<compile_context>
chip_gen: v6e
topology: v6e:2x2x1
jax: 0.10.0
libtpu: 0.0.40
codegen_flags: <defaults>
</compile_context>

<pallas_src>
import functools

import jax
import jax.numpy as jnp
from jax.experimental import pallas as pl
from jax.experimental.pallas import tpu as pltpu


# --------------------------------------------------------------------------
# Fused kernel: serial recurrence + batched decoder for one time block.
#   E_t = W_xh[token_t]  (gather, precomputed outside — exact one-hot matmul)
#   h_t = tanh(E_t + b_h + h_{t-1} @ W_hh)
#   logits_block = Y_block @ W_out + b_out      (Y_block never hits HBM)
# --------------------------------------------------------------------------
def rnn_fused_kernel(e_ref, h0_ref, whh_ref, bh_ref, wout_ref, bout_ref,
                     logits_ref, state_ref, h_scr, y_scr, *, t_block, batch):
    tb = pl.program_id(0)

    # Initialize the carried hidden state from the provided initial state.
    @pl.when(tb == 0)
    def _():
        h_scr[...] = h0_ref[0]

    h = h_scr[...]                                       # (B, H) carried state
    # Hoist the bias broadcast once per block (JAX does not CSE broadcasts).
    bh = jnp.broadcast_to(bh_ref[...], h.shape)          # (B, H)

    # Statically unrolled serial chain.  W_hh is read from its VMEM ref
    # inside the dot each step (no 64-vreg hoist of the 256x256 f32 tile).
    # TODO(synk): hold W_hh stationary in the MXU via pltpu.matmul_push_rhs /
    # matmul_acc_lhs / matmul_pop to stop re-streaming the weights every
    # timestep on this latency-bound chain.
    for s in range(t_block):
        h = jnp.tanh(
            e_ref[s] + bh
            + jnp.dot(h, whh_ref[...], preferred_element_type=jnp.float32)
        )
        y_scr[pl.ds(s * batch, batch), :] = h

    h_scr[...] = h

    # Fused decoder: one lane-dense (t_block*B, H) @ (H, V) matmul per block,
    # written straight to the logits tile (unmasked 128-lane stores).
    logits_ref[...] = (
        jnp.dot(y_scr[...], wout_ref[...], preferred_element_type=jnp.float32)
        + bout_ref[...]
    ).astype(logits_ref.dtype)

    # Final RNN state: only the last grid step writes it.
    @pl.when(tb == pl.num_programs(0) - 1)
    def _():
        state_ref[0] = h


def _largest_divisor_at_most(n, cap):
    d = max(1, min(n, cap))
    while n % d:
        d -= 1
    return d


def rnn_model_forward(inputs, state, params, *, t_block=None):
    """inputs: (batch, num_steps) int32; state: (1, batch, hidden) f32.

    params = (W_xh (V,H), W_hh (H,H), b_h (H,), W_out (H,V), b_out (V,))
    Weights are stored pre-transposed as (in_features, out_features);
    PyTorch's b_ih + b_hh are folded into the single b_h.
    Returns (logits (T*B, V), final_state (1, B, H)).
    """
    wxh, whh, bh, wout, bout = params
    vocab_size, hidden = wxh.shape
    batch, num_steps = inputs.shape

    # Embedding-row gather == one_hot(x) @ W_xh exactly (no (T,B,V) one-hot
    # tensor, no dense V-wide matmul).  NOTE: jnp.take clamps out-of-range
    # token ids, whereas a one-hot formulation would zero the row.
    tokens_tm = inputs.T                                     # (T, B) int32
    e = jnp.take(wxh, tokens_tm, axis=0)                     # (T, B, H) f32

    # Whole-sequence time block by default (one grid step, one long unrolled
    # loop).  Cap so 2x(E block) + Y scratch + 2x(logits block) stays ~<= 8
    # MiB — comfortable under v7x's 64 MiB VMEM / 32 MiB scoped default.
    if t_block is None:
        bytes_per_step = 4 * (3 * batch * hidden + 2 * batch * vocab_size)
        t_block = max(1, (8 << 20) // max(bytes_per_step, 1))
    t_block = _largest_divisor_at_most(num_steps, t_block)
    num_blocks = num_steps // t_block

    bh2 = bh.reshape(1, hidden)
    bout2 = bout.reshape(1, vocab_size)

    logits, final_state = pl.pallas_call(
        functools.partial(rnn_fused_kernel, t_block=t_block, batch=batch),
        out_shape=(
            jax.ShapeDtypeStruct((num_steps * batch, vocab_size), jnp.float32),
            jax.ShapeDtypeStruct((1, batch, hidden), jnp.float32),
        ),
        grid_spec=pltpu.PrefetchScalarGridSpec(
            num_scalar_prefetch=0,
            grid=(num_blocks,),
            in_specs=[
                pl.BlockSpec((t_block, batch, hidden), lambda t: (t, 0, 0)),  # E
                pl.BlockSpec((1, batch, hidden), lambda t: (0, 0, 0)),        # h0
                pl.BlockSpec((hidden, hidden), lambda t: (0, 0)),             # W_hh
                pl.BlockSpec((1, hidden), lambda t: (0, 0)),                  # b_h
                pl.BlockSpec((hidden, vocab_size), lambda t: (0, 0)),         # W_out
                pl.BlockSpec((1, vocab_size), lambda t: (0, 0)),              # b_out
            ],
            out_specs=[
                pl.BlockSpec((t_block * batch, vocab_size), lambda t: (t, 0)),  # logits
                pl.BlockSpec((1, batch, hidden), lambda t: (0, 0, 0)),          # state
            ],
            scratch_shapes=[
                pltpu.VMEM((batch, hidden), jnp.float32),             # carried h
                pltpu.VMEM((t_block * batch, hidden), jnp.float32),   # block Y
            ],
        ),
        compiler_params=pltpu.CompilerParams(
            dimension_semantics=("arbitrary",)),
    )(e, state, whh, bh2, wout, bout2)

    return logits, final_state


def reference_forward(inputs, state, params):
    """Plain-JAX reference (one-hot formulation, high-precision dots)."""
    wxh, whh, bh, wout, bout = params
    vocab_size = wxh.shape[0]
    hp = jax.lax.Precision.HIGHEST
    x = jax.nn.one_hot(inputs.T, vocab_size, dtype=jnp.float32)

    def step(h, xt):
        h = jnp.tanh(jnp.dot(xt, wxh, precision=hp)
                     + jnp.dot(h, whh, precision=hp) + bh)
        return h, h

    h_last, ys = jax.lax.scan(step, state[0], x)
    out = jnp.dot(ys.reshape(-1, ys.shape[-1]), wout, precision=hp) + bout
    return out, h_last[None]


if __name__ == "__main__":
    # Lane/sublane-dense shapes consistent with the module (num_hiddens=256).
    vocab_size = 128     # vocab padded to a multiple of 128 (lane-dense)
    num_hiddens = 256    # matches the spec; multiple of 128
    batch_size = 8       # multiple of 8 (f32 sublane)
    num_steps = 32

    key = jax.random.PRNGKey(0)
    k1, k2, k3, k4, k5, k6 = jax.random.split(key, 6)

    # Parameters stored pre-transposed as (in, out).
    wxh = jax.random.normal(k1, (vocab_size, num_hiddens), jnp.float32) * 0.1
    whh = jax.random.normal(k2, (num_hiddens, num_hiddens), jnp.float32) * 0.1
    bh = jax.random.normal(k3, (num_hiddens,), jnp.float32) * 0.1
    wout = jax.random.normal(k4, (num_hiddens, vocab_size), jnp.float32) * 0.1
    bout = jax.random.normal(k5, (vocab_size,), jnp.float32) * 0.1
    params = (wxh, whh, bh, wout, bout)

    inputs = jax.random.randint(k6, (batch_size, num_steps), 0, vocab_size,
                                dtype=jnp.int32)
    state0 = jnp.zeros((1, batch_size, num_hiddens), jnp.float32)  # begin_state

    out, state = rnn_model_forward(inputs, state0, params)
    out = jax.block_until_ready(out)
    state = jax.block_until_ready(state)

    ref_out, ref_state = reference_forward(inputs, state0, params)
    assert out.shape == (num_steps * batch_size, vocab_size)
    assert state.shape == (1, batch_size, num_hiddens)
    assert jnp.allclose(out, ref_out, atol=1e-4, rtol=1e-3), (
        float(jnp.max(jnp.abs(out - ref_out))))
    assert jnp.allclose(state, ref_state, atol=1e-4, rtol=1e-3), (
        float(jnp.max(jnp.abs(state - ref_state))))

    print("KERNEL_OK")
</pallas_src>

<mosaic_0001>
module attributes {stable_mosaic.version = 11 : i64} {
  func.func @rnn_fused_kernel(%arg0: i32, %arg1: memref<32x8x256xf32, #tpu.memory_space<vmem>>, %arg2: memref<1x8x256xf32, #tpu.memory_space<vmem>>, %arg3: memref<256x256xf32, #tpu.memory_space<vmem>>, %arg4: memref<1x256xf32, #tpu.memory_space<vmem>>, %arg5: memref<256x128xf32, #tpu.memory_space<vmem>>, %arg6: memref<1x128xf32, #tpu.memory_space<vmem>>, %arg7: memref<256x128xf32, #tpu.memory_space<vmem>>, %arg8: memref<1x8x256xf32, #tpu.memory_space<vmem>>, %arg9: memref<8x256xf32, #tpu.memory_space<vmem>>, %arg10: memref<256x256xf32, #tpu.memory_space<vmem>>) attributes {dimension_semantics = [#tpu.dimension_semantics<arbitrary>], iteration_bounds = array<i64: 1>, scalar_prefetch = 0 : i64, scratch_operands = 2 : i64, tpu.core_type = #tpu.core_type<tc>, window_params = [{transform_indices = @transform_0, window_bounds = array<i64: 32, 8, 256>}, {pipeline_mode = #tpu.pipeline_mode<synchronous>, transform_indices = @transform_1, window_bounds = array<i64: 1, 8, 256>}, {pipeline_mode = #tpu.pipeline_mode<synchronous>, transform_indices = @transform_2, window_bounds = array<i64: 256, 256>}, {pipeline_mode = #tpu.pipeline_mode<synchronous>, transform_indices = @transform_3, window_bounds = array<i64: 1, 256>}, {pipeline_mode = #tpu.pipeline_mode<synchronous>, transform_indices = @transform_4, window_bounds = array<i64: 256, 128>}, {pipeline_mode = #tpu.pipeline_mode<synchronous>, transform_indices = @transform_5, window_bounds = array<i64: 1, 128>}, {transform_indices = @transform_6, window_bounds = array<i64: 256, 128>}, {pipeline_mode = #tpu.pipeline_mode<synchronous>, transform_indices = @transform_7, window_bounds = array<i64: 1, 8, 256>}]} {
    %c0_i32 = arith.constant 0 : i32
    %0 = arith.cmpi eq, %arg0, %c0_i32 : i32
    %1 = arith.extui %0 : i1 to i32
    %c0_i32_0 = arith.constant 0 : i32
    %2 = arith.cmpi ne, %1, %c0_i32_0 : i32
    scf.if %2 {
      %c0_213 = arith.constant 0 : index
      %c0_214 = arith.constant 0 : index
      %c0_215 = arith.constant 0 : index
      %274 = vector.load %arg2[%c0_213, %c0_214, %c0_215] : memref<1x8x256xf32, #tpu.memory_space<vmem>>, vector<1x8x256xf32>
      %275 = vector.shape_cast %274 : vector<1x8x256xf32> to vector<8x256xf32>
      %c0_216 = arith.constant 0 : index
      %c0_217 = arith.constant 0 : index
      %276 = vector.load %arg9[%c0_216, %c0_217] : memref<8x256xf32, #tpu.memory_space<vmem>>, vector<8x256xf32>
      tpu.vector_store %arg9[%c0_216, %c0_217], %275 {strides = array<i32>} : memref<8x256xf32, #tpu.memory_space<vmem>>, vector<8x256xf32>,
    } else {
    }
    %c0 = arith.constant 0 : index
    %c0_1 = arith.constant 0 : index
    %3 = vector.load %arg9[%c0, %c0_1] : memref<8x256xf32, #tpu.memory_space<vmem>>, vector<8x256xf32>
    %c0_2 = arith.constant 0 : index
    %c0_3 = arith.constant 0 : index
    %4 = vector.load %arg4[%c0_2, %c0_3] : memref<1x256xf32, #tpu.memory_space<vmem>>, vector<1x256xf32>
    %5 = vector.shape_cast %4 : vector<1x256xf32> to vector<1x256xf32>
    %6 = vector.broadcast %5 : vector<1x256xf32> to vector<8x256xf32>
    %c0_4 = arith.constant 0 : index
    %c0_5 = arith.constant 0 : index
    %c0_6 = arith.constant 0 : index
    %7 = vector.load %arg1[%c0_4, %c0_5, %c0_6] : memref<32x8x256xf32, #tpu.memory_space<vmem>>, vector<1x8x256xf32>
    %8 = vector.shape_cast %7 : vector<1x8x256xf32> to vector<8x256xf32>
    %9 = arith.addf %8, %6 : vector<8x256xf32>
    %c0_7 = arith.constant 0 : index
    %c0_8 = arith.constant 0 : index
    %10 = vector.load %arg3[%c0_7, %c0_8] : memref<256x256xf32, #tpu.memory_space<vmem>>, vector<256x256xf32>
    %cst = arith.constant dense<0.000000e+00> : vector<8x256xf32>
    %11 = tpu.matmul %3, %10, %cst {dimension_numbers = #tpu.dot_dimension_numbers<[1], [0], [0], [1], [0, 0, 1, 1], [], []>} : vector<8x256xf32>, vector<256x256xf32>, vector<8x256xf32> -> vector<8x256xf32>
    %12 = arith.addf %9, %11 : vector<8x256xf32>
    %13 = math.tanh %12 : vector<8x256xf32>
    %c0_9 = arith.constant 0 : index
    %c0_10 = arith.constant 0 : index
    %14 = vector.load %arg10[%c0_9, %c0_10] : memref<256x256xf32, #tpu.memory_space<vmem>>, vector<8x256xf32>
    tpu.vector_store %arg10[%c0_9, %c0_10], %13 {strides = array<i32>} : memref<256x256xf32, #tpu.memory_space<vmem>>, vector<8x256xf32>,
    %c1 = arith.constant 1 : index
    %c0_11 = arith.constant 0 : index
    %c0_12 = arith.constant 0 : index
    %15 = vector.load %arg1[%c1, %c0_11, %c0_12] : memref<32x8x256xf32, #tpu.memory_space<vmem>>, vector<1x8x256xf32>
    %16 = vector.shape_cast %15 : vector<1x8x256xf32> to vector<8x256xf32>
    %17 = arith.addf %16, %6 : vector<8x256xf32>
    %c0_13 = arith.constant 0 : index
    %c0_14 = arith.constant 0 : index
    %18 = vector.load %arg3[%c0_13, %c0_14] : memref<256x256xf32, #tpu.memory_space<vmem>>, vector<256x256xf32>
    %cst_15 = arith.constant dense<0.000000e+00> : vector<8x256xf32>
    %19 = tpu.matmul %13, %18, %cst_15 {dimension_numbers = #tpu.dot_dimension_numbers<[1], [0], [0], [1], [0, 0, 1, 1], [], []>} : vector<8x256xf32>, vector<256x256xf32>, vector<8x256xf32> -> vector<8x256xf32>
    %20 = arith.addf %17, %19 : vector<8x256xf32>
    %21 = math.tanh %20 : vector<8x256xf32>
    %c8 = arith.constant 8 : index
    %c0_16 = arith.constant 0 : index
    %22 = vector.load %arg10[%c8, %c0_16] : memref<256x256xf32, #tpu.memory_space<vmem>>, vector<8x256xf32>
    tpu.vector_store %arg10[%c8, %c0_16], %21 {strides = array<i32>} : memref<256x256xf32, #tpu.memory_space<vmem>>, vector<8x256xf32>,
    %c2 = arith.constant 2 : index
    %c0_17 = arith.constant 0 : index
    %c0_18 = arith.constant 0 : index
    %23 = vector.load %arg1[%c2, %c0_17, %c0_18] : memref<32x8x256xf32, #tpu.memory_space<vmem>>, vector<1x8x256xf32>
    %24 = vector.shape_cast %23 : vector<1x8x256xf32> to vector<8x256xf32>
    %25 = arith.addf %24, %6 : vector<8x256xf32>
    %c0_19 = arith.constant 0 : index
    %c0_20 = arith.constant 0 : index
    %26 = vector.load %arg3[%c0_19, %c0_20] : memref<256x256xf32, #tpu.memory_space<vmem>>, vector<256x256xf32>
    %cst_21 = arith.constant dense<0.000000e+00> : vector<8x256xf32>
    %27 = tpu.matmul %21, %26, %cst_21 {dimension_numbers = #tpu.dot_dimension_numbers<[1], [0], [0], [1], [0, 0, 1, 1], [], []>} : vector<8x256xf32>, vector<256x256xf32>, vector<8x256xf32> -> vector<8x256xf32>
    %28 = arith.addf %25, %27 : vector<8x256xf32>
    %29 = math.tanh %28 : vector<8x256xf32>
    %c16 = arith.constant 16 : index
    %c0_22 = arith.constant 0 : index
    %30 = vector.load %arg10[%c16, %c0_22] : memref<256x256xf32, #tpu.memory_space<vmem>>, vector<8x256xf32>
    tpu.vector_store %arg10[%c16, %c0_22], %29 {strides = array<i32>} : memref<256x256xf32, #tpu.memory_space<vmem>>, vector<8x256xf32>,
    %c3 = arith.constant 3 : index
    %c0_23 = arith.constant 0 : index
    %c0_24 = arith.constant 0 : index
    %31 = vector.load %arg1[%c3, %c0_23, %c0_24] : memref<32x8x256xf32, #tpu.memory_space<vmem>>, vector<1x8x256xf32>
    %32 = vector.shape_cast %31 : vector<1x8x256xf32> to vector<8x256xf32>
    %33 = arith.addf %32, %6 : vector<8x256xf32>
    %c0_25 = arith.constant 0 : index
    %c0_26 = arith.constant 0 : index
    %34 = vector.load %arg3[%c0_25, %c0_26] : memref<256x256xf32, #tpu.memory_space<vmem>>, vector<256x256xf32>
    %cst_27 = arith.constant dense<0.000000e+00> : vector<8x256xf32>
    %35 = tpu.matmul %29, %34, %cst_27 {dimension_numbers = #tpu.dot_dimension_numbers<[1], [0], [0], [1], [0, 0, 1, 1], [], []>} : vector<8x256xf32>, vector<256x256xf32>, vector<8x256xf32> -> vector<8x256xf32>
    %36 = arith.addf %33, %35 : vector<8x256xf32>
    %37 = math.tanh %36 : vector<8x256xf32>
    %c24 = arith.constant 24 : index
    %c0_28 = arith.constant 0 : index
    %38 = vector.load %arg10[%c24, %c0_28] : memref<256x256xf32, #tpu.memory_space<vmem>>, vector<8x256xf32>
    tpu.vector_store %arg10[%c24, %c0_28], %37 {strides = array<i32>} : memref<256x256xf32, #tpu.memory_space<vmem>>, vector<8x256xf32>,
    %c4 = arith.constant 4 : index
    %c0_29 = arith.constant 0 : index
    %c0_30 = arith.constant 0 : index
    %39 = vector.load %arg1[%c4, %c0_29, %c0_30] : memref<32x8x256xf32, #tpu.memory_space<vmem>>, vector<1x8x256xf32>
    %40 = vector.shape_cast %39 : vector<1x8x256xf32> to vector<8x256xf32>
    %41 = arith.addf %40, %6 : vector<8x256xf32>
    %c0_31 = arith.constant 0 : index
    %c0_32 = arith.constant 0 : index
    %42 = vector.load %arg3[%c0_31, %c0_32] : memref<256x256xf32, #tpu.memory_space<vmem>>, vector<256x256xf32>
    %cst_33 = arith.constant dense<0.000000e+00> : vector<8x256xf32>
    %43 = tpu.matmul %37, %42, %cst_33 {dimension_numbers = #tpu.dot_dimension_numbers<[1], [0], [0], [1], [0, 0, 1, 1], [], []>} : vector<8x256xf32>, vector<256x256xf32>, vector<8x256xf32> -> vector<8x256xf32>
    %44 = arith.addf %41, %43 : vector<8x256xf32>
    %45 = math.tanh %44 : vector<8x256xf32>
    %c32 = arith.constant 32 : index
    %c0_34 = arith.constant 0 : index
    %46 = vector.load %arg10[%c32, %c0_34] : memref<256x256xf32, #tpu.memory_space<vmem>>, vector<8x256xf32>
    tpu.vector_store %arg10[%c32, %c0_34], %45 {strides = array<i32>} : memref<256x256xf32, #tpu.memory_space<vmem>>, vector<8x256xf32>,
    %c5 = arith.constant 5 : index
    %c0_35 = arith.constant 0 : index
    %c0_36 = arith.constant 0 : index
    %47 = vector.load %arg1[%c5, %c0_35, %c0_36] : memref<32x8x256xf32, #tpu.memory_space<vmem>>, vector<1x8x256xf32>
    %48 = vector.shape_cast %47 : vector<1x8x256xf32> to vector<8x256xf32>
    %49 = arith.addf %48, %6 : vector<8x256xf32>
    %c0_37 = arith.constant 0 : index
    %c0_38 = arith.constant 0 : index
    %50 = vector.load %arg3[%c0_37, %c0_38] : memref<256x256xf32, #tpu.memory_space<vmem>>, vector<256x256xf32>
    %cst_39 = arith.constant dense<0.000000e+00> : vector<8x256xf32>
    %51 = tpu.matmul %45, %50, %cst_39 {dimension_numbers = #tpu.dot_dimension_numbers<[1], [0], [0], [1], [0, 0, 1, 1], [], []>} : vector<8x256xf32>, vector<256x256xf32>, vector<8x256xf32> -> vector<8x256xf32>
    %52 = arith.addf %49, %51 : vector<8x256xf32>
    %53 = math.tanh %52 : vector<8x256xf32>
    %c40 = arith.constant 40 : index
    %c0_40 = arith.constant 0 : index
    %54 = vector.load %arg10[%c40, %c0_40] : memref<256x256xf32, #tpu.memory_space<vmem>>, vector<8x256xf32>
    tpu.vector_store %arg10[%c40, %c0_40], %53 {strides = array<i32>} : memref<256x256xf32, #tpu.memory_space<vmem>>, vector<8x256xf32>,
    %c6 = arith.constant 6 : index
    %c0_41 = arith.constant 0 : index
    %c0_42 = arith.constant 0 : index
    %55 = vector.load %arg1[%c6, %c0_41, %c0_42] : memref<32x8x256xf32, #tpu.memory_space<vmem>>, vector<1x8x256xf32>
    %56 = vector.shape_cast %55 : vector<1x8x256xf32> to vector<8x256xf32>
    %57 = arith.addf %56, %6 : vector<8x256xf32>
    %c0_43 = arith.constant 0 : index
    %c0_44 = arith.constant 0 : index
    %58 = vector.load %arg3[%c0_43, %c0_44] : memref<256x256xf32, #tpu.memory_space<vmem>>, vector<256x256xf32>
    %cst_45 = arith.constant dense<0.000000e+00> : vector<8x256xf32>
    %59 = tpu.matmul %53, %58, %cst_45 {dimension_numbers = #tpu.dot_dimension_numbers<[1], [0], [0], [1], [0, 0, 1, 1], [], []>} : vector<8x256xf32>, vector<256x256xf32>, vector<8x256xf32> -> vector<8x256xf32>
    %60 = arith.addf %57, %59 : vector<8x256xf32>
    %61 = math.tanh %60 : vector<8x256xf32>
    %c48 = arith.constant 48 : index
    %c0_46 = arith.constant 0 : index
    %62 = vector.load %arg10[%c48, %c0_46] : memref<256x256xf32, #tpu.memory_space<vmem>>, vector<8x256xf32>
    tpu.vector_store %arg10[%c48, %c0_46], %61 {strides = array<i32>} : memref<256x256xf32, #tpu.memory_space<vmem>>, vector<8x256xf32>,
    %c7 = arith.constant 7 : index
    %c0_47 = arith.constant 0 : index
    %c0_48 = arith.constant 0 : index
    %63 = vector.load %arg1[%c7, %c0_47, %c0_48] : memref<32x8x256xf32, #tpu.memory_space<vmem>>, vector<1x8x256xf32>
    %64 = vector.shape_cast %63 : vector<1x8x256xf32> to vector<8x256xf32>
    %65 = arith.addf %64, %6 : vector<8x256xf32>
    %c0_49 = arith.constant 0 : index
    %c0_50 = arith.constant 0 : index
    %66 = vector.load %arg3[%c0_49, %c0_50] : memref<256x256xf32, #tpu.memory_space<vmem>>, vector<256x256xf32>
    %cst_51 = arith.constant dense<0.000000e+00> : vector<8x256xf32>
    %67 = tpu.matmul %61, %66, %cst_51 {dimension_numbers = #tpu.dot_dimension_numbers<[1], [0], [0], [1], [0, 0, 1, 1], [], []>} : vector<8x256xf32>, vector<256x256xf32>, vector<8x256xf32> -> vector<8x256xf32>
    %68 = arith.addf %65, %67 : vector<8x256xf32>
    %69 = math.tanh %68 : vector<8x256xf32>
    %c56 = arith.constant 56 : index
    %c0_52 = arith.constant 0 : index
    %70 = vector.load %arg10[%c56, %c0_52] : memref<256x256xf32, #tpu.memory_space<vmem>>, vector<8x256xf32>
    tpu.vector_store %arg10[%c56, %c0_52], %69 {strides = array<i32>} : memref<256x256xf32, #tpu.memory_space<vmem>>, vector<8x256xf32>,
    %c8_53 = arith.constant 8 : index
    %c0_54 = arith.constant 0 : index
    %c0_55 = arith.constant 0 : index
    %71 = vector.load %arg1[%c8_53, %c0_54, %c0_55] : memref<32x8x256xf32, #tpu.memory_space<vmem>>, vector<1x8x256xf32>
    %72 = vector.shape_cast %71 : vector<1x8x256xf32> to vector<8x256xf32>
    %73 = arith.addf %72, %6 : vector<8x256xf32>
    %c0_56 = arith.constant 0 : index
    %c0_57 = arith.constant 0 : index
    %74 = vector.load %arg3[%c0_56, %c0_57] : memref<256x256xf32, #tpu.memory_space<vmem>>, vector<256x256xf32>
    %cst_58 = arith.constant dense<0.000000e+00> : vector<8x256xf32>
    %75 = tpu.matmul %69, %74, %cst_58 {dimension_numbers = #tpu.dot_dimension_numbers<[1], [0], [0], [1], [0, 0, 1, 1], [], []>} : vector<8x256xf32>, vector<256x256xf32>, vector<8x256xf32> -> vector<8x256xf32>
    %76 = arith.addf %73, %75 : vector<8x256xf32>
    %77 = math.tanh %76 : vector<8x256xf32>
    %c64 = arith.constant 64 : index
    %c0_59 = arith.constant 0 : index
    %78 = vector.load %arg10[%c64, %c0_59] : memref<256x256xf32, #tpu.memory_space<vmem>>, vector<8x256xf32>
    tpu.vector_store %arg10[%c64, %c0_59], %77 {strides = array<i32>} : memref<256x256xf32, #tpu.memory_space<vmem>>, vector<8x256xf32>,
    %c9 = arith.constant 9 : index
    %c0_60 = arith.constant 0 : index
    %c0_61 = arith.constant 0 : index
    %79 = vector.load %arg1[%c9, %c0_60, %c0_61] : memref<32x8x256xf32, #tpu.memory_space<vmem>>, vector<1x8x256xf32>
    %80 = vector.shape_cast %79 : vector<1x8x256xf32> to vector<8x256xf32>
    %81 = arith.addf %80, %6 : vector<8x256xf32>
    %c0_62 = arith.constant 0 : index
    %c0_63 = arith.constant 0 : index
    %82 = vector.load %arg3[%c0_62, %c0_63] : memref<256x256xf32, #tpu.memory_space<vmem>>, vector<256x256xf32>
    %cst_64 = arith.constant dense<0.000000e+00> : vector<8x256xf32>
    %83 = tpu.matmul %77, %82, %cst_64 {dimension_numbers = #tpu.dot_dimension_numbers<[1], [0], [0], [1], [0, 0, 1, 1], [], []>} : vector<8x256xf32>, vector<256x256xf32>, vector<8x256xf32> -> vector<8x256xf32>
    %84 = arith.addf %81, %83 : vector<8x256xf32>
    %85 = math.tanh %84 : vector<8x256xf32>
    %c72 = arith.constant 72 : index
    %c0_65 = arith.constant 0 : index
    %86 = vector.load %arg10[%c72, %c0_65] : memref<256x256xf32, #tpu.memory_space<vmem>>, vector<8x256xf32>
    tpu.vector_store %arg10[%c72, %c0_65], %85 {strides = array<i32>} : memref<256x256xf32, #tpu.memory_space<vmem>>, vector<8x256xf32>,
    %c10 = arith.constant 10 : index
    %c0_66 = arith.constant 0 : index
    %c0_67 = arith.constant 0 : index
    %87 = vector.load %arg1[%c10, %c0_66, %c0_67] : memref<32x8x256xf32, #tpu.memory_space<vmem>>, vector<1x8x256xf32>
    %88 = vector.shape_cast %87 : vector<1x8x256xf32> to vector<8x256xf32>
    %89 = arith.addf %88, %6 : vector<8x256xf32>
    %c0_68 = arith.constant 0 : index
    %c0_69 = arith.constant 0 : index
    %90 = vector.load %arg3[%c0_68, %c0_69] : memref<256x256xf32, #tpu.memory_space<vmem>>, vector<256x256xf32>
    %cst_70 = arith.constant dense<0.000000e+00> : vector<8x256xf32>
    %91 = tpu.matmul %85, %90, %cst_70 {dimension_numbers = #tpu.dot_dimension_numbers<[1], [0], [0], [1], [0, 0, 1, 1], [], []>} : vector<8x256xf32>, vector<256x256xf32>, vector<8x256xf32> -> vector<8x256xf32>
    %92 = arith.addf %89, %91 : vector<8x256xf32>
    %93 = math.tanh %92 : vector<8x256xf32>
    %c80 = arith.constant 80 : index
    %c0_71 = arith.constant 0 : index
    %94 = vector.load %arg10[%c80, %c0_71] : memref<256x256xf32, #tpu.memory_space<vmem>>, vector<8x256xf32>
    tpu.vector_store %arg10[%c80, %c0_71], %93 {strides = array<i32>} : memref<256x256xf32, #tpu.memory_space<vmem>>, vector<8x256xf32>,
    %c11 = arith.constant 11 : index
    %c0_72 = arith.constant 0 : index
    %c0_73 = arith.constant 0 : index
    %95 = vector.load %arg1[%c11, %c0_72, %c0_73] : memref<32x8x256xf32, #tpu.memory_space<vmem>>, vector<1x8x256xf32>
    %96 = vector.shape_cast %95 : vector<1x8x256xf32> to vector<8x256xf32>
    %97 = arith.addf %96, %6 : vector<8x256xf32>
    %c0_74 = arith.constant 0 : index
    %c0_75 = arith.constant 0 : index
    %98 = vector.load %arg3[%c0_74, %c0_75] : memref<256x256xf32, #tpu.memory_space<vmem>>, vector<256x256xf32>
    %cst_76 = arith.constant dense<0.000000e+00> : vector<8x256xf32>
    %99 = tpu.matmul %93, %98, %cst_76 {dimension_numbers = #tpu.dot_dimension_numbers<[1], [0], [0], [1], [0, 0, 1, 1], [], []>} : vector<8x256xf32>, vector<256x256xf32>, vector<8x256xf32> -> vector<8x256xf32>
    %100 = arith.addf %97, %99 : vector<8x256xf32>
    %101 = math.tanh %100 : vector<8x256xf32>
    %c88 = arith.constant 88 : index
    %c0_77 = arith.constant 0 : index
    %102 = vector.load %arg10[%c88, %c0_77] : memref<256x256xf32, #tpu.memory_space<vmem>>, vector<8x256xf32>
    tpu.vector_store %arg10[%c88, %c0_77], %101 {strides = array<i32>} : memref<256x256xf32, #tpu.memory_space<vmem>>, vector<8x256xf32>,
    %c12 = arith.constant 12 : index
    %c0_78 = arith.constant 0 : index
    %c0_79 = arith.constant 0 : index
    %103 = vector.load %arg1[%c12, %c0_78, %c0_79] : memref<32x8x256xf32, #tpu.memory_space<vmem>>, vector<1x8x256xf32>
    %104 = vector.shape_cast %103 : vector<1x8x256xf32> to vector<8x256xf32>
    %105 = arith.addf %104, %6 : vector<8x256xf32>
    %c0_80 = arith.constant 0 : index
    %c0_81 = arith.constant 0 : index
    %106 = vector.load %arg3[%c0_80, %c0_81] : memref<256x256xf32, #tpu.memory_space<vmem>>, vector<256x256xf32>
    %cst_82 = arith.constant dense<0.000000e+00> : vector<8x256xf32>
    %107 = tpu.matmul %101, %106, %cst_82 {dimension_numbers = #tpu.dot_dimension_numbers<[1], [0], [0], [1], [0, 0, 1, 1], [], []>} : vector<8x256xf32>, vector<256x256xf32>, vector<8x256xf32> -> vector<8x256xf32>
    %108 = arith.addf %105, %107 : vector<8x256xf32>
    %109 = math.tanh %108 : vector<8x256xf32>
    %c96 = arith.constant 96 : index
    %c0_83 = arith.constant 0 : index
    %110 = vector.load %arg10[%c96, %c0_83] : memref<256x256xf32, #tpu.memory_space<vmem>>, vector<8x256xf32>
    tpu.vector_store %arg10[%c96, %c0_83], %109 {strides = array<i32>} : memref<256x256xf32, #tpu.memory_space<vmem>>, vector<8x256xf32>,
    %c13 = arith.constant 13 : index
    %c0_84 = arith.constant 0 : index
    %c0_85 = arith.constant 0 : index
    %111 = vector.load %arg1[%c13, %c0_84, %c0_85] : memref<32x8x256xf32, #tpu.memory_space<vmem>>, vector<1x8x256xf32>
    %112 = vector.shape_cast %111 : vector<1x8x256xf32> to vector<8x256xf32>
    %113 = arith.addf %112, %6 : vector<8x256xf32>
    %c0_86 = arith.constant 0 : index
    %c0_87 = arith.constant 0 : index
    %114 = vector.load %arg3[%c0_86, %c0_87] : memref<256x256xf32, #tpu.memory_space<vmem>>, vector<256x256xf32>
    %cst_88 = arith.constant dense<0.000000e+00> : vector<8x256xf32>
    %115 = tpu.matmul %109, %114, %cst_88 {dimension_numbers = #tpu.dot_dimension_numbers<[1], [0], [0], [1], [0, 0, 1, 1], [], []>} : vector<8x256xf32>, vector<256x256xf32>, vector<8x256xf32> -> vector<8x256xf32>
    %116 = arith.addf %113, %115 : vector<8x256xf32>
    %117 = math.tanh %116 : vector<8x256xf32>
    %c104 = arith.constant 104 : index
    %c0_89 = arith.constant 0 : index
    %118 = vector.load %arg10[%c104, %c0_89] : memref<256x256xf32, #tpu.memory_space<vmem>>, vector<8x256xf32>
    tpu.vector_store %arg10[%c104, %c0_89], %117 {strides = array<i32>} : memref<256x256xf32, #tpu.memory_space<vmem>>, vector<8x256xf32>,
    %c14 = arith.constant 14 : index
    %c0_90 = arith.constant 0 : index
    %c0_91 = arith.constant 0 : index
    %119 = vector.load %arg1[%c14, %c0_90, %c0_91] : memref<32x8x256xf32, #tpu.memory_space<vmem>>, vector<1x8x256xf32>
    %120 = vector.shape_cast %119 : vector<1x8x256xf32> to vector<8x256xf32>
    %121 = arith.addf %120, %6 : vector<8x256xf32>
    %c0_92 = arith.constant 0 : index
    %c0_93 = arith.constant 0 : index
    %122 = vector.load %arg3[%c0_92, %c0_93] : memref<256x256xf32, #tpu.memory_space<vmem>>, vector<256x256xf32>
    %cst_94 = arith.constant dense<0.000000e+00> : vector<8x256xf32>
    %123 = tpu.matmul %117, %122, %cst_94 {dimension_numbers = #tpu.dot_dimension_numbers<[1], [0], [0], [1], [0, 0, 1, 1], [], []>} : vector<8x256xf32>, vector<256x256xf32>, vector<8x256xf32> -> vector<8x256xf32>
    %124 = arith.addf %121, %123 : vector<8x256xf32>
    %125 = math.tanh %124 : vector<8x256xf32>
    %c112 = arith.constant 112 : index
    %c0_95 = arith.constant 0 : index
    %126 = vector.load %arg10[%c112, %c0_95] : memref<256x256xf32, #tpu.memory_space<vmem>>, vector<8x256xf32>
    tpu.vector_store %arg10[%c112, %c0_95], %125 {strides = array<i32>} : memref<256x256xf32, #tpu.memory_space<vmem>>, vector<8x256xf32>,
    %c15 = arith.constant 15 : index
    %c0_96 = arith.constant 0 : index
    %c0_97 = arith.constant 0 : index
    %127 = vector.load %arg1[%c15, %c0_96, %c0_97] : memref<32x8x256xf32, #tpu.memory_space<vmem>>, vector<1x8x256xf32>
    %128 = vector.shape_cast %127 : vector<1x8x256xf32> to vector<8x256xf32>
    %129 = arith.addf %128, %6 : vector<8x256xf32>
    %c0_98 = arith.constant 0 : index
    %c0_99 = arith.constant 0 : index
    %130 = vector.load %arg3[%c0_98, %c0_99] : memref<256x256xf32, #tpu.memory_space<vmem>>, vector<256x256xf32>
    %cst_100 = arith.constant dense<0.000000e+00> : vector<8x256xf32>
    %131 = tpu.matmul %125, %130, %cst_100 {dimension_numbers = #tpu.dot_dimension_numbers<[1], [0], [0], [1], [0, 0, 1, 1], [], []>} : vector<8x256xf32>, vector<256x256xf32>, vector<8x256xf32> -> vector<8x256xf32>
    %132 = arith.addf %129, %131 : vector<8x256xf32>
    %133 = math.tanh %132 : vector<8x256xf32>
    %c120 = arith.constant 120 : index
    %c0_101 = arith.constant 0 : index
    %134 = vector.load %arg10[%c120, %c0_101] : memref<256x256xf32, #tpu.memory_space<vmem>>, vector<8x256xf32>
    tpu.vector_store %arg10[%c120, %c0_101], %133 {strides = array<i32>} : memref<256x256xf32, #tpu.memory_space<vmem>>, vector<8x256xf32>,
    %c16_102 = arith.constant 16 : index
    %c0_103 = arith.constant 0 : index
    %c0_104 = arith.constant 0 : index
    %135 = vector.load %arg1[%c16_102, %c0_103, %c0_104] : memref<32x8x256xf32, #tpu.memory_space<vmem>>, vector<1x8x256xf32>
    %136 = vector.shape_cast %135 : vector<1x8x256xf32> to vector<8x256xf32>
    %137 = arith.addf %136, %6 : vector<8x256xf32>
    %c0_105 = arith.constant 0 : index
    %c0_106 = arith.constant 0 : index
    %138 = vector.load %arg3[%c0_105, %c0_106] : memref<256x256xf32, #tpu.memory_space<vmem>>, vector<256x256xf32>
    %cst_107 = arith.constant dense<0.000000e+00> : vector<8x256xf32>
    %139 = tpu.matmul %133, %138, %cst_107 {dimension_numbers = #tpu.dot_dimension_numbers<[1], [0], [0], [1], [0, 0, 1, 1], [], []>} : vector<8x256xf32>, vector<256x256xf32>, vector<8x256xf32> -> vector<8x256xf32>
    %140 = arith.addf %137, %139 : vector<8x256xf32>
    %141 = math.tanh %140 : vector<8x256xf32>
    %c128 = arith.constant 128 : index
    %c0_108 = arith.constant 0 : index
    %142 = vector.load %arg10[%c128, %c0_108] : memref<256x256xf32, #tpu.memory_space<vmem>>, vector<8x256xf32>
    tpu.vector_store %arg10[%c128, %c0_108], %141 {strides = array<i32>} : memref<256x256xf32, #tpu.memory_space<vmem>>, vector<8x256xf32>,
    %c17 = arith.constant 17 : index
    %c0_109 = arith.constant 0 : index
    %c0_110 = arith.constant 0 : index
    %143 = vector.load %arg1[%c17, %c0_109, %c0_110] : memref<32x8x256xf32, #tpu.memory_space<vmem>>, vector<1x8x256xf32>
    %144 = vector.shape_cast %143 : vector<1x8x256xf32> to vector<8x256xf32>
    %145 = arith.addf %144, %6 : vector<8x256xf32>
    %c0_111 = arith.constant 0 : index
    %c0_112 = arith.constant 0 : index
    %146 = vector.load %arg3[%c0_111, %c0_112] : memref<256x256xf32, #tpu.memory_space<vmem>>, vector<256x256xf32>
    %cst_113 = arith.constant dense<0.000000e+00> : vector<8x256xf32>
    %147 = tpu.matmul %141, %146, %cst_113 {dimension_numbers = #tpu.dot_dimension_numbers<[1], [0], [0], [1], [0, 0, 1, 1], [], []>} : vector<8x256xf32>, vector<256x256xf32>, vector<8x256xf32> -> vector<8x256xf32>
    %148 = arith.addf %145, %147 : vector<8x256xf32>
    %149 = math.tanh %148 : vector<8x256xf32>
    %c136 = arith.constant 136 : index
    %c0_114 = arith.constant 0 : index
    %150 = vector.load %arg10[%c136, %c0_114] : memref<256x256xf32, #tpu.memory_space<vmem>>, vector<8x256xf32>
    tpu.vector_store %arg10[%c136, %c0_114], %149 {strides = array<i32>} : memref<256x256xf32, #tpu.memory_space<vmem>>, vector<8x256xf32>,
    %c18 = arith.constant 18 : index
    %c0_115 = arith.constant 0 : index
    %c0_116 = arith.constant 0 : index
    %151 = vector.load %arg1[%c18, %c0_115, %c0_116] : memref<32x8x256xf32, #tpu.memory_space<vmem>>, vector<1x8x256xf32>
    %152 = vector.shape_cast %151 : vector<1x8x256xf32> to vector<8x256xf32>
    %153 = arith.addf %152, %6 : vector<8x256xf32>
    %c0_117 = arith.constant 0 : index
    %c0_118 = arith.constant 0 : index
    %154 = vector.load %arg3[%c0_117, %c0_118] : memref<256x256xf32, #tpu.memory_space<vmem>>, vector<256x256xf32>
    %cst_119 = arith.constant dense<0.000000e+00> : vector<8x256xf32>
    %155 = tpu.matmul %149, %154, %cst_119 {dimension_numbers = #tpu.dot_dimension_numbers<[1], [0], [0], [1], [0, 0, 1, 1], [], []>} : vector<8x256xf32>, vector<256x256xf32>, vector<8x256xf32> -> vector<8x256xf32>
    %156 = arith.addf %153, %155 : vector<8x256xf32>
    %157 = math.tanh %156 : vector<8x256xf32>
    %c144 = arith.constant 144 : index
    %c0_120 = arith.constant 0 : index
    %158 = vector.load %arg10[%c144, %c0_120] : memref<256x256xf32, #tpu.memory_space<vmem>>, vector<8x256xf32>
    tpu.vector_store %arg10[%c144, %c0_120], %157 {strides = array<i32>} : memref<256x256xf32, #tpu.memory_space<vmem>>, vector<8x256xf32>,
    %c19 = arith.constant 19 : index
    %c0_121 = arith.constant 0 : index
    %c0_122 = arith.constant 0 : index
    %159 = vector.load %arg1[%c19, %c0_121, %c0_122] : memref<32x8x256xf32, #tpu.memory_space<vmem>>, vector<1x8x256xf32>
    %160 = vector.shape_cast %159 : vector<1x8x256xf32> to vector<8x256xf32>
    %161 = arith.addf %160, %6 : vector<8x256xf32>
    %c0_123 = arith.constant 0 : index
    %c0_124 = arith.constant 0 : index
    %162 = vector.load %arg3[%c0_123, %c0_124] : memref<256x256xf32, #tpu.memory_space<vmem>>, vector<256x256xf32>
    %cst_125 = arith.constant dense<0.000000e+00> : vector<8x256xf32>
    %163 = tpu.matmul %157, %162, %cst_125 {dimension_numbers = #tpu.dot_dimension_numbers<[1], [0], [0], [1], [0, 0, 1, 1], [], []>} : vector<8x256xf32>, vector<256x256xf32>, vector<8x256xf32> -> vector<8x256xf32>
    %164 = arith.addf %161, %163 : vector<8x256xf32>
    %165 = math.tanh %164 : vector<8x256xf32>
    %c152 = arith.constant 152 : index
    %c0_126 = arith.constant 0 : index
    %166 = vector.load %arg10[%c152, %c0_126] : memref<256x256xf32, #tpu.memory_space<vmem>>, vector<8x256xf32>
    tpu.vector_store %arg10[%c152, %c0_126], %165 {strides = array<i32>} : memref<256x256xf32, #tpu.memory_space<vmem>>, vector<8x256xf32>,
    %c20 = arith.constant 20 : index
    %c0_127 = arith.constant 0 : index
    %c0_128 = arith.constant 0 : index
    %167 = vector.load %arg1[%c20, %c0_127, %c0_128] : memref<32x8x256xf32, #tpu.memory_space<vmem>>, vector<1x8x256xf32>
    %168 = vector.shape_cast %167 : vector<1x8x256xf32> to vector<8x256xf32>
    %169 = arith.addf %168, %6 : vector<8x256xf32>
    %c0_129 = arith.constant 0 : index
    %c0_130 = arith.constant 0 : index
    %170 = vector.load %arg3[%c0_129, %c0_130] : memref<256x256xf32, #tpu.memory_space<vmem>>, vector<256x256xf32>
    %cst_131 = arith.constant dense<0.000000e+00> : vector<8x256xf32>
    %171 = tpu.matmul %165, %170, %cst_131 {dimension_numbers = #tpu.dot_dimension_numbers<[1], [0], [0], [1], [0, 0, 1, 1], [], []>} : vector<8x256xf32>, vector<256x256xf32>, vector<8x256xf32> -> vector<8x256xf32>
    %172 = arith.addf %169, %171 : vector<8x256xf32>
    %173 = math.tanh %172 : vector<8x256xf32>
    %c160 = arith.constant 160 : index
    %c0_132 = arith.constant 0 : index
    %174 = vector.load %arg10[%c160, %c0_132] : memref<256x256xf32, #tpu.memory_space<vmem>>, vector<8x256xf32>
    tpu.vector_store %arg10[%c160, %c0_132], %173 {strides = array<i32>} : memref<256x256xf32, #tpu.memory_space<vmem>>, vector<8x256xf32>,
    %c21 = arith.constant 21 : index
    %c0_133 = arith.constant 0 : index
    %c0_134 = arith.constant 0 : index
    %175 = vector.load %arg1[%c21, %c0_133, %c0_134] : memref<32x8x256xf32, #tpu.memory_space<vmem>>, vector<1x8x256xf32>
    %176 = vector.shape_cast %175 : vector<1x8x256xf32> to vector<8x256xf32>
    %177 = arith.addf %176, %6 : vector<8x256xf32>
    %c0_135 = arith.constant 0 : index
    %c0_136 = arith.constant 0 : index
    %178 = vector.load %arg3[%c0_135, %c0_136] : memref<256x256xf32, #tpu.memory_space<vmem>>, vector<256x256xf32>
    %cst_137 = arith.constant dense<0.000000e+00> : vector<8x256xf32>
    %179 = tpu.matmul %173, %178, %cst_137 {dimension_numbers = #tpu.dot_dimension_numbers<[1], [0], [0], [1], [0, 0, 1, 1], [], []>} : vector<8x256xf32>, vector<256x256xf32>, vector<8x256xf32> -> vector<8x256xf32>
    %180 = arith.addf %177, %179 : vector<8x256xf32>
    %181 = math.tanh %180 : vector<8x256xf32>
    %c168 = arith.constant 168 : index
    %c0_138 = arith.constant 0 : index
    %182 = vector.load %arg10[%c168, %c0_138] : memref<256x256xf32, #tpu.memory_space<vmem>>, vector<8x256xf32>
    tpu.vector_store %arg10[%c168, %c0_138], %181 {strides = array<i32>} : memref<256x256xf32, #tpu.memory_space<vmem>>, vector<8x256xf32>,
    %c22 = arith.constant 22 : index
    %c0_139 = arith.constant 0 : index
    %c0_140 = arith.constant 0 : index
    %183 = vector.load %arg1[%c22, %c0_139, %c0_140] : memref<32x8x256xf32, #tpu.memory_space<vmem>>, vector<1x8x256xf32>
    %184 = vector.shape_cast %183 : vector<1x8x256xf32> to vector<8x256xf32>
    %185 = arith.addf %184, %6 : vector<8x256xf32>
    %c0_141 = arith.constant 0 : index
    %c0_142 = arith.constant 0 : index
    %186 = vector.load %arg3[%c0_141, %c0_142] : memref<256x256xf32, #tpu.memory_space<vmem>>, vector<256x256xf32>
    %cst_143 = arith.constant dense<0.000000e+00> : vector<8x256xf32>
    %187 = tpu.matmul %181, %186, %cst_143 {dimension_numbers = #tpu.dot_dimension_numbers<[1], [0], [0], [1], [0, 0, 1, 1], [], []>} : vector<8x256xf32>, vector<256x256xf32>, vector<8x256xf32> -> vector<8x256xf32>
    %188 = arith.addf %185, %187 : vector<8x256xf32>
    %189 = math.tanh %188 : vector<8x256xf32>
    %c176 = arith.constant 176 : index
    %c0_144 = arith.constant 0 : index
    %190 = vector.load %arg10[%c176, %c0_144] : memref<256x256xf32, #tpu.memory_space<vmem>>, vector<8x256xf32>
    tpu.vector_store %arg10[%c176, %c0_144], %189 {strides = array<i32>} : memref<256x256xf32, #tpu.memory_space<vmem>>, vector<8x256xf32>,
    %c23 = arith.constant 23 : index
    %c0_145 = arith.constant 0 : index
    %c0_146 = arith.constant 0 : index
    %191 = vector.load %arg1[%c23, %c0_145, %c0_146] : memref<32x8x256xf32, #tpu.memory_space<vmem>>, vector<1x8x256xf32>
    %192 = vector.shape_cast %191 : vector<1x8x256xf32> to vector<8x256xf32>
    %193 = arith.addf %192, %6 : vector<8x256xf32>
    %c0_147 = arith.constant 0 : index
    %c0_148 = arith.constant 0 : index
    %194 = vector.load %arg3[%c0_147, %c0_148] : memref<256x256xf32, #tpu.memory_space<vmem>>, vector<256x256xf32>
    %cst_149 = arith.constant dense<0.000000e+00> : vector<8x256xf32>
    %195 = tpu.matmul %189, %194, %cst_149 {dimension_numbers = #tpu.dot_dimension_numbers<[1], [0], [0], [1], [0, 0, 1, 1], [], []>} : vector<8x256xf32>, vector<256x256xf32>, vector<8x256xf32> -> vector<8x256xf32>
    %196 = arith.addf %193, %195 : vector<8x256xf32>
    %197 = math.tanh %196 : vector<8x256xf32>
    %c184 = arith.constant 184 : index
    %c0_150 = arith.constant 0 : index
    %198 = vector.load %arg10[%c184, %c0_150] : memref<256x256xf32, #tpu.memory_space<vmem>>, vector<8x256xf32>
    tpu.vector_store %arg10[%c184, %c0_150], %197 {strides = array<i32>} : memref<256x256xf32, #tpu.memory_space<vmem>>, vector<8x256xf32>,
    %c24_151 = arith.constant 24 : index
    %c0_152 = arith.constant 0 : index
    %c0_153 = arith.constant 0 : index
    %199 = vector.load %arg1[%c24_151, %c0_152, %c0_153] : memref<32x8x256xf32, #tpu.memory_space<vmem>>, vector<1x8x256xf32>
    %200 = vector.shape_cast %199 : vector<1x8x256xf32> to vector<8x256xf32>
    %201 = arith.addf %200, %6 : vector<8x256xf32>
    %c0_154 = arith.constant 0 : index
    %c0_155 = arith.constant 0 : index
    %202 = vector.load %arg3[%c0_154, %c0_155] : memref<256x256xf32, #tpu.memory_space<vmem>>, vector<256x256xf32>
    %cst_156 = arith.constant dense<0.000000e+00> : vector<8x256xf32>
    %203 = tpu.matmul %197, %202, %cst_156 {dimension_numbers = #tpu.dot_dimension_numbers<[1], [0], [0], [1], [0, 0, 1, 1], [], []>} : vector<8x256xf32>, vector<256x256xf32>, vector<8x256xf32> -> vector<8x256xf32>
    %204 = arith.addf %201, %203 : vector<8x256xf32>
    %205 = math.tanh %204 : vector<8x256xf32>
    %c192 = arith.constant 192 : index
    %c0_157 = arith.constant 0 : index
    %206 = vector.load %arg10[%c192, %c0_157] : memref<256x256xf32, #tpu.memory_space<vmem>>, vector<8x256xf32>
    tpu.vector_store %arg10[%c192, %c0_157], %205 {strides = array<i32>} : memref<256x256xf32, #tpu.memory_space<vmem>>, vector<8x256xf32>,
    %c25 = arith.constant 25 : index
    %c0_158 = arith.constant 0 : index
    %c0_159 = arith.constant 0 : index
    %207 = vector.load %arg1[%c25, %c0_158, %c0_159] : memref<32x8x256xf32, #tpu.memory_space<vmem>>, vector<1x8x256xf32>
    %208 = vector.shape_cast %207 : vector<1x8x256xf32> to vector<8x256xf32>
    %209 = arith.addf %208, %6 : vector<8x256xf32>
    %c0_160 = arith.constant 0 : index
    %c0_161 = arith.constant 0 : index
    %210 = vector.load %arg3[%c0_160, %c0_161] : memref<256x256xf32, #tpu.memory_space<vmem>>, vector<256x256xf32>
    %cst_162 = arith.constant dense<0.000000e+00> : vector<8x256xf32>
    %211 = tpu.matmul %205, %210, %cst_162 {dimension_numbers = #tpu.dot_dimension_numbers<[1], [0], [0], [1], [0, 0, 1, 1], [], []>} : vector<8x256xf32>, vector<256x256xf32>, vector<8x256xf32> -> vector<8x256xf32>
    %212 = arith.addf %209, %211 : vector<8x256xf32>
    %213 = math.tanh %212 : vector<8x256xf32>
    %c200 = arith.constant 200 : index
    %c0_163 = arith.constant 0 : index
    %214 = vector.load %arg10[%c200, %c0_163] : memref<256x256xf32, #tpu.memory_space<vmem>>, vector<8x256xf32>
    tpu.vector_store %arg10[%c200, %c0_163], %213 {strides = array<i32>} : memref<256x256xf32, #tpu.memory_space<vmem>>, vector<8x256xf32>,
    %c26 = arith.constant 26 : index
    %c0_164 = arith.constant 0 : index
    %c0_165 = arith.constant 0 : index
    %215 = vector.load %arg1[%c26, %c0_164, %c0_165] : memref<32x8x256xf32, #tpu.memory_space<vmem>>, vector<1x8x256xf32>
    %216 = vector.shape_cast %215 : vector<1x8x256xf32> to vector<8x256xf32>
    %217 = arith.addf %216, %6 : vector<8x256xf32>
    %c0_166 = arith.constant 0 : index
    %c0_167 = arith.constant 0 : index
    %218 = vector.load %arg3[%c0_166, %c0_167] : memref<256x256xf32, #tpu.memory_space<vmem>>, vector<256x256xf32>
    %cst_168 = arith.constant dense<0.000000e+00> : vector<8x256xf32>
    %219 = tpu.matmul %213, %218, %cst_168 {dimension_numbers = #tpu.dot_dimension_numbers<[1], [0], [0], [1], [0, 0, 1, 1], [], []>} : vector<8x256xf32>, vector<256x256xf32>, vector<8x256xf32> -> vector<8x256xf32>
    %220 = arith.addf %217, %219 : vector<8x256xf32>
    %221 = math.tanh %220 : vector<8x256xf32>
    %c208 = arith.constant 208 : index
    %c0_169 = arith.constant 0 : index
    %222 = vector.load %arg10[%c208, %c0_169] : memref<256x256xf32, #tpu.memory_space<vmem>>, vector<8x256xf32>
    tpu.vector_store %arg10[%c208, %c0_169], %221 {strides = array<i32>} : memref<256x256xf32, #tpu.memory_space<vmem>>, vector<8x256xf32>,
    %c27 = arith.constant 27 : index
    %c0_170 = arith.constant 0 : index
    %c0_171 = arith.constant 0 : index
    %223 = vector.load %arg1[%c27, %c0_170, %c0_171] : memref<32x8x256xf32, #tpu.memory_space<vmem>>, vector<1x8x256xf32>
    %224 = vector.shape_cast %223 : vector<1x8x256xf32> to vector<8x256xf32>
    %225 = arith.addf %224, %6 : vector<8x256xf32>
    %c0_172 = arith.constant 0 : index
    %c0_173 = arith.constant 0 : index
    %226 = vector.load %arg3[%c0_172, %c0_173] : memref<256x256xf32, #tpu.memory_space<vmem>>, vector<256x256xf32>
    %cst_174 = arith.constant dense<0.000000e+00> : vector<8x256xf32>
    %227 = tpu.matmul %221, %226, %cst_174 {dimension_numbers = #tpu.dot_dimension_numbers<[1], [0], [0], [1], [0, 0, 1, 1], [], []>} : vector<8x256xf32>, vector<256x256xf32>, vector<8x256xf32> -> vector<8x256xf32>
    %228 = arith.addf %225, %227 : vector<8x256xf32>
    %229 = math.tanh %228 : vector<8x256xf32>
    %c216 = arith.constant 216 : index
    %c0_175 = arith.constant 0 : index
    %230 = vector.load %arg10[%c216, %c0_175] : memref<256x256xf32, #tpu.memory_space<vmem>>, vector<8x256xf32>
    tpu.vector_store %arg10[%c216, %c0_175], %229 {strides = array<i32>} : memref<256x256xf32, #tpu.memory_space<vmem>>, vector<8x256xf32>,
    %c28 = arith.constant 28 : index
    %c0_176 = arith.constant 0 : index
    %c0_177 = arith.constant 0 : index
    %231 = vector.load %arg1[%c28, %c0_176, %c0_177] : memref<32x8x256xf32, #tpu.memory_space<vmem>>, vector<1x8x256xf32>
    %232 = vector.shape_cast %231 : vector<1x8x256xf32> to vector<8x256xf32>
    %233 = arith.addf %232, %6 : vector<8x256xf32>
    %c0_178 = arith.constant 0 : index
    %c0_179 = arith.constant 0 : index
    %234 = vector.load %arg3[%c0_178, %c0_179] : memref<256x256xf32, #tpu.memory_space<vmem>>, vector<256x256xf32>
    %cst_180 = arith.constant dense<0.000000e+00> : vector<8x256xf32>
    %235 = tpu.matmul %229, %234, %cst_180 {dimension_numbers = #tpu.dot_dimension_numbers<[1], [0], [0], [1], [0, 0, 1, 1], [], []>} : vector<8x256xf32>, vector<256x256xf32>, vector<8x256xf32> -> vector<8x256xf32>
    %236 = arith.addf %233, %235 : vector<8x256xf32>
    %237 = math.tanh %236 : vector<8x256xf32>
    %c224 = arith.constant 224 : index
    %c0_181 = arith.constant 0 : index
    %238 = vector.load %arg10[%c224, %c0_181] : memref<256x256xf32, #tpu.memory_space<vmem>>, vector<8x256xf32>
    tpu.vector_store %arg10[%c224, %c0_181], %237 {strides = array<i32>} : memref<256x256xf32, #tpu.memory_space<vmem>>, vector<8x256xf32>,
    %c29 = arith.constant 29 : index
    %c0_182 = arith.constant 0 : index
    %c0_183 = arith.constant 0 : index
    %239 = vector.load %arg1[%c29, %c0_182, %c0_183] : memref<32x8x256xf32, #tpu.memory_space<vmem>>, vector<1x8x256xf32>
    %240 = vector.shape_cast %239 : vector<1x8x256xf32> to vector<8x256xf32>
    %241 = arith.addf %240, %6 : vector<8x256xf32>
    %c0_184 = arith.constant 0 : index
    %c0_185 = arith.constant 0 : index
    %242 = vector.load %arg3[%c0_184, %c0_185] : memref<256x256xf32, #tpu.memory_space<vmem>>, vector<256x256xf32>
    %cst_186 = arith.constant dense<0.000000e+00> : vector<8x256xf32>
    %243 = tpu.matmul %237, %242, %cst_186 {dimension_numbers = #tpu.dot_dimension_numbers<[1], [0], [0], [1], [0, 0, 1, 1], [], []>} : vector<8x256xf32>, vector<256x256xf32>, vector<8x256xf32> -> vector<8x256xf32>
    %244 = arith.addf %241, %243 : vector<8x256xf32>
    %245 = math.tanh %244 : vector<8x256xf32>
    %c232 = arith.constant 232 : index
    %c0_187 = arith.constant 0 : index
    %246 = vector.load %arg10[%c232, %c0_187] : memref<256x256xf32, #tpu.memory_space<vmem>>, vector<8x256xf32>
    tpu.vector_store %arg10[%c232, %c0_187], %245 {strides = array<i32>} : memref<256x256xf32, #tpu.memory_space<vmem>>, vector<8x256xf32>,
    %c30 = arith.constant 30 : index
    %c0_188 = arith.constant 0 : index
    %c0_189 = arith.constant 0 : index
    %247 = vector.load %arg1[%c30, %c0_188, %c0_189] : memref<32x8x256xf32, #tpu.memory_space<vmem>>, vector<1x8x256xf32>
    %248 = vector.shape_cast %247 : vector<1x8x256xf32> to vector<8x256xf32>
    %249 = arith.addf %248, %6 : vector<8x256xf32>
    %c0_190 = arith.constant 0 : index
    %c0_191 = arith.constant 0 : index
    %250 = vector.load %arg3[%c0_190, %c0_191] : memref<256x256xf32, #tpu.memory_space<vmem>>, vector<256x256xf32>
    %cst_192 = arith.constant dense<0.000000e+00> : vector<8x256xf32>
    %251 = tpu.matmul %245, %250, %cst_192 {dimension_numbers = #tpu.dot_dimension_numbers<[1], [0], [0], [1], [0, 0, 1, 1], [], []>} : vector<8x256xf32>, vector<256x256xf32>, vector<8x256xf32> -> vector<8x256xf32>
    %252 = arith.addf %249, %251 : vector<8x256xf32>
    %253 = math.tanh %252 : vector<8x256xf32>
    %c240 = arith.constant 240 : index
    %c0_193 = arith.constant 0 : index
    %254 = vector.load %arg10[%c240, %c0_193] : memref<256x256xf32, #tpu.memory_space<vmem>>, vector<8x256xf32>
    tpu.vector_store %arg10[%c240, %c0_193], %253 {strides = array<i32>} : memref<256x256xf32, #tpu.memory_space<vmem>>, vector<8x256xf32>,
    %c31 = arith.constant 31 : index
    %c0_194 = arith.constant 0 : index
    %c0_195 = arith.constant 0 : index
    %255 = vector.load %arg1[%c31, %c0_194, %c0_195] : memref<32x8x256xf32, #tpu.memory_space<vmem>>, vector<1x8x256xf32>
    %256 = vector.shape_cast %255 : vector<1x8x256xf32> to vector<8x256xf32>
    %257 = arith.addf %256, %6 : vector<8x256xf32>
    %c0_196 = arith.constant 0 : index
    %c0_197 = arith.constant 0 : index
    %258 = vector.load %arg3[%c0_196, %c0_197] : memref<256x256xf32, #tpu.memory_space<vmem>>, vector<256x256xf32>
    %cst_198 = arith.constant dense<0.000000e+00> : vector<8x256xf32>
    %259 = tpu.matmul %253, %258, %cst_198 {dimension_numbers = #tpu.dot_dimension_numbers<[1], [0], [0], [1], [0, 0, 1, 1], [], []>} : vector<8x256xf32>, vector<256x256xf32>, vector<8x256xf32> -> vector<8x256xf32>
    %260 = arith.addf %257, %259 : vector<8x256xf32>
    %261 = math.tanh %260 : vector<8x256xf32>
    %c248 = arith.constant 248 : index
    %c0_199 = arith.constant 0 : index
    %262 = vector.load %arg10[%c248, %c0_199] : memref<256x256xf32, #tpu.memory_space<vmem>>, vector<8x256xf32>
    tpu.vector_store %arg10[%c248, %c0_199], %261 {strides = array<i32>} : memref<256x256xf32, #tpu.memory_space<vmem>>, vector<8x256xf32>,
    %c0_200 = arith.constant 0 : index
    %c0_201 = arith.constant 0 : index
    %263 = vector.load %arg9[%c0_200, %c0_201] : memref<8x256xf32, #tpu.memory_space<vmem>>, vector<8x256xf32>
    tpu.vector_store %arg9[%c0_200, %c0_201], %261 {strides = array<i32>} : memref<8x256xf32, #tpu.memory_space<vmem>>, vector<8x256xf32>,
    %c0_202 = arith.constant 0 : index
    %c0_203 = arith.constant 0 : index
    %264 = vector.load %arg10[%c0_202, %c0_203] : memref<256x256xf32, #tpu.memory_space<vmem>>, vector<256x256xf32>
    %c0_204 = arith.constant 0 : index
    %c0_205 = arith.constant 0 : index
    %265 = vector.load %arg5[%c0_204, %c0_205] : memref<256x128xf32, #tpu.memory_space<vmem>>, vector<256x128xf32>
    %cst_206 = arith.constant dense<0.000000e+00> : vector<256x128xf32>
    %266 = tpu.matmul %264, %265, %cst_206 {dimension_numbers = #tpu.dot_dimension_numbers<[1], [0], [0], [1], [0, 0, 1, 1], [], []>} : vector<256x256xf32>, vector<256x128xf32>, vector<256x128xf32> -> vector<256x128xf32>
    %c0_207 = arith.constant 0 : index
    %c0_208 = arith.constant 0 : index
    %267 = vector.load %arg6[%c0_207, %c0_208] : memref<1x128xf32, #tpu.memory_space<vmem>>, vector<1x128xf32>
    %268 = vector.broadcast %267 : vector<1x128xf32> to vector<256x128xf32>
    %269 = arith.addf %266, %268 : vector<256x128xf32>
    %c0_209 = arith.constant 0 : index
    %c0_210 = arith.constant 0 : index
    %270 = vector.load %arg7[%c0_209, %c0_210] : memref<256x128xf32, #tpu.memory_space<vmem>>, vector<256x128xf32>
    tpu.vector_store %arg7[%c0_209, %c0_210], %269 {strides = array<i32>} : memref<256x128xf32, #tpu.memory_space<vmem>>, vector<256x128xf32>,
    %c0_i32_211 = arith.constant 0 : i32
    %271 = arith.cmpi eq, %arg0, %c0_i32_211 : i32
    %272 = arith.extui %271 : i1 to i32
    %c0_i32_212 = arith.constant 0 : i32
    %273 = arith.cmpi ne, %272, %c0_i32_212 : i32
    scf.if %273 {
      %c0_213 = arith.constant 0 : index
      %c0_214 = arith.constant 0 : index
      %c0_215 = arith.constant 0 : index
      %274 = vector.load %arg8[%c0_213, %c0_214, %c0_215] : memref<1x8x256xf32, #tpu.memory_space<vmem>>, vector<1x8x256xf32>
      %275 = vector.shape_cast %274 : vector<1x8x256xf32> to vector<8x256xf32>
      %276 = vector.shape_cast %261 : vector<8x256xf32> to vector<1x8x256xf32>
      tpu.vector_store %arg8[%c0_213, %c0_214, %c0_215], %276 {strides = array<i32>} : memref<1x8x256xf32, #tpu.memory_space<vmem>>, vector<1x8x256xf32>,
    } else {
    }
    return
  }
  func.func @transform_0(%arg0: i32) -> (i32, i32, i32) {
    %c0_i32 = arith.constant 0 : i32
    %c0_i32_0 = arith.constant 0 : i32
    %c0_i32_1 = arith.constant 0 : i32
    return %arg0, %c0_i32, %c0_i32_0 : i32, i32, i32
  }
  func.func @transform_1(%arg0: i32) -> (i32, i32, i32) {
    %c0_i32 = arith.constant 0 : i32
    %c0_i32_0 = arith.constant 0 : i32
    %c0_i32_1 = arith.constant 0 : i32
    %c0_i32_2 = arith.constant 0 : i32
    return %c0_i32, %c0_i32_0, %c0_i32_1 : i32, i32, i32
  }
  func.func @transform_2(%arg0: i32) -> (i32, i32) {
    %c0_i32 = arith.constant 0 : i32
    %c0_i32_0 = arith.constant 0 : i32
    %c0_i32_1 = arith.constant 0 : i32
    return %c0_i32, %c0_i32_0 : i32, i32
  }
  func.func @transform_3(%arg0: i32) -> (i32, i32) {
    %c0_i32 = arith.constant 0 : i32
    %c0_i32_0 = arith.constant 0 : i32
    %c0_i32_1 = arith.constant 0 : i32
    return %c0_i32, %c0_i32_0 : i32, i32
  }
  func.func @transform_4(%arg0: i32) -> (i32, i32) {
    %c0_i32 = arith.constant 0 : i32
    %c0_i32_0 = arith.constant 0 : i32
    %c0_i32_1 = arith.constant 0 : i32
    return %c0_i32, %c0_i32_0 : i32, i32
  }
  func.func @transform_5(%arg0: i32) -> (i32, i32) {
    %c0_i32 = arith.constant 0 : i32
    %c0_i32_0 = arith.constant 0 : i32
    %c0_i32_1 = arith.constant 0 : i32
    return %c0_i32, %c0_i32_0 : i32, i32
  }
  func.func @transform_6(%arg0: i32) -> (i32, i32) {
    %c0_i32 = arith.constant 0 : i32
    %c0_i32_0 = arith.constant 0 : i32
    return %arg0, %c0_i32 : i32, i32
  }
  func.func @transform_7(%arg0: i32) -> (i32, i32, i32) {
    %c0_i32 = arith.constant 0 : i32
    %c0_i32_0 = arith.constant 0 : i32
    %c0_i32_1 = arith.constant 0 : i32
    %c0_i32_2 = arith.constant 0 : i32
    return %c0_i32, %c0_i32_0, %c0_i32_1 : i32, i32, i32
  }
}

</mosaic_0001>

<bundles_post_ra>
// kernel: tpu_custom_call.1
= control target key start
LH: loop header
LB: loop body
LE: loop exit
PB: predicated region body
PF: predicated region fallthrough
CT: control target
= control target key end

     0   :  { %13 = vsyncpa [#allocation5], 0  ;;  %s8906_s0 = inlined_call_operand.hbm [shape: f32[32,8,256], index: 0, kind: input, shape index: {}]   ;;  %s8907_s1 = inlined_call_operand.hbm [shape: f32[1,8,256], index: 1, kind: input, shape index: {}]   ;;  %s8908_s2 = inlined_call_operand.hbm [shape: f32[256,256], index: 2, kind: input, shape index: {}]   ;;  %s8909_s3 = inlined_call_operand.vmem [shape: f32[1,256], index: 3, kind: input, shape index: {}]   ;;  %s8910_s4 = inlined_call_operand.hbm [shape: f32[256,128], index: 4, kind: input, shape index: {}]   ;;  %s8911_s5 = inlined_call_operand.vmem [shape: f32[1,128], index: 5, kind: input, shape index: {}]   ;;  %s8912_s6 = inlined_call_operand.hbm [shape: f32[256,128], index: 6, kind: output, shape index: {0}]   ;;  %s8913_s7 = inlined_call_operand.hbm [shape: f32[1,8,256], index: 7, kind: output, shape index: {1}]  }
   0x1   :  { %14 = vsyncpa [#allocation8], 0 }
   0x2   :  { %15 = vsyncpa [#allocation11], 0 }
   0x3   :  { %16 = vsyncpa [#allocation6], 0 }
   0x4   :  { %17 = vsyncpa [#allocation14], 0  ;;  %s5443_s24 = smov [#allocation7]   ;;  %s5444_s26 = smov [#allocation4]  }
   0x5   :  { %s36_s25 = sshll.u32 %s5443_s24, 4  ;;  %s23_s27 = sshll.u32 %s5444_s26, 4  ;;  %s37_s25 = int_to_ptr.vmem [resolvable:$true] %s36_s25  ;;  %s24_s27 = int_to_ptr.vmem [resolvable:$true] %s23_s27 }
   0x6   :  { %s5321_s28 = scalar_lea.vmem %s37_s25, 256  ;;  %p5326_p1 = scmp.lt.s32.totalorder %s37_s25, %s37_s25 }
   0x7   :  { %p5322_p0 = scmp.ne.s32.totalorder %s37_s25, %s5321_s28  ;;  %p5327_p2 = scmp.lt.s32.totalorder %s5321_s28, %s5321_s28 }
   0x9   :  { %p5328_p3 = por %p5327_p2, %p5326_p1 }
   0xb   :  { %p5329_p4 = pnand %p5328_p3, %p5322_p0 }
   0xd   :  { %5332 = shalt.err (!%p5329_p4)
}
   0xe   :  { %39 = dma.hbm_to_vmem [thread:$0]  %s8907_s1, 256, %s37_s25, [#allocation8]  }
   0xf   :  { %s5341_s8 = scalar_lea.vmem %s24_s27, 8192  ;;  %p5346_p6 = scmp.lt.s32.totalorder %s24_s27, %s24_s27 }
  0x10   :  { %p5342_p5 = scmp.ne.s32.totalorder %s24_s27, %s5341_s8  ;;  %p5347_p7 = scmp.lt.s32.totalorder %s5341_s8, %s5341_s8 }
  0x12   :  { %p5348_p8 = por %p5347_p7, %p5346_p6 }
  0x14   :  { %p5349_p9 = pnand %p5348_p8, %p5342_p5 }
  0x16   :  { %5352 = shalt.err (!%p5349_p9)
}
  0x17   :  { %s5445_s9 = smov 256   ;;  %s5446_s10 = smov 16  }
  0x18   :  { %29 = dma.hbm_to_vmem [thread:$0]  %s8906_s0, 8192, %s24_s27, [#allocation5], %s5445_s9, %s5445_s9, %s5446_s10  }
  0x19   :  { %s5447_s13 = smov [#allocation9]   ;;  %s5448_s15 = smov [#allocation10]  }
  0x1a   :  { %s45_s14 = sshll.u32 %s5447_s13, 4  ;;  %s59_s16 = sshll.u32 %s5448_s15, 4  ;;  %s46_s14 = int_to_ptr.vmem [resolvable:$true] %s45_s14  ;;  %s60_s16 = int_to_ptr.vmem [resolvable:$true] %s59_s16 }
  0x1b   :  { %s5361_s1 = scalar_lea.vmem %s46_s14, 8192  ;;  %p5366_p11 = scmp.lt.s32.totalorder %s46_s14, %s46_s14 }
  0x1c   :  { %p5362_p10 = scmp.ne.s32.totalorder %s46_s14, %s5361_s1  ;;  %p5367_p12 = scmp.lt.s32.totalorder %s5361_s1, %s5361_s1 }
  0x1e   :  { %p5368_p13 = por %p5367_p12, %p5366_p11 }
  0x20   :  { %p5369_p0 = pnand %p5368_p13, %p5362_p10 }
  0x22   :  { %5372 = shalt.err (!%p5369_p0)
}
  0x23   :  { %51 = dma.hbm_to_vmem [thread:$0]  %s8908_s2, 8192, %s46_s14, [#allocation8], %s5445_s9, %s5445_s9, %s5446_s10  }
  0x24   :  { %s5381_s19 = scalar_lea.vmem %s60_s16, 4096  ;;  %p5386_p2 = scmp.lt.s32.totalorder %s60_s16, %s60_s16 }
  0x25   :  { %p5382_p1 = scmp.ne.s32.totalorder %s60_s16, %s5381_s19  ;;  %p5387_p3 = scmp.lt.s32.totalorder %s5381_s19, %s5381_s19 }
  0x27   :  { %p5388_p4 = por %p5387_p3, %p5386_p2 }
  0x29   :  { %p5389_p5 = pnand %p5388_p4, %p5382_p1 }
  0x2b   :  { %5392 = shalt.err (!%p5389_p5)
}
  0x2c   :  { %s5449_s0 = smov 128   ;;  %s5450_s20 = smov 8  }
  0x2d   :  { %65 = dma.hbm_to_vmem [thread:$0]  %s8910_s4, 4096, %s60_s16, [#allocation11], %s5449_s0, %s5449_s0, %s5450_s20  }
  0x2e   :  { %5433 = dma.done.wait [#allocation5], 8192  }
  0x2f   :  { %5434 = vsyncadd [#allocation5], 4294959104 }
  0x30   :  { %5435 = dma.done.wait [#allocation8], 8448  }
  0x31   :  { %5436 = vsyncadd [#allocation8], 4294958848 }
  0x32   :  { %5437 = dma.done.wait [#allocation11], 4096  }
  0x33   :  { %5438 = vsyncadd [#allocation11], 4294963200  ;;  %v5509_v0 = vld [vmem:[#allocation9 + $0xf8] sm:$0xff]  ;;  %v5511_v1 = vld [vmem:[#allocation9 + $0xf0] sm:$0xff] }
  0x34   :  { %v5513_v2 = vld [vmem:[#allocation9 + $0xe8] sm:$0xff]  ;;  %170 = vmatprep.subr.mxu1 %v5509_v0  ;;  %v5516_v3 = vld [vmem:[#allocation9 + $0xe0] sm:$0xff]  ;;  %462 = vmatprep.subr.mxu0 %v5509_v0  ;;  %v5520_v4 = vld [vmem:[#allocation9 + $0xd8] sm:$0xff] }
  0x35   :  { %171 = vmatpush1.msra.mxu1 %v5511_v1  ;;  %463 = vmatpush1.msra.mxu0 %v5511_v1  ;;  %v5524_v5 = vld [vmem:[#allocation9 + $0xd0] sm:$0xff]  ;;  %v5528_v6 = vld [vmem:[#allocation9 + $0xc8] sm:$0xff]  ;;  %v5532_v7 = vld [vmem:[#allocation9 + $0xc0] sm:$0xff] }
  0x36   :  { %172 = vmatprep.subr.mxu1 %v5513_v2  ;;  %464 = vmatprep.subr.mxu0 %v5513_v2  ;;  %v5536_v8 = vld [vmem:[#allocation9 + $0xb8] sm:$0xff]  ;;  %v5540_v9 = vld [vmem:[#allocation9 + $0xb0] sm:$0xff]  ;;  %v5544_v10 = vld [vmem:[#allocation9 + $0xa8] sm:$0xff] }
  0x37   :  { %173 = vmatpush1.msra.mxu1 %v5516_v3  ;;  %465 = vmatpush1.msra.mxu0 %v5516_v3  ;;  %v5548_v11 = vld [vmem:[#allocation9 + $0xa0] sm:$0xff]  ;;  %v5552_v12 = vld [vmem:[#allocation9 + $0x98] sm:$0xff]  ;;  %v5556_v13 = vld [vmem:[#allocation9 + $0x90] sm:$0xff] }
  0x38   :  { %174 = vmatprep.subr.mxu1 %v5520_v4  ;;  %466 = vmatprep.subr.mxu0 %v5520_v4  ;;  %v5560_v14 = vld [vmem:[#allocation9 + $0x88] sm:$0xff]  ;;  %v5564_v15 = vld [vmem:[#allocation9 + $0x80] sm:$0xff]  ;;  %v5568_v16 = vld [vmem:[#allocation9 + $0x78] sm:$0xff] }
  0x39   :  { %175 = vmatpush1.msra.mxu1 %v5524_v5  ;;  %467 = vmatpush1.msra.mxu0 %v5524_v5  ;;  %v5572_v17 = vld [vmem:[#allocation9 + $0x70] sm:$0xff]  ;;  %v5576_v18 = vld [vmem:[#allocation9 + $0x68] sm:$0xff]  ;;  %v5580_v19 = vld [vmem:[#allocation9 + $0x60] sm:$0xff] }
  0x3a   :  { %176 = vmatprep.subr.mxu1 %v5528_v6  ;;  %468 = vmatprep.subr.mxu0 %v5528_v6  ;;  %v5584_v20 = vld [vmem:[#allocation9 + $0x58] sm:$0xff]  ;;  %v5588_v21 = vld [vmem:[#allocation9 + $0x50] sm:$0xff]  ;;  %v5592_v22 = vld [vmem:[#allocation9 + $0x48] sm:$0xff] }
  0x3b   :  { %177 = vmatpush1.msra.mxu1 %v5532_v7  ;;  %469 = vmatpush1.msra.mxu0 %v5532_v7  ;;  %v5596_v23 = vld [vmem:[#allocation9 + $0x40] sm:$0xff]  ;;  %v85_v24 = vld [vmem:[#allocation7 + $0x8] sm:$0xff]  ;;  %v5603_v26 = vld [vmem:[#allocation9 + $0x30] sm:$0xff] }
  0x3c   :  { %178 = vmatprep.subr.mxu1 %v5536_v8  ;;  %470 = vmatprep.subr.mxu0 %v5536_v8  ;;  %v5600_v25 = vld [vmem:[#allocation9 + $0x38] sm:$0xff]  ;;  %v5607_v27 = vld [vmem:[#allocation9 + $0x28] sm:$0xff]  ;;  %v5611_v28 = vld [vmem:[#allocation9 + $0x20] sm:$0xff] }
  0x3d   :  { %179 = vmatpush1.msra.mxu1 %v5540_v9  ;;  %471 = vmatpush1.msra.mxu0 %v5540_v9  ;;  %v5615_v29 = vld [vmem:[#allocation9 + $0x18] sm:$0xff]  ;;  %v5619_v30 = vld [vmem:[#allocation9 + $0x10] sm:$0xff]  ;;  %v5623_v31 = vld [vmem:[#allocation9 + $0x8] sm:$0xff] }
  0x3e   :  { %180 = vmatprep.subr.mxu1 %v5544_v10  ;;  %472 = vmatprep.subr.mxu0 %v5544_v10  ;;  %v5627_v32 = vld [vmem:[#allocation9] sm:$0xff]  ;;  %v5631_v33 = vld [vmem:[#allocation9 + $0x1f8] sm:$0xff]  ;;  %v5635_v34 = vld [vmem:[#allocation9 + $0x1f0] sm:$0xff] }
  0x3f   :  { %181 = vmatpush1.msra.mxu1 %v5548_v11  ;;  %473 = vmatpush1.msra.mxu0 %v5548_v11  ;;  %v5639_v35 = vld [vmem:[#allocation9 + $0x1e8] sm:$0xff]  ;;  %v5643_v36 = vld [vmem:[#allocation9 + $0x1e0] sm:$0xff]  ;;  %v5647_v37 = vld [vmem:[#allocation9 + $0x1d8] sm:$0xff] }
  0x40   :  { %182 = vmatprep.subr.mxu1 %v5552_v12  ;;  %474 = vmatprep.subr.mxu0 %v5552_v12  ;;  %v5651_v38 = vld [vmem:[#allocation9 + $0x1d0] sm:$0xff]  ;;  %v5655_v39 = vld [vmem:[#allocation9 + $0x1c8] sm:$0xff]  ;;  %v5659_v40 = vld [vmem:[#allocation9 + $0x1c0] sm:$0xff] }
  0x41   :  { %183 = vmatpush1.msra.mxu1 %v5556_v13  ;;  %475 = vmatpush1.msra.mxu0 %v5556_v13  ;;  %v5663_v41 = vld [vmem:[#allocation9 + $0x1b8] sm:$0xff]  ;;  %v5667_v42 = vld [vmem:[#allocation9 + $0x1b0] sm:$0xff]  ;;  %v5671_v43 = vld [vmem:[#allocation9 + $0x1a8] sm:$0xff] }
  0x42   :  { %184 = vmatprep.subr.mxu1 %v5560_v14  ;;  %476 = vmatprep.subr.mxu0 %v5560_v14  ;;  %v5675_v44 = vld [vmem:[#allocation9 + $0x1a0] sm:$0xff]  ;;  %v5679_v45 = vld [vmem:[#allocation9 + $0x198] sm:$0xff]  ;;  %v5683_v46 = vld [vmem:[#allocation9 + $0x190] sm:$0xff] }
  0x43   :  { %185 = vmatpush1.msra.mxu1 %v5564_v15  ;;  %477 = vmatpush1.msra.mxu0 %v5564_v15  ;;  %v5687_v47 = vld [vmem:[#allocation9 + $0x188] sm:$0xff]  ;;  %v5691_v48 = vld [vmem:[#allocation9 + $0x180] sm:$0xff]  ;;  %v5695_v49 = vld [vmem:[#allocation9 + $0x178] sm:$0xff] }
  0x44   :  { %186 = vmatprep.subr.mxu1 %v5568_v16  ;;  %478 = vmatprep.subr.mxu0 %v5568_v16  ;;  %v5699_v50 = vld [vmem:[#allocation9 + $0x170] sm:$0xff]  ;;  %v5703_v51 = vld [vmem:[#allocation9 + $0x168] sm:$0xff]  ;;  %v5707_v52 = vld [vmem:[#allocation9 + $0x160] sm:$0xff] }
  0x45   :  { %187 = vmatpush1.msra.mxu1 %v5572_v17  ;;  %479 = vmatpush1.msra.mxu0 %v5572_v17  ;;  %9146 = vst [vmem:[#allocation20_spill] sm:$0xff] %v5699_v50  ;;  %9147 = vst [vmem:[#allocation21_spill] sm:$0xff] %v5703_v51  ;;  %v5711_v53 = vld [vmem:[#allocation9 + $0x158] sm:$0xff]  ;;  %v5715_v54 = vld [vmem:[#allocation9 + $0x150] sm:$0xff] }
  0x46   :  { %188 = vmatprep.subr.mxu1 %v5576_v18  ;;  %480 = vmatprep.subr.mxu0 %v5576_v18  ;;  %9148 = vst [vmem:[#allocation22_spill] sm:$0xff] %v5707_v52  ;;  %9149 = vst [vmem:[#allocation23_spill] sm:$0xff] %v5711_v53  ;;  %v5719_v55 = vld [vmem:[#allocation9 + $0x148] sm:$0xff]  ;;  %v5723_v56 = vld [vmem:[#allocation9 + $0x140] sm:$0xff] }
  0x47   :  { %189 = vmatpush1.msra.mxu1 %v5580_v19  ;;  %481 = vmatpush1.msra.mxu0 %v5580_v19  ;;  %9150 = vst [vmem:[#allocation24_spill] sm:$0xff] %v5715_v54  ;;  %9151 = vst [vmem:[#allocation25_spill] sm:$0xff] %v5719_v55  ;;  %v5727_v57 = vld [vmem:[#allocation9 + $0x138] sm:$0xff]  ;;  %v5731_v58 = vld [vmem:[#allocation9 + $0x130] sm:$0xff] }
  0x48   :  { %190 = vmatprep.subr.mxu1 %v5584_v20  ;;  %482 = vmatprep.subr.mxu0 %v5584_v20  ;;  %9152 = vst [vmem:[#allocation26_spill] sm:$0xff] %v5723_v56  ;;  %9153 = vst [vmem:[#allocation27_spill] sm:$0xff] %v5727_v57  ;;  %v5735_v59 = vld [vmem:[#allocation9 + $0x128] sm:$0xff]  ;;  %v5739_v60 = vld [vmem:[#allocation9 + $0x120] sm:$0xff] }
  0x49   :  { %191 = vmatpush1.msra.mxu1 %v5588_v21  ;;  %234 = vmatprep.mubr.f32.mxu1 %v85_v24  ;;  %9154 = vst [vmem:[#allocation28_spill] sm:$0xff] %v5731_v58  ;;  %9155 = vst [vmem:[#allocation29_spill] sm:$0xff] %v5735_v59  ;;  %v5743_v61 = vld [vmem:[#allocation9 + $0x118] sm:$0xff]  ;;  %v5747_v62 = vld [vmem:[#allocation9 + $0x110] sm:$0xff] }
  0x4a   :  { %192 = vmatprep.subr.mxu1 %v5592_v22  ;;  %483 = vmatpush1.msra.mxu0 %v5588_v21  ;;  %9156 = vst [vmem:[#allocation30_spill] sm:$0xff] %v5739_v60  ;;  %9157 = vst [vmem:[#allocation31_spill] sm:$0xff] %v5743_v61  ;;  %v5751_v63 = vld [vmem:[#allocation9 + $0x108] sm:$0xff]  ;;  %v5755_v24 = vld [vmem:[#allocation9 + $0x100] sm:$0xff] }
  0x4b   :  { %193 = vmatpush1.msra.mxu1 %v5596_v23  ;;  %484 = vmatprep.subr.mxu0 %v5592_v22  ;;  %9158 = vst [vmem:[#allocation32_spill] sm:$0xff] %v5747_v62  ;;  %9159 = vst [vmem:[#allocation33_spill] sm:$0xff] %v5751_v63 }
  0x4c   :  { %194 = vmatprep.subr.mxu1 %v5600_v25  ;;  %485 = vmatpush1.msra.mxu0 %v5596_v23  ;;  %9160 = vst [vmem:[#allocation34_spill] sm:$0xff] %v5755_v24 }
  0x4d   :  { %195 = vmatpush1.msra.mxu1 %v5603_v26  ;;  %486 = vmatprep.subr.mxu0 %v5600_v25 }
  0x4e   :  { %196 = vmatprep.subr.mxu1 %v5607_v27  ;;  %487 = vmatpush1.msra.mxu0 %v5603_v26 }
  0x4f   :  { %197 = vmatpush1.msra.mxu1 %v5611_v28  ;;  %488 = vmatprep.subr.mxu0 %v5607_v27 }
  0x50   :  { %198 = vmatprep.subr.mxu1 %v5615_v29  ;;  %489 = vmatpush1.msra.mxu0 %v5611_v28 }
  0x51   :  { %199 = vmatpush1.msra.mxu1 %v5619_v30  ;;  %490 = vmatprep.subr.mxu0 %v5615_v29 }
  0x52   :  { %200 = vmatprep.subr.mxu1 %v5623_v31  ;;  %491 = vmatpush1.msra.mxu0 %v5619_v30 }
  0x53   :  { %201 = vmatpush1.msra.mxu1 %v5627_v32  ;;  %492 = vmatprep.subr.mxu0 %v5623_v31 }
  0x54   :  { %202 = vmatprep.subr.mxu1 %v5631_v33  ;;  %493 = vmatpush1.msra.mxu0 %v5627_v32 }
  0x55   :  { %203 = vmatpush2.msra.mxu1 %v5635_v34  ;;  %494 = vmatprep.subr.mxu0 %v5631_v33 }
  0x56   :  { %204 = vmatprep.subr.mxu1 %v5639_v35  ;;  %495 = vmatpush2.msra.mxu0 %v5635_v34 }
  0x57   :  { %205 = vmatpush2.msra.mxu1 %v5643_v36  ;;  %496 = vmatprep.subr.mxu0 %v5639_v35 }
  0x58   :  { %206 = vmatprep.subr.mxu1 %v5647_v37  ;;  %497 = vmatpush2.msra.mxu0 %v5643_v36 }
  0x59   :  { %207 = vmatpush2.msra.mxu1 %v5651_v38  ;;  %498 = vmatprep.subr.mxu0 %v5647_v37 }
  0x5a   :  { %208 = vmatprep.subr.mxu1 %v5655_v39  ;;  %499 = vmatpush2.msra.mxu0 %v5651_v38 }
  0x5b   :  { %209 = vmatpush2.msra.mxu1 %v5659_v40  ;;  %500 = vmatprep.subr.mxu0 %v5655_v39 }
  0x5c   :  { %210 = vmatprep.subr.mxu1 %v5663_v41  ;;  %501 = vmatpush2.msra.mxu0 %v5659_v40 }
  0x5d   :  { %211 = vmatpush2.msra.mxu1 %v5667_v42  ;;  %502 = vmatprep.subr.mxu0 %v5663_v41 }
  0x5e   :  { %212 = vmatprep.subr.mxu1 %v5671_v43  ;;  %503 = vmatpush2.msra.mxu0 %v5667_v42 }
  0x5f   :  { %213 = vmatpush2.msra.mxu1 %v5675_v44  ;;  %504 = vmatprep.subr.mxu0 %v5671_v43 }
  0x60   :  { %214 = vmatprep.subr.mxu1 %v5679_v45  ;;  %505 = vmatpush2.msra.mxu0 %v5675_v44 }
  0x61   :  { %215 = vmatpush2.msra.mxu1 %v5683_v46  ;;  %506 = vmatprep.subr.mxu0 %v5679_v45 }
  0x62   :  { %216 = vmatprep.subr.mxu1 %v5687_v47  ;;  %507 = vmatpush2.msra.mxu0 %v5683_v46 }
  0x63   :  { %217 = vmatpush2.msra.mxu1 %v5691_v48  ;;  %508 = vmatprep.subr.mxu0 %v5687_v47 }
  0x64   :  { %218 = vmatprep.subr.mxu1 %v5695_v49  ;;  %509 = vmatpush2.msra.mxu0 %v5691_v48 }
  0x65   :  { %219 = vmatpush2.msra.mxu1 %v5699_v50  ;;  %510 = vmatprep.subr.mxu0 %v5695_v49 }
  0x66   :  { %220 = vmatprep.subr.mxu1 %v5703_v51  ;;  %511 = vmatpush2.msra.mxu0 %v5699_v50 }
  0x67   :  { %221 = vmatpush2.msra.mxu1 %v5707_v52  ;;  %512 = vmatprep.subr.mxu0 %v5703_v51 }
  0x68   :  { %222 = vmatprep.subr.mxu1 %v5711_v53  ;;  %513 = vmatpush2.msra.mxu0 %v5707_v52 }
  0x69   :  { %223 = vmatpush2.msra.mxu1 %v5715_v54  ;;  %514 = vmatprep.subr.mxu0 %v5711_v53 }
  0x6a   :  { %224 = vmatprep.subr.mxu1 %v5719_v55  ;;  %515 = vmatpush2.msra.mxu0 %v5715_v54 }
  0x6b   :  { %225 = vmatpush2.msra.mxu1 %v5723_v56  ;;  %516 = vmatprep.subr.mxu0 %v5719_v55 }
  0x6c   :  { %226 = vmatprep.subr.mxu1 %v5727_v57  ;;  %517 = vmatpush2.msra.mxu0 %v5723_v56 }
  0x6d   :  { %227 = vmatpush2.msra.mxu1 %v5731_v58  ;;  %518 = vmatprep.subr.mxu0 %v5727_v57  ;;  %v84_v57 = vld [vmem:[#allocation7] sm:$0xff] }
  0x6e   :  { %228 = vmatprep.subr.mxu1 %v5735_v59  ;;  %519 = vmatpush2.msra.mxu0 %v5731_v58 }
  0x6f   :  { %229 = vmatpush2.msra.mxu1 %v5739_v60  ;;  %520 = vmatprep.subr.mxu0 %v5735_v59 }
  0x70   :  { %230 = vmatprep.subr.mxu1 %v5743_v61  ;;  %521 = vmatpush2.msra.mxu0 %v5739_v60 }
  0x71   :  { %231 = vmatpush2.msra.mxu1 %v5747_v62  ;;  %522 = vmatprep.subr.mxu0 %v5743_v61 }
  0x72   :  { %232 = vmatprep.subr.mxu1 %v5751_v63  ;;  %523 = vmatpush2.msra.mxu0 %v5747_v62 }
  0x73   :  { %233 = vmatpush2.msra.mxu1 %v5755_v24  ;;  %524 = vmatprep.subr.mxu0 %v5751_v63 }
  0x74   :  { %235 = vmatmul.mubr.f32.vlgmr.msra.gmra.mxu1 %v84_v57  ;;  %316 = vmatprep.subr.mxu1 %v5509_v0  ;;  %v9161_v57 = vld [vmem:[#allocation27_spill] sm:$0xff] }
  0x75   :  { %317 = vmatpush1.msra.mxu1 %v5511_v1  ;;  %525 = vmatpush2.msra.mxu0 %v5755_v24 }
  0x76   :  { %318 = vmatprep.subr.mxu1 %v5513_v2 }
  0x77   :  { %319 = vmatpush1.msra.mxu1 %v5516_v3 }
  0x78   :  { %320 = vmatprep.subr.mxu1 %v5520_v4 }
  0x79   :  { %321 = vmatpush1.msra.mxu1 %v5524_v5 }
  0x7a   :  { %322 = vmatprep.subr.mxu1 %v5528_v6 }
  0x7b   :  { %323 = vmatpush1.msra.mxu1 %v5532_v7 }
  0x7c   :  { %324 = vmatprep.subr.mxu1 %v5536_v8 }
  0x7d   :  { %325 = vmatpush1.msra.mxu1 %v5540_v9 }
  0x7e   :  { %326 = vmatprep.subr.mxu1 %v5544_v10 }
  0x7f   :  { %327 = vmatpush1.msra.mxu1 %v5548_v11 }
  0x80   :  { %328 = vmatprep.subr.mxu1 %v5552_v12 }
  0x81   :  { %329 = vmatpush1.msra.mxu1 %v5556_v13 }
  0x82   :  { %330 = vmatprep.subr.mxu1 %v5560_v14 }
  0x83   :  { %331 = vmatpush1.msra.mxu1 %v5564_v15 }
  0x84   :  { %332 = vmatprep.subr.mxu1 %v5568_v16 }
  0x85   :  { %333 = vmatpush1.msra.mxu1 %v5572_v17 }
  0x86   :  { %334 = vmatprep.subr.mxu1 %v5576_v18 }
  0x87   :  { %335 = vmatpush1.msra.mxu1 %v5580_v19 }
  0x88   :  { %336 = vmatprep.subr.mxu1 %v5584_v20 }
  0x89   :  { %337 = vmatpush1.msra.mxu1 %v5588_v21 }
  0x8a   :  { %338 = vmatprep.subr.mxu1 %v5592_v22 }
  0x8b   :  { %339 = vmatpush1.msra.mxu1 %v5596_v23 }
  0x8c   :  { %340 = vmatprep.subr.mxu1 %v5600_v25 }
  0x8d   :  { %341 = vmatpush1.msra.mxu1 %v5603_v26 }
  0x8e   :  { %342 = vmatprep.subr.mxu1 %v5607_v27 }
  0x8f   :  { %343 = vmatpush1.msra.mxu1 %v5611_v28 }
  0x90   :  { %344 = vmatprep.subr.mxu1 %v5615_v29 }
  0x91   :  { %345 = vmatpush1.msra.mxu1 %v5619_v30 }
  0x92   :  { %346 = vmatprep.subr.mxu1 %v5623_v31 }
  0x93   :  { %347 = vmatpush1.msra.mxu1 %v5627_v32 }
  0x94   :  { %348 = vmatprep.subr.mxu1 %v5631_v33 }
  0x95   :  { %349 = vmatpush2.msra.mxu1 %v5635_v34 }
  0x96   :  { %350 = vmatprep.subr.mxu1 %v5639_v35 }
  0x97   :  { %351 = vmatpush2.msra.mxu1 %v5643_v36 }
  0x98   :  { %352 = vmatprep.subr.mxu1 %v5647_v37 }
  0x99   :  { %353 = vmatpush2.msra.mxu1 %v5651_v38 }
  0x9a   :  { %354 = vmatprep.subr.mxu1 %v5655_v39 }
  0x9b   :  { %355 = vmatpush2.msra.mxu1 %v5659_v40 }
  0x9c   :  { %356 = vmatprep.subr.mxu1 %v5663_v41 }
  0x9d   :  { %357 = vmatpush2.msra.mxu1 %v5667_v42 }
  0x9e   :  { %358 = vmatprep.subr.mxu1 %v5671_v43 }
  0x9f   :  { %359 = vmatpush2.msra.mxu1 %v5675_v44 }
  0xa0   :  { %360 = vmatprep.subr.mxu1 %v5679_v45 }
  0xa1   :  { %361 = vmatpush2.msra.mxu1 %v5683_v46 }
  0xa2   :  { %362 = vmatprep.subr.mxu1 %v5687_v47 }
  0xa3   :  { %363 = vmatpush2.msra.mxu1 %v5691_v48 }
  0xa4   :  { %364 = vmatprep.subr.mxu1 %v5695_v49 }
  0xa5   :  { %365 = vmatpush2.msra.mxu1 %v5699_v50 }
  0xa6   :  { %366 = vmatprep.subr.mxu1 %v5703_v51 }
  0xa7   :  { %367 = vmatpush2.msra.mxu1 %v5707_v52 }
  0xa8   :  { %368 = vmatprep.subr.mxu1 %v5711_v53 }
  0xa9   :  { %369 = vmatpush2.msra.mxu1 %v5715_v54 }
  0xaa   :  { %370 = vmatprep.subr.mxu1 %v5719_v55  ;;  %v92_v55 = vlaneseq }
  0xab   :  { %371 = vmatpush2.msra.mxu1 %v5723_v56 }
  0xac   :  { %372 = vmatprep.subr.mxu1 %v9161_v57  ;;  %v93_v56 = vshrl.u32 %v92_v55, 7 }
  0xad   :  { %373 = vmatpush2.msra.mxu1 %v5731_v58  ;;  %v90_v58 = vld [vmem:[%s8909_s3] sm:$0x3] }
  0xae   :  { %374 = vmatprep.subr.mxu1 %v5735_v59  ;;  %v94_v54 = vsub.s32 0, %v93_v56  ;;  %v98_v59 = vsub.s32 1, %v93_v56  ;;  %v5993_v56 = vld [vmem:[#allocation9 + $0x28] sm:$0xff] }
  0xaf   :  { %375 = vmatpush2.msra.mxu1 %v5739_v60  ;;  %v102_v60 = vld [vmem:[#allocation4] sm:$0xff] }
  0xb0   :  { %376 = vmatprep.subr.mxu1 %v5743_v61  ;;  %v5833_v57 = vrot.slane %v90_v58, %v94_v54  ;;  %v5835_v61 = vrot.slane %v90_v58, %v98_v59  ;;  %v5990_v54 = vld [vmem:[#allocation9 + $0x30] sm:$0xff]  ;;  %v5996_v58 = vld [vmem:[#allocation9 + $0x20] sm:$0xff]  ;;  %v5999_v59 = vld [vmem:[#allocation9 + $0x18] sm:$0xff] }
  0xb1   :  { %377 = vmatpush2.msra.mxu1 %v5747_v62  ;;  %v103_v62 = vld [vmem:[#allocation4 + $0x8] sm:$0xff] }
  0xb2   :  { %378 = vmatprep.subr.mxu1 %v5751_v63  ;;  %v104_v63 = vadd.f32 %v102_v60, %v5833_v57  ;;  %v6002_v60 = vld [vmem:[#allocation9 + $0x10] sm:$0xff] }
  0xb3   :  { %379 = vmatpush2.msra.mxu1 %v5755_v24  ;;  %v105_v24 = vadd.f32 %v103_v62, %v5835_v61  ;;  %v6005_v62 = vld [vmem:[#allocation9 + $0x8] sm:$0xff] }
  0xb4   :  { %608 = vmatprep.subr.mxu1 %v5509_v0 }
 0x134   :  { %v236_v53 = vpop.f32.mrf.mxu1 }
 0x135   :  { %v241_v0 = vadd.f32 %v236_v53, %v104_v63  ;;  %v5987_v53 = vld [vmem:[#allocation9 + $0x38] sm:$0xff]  ;;  %v6008_v63 = vld [vmem:[#allocation9] sm:$0xff] }
 0x136   :  { %v238_v52 = vpop.f32.mrf.mxu1 }
 0x137   :  { %v242_v55 = vadd.f32 %v238_v52, %v105_v24  ;;  %v5984_v52 = vld [vmem:[#allocation9 + $0x40] sm:$0xff]  ;;  %v6011_v24 = vld [vmem:[#allocation9 + $0x1f8] sm:$0xff] }
 0x139   :  { %5185 = vtanh.f32 %v242_v55  ;;  %v6017_v55 = vld [vmem:[#allocation9 + $0x1e8] sm:$0xff] }
 0x13a   :  { %5187 = vtanh.f32 %v241_v0  ;;  %v6014_v0 = vld [vmem:[#allocation9 + $0x1f0] sm:$0xff] }
 0x146   :  { %v5839_v51 = vpop.eup %5185 }
 0x147   :  { %9162 = vst [vmem:[#allocation35_spill] sm:$0xff] %v5839_v51  ;;  %v5841_v50 = vpop.eup %5187  ;;  %380 = vmatprep.mubr.f32.mxu1 %v5839_v51  ;;  %v6163_v51 = vld [vmem:[#allocation9 + $0x110] sm:$0xff] }
 0x148   :  { %9163 = vst [vmem:[#allocation36_spill] sm:$0xff] %v5841_v50  ;;  %381 = vmatmul.mubr.f32.vlgmr.msra.gmra.mxu1 %v5841_v50  ;;  %v6159_v50 = vld [vmem:[#allocation9 + $0x118] sm:$0xff]  ;;  %9194 = vst [vmem:[#allocation37_spill] sm:$0xff] %v6163_v51 }
 0x149   :  { %609 = vmatpush1.msra.mxu1 %v5511_v1  ;;  %v9164_v1 = vld [vmem:[#allocation20_spill] sm:$0xff] }
 0x14a   :  { %610 = vmatprep.subr.mxu1 %v5513_v2  ;;  %v9165_v2 = vld [vmem:[#allocation21_spill] sm:$0xff] }
 0x14b   :  { %611 = vmatpush1.msra.mxu1 %v5516_v3  ;;  %v9166_v3 = vld [vmem:[#allocation22_spill] sm:$0xff] }
 0x14c   :  { %612 = vmatprep.subr.mxu1 %v5520_v4  ;;  %v9167_v4 = vld [vmem:[#allocation23_spill] sm:$0xff] }
 0x14d   :  { %613 = vmatpush1.msra.mxu1 %v5524_v5  ;;  %v9168_v5 = vld [vmem:[#allocation24_spill] sm:$0xff] }
 0x14e   :  { %614 = vmatprep.subr.mxu1 %v5528_v6  ;;  %v9169_v6 = vld [vmem:[#allocation25_spill] sm:$0xff] }
 0x14f   :  { %615 = vmatpush1.msra.mxu1 %v5532_v7  ;;  %v9170_v7 = vld [vmem:[#allocation26_spill] sm:$0xff] }
 0x150   :  { %616 = vmatprep.subr.mxu1 %v5536_v8  ;;  %v9171_v8 = vld [vmem:[#allocation27_spill] sm:$0xff] }
 0x151   :  { %617 = vmatpush1.msra.mxu1 %v5540_v9  ;;  %v9172_v9 = vld [vmem:[#allocation28_spill] sm:$0xff] }
 0x152   :  { %618 = vmatprep.subr.mxu1 %v5544_v10  ;;  %v9173_v10 = vld [vmem:[#allocation29_spill] sm:$0xff] }
 0x153   :  { %619 = vmatpush1.msra.mxu1 %v5548_v11  ;;  %v9174_v11 = vld [vmem:[#allocation30_spill] sm:$0xff] }
 0x154   :  { %620 = vmatprep.subr.mxu1 %v5552_v12  ;;  %v9175_v12 = vld [vmem:[#allocation31_spill] sm:$0xff] }
 0x155   :  { %621 = vmatpush1.msra.mxu1 %v5556_v13  ;;  %v9176_v13 = vld [vmem:[#allocation32_spill] sm:$0xff] }
 0x156   :  { %622 = vmatprep.subr.mxu1 %v5560_v14  ;;  %v9177_v14 = vld [vmem:[#allocation33_spill] sm:$0xff] }
 0x157   :  { %623 = vmatpush1.msra.mxu1 %v5564_v15  ;;  %v9178_v15 = vld [vmem:[#allocation34_spill] sm:$0xff] }
 0x158   :  { %624 = vmatprep.subr.mxu1 %v5568_v16  ;;  %v248_v16 = vld [vmem:[#allocation4 + $0x10] sm:$0xff]  ;;  %9193 = vst [vmem:[#allocation34_spill] sm:$0xff] %v6159_v50 }
 0x159   :  { %625 = vmatpush1.msra.mxu1 %v5572_v17  ;;  %v249_v17 = vld [vmem:[#allocation4 + $0x18] sm:$0xff] }
 0x15a   :  { %626 = vmatprep.subr.mxu1 %v5576_v18  ;;  %v250_v18 = vadd.f32 %v248_v16, %v5833_v57 }
 0x15b   :  { %627 = vmatpush1.msra.mxu1 %v5580_v19  ;;  %v251_v19 = vadd.f32 %v249_v17, %v5835_v61 }
 0x15c   :  { %628 = vmatprep.subr.mxu1 %v5584_v20 }
 0x15d   :  { %629 = vmatpush1.msra.mxu1 %v5588_v21 }
 0x15e   :  { %630 = vmatprep.subr.mxu1 %v5592_v22 }
 0x15f   :  { %631 = vmatpush1.msra.mxu1 %v5596_v23 }
 0x160   :  { %632 = vmatprep.subr.mxu1 %v5600_v25 }
 0x161   :  { %633 = vmatpush1.msra.mxu1 %v5603_v26 }
 0x162   :  { %634 = vmatprep.subr.mxu1 %v5607_v27  ;;  %v5916_v27 = vld [vmem:[#allocation9 + $0xf8] sm:$0xff] }
 0x163   :  { %635 = vmatpush1.msra.mxu1 %v5611_v28  ;;  %v5918_v28 = vld [vmem:[#allocation9 + $0xf0] sm:$0xff]  ;;  %754 = vmatprep.subr.mxu0 %v5916_v27 }
 0x164   :  { %636 = vmatprep.subr.mxu1 %v5615_v29  ;;  %v5920_v29 = vld [vmem:[#allocation9 + $0xe8] sm:$0xff] }
 0x165   :  { %637 = vmatpush1.msra.mxu1 %v5619_v30  ;;  %v5923_v30 = vld [vmem:[#allocation9 + $0xe0] sm:$0xff] }
 0x166   :  { %638 = vmatprep.subr.mxu1 %v5623_v31  ;;  %v5927_v31 = vld [vmem:[#allocation9 + $0xd8] sm:$0xff] }
 0x167   :  { %639 = vmatpush1.msra.mxu1 %v5627_v32  ;;  %v5930_v32 = vld [vmem:[#allocation9 + $0xd0] sm:$0xff] }
 0x168   :  { %640 = vmatprep.subr.mxu1 %v5631_v33  ;;  %v5933_v33 = vld [vmem:[#allocation9 + $0xc8] sm:$0xff] }
 0x169   :  { %641 = vmatpush2.msra.mxu1 %v5635_v34  ;;  %v5936_v34 = vld [vmem:[#allocation9 + $0xc0] sm:$0xff] }
 0x16a   :  { %642 = vmatprep.subr.mxu1 %v5639_v35  ;;  %v5939_v35 = vld [vmem:[#allocation9 + $0xb8] sm:$0xff] }
 0x16b   :  { %643 = vmatpush2.msra.mxu1 %v5643_v36  ;;  %v5942_v36 = vld [vmem:[#allocation9 + $0xb0] sm:$0xff] }
 0x16c   :  { %644 = vmatprep.subr.mxu1 %v5647_v37  ;;  %v5945_v37 = vld [vmem:[#allocation9 + $0xa8] sm:$0xff] }
 0x16d   :  { %645 = vmatpush2.msra.mxu1 %v5651_v38  ;;  %v5948_v38 = vld [vmem:[#allocation9 + $0xa0] sm:$0xff] }
 0x16e   :  { %646 = vmatprep.subr.mxu1 %v5655_v39  ;;  %v5951_v39 = vld [vmem:[#allocation9 + $0x98] sm:$0xff] }
 0x16f   :  { %647 = vmatpush2.msra.mxu1 %v5659_v40  ;;  %v5954_v40 = vld [vmem:[#allocation9 + $0x90] sm:$0xff] }
 0x170   :  { %648 = vmatprep.subr.mxu1 %v5663_v41  ;;  %v5957_v41 = vld [vmem:[#allocation9 + $0x88] sm:$0xff] }
 0x171   :  { %649 = vmatpush2.msra.mxu1 %v5667_v42  ;;  %v5960_v42 = vld [vmem:[#allocation9 + $0x80] sm:$0xff] }
 0x172   :  { %650 = vmatprep.subr.mxu1 %v5671_v43  ;;  %v5963_v43 = vld [vmem:[#allocation9 + $0x78] sm:$0xff] }
 0x173   :  { %651 = vmatpush2.msra.mxu1 %v5675_v44  ;;  %v5966_v44 = vld [vmem:[#allocation9 + $0x70] sm:$0xff] }
 0x174   :  { %652 = vmatprep.subr.mxu1 %v5679_v45  ;;  %v5969_v45 = vld [vmem:[#allocation9 + $0x68] sm:$0xff] }
 0x175   :  { %653 = vmatpush2.msra.mxu1 %v5683_v46  ;;  %v5972_v46 = vld [vmem:[#allocation9 + $0x60] sm:$0xff] }
 0x176   :  { %654 = vmatprep.subr.mxu1 %v5687_v47  ;;  %v5975_v47 = vld [vmem:[#allocation9 + $0x58] sm:$0xff] }
 0x177   :  { %655 = vmatpush2.msra.mxu1 %v5691_v48  ;;  %v5978_v48 = vld [vmem:[#allocation9 + $0x50] sm:$0xff] }
 0x178   :  { %656 = vmatprep.subr.mxu1 %v5695_v49  ;;  %v5981_v49 = vld [vmem:[#allocation9 + $0x48] sm:$0xff] }
 0x179   :  { %657 = vmatpush2.msra.mxu1 %v9164_v1  ;;  %v6020_v1 = vld [vmem:[#allocation9 + $0x1e0] sm:$0xff] }
 0x17a   :  { %658 = vmatprep.subr.mxu1 %v9165_v2  ;;  %v6023_v2 = vld [vmem:[#allocation9 + $0x1d8] sm:$0xff] }
 0x17b   :  { %659 = vmatpush2.msra.mxu1 %v9166_v3  ;;  %v6026_v3 = vld [vmem:[#allocation9 + $0x1d0] sm:$0xff] }
 0x17c   :  { %660 = vmatprep.subr.mxu1 %v9167_v4  ;;  %v6029_v4 = vld [vmem:[#allocation9 + $0x1c8] sm:$0xff] }
 0x17d   :  { %661 = vmatpush2.msra.mxu1 %v9168_v5  ;;  %v6032_v5 = vld [vmem:[#allocation9 + $0x1c0] sm:$0xff] }
 0x17e   :  { %662 = vmatprep.subr.mxu1 %v9169_v6  ;;  %v6035_v6 = vld [vmem:[#allocation9 + $0x1b8] sm:$0xff] }
 0x17f   :  { %663 = vmatpush2.msra.mxu1 %v9170_v7  ;;  %v6038_v7 = vld [vmem:[#allocation9 + $0x1b0] sm:$0xff] }
 0x180   :  { %664 = vmatprep.subr.mxu1 %v9171_v8  ;;  %v6041_v8 = vld [vmem:[#allocation9 + $0x1a8] sm:$0xff] }
 0x181   :  { %665 = vmatpush2.msra.mxu1 %v9172_v9  ;;  %v6044_v9 = vld [vmem:[#allocation9 + $0x1a0] sm:$0xff] }
 0x182   :  { %666 = vmatprep.subr.mxu1 %v9173_v10  ;;  %v394_v10 = vld [vmem:[#allocation4 + $0x20] sm:$0xff] }
 0x183   :  { %667 = vmatpush2.msra.mxu1 %v9174_v11  ;;  %v395_v11 = vld [vmem:[#allocation4 + $0x28] sm:$0xff] }
 0x184   :  { %668 = vmatprep.subr.mxu1 %v9175_v12  ;;  %v396_v12 = vadd.f32 %v394_v10, %v5833_v57  ;;  %v6115_v10 = vld [vmem:[#allocation9 + $0x178] sm:$0xff] }
 0x185   :  { %669 = vmatpush2.msra.mxu1 %v9176_v13  ;;  %v397_v13 = vadd.f32 %v395_v11, %v5835_v61  ;;  %v6119_v11 = vld [vmem:[#allocation9 + $0x170] sm:$0xff] }
 0x186   :  { %670 = vmatprep.subr.mxu1 %v9177_v14 }
 0x187   :  { %671 = vmatpush2.msra.mxu1 %v9178_v15 }
 0x188   :  { %900 = vmatprep.subr.mxu1 %v5916_v27 }
 0x208   :  { %v382_v20 = vpop.f32.mrf.mxu1 }
 0x209   :  { %v387_v21 = vadd.f32 %v382_v20, %v250_v18  ;;  %v6100_v20 = vld [vmem:[#allocation9 + $0x198] sm:$0xff] }
 0x20a   :  { %v384_v22 = vpop.f32.mrf.mxu1 }
 0x20b   :  { %v388_v23 = vadd.f32 %v384_v22, %v251_v19  ;;  %v6107_v22 = vld [vmem:[#allocation9 + $0x188] sm:$0xff] }
 0x20d   :  { %5189 = vtanh.f32 %v388_v23  ;;  %v6111_v23 = vld [vmem:[#allocation9 + $0x180] sm:$0xff] }
 0x20e   :  { %5191 = vtanh.f32 %v387_v21  ;;  %v6103_v21 = vld [vmem:[#allocation9 + $0x190] sm:$0xff] }
 0x21a   :  { %v5910_v25 = vpop.eup %5189 }
 0x21b   :  { %9179 = vst [vmem:[#allocation20_spill] sm:$0xff] %v5910_v25  ;;  %v5912_v26 = vpop.eup %5191  ;;  %526 = vmatprep.mubr.f32.mxu0 %v5910_v25  ;;  %v6155_v25 = vld [vmem:[#allocation9 + $0x120] sm:$0xff] }
 0x21c   :  { %9180 = vst [vmem:[#allocation21_spill] sm:$0xff] %v5912_v26  ;;  %527 = vmatmul.mubr.f32.vlgmr.msra.gmra.mxu0 %v5912_v26  ;;  %v6151_v26 = vld [vmem:[#allocation9 + $0x128] sm:$0xff]  ;;  %9192 = vst [vmem:[#allocation33_spill] sm:$0xff] %v6155_v25 }
 0x21d   :  { %755 = vmatpush1.msra.mxu0 %v5918_v28  ;;  %9191 = vst [vmem:[#allocation32_spill] sm:$0xff] %v6151_v26 }
 0x21e   :  { %756 = vmatprep.subr.mxu0 %v5920_v29 }
 0x21f   :  { %757 = vmatpush1.msra.mxu0 %v5923_v30 }
 0x220   :  { %758 = vmatprep.subr.mxu0 %v5927_v31 }
 0x221   :  { %759 = vmatpush1.msra.mxu0 %v5930_v32 }
 0x222   :  { %760 = vmatprep.subr.mxu0 %v5933_v33 }
 0x223   :  { %761 = vmatpush1.msra.mxu0 %v5936_v34 }
 0x224   :  { %762 = vmatprep.subr.mxu0 %v5939_v35 }
 0x225   :  { %763 = vmatpush1.msra.mxu0 %v5942_v36 }
 0x226   :  { %764 = vmatprep.subr.mxu0 %v5945_v37 }
 0x227   :  { %765 = vmatpush1.msra.mxu0 %v5948_v38 }
 0x228   :  { %766 = vmatprep.subr.mxu0 %v5951_v39 }
 0x229   :  { %767 = vmatpush1.msra.mxu0 %v5954_v40 }
 0x22a   :  { %768 = vmatprep.subr.mxu0 %v5957_v41 }
 0x22b   :  { %769 = vmatpush1.msra.mxu0 %v5960_v42 }
 0x22c   :  { %770 = vmatprep.subr.mxu0 %v5963_v43 }
 0x22d   :  { %771 = vmatpush1.msra.mxu0 %v5966_v44 }
 0x22e   :  { %772 = vmatprep.subr.mxu0 %v5969_v45 }
 0x22f   :  { %773 = vmatpush1.msra.mxu0 %v5972_v46 }
 0x230   :  { %774 = vmatprep.subr.mxu0 %v5975_v47 }
 0x231   :  { %775 = vmatpush1.msra.mxu0 %v5978_v48 }
 0x232   :  { %776 = vmatprep.subr.mxu0 %v5981_v49 }
 0x233   :  { %777 = vmatpush1.msra.mxu0 %v5984_v52 }
 0x234   :  { %778 = vmatprep.subr.mxu0 %v5987_v53 }
 0x235   :  { %779 = vmatpush1.msra.mxu0 %v5990_v54 }
 0x236   :  { %780 = vmatprep.subr.mxu0 %v5993_v56 }
 0x237   :  { %781 = vmatpush1.msra.mxu0 %v5996_v58 }
 0x238   :  { %782 = vmatprep.subr.mxu0 %v5999_v59 }
 0x239   :  { %783 = vmatpush1.msra.mxu0 %v6002_v60 }
 0x23a   :  { %784 = vmatprep.subr.mxu0 %v6005_v62 }
 0x23b   :  { %785 = vmatpush1.msra.mxu0 %v6008_v63 }
 0x23c   :  { %786 = vmatprep.subr.mxu0 %v6011_v24 }
 0x23d   :  { %787 = vmatpush2.msra.mxu0 %v6014_v0 }
 0x23e   :  { %788 = vmatprep.subr.mxu0 %v6017_v55 }
 0x23f   :  { %789 = vmatpush2.msra.mxu0 %v6020_v1 }
 0x240   :  { %790 = vmatprep.subr.mxu0 %v6023_v2 }
 0x241   :  { %791 = vmatpush2.msra.mxu0 %v6026_v3 }
 0x242   :  { %792 = vmatprep.subr.mxu0 %v6029_v4 }
 0x243   :  { %793 = vmatpush2.msra.mxu0 %v6032_v5 }
 0x244   :  { %794 = vmatprep.subr.mxu0 %v6035_v6 }
 0x245   :  { %795 = vmatpush2.msra.mxu0 %v6038_v7 }
 0x246   :  { %796 = vmatprep.subr.mxu0 %v6041_v8 }
 0x247   :  { %797 = vmatpush2.msra.mxu0 %v6044_v9 }
 0x248   :  { %798 = vmatprep.subr.mxu0 %v6100_v20 }
 0x249   :  { %799 = vmatpush2.msra.mxu0 %v6103_v21 }
 0x24a   :  { %800 = vmatprep.subr.mxu0 %v6107_v22 }
 0x24b   :  { %801 = vmatpush2.msra.mxu0 %v6111_v23 }
 0x24c   :  { %802 = vmatprep.subr.mxu0 %v6115_v10 }
 0x24d   :  { %803 = vmatpush2.msra.mxu0 %v6119_v11 }
 0x2dc   :  { %v528_v14 = vpop.f32.mrf.mxu0 }
 0x2dd   :  { %v533_v15 = vadd.f32 %v528_v14, %v396_v12  ;;  %v6123_v12 = vld [vmem:[#allocation9 + $0x168] sm:$0xff]  ;;  %v6127_v14 = vld [vmem:[#allocation9 + $0x158] sm:$0xff] }
 0x2de   :  { %v530_v16 = vpop.f32.mrf.mxu0  ;;  %9183 = vst [vmem:[#allocation24_spill] sm:$0xff] %v6123_v12  ;;  %9185 = vst [vmem:[#allocation26_spill] sm:$0xff] %v6127_v14  ;;  %804 = vmatprep.subr.mxu0 %v6123_v12 }
 0x2df   :  { %v534_v17 = vadd.f32 %v530_v16, %v397_v13  ;;  %v6125_v13 = vld [vmem:[#allocation9 + $0x160] sm:$0xff]  ;;  %v6135_v16 = vld [vmem:[#allocation9 + $0x148] sm:$0xff] }
 0x2e0   :  { %9184 = vst [vmem:[#allocation25_spill] sm:$0xff] %v6125_v13  ;;  %805 = vmatpush2.msra.mxu0 %v6125_v13  ;;  %9187 = vst [vmem:[#allocation28_spill] sm:$0xff] %v6135_v16 }
 0x2e1   :  { %5193 = vtanh.f32 %v534_v17  ;;  %806 = vmatprep.subr.mxu0 %v6127_v14  ;;  %v6139_v17 = vld [vmem:[#allocation9 + $0x140] sm:$0xff] }
 0x2e2   :  { %5195 = vtanh.f32 %v533_v15  ;;  %v6131_v15 = vld [vmem:[#allocation9 + $0x150] sm:$0xff]  ;;  %9188 = vst [vmem:[#allocation29_spill] sm:$0xff] %v6139_v17 }
 0x2e3   :  { %9186 = vst [vmem:[#allocation27_spill] sm:$0xff] %v6131_v15  ;;  %807 = vmatpush2.msra.mxu0 %v6131_v15 }
 0x2e4   :  { %808 = vmatprep.subr.mxu0 %v6135_v16 }
 0x2e5   :  { %809 = vmatpush2.msra.mxu0 %v6139_v17 }
 0x2ee   :  { %v6051_v18 = vpop.eup %5193 }
 0x2ef   :  { %9181 = vst [vmem:[#allocation22_spill] sm:$0xff] %v6051_v18  ;;  %v6053_v19 = vpop.eup %5195  ;;  %672 = vmatprep.mubr.f32.mxu1 %v6051_v18  ;;  %v6147_v18 = vld [vmem:[#allocation9 + $0x130] sm:$0xff] }
 0x2f0   :  { %9182 = vst [vmem:[#allocation23_spill] sm:$0xff] %v6053_v19  ;;  %673 = vmatmul.mubr.f32.vlgmr.msra.gmra.mxu1 %v6053_v19  ;;  %v6143_v19 = vld [vmem:[#allocation9 + $0x138] sm:$0xff]  ;;  %9190 = vst [vmem:[#allocation31_spill] sm:$0xff] %v6147_v18 }
 0x2f1   :  { %901 = vmatpush1.msra.mxu1 %v5918_v28  ;;  %9189 = vst [vmem:[#allocation30_spill] sm:$0xff] %v6143_v19  ;;  %810 = vmatprep.subr.mxu0 %v6143_v19 }
 0x2f2   :  { %902 = vmatprep.subr.mxu1 %v5920_v29  ;;  %811 = vmatpush2.msra.mxu0 %v6147_v18 }
 0x2f3   :  { %903 = vmatpush1.msra.mxu1 %v5923_v30  ;;  %812 = vmatprep.subr.mxu0 %v6151_v26 }
 0x2f4   :  { %904 = vmatprep.subr.mxu1 %v5927_v31  ;;  %813 = vmatpush2.msra.mxu0 %v6155_v25 }
 0x2f5   :  { %905 = vmatpush1.msra.mxu1 %v5930_v32  ;;  %814 = vmatprep.subr.mxu0 %v6159_v50 }
 0x2f6   :  { %906 = vmatprep.subr.mxu1 %v5933_v33  ;;  %815 = vmatpush2.msra.mxu0 %v6163_v51 }
 0x2f7   :  { %907 = vmatpush1.msra.mxu1 %v5936_v34 }
 0x2f8   :  { %908 = vmatprep.subr.mxu1 %v5939_v35 }
 0x2f9   :  { %909 = vmatpush1.msra.mxu1 %v5942_v36 }
 0x2fa   :  { %910 = vmatprep.subr.mxu1 %v5945_v37 }
 0x2fb   :  { %911 = vmatpush1.msra.mxu1 %v5948_v38 }
 0x2fc   :  { %912 = vmatprep.subr.mxu1 %v5951_v39 }
 0x2fd   :  { %913 = vmatpush1.msra.mxu1 %v5954_v40 }
 0x2fe   :  { %914 = vmatprep.subr.mxu1 %v5957_v41 }
 0x2ff   :  { %915 = vmatpush1.msra.mxu1 %v5960_v42 }
 0x300   :  { %916 = vmatprep.subr.mxu1 %v5963_v43 }
 0x301   :  { %917 = vmatpush1.msra.mxu1 %v5966_v44 }
 0x302   :  { %918 = vmatprep.subr.mxu1 %v5969_v45 }
 0x303   :  { %919 = vmatpush1.msra.mxu1 %v5972_v46 }
 0x304   :  { %920 = vmatprep.subr.mxu1 %v5975_v47 }
 0x305   :  { %921 = vmatpush1.msra.mxu1 %v5978_v48 }
 0x306   :  { %922 = vmatprep.subr.mxu1 %v5981_v49 }
 0x307   :  { %923 = vmatpush1.msra.mxu1 %v5984_v52 }
 0x308   :  { %924 = vmatprep.subr.mxu1 %v5987_v53 }
 0x309   :  { %925 = vmatpush1.msra.mxu1 %v5990_v54 }
 0x30a   :  { %926 = vmatprep.subr.mxu1 %v5993_v56 }
 0x30b   :  { %927 = vmatpush1.msra.mxu1 %v5996_v58 }
 0x30c   :  { %928 = vmatprep.subr.mxu1 %v5999_v59 }
 0x30d   :  { %929 = vmatpush1.msra.mxu1 %v6002_v60 }
 0x30e   :  { %930 = vmatprep.subr.mxu1 %v6005_v62 }
 0x30f   :  { %931 = vmatpush1.msra.mxu1 %v6008_v63 }
 0x310   :  { %932 = vmatprep.subr.mxu1 %v6011_v24 }
 0x311   :  { %933 = vmatpush2.msra.mxu1 %v6014_v0 }
 0x312   :  { %934 = vmatprep.subr.mxu1 %v6017_v55 }
 0x313   :  { %935 = vmatpush2.msra.mxu1 %v6020_v1 }
 0x314   :  { %936 = vmatprep.subr.mxu1 %v6023_v2 }
 0x315   :  { %937 = vmatpush2.msra.mxu1 %v6026_v3 }
 0x316   :  { %938 = vmatprep.subr.mxu1 %v6029_v4 }
 0x317   :  { %939 = vmatpush2.msra.mxu1 %v6032_v5 }
 0x318   :  { %940 = vmatprep.subr.mxu1 %v6035_v6 }
 0x319   :  { %941 = vmatpush2.msra.mxu1 %v6038_v7 }
 0x31a   :  { %942 = vmatprep.subr.mxu1 %v6041_v8 }
 0x31b   :  { %943 = vmatpush2.msra.mxu1 %v6044_v9 }
 0x31c   :  { %944 = vmatprep.subr.mxu1 %v6100_v20 }
 0x31d   :  { %945 = vmatpush2.msra.mxu1 %v6103_v21 }
 0x31e   :  { %946 = vmatprep.subr.mxu1 %v6107_v22 }
 0x31f   :  { %947 = vmatpush2.msra.mxu1 %v6111_v23 }
 0x320   :  { %948 = vmatprep.subr.mxu1 %v6115_v10 }
 0x321   :  { %949 = vmatpush2.msra.mxu1 %v6119_v11 }
 0x322   :  { %950 = vmatprep.subr.mxu1 %v6123_v12 }
 0x323   :  { %951 = vmatpush2.msra.mxu1 %v6125_v13 }
 0x324   :  { %952 = vmatprep.subr.mxu1 %v6127_v14 }
 0x325   :  { %953 = vmatpush2.msra.mxu1 %v6131_v15 }
 0x326   :  { %954 = vmatprep.subr.mxu1 %v6135_v16 }
 0x327   :  { %955 = vmatpush2.msra.mxu1 %v6139_v17  ;;  %v6167_v17 = vld [vmem:[#allocation9 + $0x108] sm:$0xff] }
 0x328   :  { %956 = vmatprep.subr.mxu1 %v6143_v19  ;;  %9195 = vst [vmem:[#allocation38_spill] sm:$0xff] %v6167_v17  ;;  %v6171_v19 = vld [vmem:[#allocation9 + $0x100] sm:$0xff]  ;;  %816 = vmatprep.subr.mxu0 %v6167_v17 }
 0x329   :  { %957 = vmatpush2.msra.mxu1 %v6147_v18  ;;  %817 = vmatpush2.msra.mxu0 %v6171_v19 }
 0x32a   :  { %958 = vmatprep.subr.mxu1 %v6151_v26  ;;  %1046 = vmatprep.subr.mxu0 %v5916_v27  ;;  %v541_v26 = vld [vmem:[#allocation4 + $0x38] sm:$0xff] }
 0x32b   :  { %959 = vmatpush2.msra.mxu1 %v6155_v25  ;;  %v540_v25 = vld [vmem:[#allocation4 + $0x30] sm:$0xff]  ;;  %v543_v18 = vadd.f32 %v541_v26, %v5835_v61  ;;  %v9201_v26 = vld [vmem:[#allocation28_spill] sm:$0xff] }
 0x32c   :  { %960 = vmatprep.subr.mxu1 %v6159_v50  ;;  %v542_v50 = vadd.f32 %v540_v25, %v5833_v57  ;;  %v9200_v25 = vld [vmem:[#allocation27_spill] sm:$0xff] }
 0x32d   :  { %961 = vmatpush2.msra.mxu1 %v6163_v51 }
 0x32e   :  { %962 = vmatprep.subr.mxu1 %v6167_v17 }
 0x32f   :  { %963 = vmatpush2.msra.mxu1 %v6171_v19 }
 0x330   :  { %1192 = vmatprep.subr.mxu1 %v5916_v27  ;;  %v9202_v27 = vld [vmem:[#allocation29_spill] sm:$0xff] }
 0x3b0   :  { %v674_v16 = vpop.f32.mrf.mxu1 }
 0x3b1   :  { %v679_v51 = vadd.f32 %v674_v16, %v542_v50  ;;  %v9198_v50 = vld [vmem:[#allocation25_spill] sm:$0xff] }
 0x3b2   :  { %v676_v15 = vpop.f32.mrf.mxu1  ;;  %v9206_v16 = vld [vmem:[#allocation33_spill] sm:$0xff] }
 0x3b3   :  { %v680_v14 = vadd.f32 %v676_v15, %v543_v18  ;;  %v9203_v18 = vld [vmem:[#allocation30_spill] sm:$0xff]  ;;  %v9205_v15 = vld [vmem:[#allocation32_spill] sm:$0xff] }
 0x3b5   :  { %5197 = vtanh.f32 %v680_v14  ;;  %v9204_v14 = vld [vmem:[#allocation31_spill] sm:$0xff] }
 0x3b6   :  { %5199 = vtanh.f32 %v679_v51  ;;  %v9199_v51 = vld [vmem:[#allocation26_spill] sm:$0xff] }
 0x3c2   :  { %v6184_v17 = vpop.eup %5197 }
 0x3c3   :  { %9196 = vst [vmem:[#allocation39_spill] sm:$0xff] %v6184_v17  ;;  %v6186_v13 = vpop.eup %5199  ;;  %818 = vmatprep.mubr.f32.mxu0 %v6184_v17  ;;  %v9208_v17 = vld [vmem:[#allocation37_spill] sm:$0xff] }
 0x3c4   :  { %9197 = vst [vmem:[#allocation40_spill] sm:$0xff] %v6186_v13  ;;  %819 = vmatmul.mubr.f32.vlgmr.msra.gmra.mxu0 %v6186_v13  ;;  %v9207_v13 = vld [vmem:[#allocation34_spill] sm:$0xff] }
 0x3c5   :  { %1047 = vmatpush1.msra.mxu0 %v5918_v28 }
 0x3c6   :  { %1048 = vmatprep.subr.mxu0 %v5920_v29 }
 0x3c7   :  { %1049 = vmatpush1.msra.mxu0 %v5923_v30 }
 0x3c8   :  { %1050 = vmatprep.subr.mxu0 %v5927_v31 }
 0x3c9   :  { %1051 = vmatpush1.msra.mxu0 %v5930_v32 }
 0x3ca   :  { %1052 = vmatprep.subr.mxu0 %v5933_v33 }
 0x3cb   :  { %1053 = vmatpush1.msra.mxu0 %v5936_v34 }
 0x3cc   :  { %1054 = vmatprep.subr.mxu0 %v5939_v35 }
 0x3cd   :  { %1055 = vmatpush1.msra.mxu0 %v5942_v36 }
 0x3ce   :  { %1056 = vmatprep.subr.mxu0 %v5945_v37 }
 0x3cf   :  { %1057 = vmatpush1.msra.mxu0 %v5948_v38 }
 0x3d0   :  { %1058 = vmatprep.subr.mxu0 %v5951_v39 }
 0x3d1   :  { %1059 = vmatpush1.msra.mxu0 %v5954_v40 }
 0x3d2   :  { %1060 = vmatprep.subr.mxu0 %v5957_v41 }
 0x3d3   :  { %1061 = vmatpush1.msra.mxu0 %v5960_v42 }
 0x3d4   :  { %1062 = vmatprep.subr.mxu0 %v5963_v43 }
 0x3d5   :  { %1063 = vmatpush1.msra.mxu0 %v5966_v44 }
 0x3d6   :  { %1064 = vmatprep.subr.mxu0 %v5969_v45 }
 0x3d7   :  { %1065 = vmatpush1.msra.mxu0 %v5972_v46 }
 0x3d8   :  { %1066 = vmatprep.subr.mxu0 %v5975_v47 }
 0x3d9   :  { %1067 = vmatpush1.msra.mxu0 %v5978_v48 }
 0x3da   :  { %1068 = vmatprep.subr.mxu0 %v5981_v49 }
 0x3db   :  { %1069 = vmatpush1.msra.mxu0 %v5984_v52 }
 0x3dc   :  { %1070 = vmatprep.subr.mxu0 %v5987_v53 }
 0x3dd   :  { %1071 = vmatpush1.msra.mxu0 %v5990_v54 }
 0x3de   :  { %1072 = vmatprep.subr.mxu0 %v5993_v56 }
 0x3df   :  { %1073 = vmatpush1.msra.mxu0 %v5996_v58 }
 0x3e0   :  { %1074 = vmatprep.subr.mxu0 %v5999_v59 }
 0x3e1   :  { %1075 = vmatpush1.msra.mxu0 %v6002_v60 }
 0x3e2   :  { %1076 = vmatprep.subr.mxu0 %v6005_v62 }
 0x3e3   :  { %1077 = vmatpush1.msra.mxu0 %v6008_v63 }
 0x3e4   :  { %1078 = vmatprep.subr.mxu0 %v6011_v24 }
 0x3e5   :  { %1079 = vmatpush2.msra.mxu0 %v6014_v0 }
 0x3e6   :  { %1080 = vmatprep.subr.mxu0 %v6017_v55 }
 0x3e7   :  { %1081 = vmatpush2.msra.mxu0 %v6020_v1 }
 0x3e8   :  { %1082 = vmatprep.subr.mxu0 %v6023_v2 }
 0x3e9   :  { %1083 = vmatpush2.msra.mxu0 %v6026_v3 }
 0x3ea   :  { %1084 = vmatprep.subr.mxu0 %v6029_v4 }
 0x3eb   :  { %1085 = vmatpush2.msra.mxu0 %v6032_v5 }
 0x3ec   :  { %1086 = vmatprep.subr.mxu0 %v6035_v6 }
 0x3ed   :  { %1087 = vmatpush2.msra.mxu0 %v6038_v7 }
 0x3ee   :  { %1088 = vmatprep.subr.mxu0 %v6041_v8 }
 0x3ef   :  { %1089 = vmatpush2.msra.mxu0 %v6044_v9 }
 0x3f0   :  { %1090 = vmatprep.subr.mxu0 %v6100_v20 }
 0x3f1   :  { %1091 = vmatpush2.msra.mxu0 %v6103_v21 }
 0x3f2   :  { %1092 = vmatprep.subr.mxu0 %v6107_v22 }
 0x3f3   :  { %1093 = vmatpush2.msra.mxu0 %v6111_v23 }
 0x3f4   :  { %1094 = vmatprep.subr.mxu0 %v6115_v10 }
 0x3f5   :  { %1095 = vmatpush2.msra.mxu0 %v6119_v11 }
 0x3f6   :  { %1096 = vmatprep.subr.mxu0 %v6123_v12 }
 0x3f7   :  { %1097 = vmatpush2.msra.mxu0 %v9198_v50  ;;  %v9209_v50 = vld [vmem:[#allocation38_spill] sm:$0xff] }
 0x3f8   :  { %1098 = vmatprep.subr.mxu0 %v9199_v51 }
 0x3f9   :  { %1099 = vmatpush2.msra.mxu0 %v9200_v25  ;;  %v686_v25 = vld [vmem:[#allocation4 + $0x40] sm:$0xff] }
 0x3fa   :  { %1100 = vmatprep.subr.mxu0 %v9201_v26  ;;  %v687_v26 = vld [vmem:[#allocation4 + $0x48] sm:$0xff] }
 0x3fb   :  { %1101 = vmatpush2.msra.mxu0 %v9202_v27  ;;  %v688_v27 = vadd.f32 %v686_v25, %v5833_v57  ;;  %v6430_v25 = vld [vmem:[#allocation9 + $0x1f0] sm:$0xff] }
 0x3fc   :  { %1102 = vmatprep.subr.mxu0 %v9203_v18  ;;  %v689_v18 = vadd.f32 %v687_v26, %v5835_v61  ;;  %v6433_v26 = vld [vmem:[#allocation9 + $0x1e8] sm:$0xff] }
 0x3fd   :  { %1103 = vmatpush2.msra.mxu0 %v9204_v14 }
 0x3fe   :  { %1104 = vmatprep.subr.mxu0 %v9205_v15 }
 0x3ff   :  { %1105 = vmatpush2.msra.mxu0 %v9206_v16 }
 0x400   :  { %1106 = vmatprep.subr.mxu0 %v9207_v13 }
 0x401   :  { %1107 = vmatpush2.msra.mxu0 %v9208_v17 }
 0x402   :  { %1108 = vmatprep.subr.mxu0 %v9209_v50 }
 0x403   :  { %1109 = vmatpush2.msra.mxu0 %v6171_v19 }
 0x484   :  { %v820_v51 = vpop.f32.mrf.mxu0 }
 0x485   :  { %v825_v14 = vadd.f32 %v820_v51, %v688_v27  ;;  %v6427_v51 = vld [vmem:[#allocation9 + $0x1f8] sm:$0xff]  ;;  %v6436_v27 = vld [vmem:[#allocation9 + $0x1e0] sm:$0xff] }
 0x486   :  { %v822_v12 = vpop.f32.mrf.mxu0 }
 0x487   :  { %v826_v15 = vadd.f32 %v822_v12, %v689_v18  ;;  %v6418_v12 = vld [vmem:[#allocation9 + $0x10] sm:$0xff]  ;;  %v6439_v18 = vld [vmem:[#allocation9 + $0x1d8] sm:$0xff] }
 0x489   :  { %5201 = vtanh.f32 %v826_v15  ;;  %v6445_v15 = vld [vmem:[#allocation9 + $0x1c8] sm:$0xff] }
 0x48a   :  { %5203 = vtanh.f32 %v825_v14  ;;  %v6442_v14 = vld [vmem:[#allocation9 + $0x1d0] sm:$0xff] }
 0x496   :  { %v6255_v16 = vpop.eup %5201 }
 0x497   :  { %9210 = vst [vmem:[#allocation37_spill] sm:$0xff] %v6255_v16  ;;  %v6257_v13 = vpop.eup %5203  ;;  %964 = vmatprep.mubr.f32.mxu1 %v6255_v16  ;;  %v6579_v16 = vld [vmem:[#allocation9 + $0x110] sm:$0xff] }
 0x498   :  { %9211 = vst [vmem:[#allocation38_spill] sm:$0xff] %v6257_v13  ;;  %965 = vmatmul.mubr.f32.vlgmr.msra.gmra.mxu1 %v6257_v13  ;;  %v6575_v13 = vld [vmem:[#allocation9 + $0x118] sm:$0xff]  ;;  %9238 = vst [vmem:[#allocation45_spill] sm:$0xff] %v6579_v16 }
 0x499   :  { %1193 = vmatpush1.msra.mxu1 %v5918_v28  ;;  %v9212_v28 = vld [vmem:[#allocation24_spill] sm:$0xff]  ;;  %9237 = vst [vmem:[#allocation44_spill] sm:$0xff] %v6575_v13 }
 0x49a   :  { %1194 = vmatprep.subr.mxu1 %v5920_v29  ;;  %v9213_v29 = vld [vmem:[#allocation25_spill] sm:$0xff] }
 0x49b   :  { %1195 = vmatpush1.msra.mxu1 %v5923_v30  ;;  %v9214_v30 = vld [vmem:[#allocation26_spill] sm:$0xff] }
 0x49c   :  { %1196 = vmatprep.subr.mxu1 %v5927_v31  ;;  %v9215_v31 = vld [vmem:[#allocation27_spill] sm:$0xff] }
 0x49d   :  { %1197 = vmatpush1.msra.mxu1 %v5930_v32  ;;  %v9216_v32 = vld [vmem:[#allocation28_spill] sm:$0xff] }
 0x49e   :  { %1198 = vmatprep.subr.mxu1 %v5933_v33  ;;  %v9217_v33 = vld [vmem:[#allocation29_spill] sm:$0xff] }
 0x49f   :  { %1199 = vmatpush1.msra.mxu1 %v5936_v34  ;;  %v9218_v34 = vld [vmem:[#allocation30_spill] sm:$0xff] }
 0x4a0   :  { %1200 = vmatprep.subr.mxu1 %v5939_v35  ;;  %v9219_v35 = vld [vmem:[#allocation31_spill] sm:$0xff] }
 0x4a1   :  { %1201 = vmatpush1.msra.mxu1 %v5942_v36  ;;  %v9220_v36 = vld [vmem:[#allocation32_spill] sm:$0xff] }
 0x4a2   :  { %1202 = vmatprep.subr.mxu1 %v5945_v37  ;;  %v9221_v37 = vld [vmem:[#allocation33_spill] sm:$0xff] }
 0x4a3   :  { %1203 = vmatpush1.msra.mxu1 %v5948_v38  ;;  %v9222_v38 = vld [vmem:[#allocation34_spill] sm:$0xff] }
 0x4a4   :  { %1204 = vmatprep.subr.mxu1 %v5951_v39  ;;  %v832_v39 = vld [vmem:[#allocation4 + $0x50] sm:$0xff] }
 0x4a5   :  { %1205 = vmatpush1.msra.mxu1 %v5954_v40  ;;  %v833_v40 = vld [vmem:[#allocation4 + $0x58] sm:$0xff] }
 0x4a6   :  { %1206 = vmatprep.subr.mxu1 %v5957_v41  ;;  %v834_v41 = vadd.f32 %v832_v39, %v5833_v57 }
 0x4a7   :  { %1207 = vmatpush1.msra.mxu1 %v5960_v42  ;;  %v835_v42 = vadd.f32 %v833_v40, %v5835_v61 }
 0x4a8   :  { %1208 = vmatprep.subr.mxu1 %v5963_v43 }
 0x4a9   :  { %1209 = vmatpush1.msra.mxu1 %v5966_v44 }
 0x4aa   :  { %1210 = vmatprep.subr.mxu1 %v5969_v45 }
 0x4ab   :  { %1211 = vmatpush1.msra.mxu1 %v5972_v46 }
 0x4ac   :  { %1212 = vmatprep.subr.mxu1 %v5975_v47 }
 0x4ad   :  { %1213 = vmatpush1.msra.mxu1 %v5978_v48 }
 0x4ae   :  { %1214 = vmatprep.subr.mxu1 %v5981_v49  ;;  %v6332_v49 = vld [vmem:[#allocation9 + $0xf8] sm:$0xff] }
 0x4af   :  { %1215 = vmatpush1.msra.mxu1 %v5984_v52  ;;  %v6334_v52 = vld [vmem:[#allocation9 + $0xf0] sm:$0xff]  ;;  %1338 = vmatprep.subr.mxu0 %v6332_v49 }
 0x4b0   :  { %1216 = vmatprep.subr.mxu1 %v5987_v53  ;;  %v6336_v53 = vld [vmem:[#allocation9 + $0xe8] sm:$0xff] }
 0x4b1   :  { %1217 = vmatpush1.msra.mxu1 %v5990_v54  ;;  %v6339_v54 = vld [vmem:[#allocation9 + $0xe0] sm:$0xff] }
 0x4b2   :  { %1218 = vmatprep.subr.mxu1 %v5993_v56  ;;  %v6343_v56 = vld [vmem:[#allocation9 + $0xd8] sm:$0xff] }
 0x4b3   :  { %1219 = vmatpush1.msra.mxu1 %v5996_v58  ;;  %v6346_v58 = vld [vmem:[#allocation9 + $0xd0] sm:$0xff] }
 0x4b4   :  { %1220 = vmatprep.subr.mxu1 %v5999_v59  ;;  %v6349_v59 = vld [vmem:[#allocation9 + $0xc8] sm:$0xff] }
 0x4b5   :  { %1221 = vmatpush1.msra.mxu1 %v6002_v60  ;;  %v6352_v60 = vld [vmem:[#allocation9 + $0xc0] sm:$0xff] }
 0x4b6   :  { %1222 = vmatprep.subr.mxu1 %v6005_v62  ;;  %v6355_v62 = vld [vmem:[#allocation9 + $0xb8] sm:$0xff] }
 0x4b7   :  { %1223 = vmatpush1.msra.mxu1 %v6008_v63  ;;  %v6358_v63 = vld [vmem:[#allocation9 + $0xb0] sm:$0xff] }
 0x4b8   :  { %1224 = vmatprep.subr.mxu1 %v6011_v24  ;;  %v6361_v24 = vld [vmem:[#allocation9 + $0xa8] sm:$0xff] }
 0x4b9   :  { %1225 = vmatpush2.msra.mxu1 %v6014_v0  ;;  %v6364_v0 = vld [vmem:[#allocation9 + $0xa0] sm:$0xff] }
 0x4ba   :  { %1226 = vmatprep.subr.mxu1 %v6017_v55  ;;  %v6367_v55 = vld [vmem:[#allocation9 + $0x98] sm:$0xff] }
 0x4bb   :  { %1227 = vmatpush2.msra.mxu1 %v6020_v1  ;;  %v6370_v1 = vld [vmem:[#allocation9 + $0x90] sm:$0xff] }
 0x4bc   :  { %1228 = vmatprep.subr.mxu1 %v6023_v2  ;;  %v6373_v2 = vld [vmem:[#allocation9 + $0x88] sm:$0xff] }
 0x4bd   :  { %1229 = vmatpush2.msra.mxu1 %v6026_v3  ;;  %v6376_v3 = vld [vmem:[#allocation9 + $0x80] sm:$0xff] }
 0x4be   :  { %1230 = vmatprep.subr.mxu1 %v6029_v4  ;;  %v6379_v4 = vld [vmem:[#allocation9 + $0x78] sm:$0xff] }
 0x4bf   :  { %1231 = vmatpush2.msra.mxu1 %v6032_v5  ;;  %v6382_v5 = vld [vmem:[#allocation9 + $0x70] sm:$0xff] }
 0x4c0   :  { %1232 = vmatprep.subr.mxu1 %v6035_v6  ;;  %v6385_v6 = vld [vmem:[#allocation9 + $0x68] sm:$0xff] }
 0x4c1   :  { %1233 = vmatpush2.msra.mxu1 %v6038_v7  ;;  %v6388_v7 = vld [vmem:[#allocation9 + $0x60] sm:$0xff] }
 0x4c2   :  { %1234 = vmatprep.subr.mxu1 %v6041_v8  ;;  %v6391_v8 = vld [vmem:[#allocation9 + $0x58] sm:$0xff] }
 0x4c3   :  { %1235 = vmatpush2.msra.mxu1 %v6044_v9  ;;  %v6394_v9 = vld [vmem:[#allocation9 + $0x50] sm:$0xff] }
 0x4c4   :  { %1236 = vmatprep.subr.mxu1 %v6100_v20  ;;  %v6400_v20 = vld [vmem:[#allocation9 + $0x40] sm:$0xff] }
 0x4c5   :  { %1237 = vmatpush2.msra.mxu1 %v6103_v21  ;;  %v6403_v21 = vld [vmem:[#allocation9 + $0x38] sm:$0xff] }
 0x4c6   :  { %1238 = vmatprep.subr.mxu1 %v6107_v22  ;;  %v6406_v22 = vld [vmem:[#allocation9 + $0x30] sm:$0xff] }
 0x4c7   :  { %1239 = vmatpush2.msra.mxu1 %v6111_v23  ;;  %v6409_v23 = vld [vmem:[#allocation9 + $0x28] sm:$0xff] }
 0x4c8   :  { %1240 = vmatprep.subr.mxu1 %v6115_v10  ;;  %v6412_v10 = vld [vmem:[#allocation9 + $0x20] sm:$0xff] }
 0x4c9   :  { %1241 = vmatpush2.msra.mxu1 %v6119_v11  ;;  %v6415_v11 = vld [vmem:[#allocation9 + $0x18] sm:$0xff] }
 0x4ca   :  { %1242 = vmatprep.subr.mxu1 %v9212_v28  ;;  %v6448_v28 = vld [vmem:[#allocation9 + $0x1c0] sm:$0xff] }
 0x4cb   :  { %1243 = vmatpush2.msra.mxu1 %v9213_v29  ;;  %v6451_v29 = vld [vmem:[#allocation9 + $0x1b8] sm:$0xff] }
 0x4cc   :  { %1244 = vmatprep.subr.mxu1 %v9214_v30  ;;  %v6454_v30 = vld [vmem:[#allocation9 + $0x1b0] sm:$0xff] }
 0x4cd   :  { %1245 = vmatpush2.msra.mxu1 %v9215_v31  ;;  %v6457_v31 = vld [vmem:[#allocation9 + $0x1a8] sm:$0xff] }
 0x4ce   :  { %1246 = vmatprep.subr.mxu1 %v9216_v32  ;;  %v6460_v32 = vld [vmem:[#allocation9 + $0x1a0] sm:$0xff] }
 0x4cf   :  { %1247 = vmatpush2.msra.mxu1 %v9217_v33  ;;  %v978_v33 = vld [vmem:[#allocation4 + $0x60] sm:$0xff] }
 0x4d0   :  { %1248 = vmatprep.subr.mxu1 %v9218_v34  ;;  %v979_v34 = vld [vmem:[#allocation4 + $0x68] sm:$0xff] }
 0x4d1   :  { %1249 = vmatpush2.msra.mxu1 %v9219_v35  ;;  %v980_v35 = vadd.f32 %v978_v33, %v5833_v57  ;;  %v6531_v33 = vld [vmem:[#allocation9 + $0x178] sm:$0xff] }
 0x4d2   :  { %1250 = vmatprep.subr.mxu1 %v9220_v36  ;;  %v981_v36 = vadd.f32 %v979_v34, %v5835_v61  ;;  %v6535_v34 = vld [vmem:[#allocation9 + $0x170] sm:$0xff] }
 0x4d3   :  { %1251 = vmatpush2.msra.mxu1 %v9221_v37 }
 0x4d4   :  { %1252 = vmatprep.subr.mxu1 %v9222_v38 }
 0x4d5   :  { %1253 = vmatpush2.msra.mxu1 %v9208_v17  ;;  %v6421_v17 = vld [vmem:[#allocation9 + $0x8] sm:$0xff] }
 0x4d6   :  { %1254 = vmatprep.subr.mxu1 %v9209_v50  ;;  %v6424_v50 = vld [vmem:[#allocation9] sm:$0xff] }
 0x4d7   :  { %1255 = vmatpush2.msra.mxu1 %v6171_v19  ;;  %v6397_v19 = vld [vmem:[#allocation9 + $0x48] sm:$0xff] }
 0x4d8   :  { %1484 = vmatprep.subr.mxu1 %v6332_v49 }
 0x558   :  { %v966_v43 = vpop.f32.mrf.mxu1 }
 0x559   :  { %v971_v44 = vadd.f32 %v966_v43, %v834_v41  ;;  %v6516_v43 = vld [vmem:[#allocation9 + $0x198] sm:$0xff] }
 0x55a   :  { %v968_v45 = vpop.f32.mrf.mxu1 }
 0x55b   :  { %v972_v46 = vadd.f32 %v968_v45, %v835_v42  ;;  %v6523_v45 = vld [vmem:[#allocation9 + $0x188] sm:$0xff] }
 0x55d   :  { %5205 = vtanh.f32 %v972_v46  ;;  %v6527_v46 = vld [vmem:[#allocation9 + $0x180] sm:$0xff] }
 0x55e   :  { %5207 = vtanh.f32 %v971_v44  ;;  %v6519_v44 = vld [vmem:[#allocation9 + $0x190] sm:$0xff] }
 0x56a   :  { %v6326_v47 = vpop.eup %5205 }
 0x56b   :  { %9223 = vst [vmem:[#allocation24_spill] sm:$0xff] %v6326_v47  ;;  %v6328_v48 = vpop.eup %5207  ;;  %1110 = vmatprep.mubr.f32.mxu0 %v6326_v47  ;;  %v6571_v47 = vld [vmem:[#allocation9 + $0x120] sm:$0xff] }
 0x56c   :  { %9224 = vst [vmem:[#allocation25_spill] sm:$0xff] %v6328_v48  ;;  %1111 = vmatmul.mubr.f32.vlgmr.msra.gmra.mxu0 %v6328_v48  ;;  %v6567_v48 = vld [vmem:[#allocation9 + $0x128] sm:$0xff]  ;;  %9236 = vst [vmem:[#allocation43_spill] sm:$0xff] %v6571_v47 }
 0x56d   :  { %1339 = vmatpush1.msra.mxu0 %v6334_v52  ;;  %9235 = vst [vmem:[#allocation42_spill] sm:$0xff] %v6567_v48 }
 0x56e   :  { %1340 = vmatprep.subr.mxu0 %v6336_v53 }
 0x56f   :  { %1341 = vmatpush1.msra.mxu0 %v6339_v54 }
 0x570   :  { %1342 = vmatprep.subr.mxu0 %v6343_v56 }
 0x571   :  { %1343 = vmatpush1.msra.mxu0 %v6346_v58 }
 0x572   :  { %1344 = vmatprep.subr.mxu0 %v6349_v59 }
 0x573   :  { %1345 = vmatpush1.msra.mxu0 %v6352_v60 }
 0x574   :  { %1346 = vmatprep.subr.mxu0 %v6355_v62 }
 0x575   :  { %1347 = vmatpush1.msra.mxu0 %v6358_v63 }
 0x576   :  { %1348 = vmatprep.subr.mxu0 %v6361_v24 }
 0x577   :  { %1349 = vmatpush1.msra.mxu0 %v6364_v0 }
 0x578   :  { %1350 = vmatprep.subr.mxu0 %v6367_v55 }
 0x579   :  { %1351 = vmatpush1.msra.mxu0 %v6370_v1 }
 0x57a   :  { %1352 = vmatprep.subr.mxu0 %v6373_v2 }
 0x57b   :  { %1353 = vmatpush1.msra.mxu0 %v6376_v3 }
 0x57c   :  { %1354 = vmatprep.subr.mxu0 %v6379_v4 }
 0x57d   :  { %1355 = vmatpush1.msra.mxu0 %v6382_v5 }
 0x57e   :  { %1356 = vmatprep.subr.mxu0 %v6385_v6 }
 0x57f   :  { %1357 = vmatpush1.msra.mxu0 %v6388_v7 }
 0x580   :  { %1358 = vmatprep.subr.mxu0 %v6391_v8 }
 0x581   :  { %1359 = vmatpush1.msra.mxu0 %v6394_v9 }
 0x582   :  { %1360 = vmatprep.subr.mxu0 %v6397_v19 }
 0x583   :  { %1361 = vmatpush1.msra.mxu0 %v6400_v20 }
 0x584   :  { %1362 = vmatprep.subr.mxu0 %v6403_v21 }
 0x585   :  { %1363 = vmatpush1.msra.mxu0 %v6406_v22 }
 0x586   :  { %1364 = vmatprep.subr.mxu0 %v6409_v23 }
 0x587   :  { %1365 = vmatpush1.msra.mxu0 %v6412_v10 }
 0x588   :  { %1366 = vmatprep.subr.mxu0 %v6415_v11 }
 0x589   :  { %1367 = vmatpush1.msra.mxu0 %v6418_v12 }
 0x58a   :  { %1368 = vmatprep.subr.mxu0 %v6421_v17 }
 0x58b   :  { %1369 = vmatpush1.msra.mxu0 %v6424_v50 }
 0x58c   :  { %1370 = vmatprep.subr.mxu0 %v6427_v51 }
 0x58d   :  { %1371 = vmatpush2.msra.mxu0 %v6430_v25 }
 0x58e   :  { %1372 = vmatprep.subr.mxu0 %v6433_v26 }
 0x58f   :  { %1373 = vmatpush2.msra.mxu0 %v6436_v27 }
 0x590   :  { %1374 = vmatprep.subr.mxu0 %v6439_v18 }
 0x591   :  { %1375 = vmatpush2.msra.mxu0 %v6442_v14 }
 0x592   :  { %1376 = vmatprep.subr.mxu0 %v6445_v15 }
 0x593   :  { %1377 = vmatpush2.msra.mxu0 %v6448_v28 }
 0x594   :  { %1378 = vmatprep.subr.mxu0 %v6451_v29 }
 0x595   :  { %1379 = vmatpush2.msra.mxu0 %v6454_v30 }
 0x596   :  { %1380 = vmatprep.subr.mxu0 %v6457_v31 }
 0x597   :  { %1381 = vmatpush2.msra.mxu0 %v6460_v32 }
 0x598   :  { %1382 = vmatprep.subr.mxu0 %v6516_v43 }
 0x599   :  { %1383 = vmatpush2.msra.mxu0 %v6519_v44 }
 0x59a   :  { %1384 = vmatprep.subr.mxu0 %v6523_v45 }
 0x59b   :  { %1385 = vmatpush2.msra.mxu0 %v6527_v46 }
 0x59c   :  { %1386 = vmatprep.subr.mxu0 %v6531_v33 }
 0x59d   :  { %1387 = vmatpush2.msra.mxu0 %v6535_v34 }
 0x62c   :  { %v1112_v37 = vpop.f32.mrf.mxu0 }
 0x62d   :  { %v1117_v38 = vadd.f32 %v1112_v37, %v980_v35  ;;  %v6539_v35 = vld [vmem:[#allocation9 + $0x168] sm:$0xff]  ;;  %v6543_v37 = vld [vmem:[#allocation9 + $0x158] sm:$0xff] }
 0x62e   :  { %v1114_v39 = vpop.f32.mrf.mxu0  ;;  %9227 = vst [vmem:[#allocation28_spill] sm:$0xff] %v6539_v35  ;;  %9229 = vst [vmem:[#allocation30_spill] sm:$0xff] %v6543_v37  ;;  %1388 = vmatprep.subr.mxu0 %v6539_v35 }
 0x62f   :  { %v1118_v40 = vadd.f32 %v1114_v39, %v981_v36  ;;  %v6541_v36 = vld [vmem:[#allocation9 + $0x160] sm:$0xff]  ;;  %v6551_v39 = vld [vmem:[#allocation9 + $0x148] sm:$0xff] }
 0x630   :  { %9228 = vst [vmem:[#allocation29_spill] sm:$0xff] %v6541_v36  ;;  %1389 = vmatpush2.msra.mxu0 %v6541_v36  ;;  %9231 = vst [vmem:[#allocation32_spill] sm:$0xff] %v6551_v39 }
 0x631   :  { %5209 = vtanh.f32 %v1118_v40  ;;  %1390 = vmatprep.subr.mxu0 %v6543_v37  ;;  %v6555_v40 = vld [vmem:[#allocation9 + $0x140] sm:$0xff] }
 0x632   :  { %5211 = vtanh.f32 %v1117_v38  ;;  %v6547_v38 = vld [vmem:[#allocation9 + $0x150] sm:$0xff]  ;;  %9232 = vst [vmem:[#allocation33_spill] sm:$0xff] %v6555_v40 }
 0x633   :  { %9230 = vst [vmem:[#allocation31_spill] sm:$0xff] %v6547_v38  ;;  %1391 = vmatpush2.msra.mxu0 %v6547_v38 }
 0x634   :  { %1392 = vmatprep.subr.mxu0 %v6551_v39 }
 0x635   :  { %1393 = vmatpush2.msra.mxu0 %v6555_v40 }
 0x63e   :  { %v6467_v41 = vpop.eup %5209 }
 0x63f   :  { %9225 = vst [vmem:[#allocation26_spill] sm:$0xff] %v6467_v41  ;;  %v6469_v42 = vpop.eup %5211  ;;  %1256 = vmatprep.mubr.f32.mxu1 %v6467_v41  ;;  %v6563_v41 = vld [vmem:[#allocation9 + $0x130] sm:$0xff] }
 0x640   :  { %9226 = vst [vmem:[#allocation27_spill] sm:$0xff] %v6469_v42  ;;  %1257 = vmatmul.mubr.f32.vlgmr.msra.gmra.mxu1 %v6469_v42  ;;  %v6559_v42 = vld [vmem:[#allocation9 + $0x138] sm:$0xff]  ;;  %9234 = vst [vmem:[#allocation41_spill] sm:$0xff] %v6563_v41 }
 0x641   :  { %1485 = vmatpush1.msra.mxu1 %v6334_v52  ;;  %9233 = vst [vmem:[#allocation34_spill] sm:$0xff] %v6559_v42  ;;  %1394 = vmatprep.subr.mxu0 %v6559_v42 }
 0x642   :  { %1486 = vmatprep.subr.mxu1 %v6336_v53  ;;  %1395 = vmatpush2.msra.mxu0 %v6563_v41 }
 0x643   :  { %1487 = vmatpush1.msra.mxu1 %v6339_v54  ;;  %1396 = vmatprep.subr.mxu0 %v6567_v48 }
 0x644   :  { %1488 = vmatprep.subr.mxu1 %v6343_v56  ;;  %1397 = vmatpush2.msra.mxu0 %v6571_v47 }
 0x645   :  { %1489 = vmatpush1.msra.mxu1 %v6346_v58  ;;  %1398 = vmatprep.subr.mxu0 %v6575_v13 }
 0x646   :  { %1490 = vmatprep.subr.mxu1 %v6349_v59  ;;  %1399 = vmatpush2.msra.mxu0 %v6579_v16 }
 0x647   :  { %1491 = vmatpush1.msra.mxu1 %v6352_v60 }
 0x648   :  { %1492 = vmatprep.subr.mxu1 %v6355_v62 }
 0x649   :  { %1493 = vmatpush1.msra.mxu1 %v6358_v63 }
 0x64a   :  { %1494 = vmatprep.subr.mxu1 %v6361_v24 }
 0x64b   :  { %1495 = vmatpush1.msra.mxu1 %v6364_v0 }
 0x64c   :  { %1496 = vmatprep.subr.mxu1 %v6367_v55 }
 0x64d   :  { %1497 = vmatpush1.msra.mxu1 %v6370_v1 }
 0x64e   :  { %1498 = vmatprep.subr.mxu1 %v6373_v2 }
 0x64f   :  { %1499 = vmatpush1.msra.mxu1 %v6376_v3 }
 0x650   :  { %1500 = vmatprep.subr.mxu1 %v6379_v4 }
 0x651   :  { %1501 = vmatpush1.msra.mxu1 %v6382_v5 }
 0x652   :  { %1502 = vmatprep.subr.mxu1 %v6385_v6 }
 0x653   :  { %1503 = vmatpush1.msra.mxu1 %v6388_v7 }
 0x654   :  { %1504 = vmatprep.subr.mxu1 %v6391_v8 }
 0x655   :  { %1505 = vmatpush1.msra.mxu1 %v6394_v9 }
 0x656   :  { %1506 = vmatprep.subr.mxu1 %v6397_v19 }
 0x657   :  { %1507 = vmatpush1.msra.mxu1 %v6400_v20 }
 0x658   :  { %1508 = vmatprep.subr.mxu1 %v6403_v21 }
 0x659   :  { %1509 = vmatpush1.msra.mxu1 %v6406_v22 }
 0x65a   :  { %1510 = vmatprep.subr.mxu1 %v6409_v23 }
 0x65b   :  { %1511 = vmatpush1.msra.mxu1 %v6412_v10 }
 0x65c   :  { %1512 = vmatprep.subr.mxu1 %v6415_v11 }
 0x65d   :  { %1513 = vmatpush1.msra.mxu1 %v6418_v12 }
 0x65e   :  { %1514 = vmatprep.subr.mxu1 %v6421_v17 }
 0x65f   :  { %1515 = vmatpush1.msra.mxu1 %v6424_v50 }
 0x660   :  { %1516 = vmatprep.subr.mxu1 %v6427_v51 }
 0x661   :  { %1517 = vmatpush2.msra.mxu1 %v6430_v25 }
 0x662   :  { %1518 = vmatprep.subr.mxu1 %v6433_v26 }
 0x663   :  { %1519 = vmatpush2.msra.mxu1 %v6436_v27 }
 0x664   :  { %1520 = vmatprep.subr.mxu1 %v6439_v18 }
 0x665   :  { %1521 = vmatpush2.msra.mxu1 %v6442_v14 }
 0x666   :  { %1522 = vmatprep.subr.mxu1 %v6445_v15 }
 0x667   :  { %1523 = vmatpush2.msra.mxu1 %v6448_v28 }
 0x668   :  { %1524 = vmatprep.subr.mxu1 %v6451_v29 }
 0x669   :  { %1525 = vmatpush2.msra.mxu1 %v6454_v30 }
 0x66a   :  { %1526 = vmatprep.subr.mxu1 %v6457_v31 }
 0x66b   :  { %1527 = vmatpush2.msra.mxu1 %v6460_v32 }
 0x66c   :  { %1528 = vmatprep.subr.mxu1 %v6516_v43 }
 0x66d   :  { %1529 = vmatpush2.msra.mxu1 %v6519_v44 }
 0x66e   :  { %1530 = vmatprep.subr.mxu1 %v6523_v45 }
 0x66f   :  { %1531 = vmatpush2.msra.mxu1 %v6527_v46 }
 0x670   :  { %1532 = vmatprep.subr.mxu1 %v6531_v33 }
 0x671   :  { %1533 = vmatpush2.msra.mxu1 %v6535_v34 }
 0x672   :  { %1534 = vmatprep.subr.mxu1 %v6539_v35 }
 0x673   :  { %1535 = vmatpush2.msra.mxu1 %v6541_v36 }
 0x674   :  { %1536 = vmatprep.subr.mxu1 %v6543_v37 }
 0x675   :  { %1537 = vmatpush2.msra.mxu1 %v6547_v38 }
 0x676   :  { %1538 = vmatprep.subr.mxu1 %v6551_v39 }
 0x677   :  { %1539 = vmatpush2.msra.mxu1 %v6555_v40  ;;  %v6583_v40 = vld [vmem:[#allocation9 + $0x108] sm:$0xff] }
 0x678   :  { %1540 = vmatprep.subr.mxu1 %v6559_v42  ;;  %9239 = vst [vmem:[#allocation46_spill] sm:$0xff] %v6583_v40  ;;  %v6587_v42 = vld [vmem:[#allocation9 + $0x100] sm:$0xff]  ;;  %1400 = vmatprep.subr.mxu0 %v6583_v40 }
 0x679   :  { %1541 = vmatpush2.msra.mxu1 %v6563_v41  ;;  %1401 = vmatpush2.msra.mxu0 %v6587_v42 }
 0x67a   :  { %1542 = vmatprep.subr.mxu1 %v6567_v48  ;;  %1630 = vmatprep.subr.mxu0 %v6332_v49  ;;  %v1125_v48 = vld [vmem:[#allocation4 + $0x78] sm:$0xff] }
 0x67b   :  { %1543 = vmatpush2.msra.mxu1 %v6571_v47  ;;  %v1124_v47 = vld [vmem:[#allocation4 + $0x70] sm:$0xff]  ;;  %v1127_v41 = vadd.f32 %v1125_v48, %v5835_v61  ;;  %v9245_v48 = vld [vmem:[#allocation32_spill] sm:$0xff] }
 0x67c   :  { %1544 = vmatprep.subr.mxu1 %v6575_v13  ;;  %v1126_v13 = vadd.f32 %v1124_v47, %v5833_v57  ;;  %v9244_v47 = vld [vmem:[#allocation31_spill] sm:$0xff] }
 0x67d   :  { %1545 = vmatpush2.msra.mxu1 %v6579_v16 }
 0x67e   :  { %1546 = vmatprep.subr.mxu1 %v6583_v40 }
 0x67f   :  { %1547 = vmatpush2.msra.mxu1 %v6587_v42 }
 0x680   :  { %1776 = vmatprep.subr.mxu1 %v6332_v49  ;;  %v9246_v49 = vld [vmem:[#allocation33_spill] sm:$0xff] }
 0x700   :  { %v1258_v39 = vpop.f32.mrf.mxu1 }
 0x701   :  { %v1263_v16 = vadd.f32 %v1258_v39, %v1126_v13  ;;  %v9242_v13 = vld [vmem:[#allocation29_spill] sm:$0xff]  ;;  %v9250_v39 = vld [vmem:[#allocation43_spill] sm:$0xff] }
 0x702   :  { %v1260_v38 = vpop.f32.mrf.mxu1 }
 0x703   :  { %v1264_v37 = vadd.f32 %v1260_v38, %v1127_v41  ;;  %v9247_v41 = vld [vmem:[#allocation34_spill] sm:$0xff] }
 0x704   :  { %v9249_v38 = vld [vmem:[#allocation42_spill] sm:$0xff] }
 0x705   :  { %5213 = vtanh.f32 %v1264_v37  ;;  %v9248_v37 = vld [vmem:[#allocation41_spill] sm:$0xff] }
 0x706   :  { %5215 = vtanh.f32 %v1263_v16  ;;  %v9243_v16 = vld [vmem:[#allocation30_spill] sm:$0xff] }
 0x712   :  { %v6600_v40 = vpop.eup %5213 }
 0x713   :  { %9240 = vst [vmem:[#allocation47_spill] sm:$0xff] %v6600_v40  ;;  %v6602_v36 = vpop.eup %5215  ;;  %1402 = vmatprep.mubr.f32.mxu0 %v6600_v40  ;;  %v9252_v40 = vld [vmem:[#allocation45_spill] sm:$0xff] }
 0x714   :  { %9241 = vst [vmem:[#allocation48_spill] sm:$0xff] %v6602_v36  ;;  %1403 = vmatmul.mubr.f32.vlgmr.msra.gmra.mxu0 %v6602_v36  ;;  %v9251_v36 = vld [vmem:[#allocation44_spill] sm:$0xff] }
 0x715   :  { %1631 = vmatpush1.msra.mxu0 %v6334_v52 }
 0x716   :  { %1632 = vmatprep.subr.mxu0 %v6336_v53 }
 0x717   :  { %1633 = vmatpush1.msra.mxu0 %v6339_v54 }
 0x718   :  { %1634 = vmatprep.subr.mxu0 %v6343_v56 }
 0x719   :  { %1635 = vmatpush1.msra.mxu0 %v6346_v58 }
 0x71a   :  { %1636 = vmatprep.subr.mxu0 %v6349_v59 }
 0x71b   :  { %1637 = vmatpush1.msra.mxu0 %v6352_v60 }
 0x71c   :  { %1638 = vmatprep.subr.mxu0 %v6355_v62 }
 0x71d   :  { %1639 = vmatpush1.msra.mxu0 %v6358_v63 }
 0x71e   :  { %1640 = vmatprep.subr.mxu0 %v6361_v24 }
 0x71f   :  { %1641 = vmatpush1.msra.mxu0 %v6364_v0 }
 0x720   :  { %1642 = vmatprep.subr.mxu0 %v6367_v55 }
 0x721   :  { %1643 = vmatpush1.msra.mxu0 %v6370_v1 }
 0x722   :  { %1644 = vmatprep.subr.mxu0 %v6373_v2 }
 0x723   :  { %1645 = vmatpush1.msra.mxu0 %v6376_v3 }
 0x724   :  { %1646 = vmatprep.subr.mxu0 %v6379_v4 }
 0x725   :  { %1647 = vmatpush1.msra.mxu0 %v6382_v5 }
 0x726   :  { %1648 = vmatprep.subr.mxu0 %v6385_v6 }
 0x727   :  { %1649 = vmatpush1.msra.mxu0 %v6388_v7 }
 0x728   :  { %1650 = vmatprep.subr.mxu0 %v6391_v8 }
 0x729   :  { %1651 = vmatpush1.msra.mxu0 %v6394_v9 }
 0x72a   :  { %1652 = vmatprep.subr.mxu0 %v6397_v19 }
 0x72b   :  { %1653 = vmatpush1.msra.mxu0 %v6400_v20 }
 0x72c   :  { %1654 = vmatprep.subr.mxu0 %v6403_v21 }
 0x72d   :  { %1655 = vmatpush1.msra.mxu0 %v6406_v22 }
 0x72e   :  { %1656 = vmatprep.subr.mxu0 %v6409_v23 }
 0x72f   :  { %1657 = vmatpush1.msra.mxu0 %v6412_v10 }
 0x730   :  { %1658 = vmatprep.subr.mxu0 %v6415_v11 }
 0x731   :  { %1659 = vmatpush1.msra.mxu0 %v6418_v12 }
 0x732   :  { %1660 = vmatprep.subr.mxu0 %v6421_v17 }
 0x733   :  { %1661 = vmatpush1.msra.mxu0 %v6424_v50 }
 0x734   :  { %1662 = vmatprep.subr.mxu0 %v6427_v51 }
 0x735   :  { %1663 = vmatpush2.msra.mxu0 %v6430_v25 }
 0x736   :  { %1664 = vmatprep.subr.mxu0 %v6433_v26 }
 0x737   :  { %1665 = vmatpush2.msra.mxu0 %v6436_v27 }
 0x738   :  { %1666 = vmatprep.subr.mxu0 %v6439_v18 }
 0x739   :  { %1667 = vmatpush2.msra.mxu0 %v6442_v14 }
 0x73a   :  { %1668 = vmatprep.subr.mxu0 %v6445_v15 }
 0x73b   :  { %1669 = vmatpush2.msra.mxu0 %v6448_v28 }
 0x73c   :  { %1670 = vmatprep.subr.mxu0 %v6451_v29 }
 0x73d   :  { %1671 = vmatpush2.msra.mxu0 %v6454_v30 }
 0x73e   :  { %1672 = vmatprep.subr.mxu0 %v6457_v31 }
 0x73f   :  { %1673 = vmatpush2.msra.mxu0 %v6460_v32 }
 0x740   :  { %1674 = vmatprep.subr.mxu0 %v6516_v43 }
 0x741   :  { %1675 = vmatpush2.msra.mxu0 %v6519_v44 }
 0x742   :  { %1676 = vmatprep.subr.mxu0 %v6523_v45 }
 0x743   :  { %1677 = vmatpush2.msra.mxu0 %v6527_v46 }
 0x744   :  { %1678 = vmatprep.subr.mxu0 %v6531_v33 }
 0x745   :  { %1679 = vmatpush2.msra.mxu0 %v6535_v34 }
 0x746   :  { %1680 = vmatprep.subr.mxu0 %v6539_v35 }
 0x747   :  { %1681 = vmatpush2.msra.mxu0 %v9242_v13  ;;  %v9253_v13 = vld [vmem:[#allocation46_spill] sm:$0xff] }
 0x748   :  { %1682 = vmatprep.subr.mxu0 %v9243_v16 }
 0x749   :  { %1683 = vmatpush2.msra.mxu0 %v9244_v47  ;;  %v1270_v47 = vld [vmem:[#allocation4 + $0x80] sm:$0xff] }
 0x74a   :  { %1684 = vmatprep.subr.mxu0 %v9245_v48  ;;  %v1271_v48 = vld [vmem:[#allocation4 + $0x88] sm:$0xff] }
 0x74b   :  { %1685 = vmatpush2.msra.mxu0 %v9246_v49  ;;  %v1272_v49 = vadd.f32 %v1270_v47, %v5833_v57  ;;  %v6846_v47 = vld [vmem:[#allocation9 + $0x1f0] sm:$0xff] }
 0x74c   :  { %1686 = vmatprep.subr.mxu0 %v9247_v41  ;;  %v1273_v41 = vadd.f32 %v1271_v48, %v5835_v61  ;;  %v6849_v48 = vld [vmem:[#allocation9 + $0x1e8] sm:$0xff] }
 0x74d   :  { %1687 = vmatpush2.msra.mxu0 %v9248_v37 }
 0x74e   :  { %1688 = vmatprep.subr.mxu0 %v9249_v38 }
 0x74f   :  { %1689 = vmatpush2.msra.mxu0 %v9250_v39 }
 0x750   :  { %1690 = vmatprep.subr.mxu0 %v9251_v36 }
 0x751   :  { %1691 = vmatpush2.msra.mxu0 %v9252_v40 }
 0x752   :  { %1692 = vmatprep.subr.mxu0 %v9253_v13 }
 0x753   :  { %1693 = vmatpush2.msra.mxu0 %v6587_v42 }
 0x7d4   :  { %v1404_v16 = vpop.f32.mrf.mxu0 }
 0x7d5   :  { %v1409_v37 = vadd.f32 %v1404_v16, %v1272_v49  ;;  %v6843_v16 = vld [vmem:[#allocation9 + $0x1f8] sm:$0xff]  ;;  %v6852_v49 = vld [vmem:[#allocation9 + $0x1e0] sm:$0xff] }
 0x7d6   :  { %v1406_v35 = vpop.f32.mrf.mxu0 }
 0x7d7   :  { %v1410_v38 = vadd.f32 %v1406_v35, %v1273_v41  ;;  %v6834_v35 = vld [vmem:[#allocation9 + $0x10] sm:$0xff]  ;;  %v6855_v41 = vld [vmem:[#allocation9 + $0x1d8] sm:$0xff] }
 0x7d9   :  { %5217 = vtanh.f32 %v1410_v38  ;;  %v6861_v38 = vld [vmem:[#allocation9 + $0x1c8] sm:$0xff] }
 0x7da   :  { %5219 = vtanh.f32 %v1409_v37  ;;  %v6858_v37 = vld [vmem:[#allocation9 + $0x1d0] sm:$0xff] }
 0x7e6   :  { %v6671_v39 = vpop.eup %5217 }
 0x7e7   :  { %9254 = vst [vmem:[#allocation45_spill] sm:$0xff] %v6671_v39  ;;  %v6673_v36 = vpop.eup %5219  ;;  %1548 = vmatprep.mubr.f32.mxu1 %v6671_v39  ;;  %v6995_v39 = vld [vmem:[#allocation9 + $0x110] sm:$0xff] }
 0x7e8   :  { %9255 = vst [vmem:[#allocation46_spill] sm:$0xff] %v6673_v36  ;;  %1549 = vmatmul.mubr.f32.vlgmr.msra.gmra.mxu1 %v6673_v36  ;;  %v6991_v36 = vld [vmem:[#allocation9 + $0x118] sm:$0xff]  ;;  %9282 = vst [vmem:[#allocation53_spill] sm:$0xff] %v6995_v39 }
 0x7e9   :  { %1777 = vmatpush1.msra.mxu1 %v6334_v52  ;;  %v9256_v52 = vld [vmem:[#allocation28_spill] sm:$0xff]  ;;  %9281 = vst [vmem:[#allocation52_spill] sm:$0xff] %v6991_v36 }
 0x7ea   :  { %1778 = vmatprep.subr.mxu1 %v6336_v53  ;;  %v9257_v53 = vld [vmem:[#allocation29_spill] sm:$0xff] }
 0x7eb   :  { %1779 = vmatpush1.msra.mxu1 %v6339_v54  ;;  %v9258_v54 = vld [vmem:[#allocation30_spill] sm:$0xff] }
 0x7ec   :  { %1780 = vmatprep.subr.mxu1 %v6343_v56  ;;  %v9259_v56 = vld [vmem:[#allocation31_spill] sm:$0xff] }
 0x7ed   :  { %1781 = vmatpush1.msra.mxu1 %v6346_v58  ;;  %v9260_v58 = vld [vmem:[#allocation32_spill] sm:$0xff] }
 0x7ee   :  { %1782 = vmatprep.subr.mxu1 %v6349_v59  ;;  %v9261_v59 = vld [vmem:[#allocation33_spill] sm:$0xff] }
 0x7ef   :  { %1783 = vmatpush1.msra.mxu1 %v6352_v60  ;;  %v9262_v60 = vld [vmem:[#allocation34_spill] sm:$0xff] }
 0x7f0   :  { %1784 = vmatprep.subr.mxu1 %v6355_v62  ;;  %v9263_v62 = vld [vmem:[#allocation41_spill] sm:$0xff] }
 0x7f1   :  { %1785 = vmatpush1.msra.mxu1 %v6358_v63  ;;  %v9264_v63 = vld [vmem:[#allocation42_spill] sm:$0xff] }
 0x7f2   :  { %1786 = vmatprep.subr.mxu1 %v6361_v24  ;;  %v9265_v24 = vld [vmem:[#allocation43_spill] sm:$0xff] }
 0x7f3   :  { %1787 = vmatpush1.msra.mxu1 %v6364_v0  ;;  %v9266_v0 = vld [vmem:[#allocation44_spill] sm:$0xff] }
 0x7f4   :  { %1788 = vmatprep.subr.mxu1 %v6367_v55  ;;  %v1416_v55 = vld [vmem:[#allocation4 + $0x90] sm:$0xff] }
 0x7f5   :  { %1789 = vmatpush1.msra.mxu1 %v6370_v1  ;;  %v1417_v1 = vld [vmem:[#allocation4 + $0x98] sm:$0xff] }
 0x7f6   :  { %1790 = vmatprep.subr.mxu1 %v6373_v2  ;;  %v1418_v2 = vadd.f32 %v1416_v55, %v5833_v57 }
 0x7f7   :  { %1791 = vmatpush1.msra.mxu1 %v6376_v3  ;;  %v1419_v3 = vadd.f32 %v1417_v1, %v5835_v61 }
 0x7f8   :  { %1792 = vmatprep.subr.mxu1 %v6379_v4 }
 0x7f9   :  { %1793 = vmatpush1.msra.mxu1 %v6382_v5 }
 0x7fa   :  { %1794 = vmatprep.subr.mxu1 %v6385_v6 }
 0x7fb   :  { %1795 = vmatpush1.msra.mxu1 %v6388_v7 }
 0x7fc   :  { %1796 = vmatprep.subr.mxu1 %v6391_v8 }
 0x7fd   :  { %1797 = vmatpush1.msra.mxu1 %v6394_v9 }
 0x7fe   :  { %1798 = vmatprep.subr.mxu1 %v6397_v19  ;;  %v6748_v19 = vld [vmem:[#allocation9 + $0xf8] sm:$0xff] }
 0x7ff   :  { %1799 = vmatpush1.msra.mxu1 %v6400_v20  ;;  %v6750_v20 = vld [vmem:[#allocation9 + $0xf0] sm:$0xff]  ;;  %1922 = vmatprep.subr.mxu0 %v6748_v19 }
 0x800   :  { %1800 = vmatprep.subr.mxu1 %v6403_v21  ;;  %v6752_v21 = vld [vmem:[#allocation9 + $0xe8] sm:$0xff] }
 0x801   :  { %1801 = vmatpush1.msra.mxu1 %v6406_v22  ;;  %v6755_v22 = vld [vmem:[#allocation9 + $0xe0] sm:$0xff] }
 0x802   :  { %1802 = vmatprep.subr.mxu1 %v6409_v23  ;;  %v6759_v23 = vld [vmem:[#allocation9 + $0xd8] sm:$0xff] }
 0x803   :  { %1803 = vmatpush1.msra.mxu1 %v6412_v10  ;;  %v6762_v10 = vld [vmem:[#allocation9 + $0xd0] sm:$0xff] }
 0x804   :  { %1804 = vmatprep.subr.mxu1 %v6415_v11  ;;  %v6765_v11 = vld [vmem:[#allocation9 + $0xc8] sm:$0xff] }
 0x805   :  { %1805 = vmatpush1.msra.mxu1 %v6418_v12  ;;  %v6768_v12 = vld [vmem:[#allocation9 + $0xc0] sm:$0xff] }
 0x806   :  { %1806 = vmatprep.subr.mxu1 %v6421_v17  ;;  %v6771_v17 = vld [vmem:[#allocation9 + $0xb8] sm:$0xff] }
 0x807   :  { %1807 = vmatpush1.msra.mxu1 %v6424_v50  ;;  %v6774_v50 = vld [vmem:[#allocation9 + $0xb0] sm:$0xff] }
 0x808   :  { %1808 = vmatprep.subr.mxu1 %v6427_v51  ;;  %v6777_v51 = vld [vmem:[#allocation9 + $0xa8] sm:$0xff] }
 0x809   :  { %1809 = vmatpush2.msra.mxu1 %v6430_v25  ;;  %v6780_v25 = vld [vmem:[#allocation9 + $0xa0] sm:$0xff] }
 0x80a   :  { %1810 = vmatprep.subr.mxu1 %v6433_v26  ;;  %v6783_v26 = vld [vmem:[#allocation9 + $0x98] sm:$0xff] }
 0x80b   :  { %1811 = vmatpush2.msra.mxu1 %v6436_v27  ;;  %v6786_v27 = vld [vmem:[#allocation9 + $0x90] sm:$0xff] }
 0x80c   :  { %1812 = vmatprep.subr.mxu1 %v6439_v18  ;;  %v6789_v18 = vld [vmem:[#allocation9 + $0x88] sm:$0xff] }
 0x80d   :  { %1813 = vmatpush2.msra.mxu1 %v6442_v14  ;;  %v6792_v14 = vld [vmem:[#allocation9 + $0x80] sm:$0xff] }
 0x80e   :  { %1814 = vmatprep.subr.mxu1 %v6445_v15  ;;  %v6795_v15 = vld [vmem:[#allocation9 + $0x78] sm:$0xff] }
 0x80f   :  { %1815 = vmatpush2.msra.mxu1 %v6448_v28  ;;  %v6798_v28 = vld [vmem:[#allocation9 + $0x70] sm:$0xff] }
 0x810   :  { %1816 = vmatprep.subr.mxu1 %v6451_v29  ;;  %v6801_v29 = vld [vmem:[#allocation9 + $0x68] sm:$0xff] }
 0x811   :  { %1817 = vmatpush2.msra.mxu1 %v6454_v30  ;;  %v6804_v30 = vld [vmem:[#allocation9 + $0x60] sm:$0xff] }
 0x812   :  { %1818 = vmatprep.subr.mxu1 %v6457_v31  ;;  %v6807_v31 = vld [vmem:[#allocation9 + $0x58] sm:$0xff] }
 0x813   :  { %1819 = vmatpush2.msra.mxu1 %v6460_v32  ;;  %v6810_v32 = vld [vmem:[#allocation9 + $0x50] sm:$0xff] }
 0x814   :  { %1820 = vmatprep.subr.mxu1 %v6516_v43  ;;  %v6816_v43 = vld [vmem:[#allocation9 + $0x40] sm:$0xff] }
 0x815   :  { %1821 = vmatpush2.msra.mxu1 %v6519_v44  ;;  %v6819_v44 = vld [vmem:[#allocation9 + $0x38] sm:$0xff] }
 0x816   :  { %1822 = vmatprep.subr.mxu1 %v6523_v45  ;;  %v6822_v45 = vld [vmem:[#allocation9 + $0x30] sm:$0xff] }
 0x817   :  { %1823 = vmatpush2.msra.mxu1 %v6527_v46  ;;  %v6825_v46 = vld [vmem:[#allocation9 + $0x28] sm:$0xff] }
 0x818   :  { %1824 = vmatprep.subr.mxu1 %v6531_v33  ;;  %v6828_v33 = vld [vmem:[#allocation9 + $0x20] sm:$0xff] }
 0x819   :  { %1825 = vmatpush2.msra.mxu1 %v6535_v34  ;;  %v6831_v34 = vld [vmem:[#allocation9 + $0x18] sm:$0xff] }
 0x81a   :  { %1826 = vmatprep.subr.mxu1 %v9256_v52  ;;  %v6864_v52 = vld [vmem:[#allocation9 + $0x1c0] sm:$0xff] }
 0x81b   :  { %1827 = vmatpush2.msra.mxu1 %v9257_v53  ;;  %v6867_v53 = vld [vmem:[#allocation9 + $0x1b8] sm:$0xff] }
 0x81c   :  { %1828 = vmatprep.subr.mxu1 %v9258_v54  ;;  %v6870_v54 = vld [vmem:[#allocation9 + $0x1b0] sm:$0xff] }
 0x81d   :  { %1829 = vmatpush2.msra.mxu1 %v9259_v56  ;;  %v6873_v56 = vld [vmem:[#allocation9 + $0x1a8] sm:$0xff] }
 0x81e   :  { %1830 = vmatprep.subr.mxu1 %v9260_v58  ;;  %v6876_v58 = vld [vmem:[#allocation9 + $0x1a0] sm:$0xff] }
 0x81f   :  { %1831 = vmatpush2.msra.mxu1 %v9261_v59  ;;  %v1562_v59 = vld [vmem:[#allocation4 + $0xa0] sm:$0xff] }
 0x820   :  { %1832 = vmatprep.subr.mxu1 %v9262_v60  ;;  %v1563_v60 = vld [vmem:[#allocation4 + $0xa8] sm:$0xff] }
 0x821   :  { %1833 = vmatpush2.msra.mxu1 %v9263_v62  ;;  %v1564_v62 = vadd.f32 %v1562_v59, %v5833_v57  ;;  %v6947_v59 = vld [vmem:[#allocation9 + $0x178] sm:$0xff] }
 0x822   :  { %1834 = vmatprep.subr.mxu1 %v9264_v63  ;;  %v1565_v63 = vadd.f32 %v1563_v60, %v5835_v61  ;;  %v6951_v60 = vld [vmem:[#allocation9 + $0x170] sm:$0xff] }
 0x823   :  { %1835 = vmatpush2.msra.mxu1 %v9265_v24 }
 0x824   :  { %1836 = vmatprep.subr.mxu1 %v9266_v0 }
 0x825   :  { %1837 = vmatpush2.msra.mxu1 %v9252_v40  ;;  %v6837_v40 = vld [vmem:[#allocation9 + $0x8] sm:$0xff] }
 0x826   :  { %1838 = vmatprep.subr.mxu1 %v9253_v13  ;;  %v6840_v13 = vld [vmem:[#allocation9] sm:$0xff] }
 0x827   :  { %1839 = vmatpush2.msra.mxu1 %v6587_v42  ;;  %v6813_v42 = vld [vmem:[#allocation9 + $0x48] sm:$0xff] }
 0x828   :  { %2068 = vmatprep.subr.mxu1 %v6748_v19 }
 0x8a8   :  { %v1550_v4 = vpop.f32.mrf.mxu1 }
 0x8a9   :  { %v1555_v5 = vadd.f32 %v1550_v4, %v1418_v2  ;;  %v6932_v4 = vld [vmem:[#allocation9 + $0x198] sm:$0xff] }
 0x8aa   :  { %v1552_v6 = vpop.f32.mrf.mxu1 }
 0x8ab   :  { %v1556_v7 = vadd.f32 %v1552_v6, %v1419_v3  ;;  %v6939_v6 = vld [vmem:[#allocation9 + $0x188] sm:$0xff] }
 0x8ad   :  { %5221 = vtanh.f32 %v1556_v7  ;;  %v6943_v7 = vld [vmem:[#allocation9 + $0x180] sm:$0xff] }
 0x8ae   :  { %5223 = vtanh.f32 %v1555_v5  ;;  %v6935_v5 = vld [vmem:[#allocation9 + $0x190] sm:$0xff] }
 0x8ba   :  { %v6742_v8 = vpop.eup %5221 }
 0x8bb   :  { %9267 = vst [vmem:[#allocation28_spill] sm:$0xff] %v6742_v8  ;;  %v6744_v9 = vpop.eup %5223  ;;  %1694 = vmatprep.mubr.f32.mxu0 %v6742_v8  ;;  %v6987_v8 = vld [vmem:[#allocation9 + $0x120] sm:$0xff] }
 0x8bc   :  { %9268 = vst [vmem:[#allocation29_spill] sm:$0xff] %v6744_v9  ;;  %1695 = vmatmul.mubr.f32.vlgmr.msra.gmra.mxu0 %v6744_v9  ;;  %v6983_v9 = vld [vmem:[#allocation9 + $0x128] sm:$0xff]  ;;  %9280 = vst [vmem:[#allocation51_spill] sm:$0xff] %v6987_v8 }
 0x8bd   :  { %1923 = vmatpush1.msra.mxu0 %v6750_v20  ;;  %9279 = vst [vmem:[#allocation50_spill] sm:$0xff] %v6983_v9 }
 0x8be   :  { %1924 = vmatprep.subr.mxu0 %v6752_v21 }
 0x8bf   :  { %1925 = vmatpush1.msra.mxu0 %v6755_v22 }
 0x8c0   :  { %1926 = vmatprep.subr.mxu0 %v6759_v23 }
 0x8c1   :  { %1927 = vmatpush1.msra.mxu0 %v6762_v10 }
 0x8c2   :  { %1928 = vmatprep.subr.mxu0 %v6765_v11 }
 0x8c3   :  { %1929 = vmatpush1.msra.mxu0 %v6768_v12 }
 0x8c4   :  { %1930 = vmatprep.subr.mxu0 %v6771_v17 }
 0x8c5   :  { %1931 = vmatpush1.msra.mxu0 %v6774_v50 }
 0x8c6   :  { %1932 = vmatprep.subr.mxu0 %v6777_v51 }
 0x8c7   :  { %1933 = vmatpush1.msra.mxu0 %v6780_v25 }
 0x8c8   :  { %1934 = vmatprep.subr.mxu0 %v6783_v26 }
 0x8c9   :  { %1935 = vmatpush1.msra.mxu0 %v6786_v27 }
 0x8ca   :  { %1936 = vmatprep.subr.mxu0 %v6789_v18 }
 0x8cb   :  { %1937 = vmatpush1.msra.mxu0 %v6792_v14 }
 0x8cc   :  { %1938 = vmatprep.subr.mxu0 %v6795_v15 }
 0x8cd   :  { %1939 = vmatpush1.msra.mxu0 %v6798_v28 }
 0x8ce   :  { %1940 = vmatprep.subr.mxu0 %v6801_v29 }
 0x8cf   :  { %1941 = vmatpush1.msra.mxu0 %v6804_v30 }
 0x8d0   :  { %1942 = vmatprep.subr.mxu0 %v6807_v31 }
 0x8d1   :  { %1943 = vmatpush1.msra.mxu0 %v6810_v32 }
 0x8d2   :  { %1944 = vmatprep.subr.mxu0 %v6813_v42 }
 0x8d3   :  { %1945 = vmatpush1.msra.mxu0 %v6816_v43 }
 0x8d4   :  { %1946 = vmatprep.subr.mxu0 %v6819_v44 }
 0x8d5   :  { %1947 = vmatpush1.msra.mxu0 %v6822_v45 }
 0x8d6   :  { %1948 = vmatprep.subr.mxu0 %v6825_v46 }
 0x8d7   :  { %1949 = vmatpush1.msra.mxu0 %v6828_v33 }
 0x8d8   :  { %1950 = vmatprep.subr.mxu0 %v6831_v34 }
 0x8d9   :  { %1951 = vmatpush1.msra.mxu0 %v6834_v35 }
 0x8da   :  { %1952 = vmatprep.subr.mxu0 %v6837_v40 }
 0x8db   :  { %1953 = vmatpush1.msra.mxu0 %v6840_v13 }
 0x8dc   :  { %1954 = vmatprep.subr.mxu0 %v6843_v16 }
 0x8dd   :  { %1955 = vmatpush2.msra.mxu0 %v6846_v47 }
 0x8de   :  { %1956 = vmatprep.subr.mxu0 %v6849_v48 }
 0x8df   :  { %1957 = vmatpush2.msra.mxu0 %v6852_v49 }
 0x8e0   :  { %1958 = vmatprep.subr.mxu0 %v6855_v41 }
 0x8e1   :  { %1959 = vmatpush2.msra.mxu0 %v6858_v37 }
 0x8e2   :  { %1960 = vmatprep.subr.mxu0 %v6861_v38 }
 0x8e3   :  { %1961 = vmatpush2.msra.mxu0 %v6864_v52 }
 0x8e4   :  { %1962 = vmatprep.subr.mxu0 %v6867_v53 }
 0x8e5   :  { %1963 = vmatpush2.msra.mxu0 %v6870_v54 }
 0x8e6   :  { %1964 = vmatprep.subr.mxu0 %v6873_v56 }
 0x8e7   :  { %1965 = vmatpush2.msra.mxu0 %v6876_v58 }
 0x8e8   :  { %1966 = vmatprep.subr.mxu0 %v6932_v4 }
 0x8e9   :  { %1967 = vmatpush2.msra.mxu0 %v6935_v5 }
 0x8ea   :  { %1968 = vmatprep.subr.mxu0 %v6939_v6 }
 0x8eb   :  { %1969 = vmatpush2.msra.mxu0 %v6943_v7 }
 0x8ec   :  { %1970 = vmatprep.subr.mxu0 %v6947_v59 }
 0x8ed   :  { %1971 = vmatpush2.msra.mxu0 %v6951_v60 }
 0x97c   :  { %v1696_v24 = vpop.f32.mrf.mxu0 }
 0x97d   :  { %v1701_v0 = vadd.f32 %v1696_v24, %v1564_v62  ;;  %v6955_v62 = vld [vmem:[#allocation9 + $0x168] sm:$0xff]  ;;  %v6959_v24 = vld [vmem:[#allocation9 + $0x158] sm:$0xff] }
 0x97e   :  { %v1698_v55 = vpop.f32.mrf.mxu0  ;;  %9271 = vst [vmem:[#allocation32_spill] sm:$0xff] %v6955_v62  ;;  %9273 = vst [vmem:[#allocation34_spill] sm:$0xff] %v6959_v24  ;;  %1972 = vmatprep.subr.mxu0 %v6955_v62 }
 0x97f   :  { %v1702_v1 = vadd.f32 %v1698_v55, %v1565_v63  ;;  %v6957_v63 = vld [vmem:[#allocation9 + $0x160] sm:$0xff]  ;;  %v6967_v55 = vld [vmem:[#allocation9 + $0x148] sm:$0xff] }
 0x980   :  { %9272 = vst [vmem:[#allocation33_spill] sm:$0xff] %v6957_v63  ;;  %1973 = vmatpush2.msra.mxu0 %v6957_v63  ;;  %9275 = vst [vmem:[#allocation42_spill] sm:$0xff] %v6967_v55 }
 0x981   :  { %5225 = vtanh.f32 %v1702_v1  ;;  %1974 = vmatprep.subr.mxu0 %v6959_v24  ;;  %v6971_v1 = vld [vmem:[#allocation9 + $0x140] sm:$0xff] }
 0x982   :  { %5227 = vtanh.f32 %v1701_v0  ;;  %v6963_v0 = vld [vmem:[#allocation9 + $0x150] sm:$0xff]  ;;  %9276 = vst [vmem:[#allocation43_spill] sm:$0xff] %v6971_v1 }
 0x983   :  { %9274 = vst [vmem:[#allocation41_spill] sm:$0xff] %v6963_v0  ;;  %1975 = vmatpush2.msra.mxu0 %v6963_v0 }
 0x984   :  { %1976 = vmatprep.subr.mxu0 %v6967_v55 }
 0x985   :  { %1977 = vmatpush2.msra.mxu0 %v6971_v1 }
 0x98e   :  { %v6883_v2 = vpop.eup %5225 }
 0x98f   :  { %9269 = vst [vmem:[#allocation30_spill] sm:$0xff] %v6883_v2  ;;  %v6885_v3 = vpop.eup %5227  ;;  %1840 = vmatprep.mubr.f32.mxu1 %v6883_v2  ;;  %v6979_v2 = vld [vmem:[#allocation9 + $0x130] sm:$0xff] }
 0x990   :  { %9270 = vst [vmem:[#allocation31_spill] sm:$0xff] %v6885_v3  ;;  %1841 = vmatmul.mubr.f32.vlgmr.msra.gmra.mxu1 %v6885_v3  ;;  %v6975_v3 = vld [vmem:[#allocation9 + $0x138] sm:$0xff]  ;;  %9278 = vst [vmem:[#allocation49_spill] sm:$0xff] %v6979_v2 }
 0x991   :  { %2069 = vmatpush1.msra.mxu1 %v6750_v20  ;;  %9277 = vst [vmem:[#allocation44_spill] sm:$0xff] %v6975_v3  ;;  %1978 = vmatprep.subr.mxu0 %v6975_v3 }
 0x992   :  { %2070 = vmatprep.subr.mxu1 %v6752_v21  ;;  %1979 = vmatpush2.msra.mxu0 %v6979_v2 }
 0x993   :  { %2071 = vmatpush1.msra.mxu1 %v6755_v22  ;;  %1980 = vmatprep.subr.mxu0 %v6983_v9 }
 0x994   :  { %2072 = vmatprep.subr.mxu1 %v6759_v23  ;;  %1981 = vmatpush2.msra.mxu0 %v6987_v8 }
 0x995   :  { %2073 = vmatpush1.msra.mxu1 %v6762_v10  ;;  %1982 = vmatprep.subr.mxu0 %v6991_v36 }
 0x996   :  { %2074 = vmatprep.subr.mxu1 %v6765_v11  ;;  %1983 = vmatpush2.msra.mxu0 %v6995_v39 }
 0x997   :  { %2075 = vmatpush1.msra.mxu1 %v6768_v12 }
 0x998   :  { %2076 = vmatprep.subr.mxu1 %v6771_v17 }
 0x999   :  { %2077 = vmatpush1.msra.mxu1 %v6774_v50 }
 0x99a   :  { %2078 = vmatprep.subr.mxu1 %v6777_v51 }
 0x99b   :  { %2079 = vmatpush1.msra.mxu1 %v6780_v25 }
 0x99c   :  { %2080 = vmatprep.subr.mxu1 %v6783_v26 }
 0x99d   :  { %2081 = vmatpush1.msra.mxu1 %v6786_v27 }
 0x99e   :  { %2082 = vmatprep.subr.mxu1 %v6789_v18 }
 0x99f   :  { %2083 = vmatpush1.msra.mxu1 %v6792_v14 }
 0x9a0   :  { %2084 = vmatprep.subr.mxu1 %v6795_v15 }
 0x9a1   :  { %2085 = vmatpush1.msra.mxu1 %v6798_v28 }
 0x9a2   :  { %2086 = vmatprep.subr.mxu1 %v6801_v29 }
 0x9a3   :  { %2087 = vmatpush1.msra.mxu1 %v6804_v30 }
 0x9a4   :  { %2088 = vmatprep.subr.mxu1 %v6807_v31 }
 0x9a5   :  { %2089 = vmatpush1.msra.mxu1 %v6810_v32 }
 0x9a6   :  { %2090 = vmatprep.subr.mxu1 %v6813_v42 }
 0x9a7   :  { %2091 = vmatpush1.msra.mxu1 %v6816_v43 }
 0x9a8   :  { %2092 = vmatprep.subr.mxu1 %v6819_v44 }
 0x9a9   :  { %2093 = vmatpush1.msra.mxu1 %v6822_v45 }
 0x9aa   :  { %2094 = vmatprep.subr.mxu1 %v6825_v46 }
 0x9ab   :  { %2095 = vmatpush1.msra.mxu1 %v6828_v33 }
 0x9ac   :  { %2096 = vmatprep.subr.mxu1 %v6831_v34 }
 0x9ad   :  { %2097 = vmatpush1.msra.mxu1 %v6834_v35 }
 0x9ae   :  { %2098 = vmatprep.subr.mxu1 %v6837_v40 }
 0x9af   :  { %2099 = vmatpush1.msra.mxu1 %v6840_v13 }
 0x9b0   :  { %2100 = vmatprep.subr.mxu1 %v6843_v16 }
 0x9b1   :  { %2101 = vmatpush2.msra.mxu1 %v6846_v47 }
 0x9b2   :  { %2102 = vmatprep.subr.mxu1 %v6849_v48 }
 0x9b3   :  { %2103 = vmatpush2.msra.mxu1 %v6852_v49 }
 0x9b4   :  { %2104 = vmatprep.subr.mxu1 %v6855_v41 }
 0x9b5   :  { %2105 = vmatpush2.msra.mxu1 %v6858_v37 }
 0x9b6   :  { %2106 = vmatprep.subr.mxu1 %v6861_v38 }
 0x9b7   :  { %2107 = vmatpush2.msra.mxu1 %v6864_v52 }
 0x9b8   :  { %2108 = vmatprep.subr.mxu1 %v6867_v53 }
 0x9b9   :  { %2109 = vmatpush2.msra.mxu1 %v6870_v54 }
 0x9ba   :  { %2110 = vmatprep.subr.mxu1 %v6873_v56 }
 0x9bb   :  { %2111 = vmatpush2.msra.mxu1 %v6876_v58 }
 0x9bc   :  { %2112 = vmatprep.subr.mxu1 %v6932_v4 }
 0x9bd   :  { %2113 = vmatpush2.msra.mxu1 %v6935_v5 }
 0x9be   :  { %2114 = vmatprep.subr.mxu1 %v6939_v6 }
 0x9bf   :  { %2115 = vmatpush2.msra.mxu1 %v6943_v7 }
 0x9c0   :  { %2116 = vmatprep.subr.mxu1 %v6947_v59 }
 0x9c1   :  { %2117 = vmatpush2.msra.mxu1 %v6951_v60 }
 0x9c2   :  { %2118 = vmatprep.subr.mxu1 %v6955_v62 }
 0x9c3   :  { %2119 = vmatpush2.msra.mxu1 %v6957_v63 }
 0x9c4   :  { %2120 = vmatprep.subr.mxu1 %v6959_v24 }
 0x9c5   :  { %2121 = vmatpush2.msra.mxu1 %v6963_v0 }
 0x9c6   :  { %2122 = vmatprep.subr.mxu1 %v6967_v55 }
 0x9c7   :  { %2123 = vmatpush2.msra.mxu1 %v6971_v1  ;;  %v6999_v1 = vld [vmem:[#allocation9 + $0x108] sm:$0xff] }
 0x9c8   :  { %2124 = vmatprep.subr.mxu1 %v6975_v3  ;;  %9283 = vst [vmem:[#allocation54_spill] sm:$0xff] %v6999_v1  ;;  %v7003_v3 = vld [vmem:[#allocation9 + $0x100] sm:$0xff]  ;;  %1984 = vmatprep.subr.mxu0 %v6999_v1 }
 0x9c9   :  { %2125 = vmatpush2.msra.mxu1 %v6979_v2  ;;  %1985 = vmatpush2.msra.mxu0 %v7003_v3 }
 0x9ca   :  { %2126 = vmatprep.subr.mxu1 %v6983_v9  ;;  %2214 = vmatprep.subr.mxu0 %v6748_v19  ;;  %v1709_v9 = vld [vmem:[#allocation4 + $0xb8] sm:$0xff] }
 0x9cb   :  { %2127 = vmatpush2.msra.mxu1 %v6987_v8  ;;  %v1708_v8 = vld [vmem:[#allocation4 + $0xb0] sm:$0xff]  ;;  %v1711_v2 = vadd.f32 %v1709_v9, %v5835_v61 }
 0x9cc   :  { %2128 = vmatprep.subr.mxu1 %v6991_v36  ;;  %v1710_v36 = vadd.f32 %v1708_v8, %v5833_v57  ;;  %v9288_v8 = vld [vmem:[#allocation41_spill] sm:$0xff]  ;;  %v9289_v9 = vld [vmem:[#allocation42_spill] sm:$0xff] }
 0x9cd   :  { %2129 = vmatpush2.msra.mxu1 %v6995_v39 }
 0x9ce   :  { %2130 = vmatprep.subr.mxu1 %v6999_v1 }
 0x9cf   :  { %2131 = vmatpush2.msra.mxu1 %v7003_v3 }
 0x9d0   :  { %2360 = vmatprep.subr.mxu1 %v6748_v19  ;;  %v9290_v19 = vld [vmem:[#allocation43_spill] sm:$0xff] }
 0xa50   :  { %v1842_v55 = vpop.f32.mrf.mxu1 }
 0xa51   :  { %v1847_v39 = vadd.f32 %v1842_v55, %v1710_v36  ;;  %v9286_v36 = vld [vmem:[#allocation33_spill] sm:$0xff]  ;;  %v9294_v55 = vld [vmem:[#allocation51_spill] sm:$0xff] }
 0xa52   :  { %v1844_v0 = vpop.f32.mrf.mxu1 }
 0xa53   :  { %v1848_v24 = vadd.f32 %v1844_v0, %v1711_v2  ;;  %v9291_v2 = vld [vmem:[#allocation44_spill] sm:$0xff]  ;;  %v9293_v0 = vld [vmem:[#allocation50_spill] sm:$0xff] }
 0xa55   :  { %5229 = vtanh.f32 %v1848_v24  ;;  %v9292_v24 = vld [vmem:[#allocation49_spill] sm:$0xff] }
 0xa56   :  { %5231 = vtanh.f32 %v1847_v39  ;;  %v9287_v39 = vld [vmem:[#allocation34_spill] sm:$0xff] }
 0xa62   :  { %v7016_v1 = vpop.eup %5229 }
 0xa63   :  { %9284 = vst [vmem:[#allocation55_spill] sm:$0xff] %v7016_v1  ;;  %v7018_v63 = vpop.eup %5231  ;;  %1986 = vmatprep.mubr.f32.mxu0 %v7016_v1  ;;  %v9296_v1 = vld [vmem:[#allocation53_spill] sm:$0xff] }
 0xa64   :  { %9285 = vst [vmem:[#allocation56_spill] sm:$0xff] %v7018_v63  ;;  %1987 = vmatmul.mubr.f32.vlgmr.msra.gmra.mxu0 %v7018_v63  ;;  %v9295_v63 = vld [vmem:[#allocation52_spill] sm:$0xff] }
 0xa65   :  { %2215 = vmatpush1.msra.mxu0 %v6750_v20 }
 0xa66   :  { %2216 = vmatprep.subr.mxu0 %v6752_v21 }
 0xa67   :  { %2217 = vmatpush1.msra.mxu0 %v6755_v22 }
 0xa68   :  { %2218 = vmatprep.subr.mxu0 %v6759_v23 }
 0xa69   :  { %2219 = vmatpush1.msra.mxu0 %v6762_v10 }
 0xa6a   :  { %2220 = vmatprep.subr.mxu0 %v6765_v11 }
 0xa6b   :  { %2221 = vmatpush1.msra.mxu0 %v6768_v12 }
 0xa6c   :  { %2222 = vmatprep.subr.mxu0 %v6771_v17 }
 0xa6d   :  { %2223 = vmatpush1.msra.mxu0 %v6774_v50 }
 0xa6e   :  { %2224 = vmatprep.subr.mxu0 %v6777_v51 }
 0xa6f   :  { %2225 = vmatpush1.msra.mxu0 %v6780_v25 }
 0xa70   :  { %2226 = vmatprep.subr.mxu0 %v6783_v26 }
 0xa71   :  { %2227 = vmatpush1.msra.mxu0 %v6786_v27 }
 0xa72   :  { %2228 = vmatprep.subr.mxu0 %v6789_v18 }
 0xa73   :  { %2229 = vmatpush1.msra.mxu0 %v6792_v14 }
 0xa74   :  { %2230 = vmatprep.subr.mxu0 %v6795_v15 }
 0xa75   :  { %2231 = vmatpush1.msra.mxu0 %v6798_v28 }
 0xa76   :  { %2232 = vmatprep.subr.mxu0 %v6801_v29 }
 0xa77   :  { %2233 = vmatpush1.msra.mxu0 %v6804_v30 }
 0xa78   :  { %2234 = vmatprep.subr.mxu0 %v6807_v31 }
 0xa79   :  { %2235 = vmatpush1.msra.mxu0 %v6810_v32 }
 0xa7a   :  { %2236 = vmatprep.subr.mxu0 %v6813_v42 }
 0xa7b   :  { %2237 = vmatpush1.msra.mxu0 %v6816_v43 }
 0xa7c   :  { %2238 = vmatprep.subr.mxu0 %v6819_v44 }
 0xa7d   :  { %2239 = vmatpush1.msra.mxu0 %v6822_v45 }
 0xa7e   :  { %2240 = vmatprep.subr.mxu0 %v6825_v46 }
 0xa7f   :  { %2241 = vmatpush1.msra.mxu0 %v6828_v33 }
 0xa80   :  { %2242 = vmatprep.subr.mxu0 %v6831_v34 }
 0xa81   :  { %2243 = vmatpush1.msra.mxu0 %v6834_v35 }
 0xa82   :  { %2244 = vmatprep.subr.mxu0 %v6837_v40 }
 0xa83   :  { %2245 = vmatpush1.msra.mxu0 %v6840_v13 }
 0xa84   :  { %2246 = vmatprep.subr.mxu0 %v6843_v16 }
 0xa85   :  { %2247 = vmatpush2.msra.mxu0 %v6846_v47 }
 0xa86   :  { %2248 = vmatprep.subr.mxu0 %v6849_v48 }
 0xa87   :  { %2249 = vmatpush2.msra.mxu0 %v6852_v49 }
 0xa88   :  { %2250 = vmatprep.subr.mxu0 %v6855_v41 }
 0xa89   :  { %2251 = vmatpush2.msra.mxu0 %v6858_v37 }
 0xa8a   :  { %2252 = vmatprep.subr.mxu0 %v6861_v38 }
 0xa8b   :  { %2253 = vmatpush2.msra.mxu0 %v6864_v52 }
 0xa8c   :  { %2254 = vmatprep.subr.mxu0 %v6867_v53 }
 0xa8d   :  { %2255 = vmatpush2.msra.mxu0 %v6870_v54 }
 0xa8e   :  { %2256 = vmatprep.subr.mxu0 %v6873_v56 }
 0xa8f   :  { %2257 = vmatpush2.msra.mxu0 %v6876_v58 }
 0xa90   :  { %2258 = vmatprep.subr.mxu0 %v6932_v4 }
 0xa91   :  { %2259 = vmatpush2.msra.mxu0 %v6935_v5 }
 0xa92   :  { %2260 = vmatprep.subr.mxu0 %v6939_v6 }
 0xa93   :  { %2261 = vmatpush2.msra.mxu0 %v6943_v7 }
 0xa94   :  { %2262 = vmatprep.subr.mxu0 %v6947_v59 }
 0xa95   :  { %2263 = vmatpush2.msra.mxu0 %v6951_v60 }
 0xa96   :  { %2264 = vmatprep.subr.mxu0 %v6955_v62 }
 0xa97   :  { %2265 = vmatpush2.msra.mxu0 %v9286_v36  ;;  %v9297_v36 = vld [vmem:[#allocation54_spill] sm:$0xff] }
 0xa98   :  { %2266 = vmatprep.subr.mxu0 %v9287_v39 }
 0xa99   :  { %2267 = vmatpush2.msra.mxu0 %v9288_v8  ;;  %v1854_v8 = vld [vmem:[#allocation4 + $0xc0] sm:$0xff] }
 0xa9a   :  { %2268 = vmatprep.subr.mxu0 %v9289_v9  ;;  %v1855_v9 = vld [vmem:[#allocation4 + $0xc8] sm:$0xff] }
 0xa9b   :  { %2269 = vmatpush2.msra.mxu0 %v9290_v19  ;;  %v1856_v19 = vadd.f32 %v1854_v8, %v5833_v57  ;;  %v7262_v8 = vld [vmem:[#allocation9 + $0x1f0] sm:$0xff] }
 0xa9c   :  { %2270 = vmatprep.subr.mxu0 %v9291_v2  ;;  %v1857_v2 = vadd.f32 %v1855_v9, %v5835_v61  ;;  %v7265_v9 = vld [vmem:[#allocation9 + $0x1e8] sm:$0xff] }
 0xa9d   :  { %2271 = vmatpush2.msra.mxu0 %v9292_v24 }
 0xa9e   :  { %2272 = vmatprep.subr.mxu0 %v9293_v0 }
 0xa9f   :  { %2273 = vmatpush2.msra.mxu0 %v9294_v55 }
 0xaa0   :  { %2274 = vmatprep.subr.mxu0 %v9295_v63 }
 0xaa1   :  { %2275 = vmatpush2.msra.mxu0 %v9296_v1 }
 0xaa2   :  { %2276 = vmatprep.subr.mxu0 %v9297_v36 }
 0xaa3   :  { %2277 = vmatpush2.msra.mxu0 %v7003_v3 }
 0xb24   :  { %v1988_v39 = vpop.f32.mrf.mxu0 }
 0xb25   :  { %v1993_v24 = vadd.f32 %v1988_v39, %v1856_v19  ;;  %v7259_v39 = vld [vmem:[#allocation9 + $0x1f8] sm:$0xff]  ;;  %v7268_v19 = vld [vmem:[#allocation9 + $0x1e0] sm:$0xff] }
 0xb26   :  { %v1990_v62 = vpop.f32.mrf.mxu0 }
 0xb27   :  { %v1994_v0 = vadd.f32 %v1990_v62, %v1857_v2  ;;  %v7250_v62 = vld [vmem:[#allocation9 + $0x10] sm:$0xff]  ;;  %v7271_v2 = vld [vmem:[#allocation9 + $0x1d8] sm:$0xff] }
 0xb29   :  { %5233 = vtanh.f32 %v1994_v0  ;;  %v7277_v0 = vld [vmem:[#allocation9 + $0x1c8] sm:$0xff] }
 0xb2a   :  { %5235 = vtanh.f32 %v1993_v24  ;;  %v7274_v24 = vld [vmem:[#allocation9 + $0x1d0] sm:$0xff] }
 0xb36   :  { %v7087_v55 = vpop.eup %5233 }
 0xb37   :  { %9298 = vst [vmem:[#allocation53_spill] sm:$0xff] %v7087_v55  ;;  %v7089_v63 = vpop.eup %5235  ;;  %2132 = vmatprep.mubr.f32.mxu1 %v7087_v55  ;;  %v7411_v55 = vld [vmem:[#allocation9 + $0x110] sm:$0xff] }
 0xb38   :  { %9299 = vst [vmem:[#allocation54_spill] sm:$0xff] %v7089_v63  ;;  %2133 = vmatmul.mubr.f32.vlgmr.msra.gmra.mxu1 %v7089_v63  ;;  %v7407_v63 = vld [vmem:[#allocation9 + $0x118] sm:$0xff]  ;;  %9326 = vst [vmem:[#allocation61_spill] sm:$0xff] %v7411_v55 }
 0xb39   :  { %2361 = vmatpush1.msra.mxu1 %v6750_v20  ;;  %v9300_v20 = vld [vmem:[#allocation32_spill] sm:$0xff]  ;;  %9325 = vst [vmem:[#allocation60_spill] sm:$0xff] %v7407_v63 }
 0xb3a   :  { %2362 = vmatprep.subr.mxu1 %v6752_v21  ;;  %v9301_v21 = vld [vmem:[#allocation33_spill] sm:$0xff] }
 0xb3b   :  { %2363 = vmatpush1.msra.mxu1 %v6755_v22  ;;  %v9302_v22 = vld [vmem:[#allocation34_spill] sm:$0xff] }
 0xb3c   :  { %2364 = vmatprep.subr.mxu1 %v6759_v23  ;;  %v9303_v23 = vld [vmem:[#allocation41_spill] sm:$0xff] }
 0xb3d   :  { %2365 = vmatpush1.msra.mxu1 %v6762_v10  ;;  %v9304_v10 = vld [vmem:[#allocation42_spill] sm:$0xff] }
 0xb3e   :  { %2366 = vmatprep.subr.mxu1 %v6765_v11  ;;  %v9305_v11 = vld [vmem:[#allocation43_spill] sm:$0xff] }
 0xb3f   :  { %2367 = vmatpush1.msra.mxu1 %v6768_v12  ;;  %v9306_v12 = vld [vmem:[#allocation44_spill] sm:$0xff] }
 0xb40   :  { %2368 = vmatprep.subr.mxu1 %v6771_v17  ;;  %v9307_v17 = vld [vmem:[#allocation49_spill] sm:$0xff] }
 0xb41   :  { %2369 = vmatpush1.msra.mxu1 %v6774_v50  ;;  %v9308_v50 = vld [vmem:[#allocation50_spill] sm:$0xff] }
 0xb42   :  { %2370 = vmatprep.subr.mxu1 %v6777_v51  ;;  %v9309_v51 = vld [vmem:[#allocation51_spill] sm:$0xff] }
 0xb43   :  { %2371 = vmatpush1.msra.mxu1 %v6780_v25  ;;  %v9310_v25 = vld [vmem:[#allocation52_spill] sm:$0xff] }
 0xb44   :  { %2372 = vmatprep.subr.mxu1 %v6783_v26  ;;  %v2000_v26 = vld [vmem:[#allocation4 + $0xd0] sm:$0xff] }
 0xb45   :  { %2373 = vmatpush1.msra.mxu1 %v6786_v27  ;;  %v2001_v27 = vld [vmem:[#allocation4 + $0xd8] sm:$0xff] }
 0xb46   :  { %2374 = vmatprep.subr.mxu1 %v6789_v18  ;;  %v2002_v18 = vadd.f32 %v2000_v26, %v5833_v57 }
 0xb47   :  { %2375 = vmatpush1.msra.mxu1 %v6792_v14  ;;  %v2003_v14 = vadd.f32 %v2001_v27, %v5835_v61 }
 0xb48   :  { %2376 = vmatprep.subr.mxu1 %v6795_v15 }
 0xb49   :  { %2377 = vmatpush1.msra.mxu1 %v6798_v28 }
 0xb4a   :  { %2378 = vmatprep.subr.mxu1 %v6801_v29 }
 0xb4b   :  { %2379 = vmatpush1.msra.mxu1 %v6804_v30 }
 0xb4c   :  { %2380 = vmatprep.subr.mxu1 %v6807_v31 }
 0xb4d   :  { %2381 = vmatpush1.msra.mxu1 %v6810_v32 }
 0xb4e   :  { %2382 = vmatprep.subr.mxu1 %v6813_v42  ;;  %v7164_v42 = vld [vmem:[#allocation9 + $0xf8] sm:$0xff] }
 0xb4f   :  { %2383 = vmatpush1.msra.mxu1 %v6816_v43  ;;  %v7166_v43 = vld [vmem:[#allocation9 + $0xf0] sm:$0xff]  ;;  %2506 = vmatprep.subr.mxu0 %v7164_v42 }
 0xb50   :  { %2384 = vmatprep.subr.mxu1 %v6819_v44  ;;  %v7168_v44 = vld [vmem:[#allocation9 + $0xe8] sm:$0xff] }
 0xb51   :  { %2385 = vmatpush1.msra.mxu1 %v6822_v45  ;;  %v7171_v45 = vld [vmem:[#allocation9 + $0xe0] sm:$0xff] }
 0xb52   :  { %2386 = vmatprep.subr.mxu1 %v6825_v46  ;;  %v7175_v46 = vld [vmem:[#allocation9 + $0xd8] sm:$0xff] }
 0xb53   :  { %2387 = vmatpush1.msra.mxu1 %v6828_v33  ;;  %v7178_v33 = vld [vmem:[#allocation9 + $0xd0] sm:$0xff] }
 0xb54   :  { %2388 = vmatprep.subr.mxu1 %v6831_v34  ;;  %v7181_v34 = vld [vmem:[#allocation9 + $0xc8] sm:$0xff] }
 0xb55   :  { %2389 = vmatpush1.msra.mxu1 %v6834_v35  ;;  %v7184_v35 = vld [vmem:[#allocation9 + $0xc0] sm:$0xff] }
 0xb56   :  { %2390 = vmatprep.subr.mxu1 %v6837_v40  ;;  %v7187_v40 = vld [vmem:[#allocation9 + $0xb8] sm:$0xff] }
 0xb57   :  { %2391 = vmatpush1.msra.mxu1 %v6840_v13  ;;  %v7190_v13 = vld [vmem:[#allocation9 + $0xb0] sm:$0xff] }
 0xb58   :  { %2392 = vmatprep.subr.mxu1 %v6843_v16  ;;  %v7193_v16 = vld [vmem:[#allocation9 + $0xa8] sm:$0xff] }
 0xb59   :  { %2393 = vmatpush2.msra.mxu1 %v6846_v47  ;;  %v7196_v47 = vld [vmem:[#allocation9 + $0xa0] sm:$0xff] }
 0xb5a   :  { %2394 = vmatprep.subr.mxu1 %v6849_v48  ;;  %v7199_v48 = vld [vmem:[#allocation9 + $0x98] sm:$0xff] }
 0xb5b   :  { %2395 = vmatpush2.msra.mxu1 %v6852_v49  ;;  %v7202_v49 = vld [vmem:[#allocation9 + $0x90] sm:$0xff] }
 0xb5c   :  { %2396 = vmatprep.subr.mxu1 %v6855_v41  ;;  %v7205_v41 = vld [vmem:[#allocation9 + $0x88] sm:$0xff] }
 0xb5d   :  { %2397 = vmatpush2.msra.mxu1 %v6858_v37  ;;  %v7208_v37 = vld [vmem:[#allocation9 + $0x80] sm:$0xff] }
 0xb5e   :  { %2398 = vmatprep.subr.mxu1 %v6861_v38  ;;  %v7211_v38 = vld [vmem:[#allocation9 + $0x78] sm:$0xff] }
 0xb5f   :  { %2399 = vmatpush2.msra.mxu1 %v6864_v52  ;;  %v7214_v52 = vld [vmem:[#allocation9 + $0x70] sm:$0xff] }
 0xb60   :  { %2400 = vmatprep.subr.mxu1 %v6867_v53  ;;  %v7217_v53 = vld [vmem:[#allocation9 + $0x68] sm:$0xff] }
 0xb61   :  { %2401 = vmatpush2.msra.mxu1 %v6870_v54  ;;  %v7220_v54 = vld [vmem:[#allocation9 + $0x60] sm:$0xff] }
 0xb62   :  { %2402 = vmatprep.subr.mxu1 %v6873_v56  ;;  %v7223_v56 = vld [vmem:[#allocation9 + $0x58] sm:$0xff] }
 0xb63   :  { %2403 = vmatpush2.msra.mxu1 %v6876_v58  ;;  %v7226_v58 = vld [vmem:[#allocation9 + $0x50] sm:$0xff] }
 0xb64   :  { %2404 = vmatprep.subr.mxu1 %v6932_v4  ;;  %v7232_v4 = vld [vmem:[#allocation9 + $0x40] sm:$0xff] }
 0xb65   :  { %2405 = vmatpush2.msra.mxu1 %v6935_v5  ;;  %v7235_v5 = vld [vmem:[#allocation9 + $0x38] sm:$0xff] }
 0xb66   :  { %2406 = vmatprep.subr.mxu1 %v6939_v6  ;;  %v7238_v6 = vld [vmem:[#allocation9 + $0x30] sm:$0xff] }
 0xb67   :  { %2407 = vmatpush2.msra.mxu1 %v6943_v7  ;;  %v7241_v7 = vld [vmem:[#allocation9 + $0x28] sm:$0xff] }
 0xb68   :  { %2408 = vmatprep.subr.mxu1 %v6947_v59  ;;  %v7244_v59 = vld [vmem:[#allocation9 + $0x20] sm:$0xff] }
 0xb69   :  { %2409 = vmatpush2.msra.mxu1 %v6951_v60  ;;  %v7247_v60 = vld [vmem:[#allocation9 + $0x18] sm:$0xff] }
 0xb6a   :  { %2410 = vmatprep.subr.mxu1 %v9300_v20  ;;  %v7280_v20 = vld [vmem:[#allocation9 + $0x1c0] sm:$0xff] }
 0xb6b   :  { %2411 = vmatpush2.msra.mxu1 %v9301_v21  ;;  %v7283_v21 = vld [vmem:[#allocation9 + $0x1b8] sm:$0xff] }
 0xb6c   :  { %2412 = vmatprep.subr.mxu1 %v9302_v22  ;;  %v7286_v22 = vld [vmem:[#allocation9 + $0x1b0] sm:$0xff] }
 0xb6d   :  { %2413 = vmatpush2.msra.mxu1 %v9303_v23  ;;  %v7289_v23 = vld [vmem:[#allocation9 + $0x1a8] sm:$0xff] }
 0xb6e   :  { %2414 = vmatprep.subr.mxu1 %v9304_v10  ;;  %v7292_v10 = vld [vmem:[#allocation9 + $0x1a0] sm:$0xff] }
 0xb6f   :  { %2415 = vmatpush2.msra.mxu1 %v9305_v11  ;;  %v2146_v11 = vld [vmem:[#allocation4 + $0xe0] sm:$0xff] }
 0xb70   :  { %2416 = vmatprep.subr.mxu1 %v9306_v12  ;;  %v2147_v12 = vld [vmem:[#allocation4 + $0xe8] sm:$0xff] }
 0xb71   :  { %2417 = vmatpush2.msra.mxu1 %v9307_v17  ;;  %v2148_v17 = vadd.f32 %v2146_v11, %v5833_v57  ;;  %v7363_v11 = vld [vmem:[#allocation9 + $0x178] sm:$0xff] }
 0xb72   :  { %2418 = vmatprep.subr.mxu1 %v9308_v50  ;;  %v2149_v50 = vadd.f32 %v2147_v12, %v5835_v61  ;;  %v7367_v12 = vld [vmem:[#allocation9 + $0x170] sm:$0xff] }
 0xb73   :  { %2419 = vmatpush2.msra.mxu1 %v9309_v51 }
 0xb74   :  { %2420 = vmatprep.subr.mxu1 %v9310_v25 }
 0xb75   :  { %2421 = vmatpush2.msra.mxu1 %v9296_v1  ;;  %v7253_v1 = vld [vmem:[#allocation9 + $0x8] sm:$0xff] }
 0xb76   :  { %2422 = vmatprep.subr.mxu1 %v9297_v36  ;;  %v7256_v36 = vld [vmem:[#allocation9] sm:$0xff] }
 0xb77   :  { %2423 = vmatpush2.msra.mxu1 %v7003_v3  ;;  %v7229_v3 = vld [vmem:[#allocation9 + $0x48] sm:$0xff] }
 0xb78   :  { %2652 = vmatprep.subr.mxu1 %v7164_v42 }
 0xbf8   :  { %v2134_v15 = vpop.f32.mrf.mxu1 }
 0xbf9   :  { %v2139_v28 = vadd.f32 %v2134_v15, %v2002_v18  ;;  %v7348_v15 = vld [vmem:[#allocation9 + $0x198] sm:$0xff] }
 0xbfa   :  { %v2136_v29 = vpop.f32.mrf.mxu1 }
 0xbfb   :  { %v2140_v30 = vadd.f32 %v2136_v29, %v2003_v14  ;;  %v7355_v29 = vld [vmem:[#allocation9 + $0x188] sm:$0xff] }
 0xbfd   :  { %5237 = vtanh.f32 %v2140_v30  ;;  %v7359_v30 = vld [vmem:[#allocation9 + $0x180] sm:$0xff] }
 0xbfe   :  { %5239 = vtanh.f32 %v2139_v28  ;;  %v7351_v28 = vld [vmem:[#allocation9 + $0x190] sm:$0xff] }
 0xc0a   :  { %v7158_v31 = vpop.eup %5237 }
 0xc0b   :  { %9311 = vst [vmem:[#allocation32_spill] sm:$0xff] %v7158_v31  ;;  %v7160_v32 = vpop.eup %5239  ;;  %2278 = vmatprep.mubr.f32.mxu0 %v7158_v31  ;;  %v7403_v31 = vld [vmem:[#allocation9 + $0x120] sm:$0xff] }
 0xc0c   :  { %9312 = vst [vmem:[#allocation33_spill] sm:$0xff] %v7160_v32  ;;  %2279 = vmatmul.mubr.f32.vlgmr.msra.gmra.mxu0 %v7160_v32  ;;  %v7399_v32 = vld [vmem:[#allocation9 + $0x128] sm:$0xff]  ;;  %9324 = vst [vmem:[#allocation59_spill] sm:$0xff] %v7403_v31 }
 0xc0d   :  { %2507 = vmatpush1.msra.mxu0 %v7166_v43  ;;  %9323 = vst [vmem:[#allocation58_spill] sm:$0xff] %v7399_v32 }
 0xc0e   :  { %2508 = vmatprep.subr.mxu0 %v7168_v44 }
 0xc0f   :  { %2509 = vmatpush1.msra.mxu0 %v7171_v45 }
 0xc10   :  { %2510 = vmatprep.subr.mxu0 %v7175_v46 }
 0xc11   :  { %2511 = vmatpush1.msra.mxu0 %v7178_v33 }
 0xc12   :  { %2512 = vmatprep.subr.mxu0 %v7181_v34 }
 0xc13   :  { %2513 = vmatpush1.msra.mxu0 %v7184_v35 }
 0xc14   :  { %2514 = vmatprep.subr.mxu0 %v7187_v40 }
 0xc15   :  { %2515 = vmatpush1.msra.mxu0 %v7190_v13 }
 0xc16   :  { %2516 = vmatprep.subr.mxu0 %v7193_v16 }
 0xc17   :  { %2517 = vmatpush1.msra.mxu0 %v7196_v47 }
 0xc18   :  { %2518 = vmatprep.subr.mxu0 %v7199_v48 }
 0xc19   :  { %2519 = vmatpush1.msra.mxu0 %v7202_v49 }
 0xc1a   :  { %2520 = vmatprep.subr.mxu0 %v7205_v41 }
 0xc1b   :  { %2521 = vmatpush1.msra.mxu0 %v7208_v37 }
 0xc1c   :  { %2522 = vmatprep.subr.mxu0 %v7211_v38 }
 0xc1d   :  { %2523 = vmatpush1.msra.mxu0 %v7214_v52 }
 0xc1e   :  { %2524 = vmatprep.subr.mxu0 %v7217_v53 }
 0xc1f   :  { %2525 = vmatpush1.msra.mxu0 %v7220_v54 }
 0xc20   :  { %2526 = vmatprep.subr.mxu0 %v7223_v56 }
 0xc21   :  { %2527 = vmatpush1.msra.mxu0 %v7226_v58 }
 0xc22   :  { %2528 = vmatprep.subr.mxu0 %v7229_v3 }
 0xc23   :  { %2529 = vmatpush1.msra.mxu0 %v7232_v4 }
 0xc24   :  { %2530 = vmatprep.subr.mxu0 %v7235_v5 }
 0xc25   :  { %2531 = vmatpush1.msra.mxu0 %v7238_v6 }
 0xc26   :  { %2532 = vmatprep.subr.mxu0 %v7241_v7 }
 0xc27   :  { %2533 = vmatpush1.msra.mxu0 %v7244_v59 }
 0xc28   :  { %2534 = vmatprep.subr.mxu0 %v7247_v60 }
 0xc29   :  { %2535 = vmatpush1.msra.mxu0 %v7250_v62 }
 0xc2a   :  { %2536 = vmatprep.subr.mxu0 %v7253_v1 }
 0xc2b   :  { %2537 = vmatpush1.msra.mxu0 %v7256_v36 }
 0xc2c   :  { %2538 = vmatprep.subr.mxu0 %v7259_v39 }
 0xc2d   :  { %2539 = vmatpush2.msra.mxu0 %v7262_v8 }
 0xc2e   :  { %2540 = vmatprep.subr.mxu0 %v7265_v9 }
 0xc2f   :  { %2541 = vmatpush2.msra.mxu0 %v7268_v19 }
 0xc30   :  { %2542 = vmatprep.subr.mxu0 %v7271_v2 }
 0xc31   :  { %2543 = vmatpush2.msra.mxu0 %v7274_v24 }
 0xc32   :  { %2544 = vmatprep.subr.mxu0 %v7277_v0 }
 0xc33   :  { %2545 = vmatpush2.msra.mxu0 %v7280_v20 }
 0xc34   :  { %2546 = vmatprep.subr.mxu0 %v7283_v21 }
 0xc35   :  { %2547 = vmatpush2.msra.mxu0 %v7286_v22 }
 0xc36   :  { %2548 = vmatprep.subr.mxu0 %v7289_v23 }
 0xc37   :  { %2549 = vmatpush2.msra.mxu0 %v7292_v10 }
 0xc38   :  { %2550 = vmatprep.subr.mxu0 %v7348_v15 }
 0xc39   :  { %2551 = vmatpush2.msra.mxu0 %v7351_v28 }
 0xc3a   :  { %2552 = vmatprep.subr.mxu0 %v7355_v29 }
 0xc3b   :  { %2553 = vmatpush2.msra.mxu0 %v7359_v30 }
 0xc3c   :  { %2554 = vmatprep.subr.mxu0 %v7363_v11 }
 0xc3d   :  { %2555 = vmatpush2.msra.mxu0 %v7367_v12 }
 0xccc   :  { %v2280_v51 = vpop.f32.mrf.mxu0 }
 0xccd   :  { %v2285_v25 = vadd.f32 %v2280_v51, %v2148_v17  ;;  %v7371_v17 = vld [vmem:[#allocation9 + $0x168] sm:$0xff]  ;;  %v7375_v51 = vld [vmem:[#allocation9 + $0x158] sm:$0xff] }
 0xcce   :  { %v2282_v26 = vpop.f32.mrf.mxu0  ;;  %9315 = vst [vmem:[#allocation42_spill] sm:$0xff] %v7371_v17  ;;  %9317 = vst [vmem:[#allocation44_spill] sm:$0xff] %v7375_v51  ;;  %2556 = vmatprep.subr.mxu0 %v7371_v17 }
 0xccf   :  { %v2286_v27 = vadd.f32 %v2282_v26, %v2149_v50  ;;  %v7373_v50 = vld [vmem:[#allocation9 + $0x160] sm:$0xff]  ;;  %v7383_v26 = vld [vmem:[#allocation9 + $0x148] sm:$0xff] }
 0xcd0   :  { %9316 = vst [vmem:[#allocation43_spill] sm:$0xff] %v7373_v50  ;;  %2557 = vmatpush2.msra.mxu0 %v7373_v50  ;;  %9319 = vst [vmem:[#allocation50_spill] sm:$0xff] %v7383_v26 }
 0xcd1   :  { %5241 = vtanh.f32 %v2286_v27  ;;  %2558 = vmatprep.subr.mxu0 %v7375_v51  ;;  %v7387_v27 = vld [vmem:[#allocation9 + $0x140] sm:$0xff] }
 0xcd2   :  { %5243 = vtanh.f32 %v2285_v25  ;;  %v7379_v25 = vld [vmem:[#allocation9 + $0x150] sm:$0xff]  ;;  %9320 = vst [vmem:[#allocation51_spill] sm:$0xff] %v7387_v27 }
 0xcd3   :  { %9318 = vst [vmem:[#allocation49_spill] sm:$0xff] %v7379_v25  ;;  %2559 = vmatpush2.msra.mxu0 %v7379_v25 }
 0xcd4   :  { %2560 = vmatprep.subr.mxu0 %v7383_v26 }
 0xcd5   :  { %2561 = vmatpush2.msra.mxu0 %v7387_v27 }
 0xcde   :  { %v7299_v18 = vpop.eup %5241 }
 0xcdf   :  { %9313 = vst [vmem:[#allocation34_spill] sm:$0xff] %v7299_v18  ;;  %v7301_v14 = vpop.eup %5243  ;;  %2424 = vmatprep.mubr.f32.mxu1 %v7299_v18  ;;  %v7395_v18 = vld [vmem:[#allocation9 + $0x130] sm:$0xff] }
 0xce0   :  { %9314 = vst [vmem:[#allocation41_spill] sm:$0xff] %v7301_v14  ;;  %2425 = vmatmul.mubr.f32.vlgmr.msra.gmra.mxu1 %v7301_v14  ;;  %v7391_v14 = vld [vmem:[#allocation9 + $0x138] sm:$0xff]  ;;  %9322 = vst [vmem:[#allocation57_spill] sm:$0xff] %v7395_v18 }
 0xce1   :  { %2653 = vmatpush1.msra.mxu1 %v7166_v43  ;;  %9321 = vst [vmem:[#allocation52_spill] sm:$0xff] %v7391_v14  ;;  %2562 = vmatprep.subr.mxu0 %v7391_v14 }
 0xce2   :  { %2654 = vmatprep.subr.mxu1 %v7168_v44  ;;  %2563 = vmatpush2.msra.mxu0 %v7395_v18 }
 0xce3   :  { %2655 = vmatpush1.msra.mxu1 %v7171_v45  ;;  %2564 = vmatprep.subr.mxu0 %v7399_v32 }
 0xce4   :  { %2656 = vmatprep.subr.mxu1 %v7175_v46  ;;  %2565 = vmatpush2.msra.mxu0 %v7403_v31 }
 0xce5   :  { %2657 = vmatpush1.msra.mxu1 %v7178_v33  ;;  %2566 = vmatprep.subr.mxu0 %v7407_v63 }
 0xce6   :  { %2658 = vmatprep.subr.mxu1 %v7181_v34  ;;  %2567 = vmatpush2.msra.mxu0 %v7411_v55 }
 0xce7   :  { %2659 = vmatpush1.msra.mxu1 %v7184_v35 }
 0xce8   :  { %2660 = vmatprep.subr.mxu1 %v7187_v40 }
 0xce9   :  { %2661 = vmatpush1.msra.mxu1 %v7190_v13 }
 0xcea   :  { %2662 = vmatprep.subr.mxu1 %v7193_v16 }
 0xceb   :  { %2663 = vmatpush1.msra.mxu1 %v7196_v47 }
 0xcec   :  { %2664 = vmatprep.subr.mxu1 %v7199_v48 }
 0xced   :  { %2665 = vmatpush1.msra.mxu1 %v7202_v49 }
 0xcee   :  { %2666 = vmatprep.subr.mxu1 %v7205_v41 }
 0xcef   :  { %2667 = vmatpush1.msra.mxu1 %v7208_v37 }
 0xcf0   :  { %2668 = vmatprep.subr.mxu1 %v7211_v38 }
 0xcf1   :  { %2669 = vmatpush1.msra.mxu1 %v7214_v52 }
 0xcf2   :  { %2670 = vmatprep.subr.mxu1 %v7217_v53 }
 0xcf3   :  { %2671 = vmatpush1.msra.mxu1 %v7220_v54 }
 0xcf4   :  { %2672 = vmatprep.subr.mxu1 %v7223_v56 }
 0xcf5   :  { %2673 = vmatpush1.msra.mxu1 %v7226_v58 }
 0xcf6   :  { %2674 = vmatprep.subr.mxu1 %v7229_v3 }
 0xcf7   :  { %2675 = vmatpush1.msra.mxu1 %v7232_v4 }
 0xcf8   :  { %2676 = vmatprep.subr.mxu1 %v7235_v5 }
 0xcf9   :  { %2677 = vmatpush1.msra.mxu1 %v7238_v6 }
 0xcfa   :  { %2678 = vmatprep.subr.mxu1 %v7241_v7 }
 0xcfb   :  { %2679 = vmatpush1.msra.mxu1 %v7244_v59 }
 0xcfc   :  { %2680 = vmatprep.subr.mxu1 %v7247_v60 }
 0xcfd   :  { %2681 = vmatpush1.msra.mxu1 %v7250_v62 }
 0xcfe   :  { %2682 = vmatprep.subr.mxu1 %v7253_v1 }
 0xcff   :  { %2683 = vmatpush1.msra.mxu1 %v7256_v36 }
 0xd00   :  { %2684 = vmatprep.subr.mxu1 %v7259_v39 }
 0xd01   :  { %2685 = vmatpush2.msra.mxu1 %v7262_v8 }
 0xd02   :  { %2686 = vmatprep.subr.mxu1 %v7265_v9 }
 0xd03   :  { %2687 = vmatpush2.msra.mxu1 %v7268_v19 }
 0xd04   :  { %2688 = vmatprep.subr.mxu1 %v7271_v2 }
 0xd05   :  { %2689 = vmatpush2.msra.mxu1 %v7274_v24 }
 0xd06   :  { %2690 = vmatprep.subr.mxu1 %v7277_v0 }
 0xd07   :  { %2691 = vmatpush2.msra.mxu1 %v7280_v20 }
 0xd08   :  { %2692 = vmatprep.subr.mxu1 %v7283_v21 }
 0xd09   :  { %2693 = vmatpush2.msra.mxu1 %v7286_v22 }
 0xd0a   :  { %2694 = vmatprep.subr.mxu1 %v7289_v23 }
 0xd0b   :  { %2695 = vmatpush2.msra.mxu1 %v7292_v10 }
 0xd0c   :  { %2696 = vmatprep.subr.mxu1 %v7348_v15 }
 0xd0d   :  { %2697 = vmatpush2.msra.mxu1 %v7351_v28 }
 0xd0e   :  { %2698 = vmatprep.subr.mxu1 %v7355_v29 }
 0xd0f   :  { %2699 = vmatpush2.msra.mxu1 %v7359_v30 }
 0xd10   :  { %2700 = vmatprep.subr.mxu1 %v7363_v11 }
 0xd11   :  { %2701 = vmatpush2.msra.mxu1 %v7367_v12 }
 0xd12   :  { %2702 = vmatprep.subr.mxu1 %v7371_v17 }
 0xd13   :  { %2703 = vmatpush2.msra.mxu1 %v7373_v50 }
 0xd14   :  { %2704 = vmatprep.subr.mxu1 %v7375_v51 }
 0xd15   :  { %2705 = vmatpush2.msra.mxu1 %v7379_v25 }
 0xd16   :  { %2706 = vmatprep.subr.mxu1 %v7383_v26 }
 0xd17   :  { %2707 = vmatpush2.msra.mxu1 %v7387_v27  ;;  %v7415_v27 = vld [vmem:[#allocation9 + $0x108] sm:$0xff] }
 0xd18   :  { %2708 = vmatprep.subr.mxu1 %v7391_v14  ;;  %9327 = vst [vmem:[#allocation62_spill] sm:$0xff] %v7415_v27  ;;  %v7419_v14 = vld [vmem:[#allocation9 + $0x100] sm:$0xff]  ;;  %2568 = vmatprep.subr.mxu0 %v7415_v27 }
 0xd19   :  { %2709 = vmatpush2.msra.mxu1 %v7395_v18  ;;  %2569 = vmatpush2.msra.mxu0 %v7419_v14 }
 0xd1a   :  { %2710 = vmatprep.subr.mxu1 %v7399_v32  ;;  %2798 = vmatprep.subr.mxu0 %v7164_v42  ;;  %v2293_v32 = vld [vmem:[#allocation4 + $0xf8] sm:$0xff] }
 0xd1b   :  { %2711 = vmatpush2.msra.mxu1 %v7403_v31  ;;  %v2292_v31 = vld [vmem:[#allocation4 + $0xf0] sm:$0xff]  ;;  %v2295_v18 = vadd.f32 %v2293_v32, %v5835_v61 }
 0xd1c   :  { %2712 = vmatprep.subr.mxu1 %v7407_v63  ;;  %v2294_v63 = vadd.f32 %v2292_v31, %v5833_v57  ;;  %v9332_v31 = vld [vmem:[#allocation49_spill] sm:$0xff]  ;;  %v9333_v32 = vld [vmem:[#allocation50_spill] sm:$0xff] }
 0xd1d   :  { %2713 = vmatpush2.msra.mxu1 %v7411_v55 }
 0xd1e   :  { %2714 = vmatprep.subr.mxu1 %v7415_v27 }
 0xd1f   :  { %2715 = vmatpush2.msra.mxu1 %v7419_v14 }
 0xd20   :  { %2944 = vmatprep.subr.mxu1 %v7164_v42  ;;  %v9334_v42 = vld [vmem:[#allocation51_spill] sm:$0xff] }
 0xda0   :  { %v2426_v26 = vpop.f32.mrf.mxu1 }
 0xda1   :  { %v2431_v55 = vadd.f32 %v2426_v26, %v2294_v63  ;;  %v9330_v63 = vld [vmem:[#allocation43_spill] sm:$0xff] }
 0xda2   :  { %v2428_v25 = vpop.f32.mrf.mxu1  ;;  %v9338_v26 = vld [vmem:[#allocation59_spill] sm:$0xff] }
 0xda3   :  { %v2432_v51 = vadd.f32 %v2428_v25, %v2295_v18  ;;  %v9335_v18 = vld [vmem:[#allocation52_spill] sm:$0xff]  ;;  %v9337_v25 = vld [vmem:[#allocation58_spill] sm:$0xff] }
 0xda5   :  { %5245 = vtanh.f32 %v2432_v51  ;;  %v9336_v51 = vld [vmem:[#allocation57_spill] sm:$0xff] }
 0xda6   :  { %5247 = vtanh.f32 %v2431_v55  ;;  %v9331_v55 = vld [vmem:[#allocation44_spill] sm:$0xff] }
 0xdb2   :  { %v7432_v27 = vpop.eup %5245 }
 0xdb3   :  { %9328 = vst [vmem:[#allocation63_spill] sm:$0xff] %v7432_v27  ;;  %v7434_v50 = vpop.eup %5247  ;;  %2570 = vmatprep.mubr.f32.mxu0 %v7432_v27  ;;  %v9340_v27 = vld [vmem:[#allocation61_spill] sm:$0xff] }
 0xdb4   :  { %9329 = vst [vmem:[#allocation64_spill] sm:$0xff] %v7434_v50  ;;  %2571 = vmatmul.mubr.f32.vlgmr.msra.gmra.mxu0 %v7434_v50  ;;  %v9339_v50 = vld [vmem:[#allocation60_spill] sm:$0xff] }
 0xdb5   :  { %2799 = vmatpush1.msra.mxu0 %v7166_v43 }
 0xdb6   :  { %2800 = vmatprep.subr.mxu0 %v7168_v44 }
 0xdb7   :  { %2801 = vmatpush1.msra.mxu0 %v7171_v45 }
 0xdb8   :  { %2802 = vmatprep.subr.mxu0 %v7175_v46 }
 0xdb9   :  { %2803 = vmatpush1.msra.mxu0 %v7178_v33 }
 0xdba   :  { %2804 = vmatprep.subr.mxu0 %v7181_v34 }
 0xdbb   :  { %2805 = vmatpush1.msra.mxu0 %v7184_v35 }
 0xdbc   :  { %2806 = vmatprep.subr.mxu0 %v7187_v40 }
 0xdbd   :  { %2807 = vmatpush1.msra.mxu0 %v7190_v13 }
 0xdbe   :  { %2808 = vmatprep.subr.mxu0 %v7193_v16 }
 0xdbf   :  { %2809 = vmatpush1.msra.mxu0 %v7196_v47 }
 0xdc0   :  { %2810 = vmatprep.subr.mxu0 %v7199_v48 }
 0xdc1   :  { %2811 = vmatpush1.msra.mxu0 %v7202_v49 }
 0xdc2   :  { %2812 = vmatprep.subr.mxu0 %v7205_v41 }
 0xdc3   :  { %2813 = vmatpush1.msra.mxu0 %v7208_v37 }
 0xdc4   :  { %2814 = vmatprep.subr.mxu0 %v7211_v38 }
 0xdc5   :  { %2815 = vmatpush1.msra.mxu0 %v7214_v52 }
 0xdc6   :  { %2816 = vmatprep.subr.mxu0 %v7217_v53 }
 0xdc7   :  { %2817 = vmatpush1.msra.mxu0 %v7220_v54 }
 0xdc8   :  { %2818 = vmatprep.subr.mxu0 %v7223_v56 }
 0xdc9   :  { %2819 = vmatpush1.msra.mxu0 %v7226_v58 }
 0xdca   :  { %2820 = vmatprep.subr.mxu0 %v7229_v3 }
 0xdcb   :  { %2821 = vmatpush1.msra.mxu0 %v7232_v4 }
 0xdcc   :  { %2822 = vmatprep.subr.mxu0 %v7235_v5 }
 0xdcd   :  { %2823 = vmatpush1.msra.mxu0 %v7238_v6 }
 0xdce   :  { %2824 = vmatprep.subr.mxu0 %v7241_v7 }
 0xdcf   :  { %2825 = vmatpush1.msra.mxu0 %v7244_v59 }
 0xdd0   :  { %2826 = vmatprep.subr.mxu0 %v7247_v60 }
 0xdd1   :  { %2827 = vmatpush1.msra.mxu0 %v7250_v62 }
 0xdd2   :  { %2828 = vmatprep.subr.mxu0 %v7253_v1 }
 0xdd3   :  { %2829 = vmatpush1.msra.mxu0 %v7256_v36 }
 0xdd4   :  { %2830 = vmatprep.subr.mxu0 %v7259_v39 }
 0xdd5   :  { %2831 = vmatpush2.msra.mxu0 %v7262_v8 }
 0xdd6   :  { %2832 = vmatprep.subr.mxu0 %v7265_v9 }
 0xdd7   :  { %2833 = vmatpush2.msra.mxu0 %v7268_v19 }
 0xdd8   :  { %2834 = vmatprep.subr.mxu0 %v7271_v2 }
 0xdd9   :  { %2835 = vmatpush2.msra.mxu0 %v7274_v24 }
 0xdda   :  { %2836 = vmatprep.subr.mxu0 %v7277_v0 }
 0xddb   :  { %2837 = vmatpush2.msra.mxu0 %v7280_v20 }
 0xddc   :  { %2838 = vmatprep.subr.mxu0 %v7283_v21 }
 0xddd   :  { %2839 = vmatpush2.msra.mxu0 %v7286_v22 }
 0xdde   :  { %2840 = vmatprep.subr.mxu0 %v7289_v23 }
 0xddf   :  { %2841 = vmatpush2.msra.mxu0 %v7292_v10 }
 0xde0   :  { %2842 = vmatprep.subr.mxu0 %v7348_v15 }
 0xde1   :  { %2843 = vmatpush2.msra.mxu0 %v7351_v28 }
 0xde2   :  { %2844 = vmatprep.subr.mxu0 %v7355_v29 }
 0xde3   :  { %2845 = vmatpush2.msra.mxu0 %v7359_v30 }
 0xde4   :  { %2846 = vmatprep.subr.mxu0 %v7363_v11 }
 0xde5   :  { %2847 = vmatpush2.msra.mxu0 %v7367_v12 }
 0xde6   :  { %2848 = vmatprep.subr.mxu0 %v7371_v17 }
 0xde7   :  { %2849 = vmatpush2.msra.mxu0 %v9330_v63  ;;  %v9341_v63 = vld [vmem:[#allocation62_spill] sm:$0xff] }
 0xde8   :  { %2850 = vmatprep.subr.mxu0 %v9331_v55 }
 0xde9   :  { %2851 = vmatpush2.msra.mxu0 %v9332_v31  ;;  %v2438_v31 = vld [vmem:[#allocation4 + $0x100] sm:$0xff] }
 0xdea   :  { %2852 = vmatprep.subr.mxu0 %v9333_v32  ;;  %v2439_v32 = vld [vmem:[#allocation4 + $0x108] sm:$0xff] }
 0xdeb   :  { %2853 = vmatpush2.msra.mxu0 %v9334_v42  ;;  %v2440_v42 = vadd.f32 %v2438_v31, %v5833_v57  ;;  %v7678_v31 = vld [vmem:[#allocation9 + $0x1f0] sm:$0xff] }
 0xdec   :  { %2854 = vmatprep.subr.mxu0 %v9335_v18  ;;  %v2441_v18 = vadd.f32 %v2439_v32, %v5835_v61  ;;  %v7681_v32 = vld [vmem:[#allocation9 + $0x1e8] sm:$0xff] }
 0xded   :  { %2855 = vmatpush2.msra.mxu0 %v9336_v51 }
 0xdee   :  { %2856 = vmatprep.subr.mxu0 %v9337_v25 }
 0xdef   :  { %2857 = vmatpush2.msra.mxu0 %v9338_v26 }
 0xdf0   :  { %2858 = vmatprep.subr.mxu0 %v9339_v50 }
 0xdf1   :  { %2859 = vmatpush2.msra.mxu0 %v9340_v27 }
 0xdf2   :  { %2860 = vmatprep.subr.mxu0 %v9341_v63 }
 0xdf3   :  { %2861 = vmatpush2.msra.mxu0 %v7419_v14 }
 0xe74   :  { %v2572_v55 = vpop.f32.mrf.mxu0 }
 0xe75   :  { %v2577_v51 = vadd.f32 %v2572_v55, %v2440_v42  ;;  %v7675_v55 = vld [vmem:[#allocation9 + $0x1f8] sm:$0xff]  ;;  %v7684_v42 = vld [vmem:[#allocation9 + $0x1e0] sm:$0xff] }
 0xe76   :  { %v2574_v17 = vpop.f32.mrf.mxu0 }
 0xe77   :  { %v2578_v25 = vadd.f32 %v2574_v17, %v2441_v18  ;;  %v7666_v17 = vld [vmem:[#allocation9 + $0x10] sm:$0xff]  ;;  %v7687_v18 = vld [vmem:[#allocation9 + $0x1d8] sm:$0xff] }
 0xe79   :  { %5249 = vtanh.f32 %v2578_v25  ;;  %v7693_v25 = vld [vmem:[#allocation9 + $0x1c8] sm:$0xff] }
 0xe7a   :  { %5251 = vtanh.f32 %v2577_v51  ;;  %v7690_v51 = vld [vmem:[#allocation9 + $0x1d0] sm:$0xff] }
 0xe86   :  { %v7503_v26 = vpop.eup %5249 }
 0xe87   :  { %9342 = vst [vmem:[#allocation61_spill] sm:$0xff] %v7503_v26  ;;  %v7505_v50 = vpop.eup %5251  ;;  %2716 = vmatprep.mubr.f32.mxu1 %v7503_v26  ;;  %v7827_v26 = vld [vmem:[#allocation9 + $0x110] sm:$0xff] }
 0xe88   :  { %9343 = vst [vmem:[#allocation62_spill] sm:$0xff] %v7505_v50  ;;  %2717 = vmatmul.mubr.f32.vlgmr.msra.gmra.mxu1 %v7505_v50  ;;  %v7823_v50 = vld [vmem:[#allocation9 + $0x118] sm:$0xff]  ;;  %9370 = vst [vmem:[#allocation69_spill] sm:$0xff] %v7827_v26 }
 0xe89   :  { %2945 = vmatpush1.msra.mxu1 %v7166_v43  ;;  %v9344_v43 = vld [vmem:[#allocation42_spill] sm:$0xff]  ;;  %9369 = vst [vmem:[#allocation68_spill] sm:$0xff] %v7823_v50 }
 0xe8a   :  { %2946 = vmatprep.subr.mxu1 %v7168_v44  ;;  %v9345_v44 = vld [vmem:[#allocation43_spill] sm:$0xff] }
 0xe8b   :  { %2947 = vmatpush1.msra.mxu1 %v7171_v45  ;;  %v9346_v45 = vld [vmem:[#allocation44_spill] sm:$0xff] }
 0xe8c   :  { %2948 = vmatprep.subr.mxu1 %v7175_v46  ;;  %v9347_v46 = vld [vmem:[#allocation49_spill] sm:$0xff] }
 0xe8d   :  { %2949 = vmatpush1.msra.mxu1 %v7178_v33  ;;  %v9348_v33 = vld [vmem:[#allocation50_spill] sm:$0xff] }
 0xe8e   :  { %2950 = vmatprep.subr.mxu1 %v7181_v34  ;;  %v9349_v34 = vld [vmem:[#allocation51_spill] sm:$0xff] }
 0xe8f   :  { %2951 = vmatpush1.msra.mxu1 %v7184_v35  ;;  %v9350_v35 = vld [vmem:[#allocation52_spill] sm:$0xff] }
 0xe90   :  { %2952 = vmatprep.subr.mxu1 %v7187_v40  ;;  %v9351_v40 = vld [vmem:[#allocation57_spill] sm:$0xff] }
 0xe91   :  { %2953 = vmatpush1.msra.mxu1 %v7190_v13  ;;  %v9352_v13 = vld [vmem:[#allocation58_spill] sm:$0xff] }
 0xe92   :  { %2954 = vmatprep.subr.mxu1 %v7193_v16  ;;  %v9353_v16 = vld [vmem:[#allocation59_spill] sm:$0xff] }
 0xe93   :  { %2955 = vmatpush1.msra.mxu1 %v7196_v47  ;;  %v9354_v47 = vld [vmem:[#allocation60_spill] sm:$0xff] }
 0xe94   :  { %2956 = vmatprep.subr.mxu1 %v7199_v48  ;;  %v2584_v48 = vld [vmem:[#allocation4 + $0x110] sm:$0xff] }
 0xe95   :  { %2957 = vmatpush1.msra.mxu1 %v7202_v49  ;;  %v2585_v49 = vld [vmem:[#allocation4 + $0x118] sm:$0xff] }
 0xe96   :  { %2958 = vmatprep.subr.mxu1 %v7205_v41  ;;  %v2586_v41 = vadd.f32 %v2584_v48, %v5833_v57 }
 0xe97   :  { %2959 = vmatpush1.msra.mxu1 %v7208_v37  ;;  %v2587_v37 = vadd.f32 %v2585_v49, %v5835_v61 }
 0xe98   :  { %2960 = vmatprep.subr.mxu1 %v7211_v38 }
 0xe99   :  { %2961 = vmatpush1.msra.mxu1 %v7214_v52 }
 0xe9a   :  { %2962 = vmatprep.subr.mxu1 %v7217_v53 }
 0xe9b   :  { %2963 = vmatpush1.msra.mxu1 %v7220_v54 }
 0xe9c   :  { %2964 = vmatprep.subr.mxu1 %v7223_v56 }
 0xe9d   :  { %2965 = vmatpush1.msra.mxu1 %v7226_v58 }
 0xe9e   :  { %2966 = vmatprep.subr.mxu1 %v7229_v3  ;;  %v7580_v3 = vld [vmem:[#allocation9 + $0xf8] sm:$0xff] }
 0xe9f   :  { %2967 = vmatpush1.msra.mxu1 %v7232_v4  ;;  %v7582_v4 = vld [vmem:[#allocation9 + $0xf0] sm:$0xff]  ;;  %3090 = vmatprep.subr.mxu0 %v7580_v3 }
 0xea0   :  { %2968 = vmatprep.subr.mxu1 %v7235_v5  ;;  %v7584_v5 = vld [vmem:[#allocation9 + $0xe8] sm:$0xff] }
 0xea1   :  { %2969 = vmatpush1.msra.mxu1 %v7238_v6  ;;  %v7587_v6 = vld [vmem:[#allocation9 + $0xe0] sm:$0xff] }
 0xea2   :  { %2970 = vmatprep.subr.mxu1 %v7241_v7  ;;  %v7591_v7 = vld [vmem:[#allocation9 + $0xd8] sm:$0xff] }
 0xea3   :  { %2971 = vmatpush1.msra.mxu1 %v7244_v59  ;;  %v7594_v59 = vld [vmem:[#allocation9 + $0xd0] sm:$0xff] }
 0xea4   :  { %2972 = vmatprep.subr.mxu1 %v7247_v60  ;;  %v7597_v60 = vld [vmem:[#allocation9 + $0xc8] sm:$0xff] }
 0xea5   :  { %2973 = vmatpush1.msra.mxu1 %v7250_v62  ;;  %v7600_v62 = vld [vmem:[#allocation9 + $0xc0] sm:$0xff] }
 0xea6   :  { %2974 = vmatprep.subr.mxu1 %v7253_v1  ;;  %v7603_v1 = vld [vmem:[#allocation9 + $0xb8] sm:$0xff] }
 0xea7   :  { %2975 = vmatpush1.msra.mxu1 %v7256_v36  ;;  %v7606_v36 = vld [vmem:[#allocation9 + $0xb0] sm:$0xff] }
 0xea8   :  { %2976 = vmatprep.subr.mxu1 %v7259_v39  ;;  %v7609_v39 = vld [vmem:[#allocation9 + $0xa8] sm:$0xff] }
 0xea9   :  { %2977 = vmatpush2.msra.mxu1 %v7262_v8  ;;  %v7612_v8 = vld [vmem:[#allocation9 + $0xa0] sm:$0xff] }
 0xeaa   :  { %2978 = vmatprep.subr.mxu1 %v7265_v9  ;;  %v7615_v9 = vld [vmem:[#allocation9 + $0x98] sm:$0xff] }
 0xeab   :  { %2979 = vmatpush2.msra.mxu1 %v7268_v19  ;;  %v7618_v19 = vld [vmem:[#allocation9 + $0x90] sm:$0xff] }
 0xeac   :  { %2980 = vmatprep.subr.mxu1 %v7271_v2  ;;  %v7621_v2 = vld [vmem:[#allocation9 + $0x88] sm:$0xff] }
 0xead   :  { %2981 = vmatpush2.msra.mxu1 %v7274_v24  ;;  %v7624_v24 = vld [vmem:[#allocation9 + $0x80] sm:$0xff] }
 0xeae   :  { %2982 = vmatprep.subr.mxu1 %v7277_v0  ;;  %v7627_v0 = vld [vmem:[#allocation9 + $0x78] sm:$0xff] }
 0xeaf   :  { %2983 = vmatpush2.msra.mxu1 %v7280_v20  ;;  %v7630_v20 = vld [vmem:[#allocation9 + $0x70] sm:$0xff] }
 0xeb0   :  { %2984 = vmatprep.subr.mxu1 %v7283_v21  ;;  %v7633_v21 = vld [vmem:[#allocation9 + $0x68] sm:$0xff] }
 0xeb1   :  { %2985 = vmatpush2.msra.mxu1 %v7286_v22  ;;  %v7636_v22 = vld [vmem:[#allocation9 + $0x60] sm:$0xff] }
 0xeb2   :  { %2986 = vmatprep.subr.mxu1 %v7289_v23  ;;  %v7639_v23 = vld [vmem:[#allocation9 + $0x58] sm:$0xff] }
 0xeb3   :  { %2987 = vmatpush2.msra.mxu1 %v7292_v10  ;;  %v7642_v10 = vld [vmem:[#allocation9 + $0x50] sm:$0xff] }
 0xeb4   :  { %2988 = vmatprep.subr.mxu1 %v7348_v15  ;;  %v7648_v15 = vld [vmem:[#allocation9 + $0x40] sm:$0xff] }
 0xeb5   :  { %2989 = vmatpush2.msra.mxu1 %v7351_v28  ;;  %v7651_v28 = vld [vmem:[#allocation9 + $0x38] sm:$0xff] }
 0xeb6   :  { %2990 = vmatprep.subr.mxu1 %v7355_v29  ;;  %v7654_v29 = vld [vmem:[#allocation9 + $0x30] sm:$0xff] }
 0xeb7   :  { %2991 = vmatpush2.msra.mxu1 %v7359_v30  ;;  %v7657_v30 = vld [vmem:[#allocation9 + $0x28] sm:$0xff] }
 0xeb8   :  { %2992 = vmatprep.subr.mxu1 %v7363_v11  ;;  %v7660_v11 = vld [vmem:[#allocation9 + $0x20] sm:$0xff] }
 0xeb9   :  { %2993 = vmatpush2.msra.mxu1 %v7367_v12  ;;  %v7663_v12 = vld [vmem:[#allocation9 + $0x18] sm:$0xff] }
 0xeba   :  { %2994 = vmatprep.subr.mxu1 %v9344_v43  ;;  %v7696_v43 = vld [vmem:[#allocation9 + $0x1c0] sm:$0xff] }
 0xebb   :  { %2995 = vmatpush2.msra.mxu1 %v9345_v44  ;;  %v7699_v44 = vld [vmem:[#allocation9 + $0x1b8] sm:$0xff] }
 0xebc   :  { %2996 = vmatprep.subr.mxu1 %v9346_v45  ;;  %v7702_v45 = vld [vmem:[#allocation9 + $0x1b0] sm:$0xff] }
 0xebd   :  { %2997 = vmatpush2.msra.mxu1 %v9347_v46  ;;  %v7705_v46 = vld [vmem:[#allocation9 + $0x1a8] sm:$0xff] }
 0xebe   :  { %2998 = vmatprep.subr.mxu1 %v9348_v33  ;;  %v7708_v33 = vld [vmem:[#allocation9 + $0x1a0] sm:$0xff] }
 0xebf   :  { %2999 = vmatpush2.msra.mxu1 %v9349_v34  ;;  %v2730_v34 = vld [vmem:[#allocation4 + $0x120] sm:$0xff] }
 0xec0   :  { %3000 = vmatprep.subr.mxu1 %v9350_v35  ;;  %v2731_v35 = vld [vmem:[#allocation4 + $0x128] sm:$0xff] }
 0xec1   :  { %3001 = vmatpush2.msra.mxu1 %v9351_v40  ;;  %v2732_v40 = vadd.f32 %v2730_v34, %v5833_v57  ;;  %v7779_v34 = vld [vmem:[#allocation9 + $0x178] sm:$0xff] }
 0xec2   :  { %3002 = vmatprep.subr.mxu1 %v9352_v13  ;;  %v2733_v13 = vadd.f32 %v2731_v35, %v5835_v61  ;;  %v7783_v35 = vld [vmem:[#allocation9 + $0x170] sm:$0xff] }
 0xec3   :  { %3003 = vmatpush2.msra.mxu1 %v9353_v16 }
 0xec4   :  { %3004 = vmatprep.subr.mxu1 %v9354_v47 }
 0xec5   :  { %3005 = vmatpush2.msra.mxu1 %v9340_v27  ;;  %v7669_v27 = vld [vmem:[#allocation9 + $0x8] sm:$0xff] }
 0xec6   :  { %3006 = vmatprep.subr.mxu1 %v9341_v63  ;;  %v7672_v63 = vld [vmem:[#allocation9] sm:$0xff] }
 0xec7   :  { %3007 = vmatpush2.msra.mxu1 %v7419_v14  ;;  %v7645_v14 = vld [vmem:[#allocation9 + $0x48] sm:$0xff] }
 0xec8   :  { %3236 = vmatprep.subr.mxu1 %v7580_v3 }
 0xf48   :  { %v2718_v38 = vpop.f32.mrf.mxu1 }
 0xf49   :  { %v2723_v52 = vadd.f32 %v2718_v38, %v2586_v41  ;;  %v7764_v38 = vld [vmem:[#allocation9 + $0x198] sm:$0xff] }
 0xf4a   :  { %v2720_v53 = vpop.f32.mrf.mxu1 }
 0xf4b   :  { %v2724_v54 = vadd.f32 %v2720_v53, %v2587_v37  ;;  %v7771_v53 = vld [vmem:[#allocation9 + $0x188] sm:$0xff] }
 0xf4d   :  { %5253 = vtanh.f32 %v2724_v54  ;;  %v7775_v54 = vld [vmem:[#allocation9 + $0x180] sm:$0xff] }
 0xf4e   :  { %5255 = vtanh.f32 %v2723_v52  ;;  %v7767_v52 = vld [vmem:[#allocation9 + $0x190] sm:$0xff] }
 0xf5a   :  { %v7574_v56 = vpop.eup %5253 }
 0xf5b   :  { %9355 = vst [vmem:[#allocation42_spill] sm:$0xff] %v7574_v56  ;;  %v7576_v58 = vpop.eup %5255  ;;  %2862 = vmatprep.mubr.f32.mxu0 %v7574_v56  ;;  %v7819_v56 = vld [vmem:[#allocation9 + $0x120] sm:$0xff] }
 0xf5c   :  { %9356 = vst [vmem:[#allocation43_spill] sm:$0xff] %v7576_v58  ;;  %2863 = vmatmul.mubr.f32.vlgmr.msra.gmra.mxu0 %v7576_v58  ;;  %v7815_v58 = vld [vmem:[#allocation9 + $0x128] sm:$0xff]  ;;  %9368 = vst [vmem:[#allocation67_spill] sm:$0xff] %v7819_v56 }
 0xf5d   :  { %3091 = vmatpush1.msra.mxu0 %v7582_v4  ;;  %9367 = vst [vmem:[#allocation66_spill] sm:$0xff] %v7815_v58 }
 0xf5e   :  { %3092 = vmatprep.subr.mxu0 %v7584_v5 }
 0xf5f   :  { %3093 = vmatpush1.msra.mxu0 %v7587_v6 }
 0xf60   :  { %3094 = vmatprep.subr.mxu0 %v7591_v7 }
 0xf61   :  { %3095 = vmatpush1.msra.mxu0 %v7594_v59 }
 0xf62   :  { %3096 = vmatprep.subr.mxu0 %v7597_v60 }
 0xf63   :  { %3097 = vmatpush1.msra.mxu0 %v7600_v62 }
 0xf64   :  { %3098 = vmatprep.subr.mxu0 %v7603_v1 }
 0xf65   :  { %3099 = vmatpush1.msra.mxu0 %v7606_v36 }
 0xf66   :  { %3100 = vmatprep.subr.mxu0 %v7609_v39 }
 0xf67   :  { %3101 = vmatpush1.msra.mxu0 %v7612_v8 }
 0xf68   :  { %3102 = vmatprep.subr.mxu0 %v7615_v9 }
 0xf69   :  { %3103 = vmatpush1.msra.mxu0 %v7618_v19 }
 0xf6a   :  { %3104 = vmatprep.subr.mxu0 %v7621_v2 }
 0xf6b   :  { %3105 = vmatpush1.msra.mxu0 %v7624_v24 }
 0xf6c   :  { %3106 = vmatprep.subr.mxu0 %v7627_v0 }
 0xf6d   :  { %3107 = vmatpush1.msra.mxu0 %v7630_v20 }
 0xf6e   :  { %3108 = vmatprep.subr.mxu0 %v7633_v21 }
 0xf6f   :  { %3109 = vmatpush1.msra.mxu0 %v7636_v22 }
 0xf70   :  { %3110 = vmatprep.subr.mxu0 %v7639_v23 }
 0xf71   :  { %3111 = vmatpush1.msra.mxu0 %v7642_v10 }
 0xf72   :  { %3112 = vmatprep.subr.mxu0 %v7645_v14 }
 0xf73   :  { %3113 = vmatpush1.msra.mxu0 %v7648_v15 }
 0xf74   :  { %3114 = vmatprep.subr.mxu0 %v7651_v28 }
 0xf75   :  { %3115 = vmatpush1.msra.mxu0 %v7654_v29 }
 0xf76   :  { %3116 = vmatprep.subr.mxu0 %v7657_v30 }
 0xf77   :  { %3117 = vmatpush1.msra.mxu0 %v7660_v11 }
 0xf78   :  { %3118 = vmatprep.subr.mxu0 %v7663_v12 }
 0xf79   :  { %3119 = vmatpush1.msra.mxu0 %v7666_v17 }
 0xf7a   :  { %3120 = vmatprep.subr.mxu0 %v7669_v27 }
 0xf7b   :  { %3121 = vmatpush1.msra.mxu0 %v7672_v63 }
 0xf7c   :  { %3122 = vmatprep.subr.mxu0 %v7675_v55 }
 0xf7d   :  { %3123 = vmatpush2.msra.mxu0 %v7678_v31 }
 0xf7e   :  { %3124 = vmatprep.subr.mxu0 %v7681_v32 }
 0xf7f   :  { %3125 = vmatpush2.msra.mxu0 %v7684_v42 }
 0xf80   :  { %3126 = vmatprep.subr.mxu0 %v7687_v18 }
 0xf81   :  { %3127 = vmatpush2.msra.mxu0 %v7690_v51 }
 0xf82   :  { %3128 = vmatprep.subr.mxu0 %v7693_v25 }
 0xf83   :  { %3129 = vmatpush2.msra.mxu0 %v7696_v43 }
 0xf84   :  { %3130 = vmatprep.subr.mxu0 %v7699_v44 }
 0xf85   :  { %3131 = vmatpush2.msra.mxu0 %v7702_v45 }
 0xf86   :  { %3132 = vmatprep.subr.mxu0 %v7705_v46 }
 0xf87   :  { %3133 = vmatpush2.msra.mxu0 %v7708_v33 }
 0xf88   :  { %3134 = vmatprep.subr.mxu0 %v7764_v38 }
 0xf89   :  { %3135 = vmatpush2.msra.mxu0 %v7767_v52 }
 0xf8a   :  { %3136 = vmatprep.subr.mxu0 %v7771_v53 }
 0xf8b   :  { %3137 = vmatpush2.msra.mxu0 %v7775_v54 }
 0xf8c   :  { %3138 = vmatprep.subr.mxu0 %v7779_v34 }
 0xf8d   :  { %3139 = vmatpush2.msra.mxu0 %v7783_v35 }
0x101c   :  { %v2864_v16 = vpop.f32.mrf.mxu0 }
0x101d   :  { %v2869_v47 = vadd.f32 %v2864_v16, %v2732_v40  ;;  %v7787_v40 = vld [vmem:[#allocation9 + $0x168] sm:$0xff]  ;;  %v7791_v16 = vld [vmem:[#allocation9 + $0x158] sm:$0xff] }
0x101e   :  { %v2866_v48 = vpop.f32.mrf.mxu0  ;;  %9359 = vst [vmem:[#allocation50_spill] sm:$0xff] %v7787_v40  ;;  %9361 = vst [vmem:[#allocation52_spill] sm:$0xff] %v7791_v16  ;;  %3140 = vmatprep.subr.mxu0 %v7787_v40 }
0x101f   :  { %v2870_v49 = vadd.f32 %v2866_v48, %v2733_v13  ;;  %v7789_v13 = vld [vmem:[#allocation9 + $0x160] sm:$0xff]  ;;  %v7799_v48 = vld [vmem:[#allocation9 + $0x148] sm:$0xff] }
0x1020   :  { %9360 = vst [vmem:[#allocation51_spill] sm:$0xff] %v7789_v13  ;;  %3141 = vmatpush2.msra.mxu0 %v7789_v13  ;;  %9363 = vst [vmem:[#allocation58_spill] sm:$0xff] %v7799_v48 }
0x1021   :  { %5257 = vtanh.f32 %v2870_v49  ;;  %3142 = vmatprep.subr.mxu0 %v7791_v16  ;;  %v7803_v49 = vld [vmem:[#allocation9 + $0x140] sm:$0xff] }
0x1022   :  { %5259 = vtanh.f32 %v2869_v47  ;;  %v7795_v47 = vld [vmem:[#allocation9 + $0x150] sm:$0xff]  ;;  %9364 = vst [vmem:[#allocation59_spill] sm:$0xff] %v7803_v49 }
0x1023   :  { %9362 = vst [vmem:[#allocation57_spill] sm:$0xff] %v7795_v47  ;;  %3143 = vmatpush2.msra.mxu0 %v7795_v47 }
0x1024   :  { %3144 = vmatprep.subr.mxu0 %v7799_v48 }
0x1025   :  { %3145 = vmatpush2.msra.mxu0 %v7803_v49 }
0x102e   :  { %v7715_v41 = vpop.eup %5257 }
0x102f   :  { %9357 = vst [vmem:[#allocation44_spill] sm:$0xff] %v7715_v41  ;;  %v7717_v37 = vpop.eup %5259  ;;  %3008 = vmatprep.mubr.f32.mxu1 %v7715_v41  ;;  %v7811_v41 = vld [vmem:[#allocation9 + $0x130] sm:$0xff] }
0x1030   :  { %9358 = vst [vmem:[#allocation49_spill] sm:$0xff] %v7717_v37  ;;  %3009 = vmatmul.mubr.f32.vlgmr.msra.gmra.mxu1 %v7717_v37  ;;  %v7807_v37 = vld [vmem:[#allocation9 + $0x138] sm:$0xff]  ;;  %9366 = vst [vmem:[#allocation65_spill] sm:$0xff] %v7811_v41 }
0x1031   :  { %3237 = vmatpush1.msra.mxu1 %v7582_v4  ;;  %9365 = vst [vmem:[#allocation60_spill] sm:$0xff] %v7807_v37  ;;  %3146 = vmatprep.subr.mxu0 %v7807_v37 }
0x1032   :  { %3238 = vmatprep.subr.mxu1 %v7584_v5  ;;  %3147 = vmatpush2.msra.mxu0 %v7811_v41 }
0x1033   :  { %3239 = vmatpush1.msra.mxu1 %v7587_v6  ;;  %3148 = vmatprep.subr.mxu0 %v7815_v58 }
0x1034   :  { %3240 = vmatprep.subr.mxu1 %v7591_v7  ;;  %3149 = vmatpush2.msra.mxu0 %v7819_v56 }
0x1035   :  { %3241 = vmatpush1.msra.mxu1 %v7594_v59  ;;  %3150 = vmatprep.subr.mxu0 %v7823_v50 }
0x1036   :  { %3242 = vmatprep.subr.mxu1 %v7597_v60  ;;  %3151 = vmatpush2.msra.mxu0 %v7827_v26 }
0x1037   :  { %3243 = vmatpush1.msra.mxu1 %v7600_v62 }
0x1038   :  { %3244 = vmatprep.subr.mxu1 %v7603_v1 }
0x1039   :  { %3245 = vmatpush1.msra.mxu1 %v7606_v36 }
0x103a   :  { %3246 = vmatprep.subr.mxu1 %v7609_v39 }
0x103b   :  { %3247 = vmatpush1.msra.mxu1 %v7612_v8 }
0x103c   :  { %3248 = vmatprep.subr.mxu1 %v7615_v9 }
0x103d   :  { %3249 = vmatpush1.msra.mxu1 %v7618_v19 }
0x103e   :  { %3250 = vmatprep.subr.mxu1 %v7621_v2 }
0x103f   :  { %3251 = vmatpush1.msra.mxu1 %v7624_v24 }
0x1040   :  { %3252 = vmatprep.subr.mxu1 %v7627_v0 }
0x1041   :  { %3253 = vmatpush1.msra.mxu1 %v7630_v20 }
0x1042   :  { %3254 = vmatprep.subr.mxu1 %v7633_v21 }
0x1043   :  { %3255 = vmatpush1.msra.mxu1 %v7636_v22 }
0x1044   :  { %3256 = vmatprep.subr.mxu1 %v7639_v23 }
0x1045   :  { %3257 = vmatpush1.msra.mxu1 %v7642_v10 }
0x1046   :  { %3258 = vmatprep.subr.mxu1 %v7645_v14 }
0x1047   :  { %3259 = vmatpush1.msra.mxu1 %v7648_v15 }
0x1048   :  { %3260 = vmatprep.subr.mxu1 %v7651_v28 }
0x1049   :  { %3261 = vmatpush1.msra.mxu1 %v7654_v29 }
0x104a   :  { %3262 = vmatprep.subr.mxu1 %v7657_v30 }
0x104b   :  { %3263 = vmatpush1.msra.mxu1 %v7660_v11 }
0x104c   :  { %3264 = vmatprep.subr.mxu1 %v7663_v12 }
0x104d   :  { %3265 = vmatpush1.msra.mxu1 %v7666_v17 }
0x104e   :  { %3266 = vmatprep.subr.mxu1 %v7669_v27 }
0x104f   :  { %3267 = vmatpush1.msra.mxu1 %v7672_v63 }
0x1050   :  { %3268 = vmatprep.subr.mxu1 %v7675_v55 }
0x1051   :  { %3269 = vmatpush2.msra.mxu1 %v7678_v31 }
0x1052   :  { %3270 = vmatprep.subr.mxu1 %v7681_v32 }
0x1053   :  { %3271 = vmatpush2.msra.mxu1 %v7684_v42 }
0x1054   :  { %3272 = vmatprep.subr.mxu1 %v7687_v18 }
0x1055   :  { %3273 = vmatpush2.msra.mxu1 %v7690_v51 }
0x1056   :  { %3274 = vmatprep.subr.mxu1 %v7693_v25 }
0x1057   :  { %3275 = vmatpush2.msra.mxu1 %v7696_v43 }
0x1058   :  { %3276 = vmatprep.subr.mxu1 %v7699_v44 }
0x1059   :  { %3277 = vmatpush2.msra.mxu1 %v7702_v45 }
0x105a   :  { %3278 = vmatprep.subr.mxu1 %v7705_v46 }
0x105b   :  { %3279 = vmatpush2.msra.mxu1 %v7708_v33 }
0x105c   :  { %3280 = vmatprep.subr.mxu1 %v7764_v38 }
0x105d   :  { %3281 = vmatpush2.msra.mxu1 %v7767_v52 }
0x105e   :  { %3282 = vmatprep.subr.mxu1 %v7771_v53 }
0x105f   :  { %3283 = vmatpush2.msra.mxu1 %v7775_v54 }
0x1060   :  { %3284 = vmatprep.subr.mxu1 %v7779_v34 }
0x1061   :  { %3285 = vmatpush2.msra.mxu1 %v7783_v35 }
0x1062   :  { %3286 = vmatprep.subr.mxu1 %v7787_v40 }
0x1063   :  { %3287 = vmatpush2.msra.mxu1 %v7789_v13 }
0x1064   :  { %3288 = vmatprep.subr.mxu1 %v7791_v16 }
0x1065   :  { %3289 = vmatpush2.msra.mxu1 %v7795_v47 }
0x1066   :  { %3290 = vmatprep.subr.mxu1 %v7799_v48 }
0x1067   :  { %3291 = vmatpush2.msra.mxu1 %v7803_v49  ;;  %v7831_v49 = vld [vmem:[#allocation9 + $0x108] sm:$0xff] }
0x1068   :  { %3292 = vmatprep.subr.mxu1 %v7807_v37  ;;  %9371 = vst [vmem:[#allocation70_spill] sm:$0xff] %v7831_v49  ;;  %v7835_v37 = vld [vmem:[#allocation9 + $0x100] sm:$0xff]  ;;  %3152 = vmatprep.subr.mxu0 %v7831_v49 }
0x1069   :  { %3293 = vmatpush2.msra.mxu1 %v7811_v41  ;;  %3153 = vmatpush2.msra.mxu0 %v7835_v37 }
0x106a   :  { %3294 = vmatprep.subr.mxu1 %v7815_v58  ;;  %3382 = vmatprep.subr.mxu0 %v7580_v3  ;;  %v2877_v58 = vld [vmem:[#allocation4 + $0x138] sm:$0xff] }
0x106b   :  { %3295 = vmatpush2.msra.mxu1 %v7819_v56  ;;  %v2876_v56 = vld [vmem:[#allocation4 + $0x130] sm:$0xff]  ;;  %v2879_v41 = vadd.f32 %v2877_v58, %v5835_v61 }
0x106c   :  { %3296 = vmatprep.subr.mxu1 %v7823_v50  ;;  %v2878_v50 = vadd.f32 %v2876_v56, %v5833_v57  ;;  %v9376_v56 = vld [vmem:[#allocation57_spill] sm:$0xff]  ;;  %v9377_v58 = vld [vmem:[#allocation58_spill] sm:$0xff] }
0x106d   :  { %3297 = vmatpush2.msra.mxu1 %v7827_v26 }
0x106e   :  { %3298 = vmatprep.subr.mxu1 %v7831_v49 }
0x106f   :  { %3299 = vmatpush2.msra.mxu1 %v7835_v37 }
0x1070   :  { %3528 = vmatprep.subr.mxu1 %v7580_v3  ;;  %v9378_v3 = vld [vmem:[#allocation59_spill] sm:$0xff] }
0x10f0   :  { %v3010_v48 = vpop.f32.mrf.mxu1 }
0x10f1   :  { %v3015_v26 = vadd.f32 %v3010_v48, %v2878_v50  ;;  %v9374_v50 = vld [vmem:[#allocation51_spill] sm:$0xff] }
0x10f2   :  { %v3012_v47 = vpop.f32.mrf.mxu1  ;;  %v9382_v48 = vld [vmem:[#allocation67_spill] sm:$0xff] }
0x10f3   :  { %v3016_v16 = vadd.f32 %v3012_v47, %v2879_v41  ;;  %v9379_v41 = vld [vmem:[#allocation60_spill] sm:$0xff]  ;;  %v9381_v47 = vld [vmem:[#allocation66_spill] sm:$0xff] }
0x10f5   :  { %5261 = vtanh.f32 %v3016_v16  ;;  %v9380_v16 = vld [vmem:[#allocation65_spill] sm:$0xff] }
0x10f6   :  { %5263 = vtanh.f32 %v3015_v26  ;;  %v9375_v26 = vld [vmem:[#allocation52_spill] sm:$0xff] }
0x1102   :  { %v7848_v49 = vpop.eup %5261 }
0x1103   :  { %9372 = vst [vmem:[#allocation71_spill] sm:$0xff] %v7848_v49  ;;  %v7850_v13 = vpop.eup %5263  ;;  %3154 = vmatprep.mubr.f32.mxu0 %v7848_v49  ;;  %v9384_v49 = vld [vmem:[#allocation69_spill] sm:$0xff] }
0x1104   :  { %9373 = vst [vmem:[#allocation72_spill] sm:$0xff] %v7850_v13  ;;  %3155 = vmatmul.mubr.f32.vlgmr.msra.gmra.mxu0 %v7850_v13  ;;  %v9383_v13 = vld [vmem:[#allocation68_spill] sm:$0xff] }
0x1105   :  { %3383 = vmatpush1.msra.mxu0 %v7582_v4 }
0x1106   :  { %3384 = vmatprep.subr.mxu0 %v7584_v5 }
0x1107   :  { %3385 = vmatpush1.msra.mxu0 %v7587_v6 }
0x1108   :  { %3386 = vmatprep.subr.mxu0 %v7591_v7 }
0x1109   :  { %3387 = vmatpush1.msra.mxu0 %v7594_v59 }
0x110a   :  { %3388 = vmatprep.subr.mxu0 %v7597_v60 }
0x110b   :  { %3389 = vmatpush1.msra.mxu0 %v7600_v62 }
0x110c   :  { %3390 = vmatprep.subr.mxu0 %v7603_v1 }
0x110d   :  { %3391 = vmatpush1.msra.mxu0 %v7606_v36 }
0x110e   :  { %3392 = vmatprep.subr.mxu0 %v7609_v39 }
0x110f   :  { %3393 = vmatpush1.msra.mxu0 %v7612_v8 }
0x1110   :  { %3394 = vmatprep.subr.mxu0 %v7615_v9 }
0x1111   :  { %3395 = vmatpush1.msra.mxu0 %v7618_v19 }
0x1112   :  { %3396 = vmatprep.subr.mxu0 %v7621_v2 }
0x1113   :  { %3397 = vmatpush1.msra.mxu0 %v7624_v24 }
0x1114   :  { %3398 = vmatprep.subr.mxu0 %v7627_v0 }
0x1115   :  { %3399 = vmatpush1.msra.mxu0 %v7630_v20 }
0x1116   :  { %3400 = vmatprep.subr.mxu0 %v7633_v21 }
0x1117   :  { %3401 = vmatpush1.msra.mxu0 %v7636_v22 }
0x1118   :  { %3402 = vmatprep.subr.mxu0 %v7639_v23 }
0x1119   :  { %3403 = vmatpush1.msra.mxu0 %v7642_v10 }
0x111a   :  { %3404 = vmatprep.subr.mxu0 %v7645_v14 }
0x111b   :  { %3405 = vmatpush1.msra.mxu0 %v7648_v15 }
0x111c   :  { %3406 = vmatprep.subr.mxu0 %v7651_v28 }
0x111d   :  { %3407 = vmatpush1.msra.mxu0 %v7654_v29 }
0x111e   :  { %3408 = vmatprep.subr.mxu0 %v7657_v30 }
0x111f   :  { %3409 = vmatpush1.msra.mxu0 %v7660_v11 }
0x1120   :  { %3410 = vmatprep.subr.mxu0 %v7663_v12 }
0x1121   :  { %3411 = vmatpush1.msra.mxu0 %v7666_v17 }
0x1122   :  { %3412 = vmatprep.subr.mxu0 %v7669_v27 }
0x1123   :  { %3413 = vmatpush1.msra.mxu0 %v7672_v63 }
0x1124   :  { %3414 = vmatprep.subr.mxu0 %v7675_v55 }
0x1125   :  { %3415 = vmatpush2.msra.mxu0 %v7678_v31 }
0x1126   :  { %3416 = vmatprep.subr.mxu0 %v7681_v32 }
0x1127   :  { %3417 = vmatpush2.msra.mxu0 %v7684_v42 }
0x1128   :  { %3418 = vmatprep.subr.mxu0 %v7687_v18 }
0x1129   :  { %3419 = vmatpush2.msra.mxu0 %v7690_v51 }
0x112a   :  { %3420 = vmatprep.subr.mxu0 %v7693_v25 }
0x112b   :  { %3421 = vmatpush2.msra.mxu0 %v7696_v43 }
0x112c   :  { %3422 = vmatprep.subr.mxu0 %v7699_v44 }
0x112d   :  { %3423 = vmatpush2.msra.mxu0 %v7702_v45 }
0x112e   :  { %3424 = vmatprep.subr.mxu0 %v7705_v46 }
0x112f   :  { %3425 = vmatpush2.msra.mxu0 %v7708_v33 }
0x1130   :  { %3426 = vmatprep.subr.mxu0 %v7764_v38 }
0x1131   :  { %3427 = vmatpush2.msra.mxu0 %v7767_v52 }
0x1132   :  { %3428 = vmatprep.subr.mxu0 %v7771_v53 }
0x1133   :  { %3429 = vmatpush2.msra.mxu0 %v7775_v54 }
0x1134   :  { %3430 = vmatprep.subr.mxu0 %v7779_v34 }
0x1135   :  { %3431 = vmatpush2.msra.mxu0 %v7783_v35 }
0x1136   :  { %3432 = vmatprep.subr.mxu0 %v7787_v40 }
0x1137   :  { %3433 = vmatpush2.msra.mxu0 %v9374_v50  ;;  %v9385_v50 = vld [vmem:[#allocation70_spill] sm:$0xff] }
0x1138   :  { %3434 = vmatprep.subr.mxu0 %v9375_v26 }
0x1139   :  { %3435 = vmatpush2.msra.mxu0 %v9376_v56  ;;  %v3022_v56 = vld [vmem:[#allocation4 + $0x140] sm:$0xff] }
0x113a   :  { %3436 = vmatprep.subr.mxu0 %v9377_v58  ;;  %v3023_v58 = vld [vmem:[#allocation4 + $0x148] sm:$0xff] }
0x113b   :  { %3437 = vmatpush2.msra.mxu0 %v9378_v3  ;;  %v3024_v3 = vadd.f32 %v3022_v56, %v5833_v57  ;;  %v8094_v56 = vld [vmem:[#allocation9 + $0x1f0] sm:$0xff] }
0x113c   :  { %3438 = vmatprep.subr.mxu0 %v9379_v41  ;;  %v3025_v41 = vadd.f32 %v3023_v58, %v5835_v61  ;;  %v8097_v58 = vld [vmem:[#allocation9 + $0x1e8] sm:$0xff] }
0x113d   :  { %3439 = vmatpush2.msra.mxu0 %v9380_v16 }
0x113e   :  { %3440 = vmatprep.subr.mxu0 %v9381_v47 }
0x113f   :  { %3441 = vmatpush2.msra.mxu0 %v9382_v48 }
0x1140   :  { %3442 = vmatprep.subr.mxu0 %v9383_v13 }
0x1141   :  { %3443 = vmatpush2.msra.mxu0 %v9384_v49 }
0x1142   :  { %3444 = vmatprep.subr.mxu0 %v9385_v50 }
0x1143   :  { %3445 = vmatpush2.msra.mxu0 %v7835_v37 }
0x11c4   :  { %v3156_v26 = vpop.f32.mrf.mxu0 }
0x11c5   :  { %v3161_v16 = vadd.f32 %v3156_v26, %v3024_v3  ;;  %v8091_v26 = vld [vmem:[#allocation9 + $0x1f8] sm:$0xff]  ;;  %v8100_v3 = vld [vmem:[#allocation9 + $0x1e0] sm:$0xff] }
0x11c6   :  { %v3158_v40 = vpop.f32.mrf.mxu0 }
0x11c7   :  { %v3162_v47 = vadd.f32 %v3158_v40, %v3025_v41  ;;  %v8082_v40 = vld [vmem:[#allocation9 + $0x10] sm:$0xff]  ;;  %v8103_v41 = vld [vmem:[#allocation9 + $0x1d8] sm:$0xff] }
0x11c9   :  { %5265 = vtanh.f32 %v3162_v47  ;;  %v8109_v47 = vld [vmem:[#allocation9 + $0x1c8] sm:$0xff] }
0x11ca   :  { %5267 = vtanh.f32 %v3161_v16  ;;  %v8106_v16 = vld [vmem:[#allocation9 + $0x1d0] sm:$0xff] }
0x11d6   :  { %v7919_v48 = vpop.eup %5265 }
0x11d7   :  { %9386 = vst [vmem:[#allocation69_spill] sm:$0xff] %v7919_v48  ;;  %v7921_v13 = vpop.eup %5267  ;;  %3300 = vmatprep.mubr.f32.mxu1 %v7919_v48  ;;  %v8243_v48 = vld [vmem:[#allocation9 + $0x110] sm:$0xff] }
0x11d8   :  { %9387 = vst [vmem:[#allocation70_spill] sm:$0xff] %v7921_v13  ;;  %3301 = vmatmul.mubr.f32.vlgmr.msra.gmra.mxu1 %v7921_v13  ;;  %v8239_v13 = vld [vmem:[#allocation9 + $0x118] sm:$0xff]  ;;  %9414 = vst [vmem:[#allocation77_spill] sm:$0xff] %v8243_v48 }
0x11d9   :  { %3529 = vmatpush1.msra.mxu1 %v7582_v4  ;;  %v9388_v4 = vld [vmem:[#allocation50_spill] sm:$0xff]  ;;  %9413 = vst [vmem:[#allocation76_spill] sm:$0xff] %v8239_v13 }
0x11da   :  { %3530 = vmatprep.subr.mxu1 %v7584_v5  ;;  %v9389_v5 = vld [vmem:[#allocation51_spill] sm:$0xff] }
0x11db   :  { %3531 = vmatpush1.msra.mxu1 %v7587_v6  ;;  %v9390_v6 = vld [vmem:[#allocation52_spill] sm:$0xff] }
0x11dc   :  { %3532 = vmatprep.subr.mxu1 %v7591_v7  ;;  %v9391_v7 = vld [vmem:[#allocation57_spill] sm:$0xff] }
0x11dd   :  { %3533 = vmatpush1.msra.mxu1 %v7594_v59  ;;  %v9392_v59 = vld [vmem:[#allocation58_spill] sm:$0xff] }
0x11de   :  { %3534 = vmatprep.subr.mxu1 %v7597_v60  ;;  %v9393_v60 = vld [vmem:[#allocation59_spill] sm:$0xff] }
0x11df   :  { %3535 = vmatpush1.msra.mxu1 %v7600_v62  ;;  %v9394_v62 = vld [vmem:[#allocation60_spill] sm:$0xff] }
0x11e0   :  { %3536 = vmatprep.subr.mxu1 %v7603_v1  ;;  %v9395_v1 = vld [vmem:[#allocation65_spill] sm:$0xff] }
0x11e1   :  { %3537 = vmatpush1.msra.mxu1 %v7606_v36  ;;  %v9396_v36 = vld [vmem:[#allocation66_spill] sm:$0xff] }
0x11e2   :  { %3538 = vmatprep.subr.mxu1 %v7609_v39  ;;  %v9397_v39 = vld [vmem:[#allocation67_spill] sm:$0xff] }
0x11e3   :  { %3539 = vmatpush1.msra.mxu1 %v7612_v8  ;;  %v9398_v8 = vld [vmem:[#allocation68_spill] sm:$0xff] }
0x11e4   :  { %3540 = vmatprep.subr.mxu1 %v7615_v9  ;;  %v3168_v9 = vld [vmem:[#allocation4 + $0x150] sm:$0xff] }
0x11e5   :  { %3541 = vmatpush1.msra.mxu1 %v7618_v19  ;;  %v3169_v19 = vld [vmem:[#allocation4 + $0x158] sm:$0xff] }
0x11e6   :  { %3542 = vmatprep.subr.mxu1 %v7621_v2  ;;  %v3170_v2 = vadd.f32 %v3168_v9, %v5833_v57 }
0x11e7   :  { %3543 = vmatpush1.msra.mxu1 %v7624_v24  ;;  %v3171_v24 = vadd.f32 %v3169_v19, %v5835_v61 }
0x11e8   :  { %3544 = vmatprep.subr.mxu1 %v7627_v0 }
0x11e9   :  { %3545 = vmatpush1.msra.mxu1 %v7630_v20 }
0x11ea   :  { %3546 = vmatprep.subr.mxu1 %v7633_v21 }
0x11eb   :  { %3547 = vmatpush1.msra.mxu1 %v7636_v22 }
0x11ec   :  { %3548 = vmatprep.subr.mxu1 %v7639_v23 }
0x11ed   :  { %3549 = vmatpush1.msra.mxu1 %v7642_v10 }
0x11ee   :  { %3550 = vmatprep.subr.mxu1 %v7645_v14  ;;  %v7996_v14 = vld [vmem:[#allocation9 + $0xf8] sm:$0xff] }
0x11ef   :  { %3551 = vmatpush1.msra.mxu1 %v7648_v15  ;;  %v7998_v15 = vld [vmem:[#allocation9 + $0xf0] sm:$0xff]  ;;  %3674 = vmatprep.subr.mxu0 %v7996_v14 }
0x11f0   :  { %3552 = vmatprep.subr.mxu1 %v7651_v28  ;;  %v8000_v28 = vld [vmem:[#allocation9 + $0xe8] sm:$0xff] }
0x11f1   :  { %3553 = vmatpush1.msra.mxu1 %v7654_v29  ;;  %v8003_v29 = vld [vmem:[#allocation9 + $0xe0] sm:$0xff] }
0x11f2   :  { %3554 = vmatprep.subr.mxu1 %v7657_v30  ;;  %v8007_v30 = vld [vmem:[#allocation9 + $0xd8] sm:$0xff] }
0x11f3   :  { %3555 = vmatpush1.msra.mxu1 %v7660_v11  ;;  %v8010_v11 = vld [vmem:[#allocation9 + $0xd0] sm:$0xff] }
0x11f4   :  { %3556 = vmatprep.subr.mxu1 %v7663_v12  ;;  %v8013_v12 = vld [vmem:[#allocation9 + $0xc8] sm:$0xff] }
0x11f5   :  { %3557 = vmatpush1.msra.mxu1 %v7666_v17  ;;  %v8016_v17 = vld [vmem:[#allocation9 + $0xc0] sm:$0xff] }
0x11f6   :  { %3558 = vmatprep.subr.mxu1 %v7669_v27  ;;  %v8019_v27 = vld [vmem:[#allocation9 + $0xb8] sm:$0xff] }
0x11f7   :  { %3559 = vmatpush1.msra.mxu1 %v7672_v63  ;;  %v8022_v63 = vld [vmem:[#allocation9 + $0xb0] sm:$0xff] }
0x11f8   :  { %3560 = vmatprep.subr.mxu1 %v7675_v55  ;;  %v8025_v55 = vld [vmem:[#allocation9 + $0xa8] sm:$0xff] }
0x11f9   :  { %3561 = vmatpush2.msra.mxu1 %v7678_v31  ;;  %v8028_v31 = vld [vmem:[#allocation9 + $0xa0] sm:$0xff] }
0x11fa   :  { %3562 = vmatprep.subr.mxu1 %v7681_v32  ;;  %v8031_v32 = vld [vmem:[#allocation9 + $0x98] sm:$0xff] }
0x11fb   :  { %3563 = vmatpush2.msra.mxu1 %v7684_v42  ;;  %v8034_v42 = vld [vmem:[#allocation9 + $0x90] sm:$0xff] }
0x11fc   :  { %3564 = vmatprep.subr.mxu1 %v7687_v18  ;;  %v8037_v18 = vld [vmem:[#allocation9 + $0x88] sm:$0xff] }
0x11fd   :  { %3565 = vmatpush2.msra.mxu1 %v7690_v51  ;;  %v8040_v51 = vld [vmem:[#allocation9 + $0x80] sm:$0xff] }
0x11fe   :  { %3566 = vmatprep.subr.mxu1 %v7693_v25  ;;  %v8043_v25 = vld [vmem:[#allocation9 + $0x78] sm:$0xff] }
0x11ff   :  { %3567 = vmatpush2.msra.mxu1 %v7696_v43  ;;  %v8046_v43 = vld [vmem:[#allocation9 + $0x70] sm:$0xff] }
0x1200   :  { %3568 = vmatprep.subr.mxu1 %v7699_v44  ;;  %v8049_v44 = vld [vmem:[#allocation9 + $0x68] sm:$0xff] }
0x1201   :  { %3569 = vmatpush2.msra.mxu1 %v7702_v45  ;;  %v8052_v45 = vld [vmem:[#allocation9 + $0x60] sm:$0xff] }
0x1202   :  { %3570 = vmatprep.subr.mxu1 %v7705_v46  ;;  %v8055_v46 = vld [vmem:[#allocation9 + $0x58] sm:$0xff] }
0x1203   :  { %3571 = vmatpush2.msra.mxu1 %v7708_v33  ;;  %v8058_v33 = vld [vmem:[#allocation9 + $0x50] sm:$0xff] }
0x1204   :  { %3572 = vmatprep.subr.mxu1 %v7764_v38  ;;  %v8064_v38 = vld [vmem:[#allocation9 + $0x40] sm:$0xff] }
0x1205   :  { %3573 = vmatpush2.msra.mxu1 %v7767_v52  ;;  %v8067_v52 = vld [vmem:[#allocation9 + $0x38] sm:$0xff] }
0x1206   :  { %3574 = vmatprep.subr.mxu1 %v7771_v53  ;;  %v8070_v53 = vld [vmem:[#allocation9 + $0x30] sm:$0xff] }
0x1207   :  { %3575 = vmatpush2.msra.mxu1 %v7775_v54  ;;  %v8073_v54 = vld [vmem:[#allocation9 + $0x28] sm:$0xff] }
0x1208   :  { %3576 = vmatprep.subr.mxu1 %v7779_v34  ;;  %v8076_v34 = vld [vmem:[#allocation9 + $0x20] sm:$0xff] }
0x1209   :  { %3577 = vmatpush2.msra.mxu1 %v7783_v35  ;;  %v8079_v35 = vld [vmem:[#allocation9 + $0x18] sm:$0xff] }
0x120a   :  { %3578 = vmatprep.subr.mxu1 %v9388_v4  ;;  %v8112_v4 = vld [vmem:[#allocation9 + $0x1c0] sm:$0xff] }
0x120b   :  { %3579 = vmatpush2.msra.mxu1 %v9389_v5  ;;  %v8115_v5 = vld [vmem:[#allocation9 + $0x1b8] sm:$0xff] }
0x120c   :  { %3580 = vmatprep.subr.mxu1 %v9390_v6  ;;  %v8118_v6 = vld [vmem:[#allocation9 + $0x1b0] sm:$0xff] }
0x120d   :  { %3581 = vmatpush2.msra.mxu1 %v9391_v7  ;;  %v8121_v7 = vld [vmem:[#allocation9 + $0x1a8] sm:$0xff] }
0x120e   :  { %3582 = vmatprep.subr.mxu1 %v9392_v59  ;;  %v8124_v59 = vld [vmem:[#allocation9 + $0x1a0] sm:$0xff] }
0x120f   :  { %3583 = vmatpush2.msra.mxu1 %v9393_v60  ;;  %v3314_v60 = vld [vmem:[#allocation4 + $0x160] sm:$0xff] }
0x1210   :  { %3584 = vmatprep.subr.mxu1 %v9394_v62  ;;  %v3315_v62 = vld [vmem:[#allocation4 + $0x168] sm:$0xff] }
0x1211   :  { %3585 = vmatpush2.msra.mxu1 %v9395_v1  ;;  %v3316_v1 = vadd.f32 %v3314_v60, %v5833_v57  ;;  %v8195_v60 = vld [vmem:[#allocation9 + $0x178] sm:$0xff] }
0x1212   :  { %3586 = vmatprep.subr.mxu1 %v9396_v36  ;;  %v3317_v36 = vadd.f32 %v3315_v62, %v5835_v61  ;;  %v8199_v62 = vld [vmem:[#allocation9 + $0x170] sm:$0xff] }
0x1213   :  { %3587 = vmatpush2.msra.mxu1 %v9397_v39 }
0x1214   :  { %3588 = vmatprep.subr.mxu1 %v9398_v8 }
0x1215   :  { %3589 = vmatpush2.msra.mxu1 %v9384_v49  ;;  %v8085_v49 = vld [vmem:[#allocation9 + $0x8] sm:$0xff] }
0x1216   :  { %3590 = vmatprep.subr.mxu1 %v9385_v50  ;;  %v8088_v50 = vld [vmem:[#allocation9] sm:$0xff] }
0x1217   :  { %3591 = vmatpush2.msra.mxu1 %v7835_v37  ;;  %v8061_v37 = vld [vmem:[#allocation9 + $0x48] sm:$0xff] }
0x1218   :  { %3820 = vmatprep.subr.mxu1 %v7996_v14 }
0x1298   :  { %v3302_v0 = vpop.f32.mrf.mxu1 }
0x1299   :  { %v3307_v20 = vadd.f32 %v3302_v0, %v3170_v2  ;;  %v8180_v0 = vld [vmem:[#allocation9 + $0x198] sm:$0xff] }
0x129a   :  { %v3304_v21 = vpop.f32.mrf.mxu1 }
0x129b   :  { %v3308_v22 = vadd.f32 %v3304_v21, %v3171_v24  ;;  %v8187_v21 = vld [vmem:[#allocation9 + $0x188] sm:$0xff] }
0x129d   :  { %5269 = vtanh.f32 %v3308_v22  ;;  %v8191_v22 = vld [vmem:[#allocation9 + $0x180] sm:$0xff] }
0x129e   :  { %5271 = vtanh.f32 %v3307_v20  ;;  %v8183_v20 = vld [vmem:[#allocation9 + $0x190] sm:$0xff] }
0x12aa   :  { %v7990_v23 = vpop.eup %5269 }
0x12ab   :  { %9399 = vst [vmem:[#allocation50_spill] sm:$0xff] %v7990_v23  ;;  %v7992_v10 = vpop.eup %5271  ;;  %3446 = vmatprep.mubr.f32.mxu0 %v7990_v23  ;;  %v8235_v23 = vld [vmem:[#allocation9 + $0x120] sm:$0xff] }
0x12ac   :  { %9400 = vst [vmem:[#allocation51_spill] sm:$0xff] %v7992_v10  ;;  %3447 = vmatmul.mubr.f32.vlgmr.msra.gmra.mxu0 %v7992_v10  ;;  %v8231_v10 = vld [vmem:[#allocation9 + $0x128] sm:$0xff]  ;;  %9412 = vst [vmem:[#allocation75_spill] sm:$0xff] %v8235_v23 }
0x12ad   :  { %3675 = vmatpush1.msra.mxu0 %v7998_v15  ;;  %9411 = vst [vmem:[#allocation74_spill] sm:$0xff] %v8231_v10 }
0x12ae   :  { %3676 = vmatprep.subr.mxu0 %v8000_v28 }
0x12af   :  { %3677 = vmatpush1.msra.mxu0 %v8003_v29 }
0x12b0   :  { %3678 = vmatprep.subr.mxu0 %v8007_v30 }
0x12b1   :  { %3679 = vmatpush1.msra.mxu0 %v8010_v11 }
0x12b2   :  { %3680 = vmatprep.subr.mxu0 %v8013_v12 }
0x12b3   :  { %3681 = vmatpush1.msra.mxu0 %v8016_v17 }
0x12b4   :  { %3682 = vmatprep.subr.mxu0 %v8019_v27 }
0x12b5   :  { %3683 = vmatpush1.msra.mxu0 %v8022_v63 }
0x12b6   :  { %3684 = vmatprep.subr.mxu0 %v8025_v55 }
0x12b7   :  { %3685 = vmatpush1.msra.mxu0 %v8028_v31 }
0x12b8   :  { %3686 = vmatprep.subr.mxu0 %v8031_v32 }
0x12b9   :  { %3687 = vmatpush1.msra.mxu0 %v8034_v42 }
0x12ba   :  { %3688 = vmatprep.subr.mxu0 %v8037_v18 }
0x12bb   :  { %3689 = vmatpush1.msra.mxu0 %v8040_v51 }
0x12bc   :  { %3690 = vmatprep.subr.mxu0 %v8043_v25 }
0x12bd   :  { %3691 = vmatpush1.msra.mxu0 %v8046_v43 }
0x12be   :  { %3692 = vmatprep.subr.mxu0 %v8049_v44 }
0x12bf   :  { %3693 = vmatpush1.msra.mxu0 %v8052_v45 }
0x12c0   :  { %3694 = vmatprep.subr.mxu0 %v8055_v46 }
0x12c1   :  { %3695 = vmatpush1.msra.mxu0 %v8058_v33 }
0x12c2   :  { %3696 = vmatprep.subr.mxu0 %v8061_v37 }
0x12c3   :  { %3697 = vmatpush1.msra.mxu0 %v8064_v38 }
0x12c4   :  { %3698 = vmatprep.subr.mxu0 %v8067_v52 }
0x12c5   :  { %3699 = vmatpush1.msra.mxu0 %v8070_v53 }
0x12c6   :  { %3700 = vmatprep.subr.mxu0 %v8073_v54 }
0x12c7   :  { %3701 = vmatpush1.msra.mxu0 %v8076_v34 }
0x12c8   :  { %3702 = vmatprep.subr.mxu0 %v8079_v35 }
0x12c9   :  { %3703 = vmatpush1.msra.mxu0 %v8082_v40 }
0x12ca   :  { %3704 = vmatprep.subr.mxu0 %v8085_v49 }
0x12cb   :  { %3705 = vmatpush1.msra.mxu0 %v8088_v50 }
0x12cc   :  { %3706 = vmatprep.subr.mxu0 %v8091_v26 }
0x12cd   :  { %3707 = vmatpush2.msra.mxu0 %v8094_v56 }
0x12ce   :  { %3708 = vmatprep.subr.mxu0 %v8097_v58 }
0x12cf   :  { %3709 = vmatpush2.msra.mxu0 %v8100_v3 }
0x12d0   :  { %3710 = vmatprep.subr.mxu0 %v8103_v41 }
0x12d1   :  { %3711 = vmatpush2.msra.mxu0 %v8106_v16 }
0x12d2   :  { %3712 = vmatprep.subr.mxu0 %v8109_v47 }
0x12d3   :  { %3713 = vmatpush2.msra.mxu0 %v8112_v4 }
0x12d4   :  { %3714 = vmatprep.subr.mxu0 %v8115_v5 }
0x12d5   :  { %3715 = vmatpush2.msra.mxu0 %v8118_v6 }
0x12d6   :  { %3716 = vmatprep.subr.mxu0 %v8121_v7 }
0x12d7   :  { %3717 = vmatpush2.msra.mxu0 %v8124_v59 }
0x12d8   :  { %3718 = vmatprep.subr.mxu0 %v8180_v0 }
0x12d9   :  { %3719 = vmatpush2.msra.mxu0 %v8183_v20 }
0x12da   :  { %3720 = vmatprep.subr.mxu0 %v8187_v21 }
0x12db   :  { %3721 = vmatpush2.msra.mxu0 %v8191_v22 }
0x12dc   :  { %3722 = vmatprep.subr.mxu0 %v8195_v60 }
0x12dd   :  { %3723 = vmatpush2.msra.mxu0 %v8199_v62 }
0x136c   :  { %v3448_v39 = vpop.f32.mrf.mxu0 }
0x136d   :  { %v3453_v8 = vadd.f32 %v3448_v39, %v3316_v1  ;;  %v8203_v1 = vld [vmem:[#allocation9 + $0x168] sm:$0xff]  ;;  %v8207_v39 = vld [vmem:[#allocation9 + $0x158] sm:$0xff] }
0x136e   :  { %v3450_v9 = vpop.f32.mrf.mxu0  ;;  %9403 = vst [vmem:[#allocation58_spill] sm:$0xff] %v8203_v1  ;;  %9405 = vst [vmem:[#allocation60_spill] sm:$0xff] %v8207_v39  ;;  %3724 = vmatprep.subr.mxu0 %v8203_v1 }
0x136f   :  { %v3454_v19 = vadd.f32 %v3450_v9, %v3317_v36  ;;  %v8205_v36 = vld [vmem:[#allocation9 + $0x160] sm:$0xff]  ;;  %v8215_v9 = vld [vmem:[#allocation9 + $0x148] sm:$0xff] }
0x1370   :  { %9404 = vst [vmem:[#allocation59_spill] sm:$0xff] %v8205_v36  ;;  %3725 = vmatpush2.msra.mxu0 %v8205_v36  ;;  %9407 = vst [vmem:[#allocation66_spill] sm:$0xff] %v8215_v9 }
0x1371   :  { %5273 = vtanh.f32 %v3454_v19  ;;  %3726 = vmatprep.subr.mxu0 %v8207_v39  ;;  %v8219_v19 = vld [vmem:[#allocation9 + $0x140] sm:$0xff] }
0x1372   :  { %5275 = vtanh.f32 %v3453_v8  ;;  %v8211_v8 = vld [vmem:[#allocation9 + $0x150] sm:$0xff]  ;;  %9408 = vst [vmem:[#allocation67_spill] sm:$0xff] %v8219_v19 }
0x1373   :  { %9406 = vst [vmem:[#allocation65_spill] sm:$0xff] %v8211_v8  ;;  %3727 = vmatpush2.msra.mxu0 %v8211_v8 }
0x1374   :  { %3728 = vmatprep.subr.mxu0 %v8215_v9 }
0x1375   :  { %3729 = vmatpush2.msra.mxu0 %v8219_v19 }
0x137e   :  { %v8131_v2 = vpop.eup %5273 }
0x137f   :  { %9401 = vst [vmem:[#allocation52_spill] sm:$0xff] %v8131_v2  ;;  %v8133_v24 = vpop.eup %5275  ;;  %3592 = vmatprep.mubr.f32.mxu1 %v8131_v2  ;;  %v8227_v2 = vld [vmem:[#allocation9 + $0x130] sm:$0xff] }
0x1380   :  { %9402 = vst [vmem:[#allocation57_spill] sm:$0xff] %v8133_v24  ;;  %3593 = vmatmul.mubr.f32.vlgmr.msra.gmra.mxu1 %v8133_v24  ;;  %v8223_v24 = vld [vmem:[#allocation9 + $0x138] sm:$0xff]  ;;  %9410 = vst [vmem:[#allocation73_spill] sm:$0xff] %v8227_v2 }
0x1381   :  { %3821 = vmatpush1.msra.mxu1 %v7998_v15  ;;  %9409 = vst [vmem:[#allocation68_spill] sm:$0xff] %v8223_v24  ;;  %3730 = vmatprep.subr.mxu0 %v8223_v24 }
0x1382   :  { %3822 = vmatprep.subr.mxu1 %v8000_v28  ;;  %3731 = vmatpush2.msra.mxu0 %v8227_v2 }
0x1383   :  { %3823 = vmatpush1.msra.mxu1 %v8003_v29  ;;  %3732 = vmatprep.subr.mxu0 %v8231_v10 }
0x1384   :  { %3824 = vmatprep.subr.mxu1 %v8007_v30  ;;  %3733 = vmatpush2.msra.mxu0 %v8235_v23 }
0x1385   :  { %3825 = vmatpush1.msra.mxu1 %v8010_v11  ;;  %3734 = vmatprep.subr.mxu0 %v8239_v13 }
0x1386   :  { %3826 = vmatprep.subr.mxu1 %v8013_v12  ;;  %3735 = vmatpush2.msra.mxu0 %v8243_v48 }
0x1387   :  { %3827 = vmatpush1.msra.mxu1 %v8016_v17 }
0x1388   :  { %3828 = vmatprep.subr.mxu1 %v8019_v27 }
0x1389   :  { %3829 = vmatpush1.msra.mxu1 %v8022_v63 }
0x138a   :  { %3830 = vmatprep.subr.mxu1 %v8025_v55 }
0x138b   :  { %3831 = vmatpush1.msra.mxu1 %v8028_v31 }
0x138c   :  { %3832 = vmatprep.subr.mxu1 %v8031_v32 }
0x138d   :  { %3833 = vmatpush1.msra.mxu1 %v8034_v42 }
0x138e   :  { %3834 = vmatprep.subr.mxu1 %v8037_v18 }
0x138f   :  { %3835 = vmatpush1.msra.mxu1 %v8040_v51 }
0x1390   :  { %3836 = vmatprep.subr.mxu1 %v8043_v25 }
0x1391   :  { %3837 = vmatpush1.msra.mxu1 %v8046_v43 }
0x1392   :  { %3838 = vmatprep.subr.mxu1 %v8049_v44 }
0x1393   :  { %3839 = vmatpush1.msra.mxu1 %v8052_v45 }
0x1394   :  { %3840 = vmatprep.subr.mxu1 %v8055_v46 }
0x1395   :  { %3841 = vmatpush1.msra.mxu1 %v8058_v33 }
0x1396   :  { %3842 = vmatprep.subr.mxu1 %v8061_v37 }
0x1397   :  { %3843 = vmatpush1.msra.mxu1 %v8064_v38 }
0x1398   :  { %3844 = vmatprep.subr.mxu1 %v8067_v52 }
0x1399   :  { %3845 = vmatpush1.msra.mxu1 %v8070_v53 }
0x139a   :  { %3846 = vmatprep.subr.mxu1 %v8073_v54 }
0x139b   :  { %3847 = vmatpush1.msra.mxu1 %v8076_v34 }
0x139c   :  { %3848 = vmatprep.subr.mxu1 %v8079_v35 }
0x139d   :  { %3849 = vmatpush1.msra.mxu1 %v8082_v40 }
0x139e   :  { %3850 = vmatprep.subr.mxu1 %v8085_v49 }
0x139f   :  { %3851 = vmatpush1.msra.mxu1 %v8088_v50 }
0x13a0   :  { %3852 = vmatprep.subr.mxu1 %v8091_v26 }
0x13a1   :  { %3853 = vmatpush2.msra.mxu1 %v8094_v56 }
0x13a2   :  { %3854 = vmatprep.subr.mxu1 %v8097_v58 }
0x13a3   :  { %3855 = vmatpush2.msra.mxu1 %v8100_v3 }
0x13a4   :  { %3856 = vmatprep.subr.mxu1 %v8103_v41 }
0x13a5   :  { %3857 = vmatpush2.msra.mxu1 %v8106_v16 }
0x13a6   :  { %3858 = vmatprep.subr.mxu1 %v8109_v47 }
0x13a7   :  { %3859 = vmatpush2.msra.mxu1 %v8112_v4 }
0x13a8   :  { %3860 = vmatprep.subr.mxu1 %v8115_v5 }
0x13a9   :  { %3861 = vmatpush2.msra.mxu1 %v8118_v6 }
0x13aa   :  { %3862 = vmatprep.subr.mxu1 %v8121_v7 }
0x13ab   :  { %3863 = vmatpush2.msra.mxu1 %v8124_v59 }
0x13ac   :  { %3864 = vmatprep.subr.mxu1 %v8180_v0 }
0x13ad   :  { %3865 = vmatpush2.msra.mxu1 %v8183_v20 }
0x13ae   :  { %3866 = vmatprep.subr.mxu1 %v8187_v21 }
0x13af   :  { %3867 = vmatpush2.msra.mxu1 %v8191_v22 }
0x13b0   :  { %3868 = vmatprep.subr.mxu1 %v8195_v60 }
0x13b1   :  { %3869 = vmatpush2.msra.mxu1 %v8199_v62 }
0x13b2   :  { %3870 = vmatprep.subr.mxu1 %v8203_v1 }
0x13b3   :  { %3871 = vmatpush2.msra.mxu1 %v8205_v36 }
0x13b4   :  { %3872 = vmatprep.subr.mxu1 %v8207_v39 }
0x13b5   :  { %3873 = vmatpush2.msra.mxu1 %v8211_v8 }
0x13b6   :  { %3874 = vmatprep.subr.mxu1 %v8215_v9 }
0x13b7   :  { %3875 = vmatpush2.msra.mxu1 %v8219_v19  ;;  %v8247_v19 = vld [vmem:[#allocation9 + $0x108] sm:$0xff] }
0x13b8   :  { %3876 = vmatprep.subr.mxu1 %v8223_v24  ;;  %9415 = vst [vmem:[#allocation78_spill] sm:$0xff] %v8247_v19  ;;  %v8251_v24 = vld [vmem:[#allocation9 + $0x100] sm:$0xff]  ;;  %3736 = vmatprep.subr.mxu0 %v8247_v19 }
0x13b9   :  { %3877 = vmatpush2.msra.mxu1 %v8227_v2  ;;  %3737 = vmatpush2.msra.mxu0 %v8251_v24 }
0x13ba   :  { %3878 = vmatprep.subr.mxu1 %v8231_v10  ;;  %3966 = vmatprep.subr.mxu0 %v7996_v14  ;;  %v3461_v10 = vld [vmem:[#allocation4 + $0x178] sm:$0xff] }
0x13bb   :  { %3879 = vmatpush2.msra.mxu1 %v8235_v23  ;;  %v3460_v23 = vld [vmem:[#allocation4 + $0x170] sm:$0xff]  ;;  %v3463_v2 = vadd.f32 %v3461_v10, %v5835_v61 }
0x13bc   :  { %3880 = vmatprep.subr.mxu1 %v8239_v13  ;;  %v3462_v13 = vadd.f32 %v3460_v23, %v5833_v57  ;;  %v9420_v23 = vld [vmem:[#allocation65_spill] sm:$0xff]  ;;  %v9421_v10 = vld [vmem:[#allocation66_spill] sm:$0xff] }
0x13bd   :  { %3881 = vmatpush2.msra.mxu1 %v8243_v48 }
0x13be   :  { %3882 = vmatprep.subr.mxu1 %v8247_v19 }
0x13bf   :  { %3883 = vmatpush2.msra.mxu1 %v8251_v24 }
0x13c0   :  { %4112 = vmatprep.subr.mxu1 %v7996_v14  ;;  %v9422_v14 = vld [vmem:[#allocation67_spill] sm:$0xff] }
0x1440   :  { %v3594_v9 = vpop.f32.mrf.mxu1 }
0x1441   :  { %v3599_v48 = vadd.f32 %v3594_v9, %v3462_v13  ;;  %v9418_v13 = vld [vmem:[#allocation59_spill] sm:$0xff] }
0x1442   :  { %v3596_v8 = vpop.f32.mrf.mxu1  ;;  %v9426_v9 = vld [vmem:[#allocation75_spill] sm:$0xff] }
0x1443   :  { %v3600_v39 = vadd.f32 %v3596_v8, %v3463_v2  ;;  %v9423_v2 = vld [vmem:[#allocation68_spill] sm:$0xff]  ;;  %v9425_v8 = vld [vmem:[#allocation74_spill] sm:$0xff] }
0x1445   :  { %5277 = vtanh.f32 %v3600_v39  ;;  %v9424_v39 = vld [vmem:[#allocation73_spill] sm:$0xff] }
0x1446   :  { %5279 = vtanh.f32 %v3599_v48  ;;  %v9419_v48 = vld [vmem:[#allocation60_spill] sm:$0xff] }
0x1452   :  { %v8264_v19 = vpop.eup %5277 }
0x1453   :  { %9416 = vst [vmem:[#allocation79_spill] sm:$0xff] %v8264_v19  ;;  %v8266_v36 = vpop.eup %5279  ;;  %3738 = vmatprep.mubr.f32.mxu0 %v8264_v19  ;;  %v9428_v19 = vld [vmem:[#allocation77_spill] sm:$0xff] }
0x1454   :  { %9417 = vst [vmem:[#allocation80_spill] sm:$0xff] %v8266_v36  ;;  %3739 = vmatmul.mubr.f32.vlgmr.msra.gmra.mxu0 %v8266_v36  ;;  %v9427_v36 = vld [vmem:[#allocation76_spill] sm:$0xff] }
0x1455   :  { %3967 = vmatpush1.msra.mxu0 %v7998_v15 }
0x1456   :  { %3968 = vmatprep.subr.mxu0 %v8000_v28 }
0x1457   :  { %3969 = vmatpush1.msra.mxu0 %v8003_v29 }
0x1458   :  { %3970 = vmatprep.subr.mxu0 %v8007_v30 }
0x1459   :  { %3971 = vmatpush1.msra.mxu0 %v8010_v11 }
0x145a   :  { %3972 = vmatprep.subr.mxu0 %v8013_v12 }
0x145b   :  { %3973 = vmatpush1.msra.mxu0 %v8016_v17 }
0x145c   :  { %3974 = vmatprep.subr.mxu0 %v8019_v27 }
0x145d   :  { %3975 = vmatpush1.msra.mxu0 %v8022_v63 }
0x145e   :  { %3976 = vmatprep.subr.mxu0 %v8025_v55 }
0x145f   :  { %3977 = vmatpush1.msra.mxu0 %v8028_v31 }
0x1460   :  { %3978 = vmatprep.subr.mxu0 %v8031_v32 }
0x1461   :  { %3979 = vmatpush1.msra.mxu0 %v8034_v42 }
0x1462   :  { %3980 = vmatprep.subr.mxu0 %v8037_v18 }
0x1463   :  { %3981 = vmatpush1.msra.mxu0 %v8040_v51 }
0x1464   :  { %3982 = vmatprep.subr.mxu0 %v8043_v25 }
0x1465   :  { %3983 = vmatpush1.msra.mxu0 %v8046_v43 }
0x1466   :  { %3984 = vmatprep.subr.mxu0 %v8049_v44 }
0x1467   :  { %3985 = vmatpush1.msra.mxu0 %v8052_v45 }
0x1468   :  { %3986 = vmatprep.subr.mxu0 %v8055_v46 }
0x1469   :  { %3987 = vmatpush1.msra.mxu0 %v8058_v33 }
0x146a   :  { %3988 = vmatprep.subr.mxu0 %v8061_v37 }
0x146b   :  { %3989 = vmatpush1.msra.mxu0 %v8064_v38 }
0x146c   :  { %3990 = vmatprep.subr.mxu0 %v8067_v52 }
0x146d   :  { %3991 = vmatpush1.msra.mxu0 %v8070_v53 }
0x146e   :  { %3992 = vmatprep.subr.mxu0 %v8073_v54 }
0x146f   :  { %3993 = vmatpush1.msra.mxu0 %v8076_v34 }
0x1470   :  { %3994 = vmatprep.subr.mxu0 %v8079_v35 }
0x1471   :  { %3995 = vmatpush1.msra.mxu0 %v8082_v40 }
0x1472   :  { %3996 = vmatprep.subr.mxu0 %v8085_v49 }
0x1473   :  { %3997 = vmatpush1.msra.mxu0 %v8088_v50 }
0x1474   :  { %3998 = vmatprep.subr.mxu0 %v8091_v26 }
0x1475   :  { %3999 = vmatpush2.msra.mxu0 %v8094_v56 }
0x1476   :  { %4000 = vmatprep.subr.mxu0 %v8097_v58 }
0x1477   :  { %4001 = vmatpush2.msra.mxu0 %v8100_v3 }
0x1478   :  { %4002 = vmatprep.subr.mxu0 %v8103_v41 }
0x1479   :  { %4003 = vmatpush2.msra.mxu0 %v8106_v16 }
0x147a   :  { %4004 = vmatprep.subr.mxu0 %v8109_v47 }
0x147b   :  { %4005 = vmatpush2.msra.mxu0 %v8112_v4 }
0x147c   :  { %4006 = vmatprep.subr.mxu0 %v8115_v5 }
0x147d   :  { %4007 = vmatpush2.msra.mxu0 %v8118_v6 }
0x147e   :  { %4008 = vmatprep.subr.mxu0 %v8121_v7 }
0x147f   :  { %4009 = vmatpush2.msra.mxu0 %v8124_v59 }
0x1480   :  { %4010 = vmatprep.subr.mxu0 %v8180_v0 }
0x1481   :  { %4011 = vmatpush2.msra.mxu0 %v8183_v20 }
0x1482   :  { %4012 = vmatprep.subr.mxu0 %v8187_v21 }
0x1483   :  { %4013 = vmatpush2.msra.mxu0 %v8191_v22 }
0x1484   :  { %4014 = vmatprep.subr.mxu0 %v8195_v60 }
0x1485   :  { %4015 = vmatpush2.msra.mxu0 %v8199_v62 }
0x1486   :  { %4016 = vmatprep.subr.mxu0 %v8203_v1 }
0x1487   :  { %4017 = vmatpush2.msra.mxu0 %v9418_v13  ;;  %v9429_v13 = vld [vmem:[#allocation78_spill] sm:$0xff] }
0x1488   :  { %4018 = vmatprep.subr.mxu0 %v9419_v48 }
0x1489   :  { %4019 = vmatpush2.msra.mxu0 %v9420_v23  ;;  %v3606_v23 = vld [vmem:[#allocation4 + $0x180] sm:$0xff] }
0x148a   :  { %4020 = vmatprep.subr.mxu0 %v9421_v10  ;;  %v3607_v10 = vld [vmem:[#allocation4 + $0x188] sm:$0xff] }
0x148b   :  { %4021 = vmatpush2.msra.mxu0 %v9422_v14  ;;  %v3608_v14 = vadd.f32 %v3606_v23, %v5833_v57  ;;  %v8510_v23 = vld [vmem:[#allocation9 + $0x1f0] sm:$0xff] }
0x148c   :  { %4022 = vmatprep.subr.mxu0 %v9423_v2  ;;  %v3609_v2 = vadd.f32 %v3607_v10, %v5835_v61  ;;  %v8513_v10 = vld [vmem:[#allocation9 + $0x1e8] sm:$0xff] }
0x148d   :  { %4023 = vmatpush2.msra.mxu0 %v9424_v39 }
0x148e   :  { %4024 = vmatprep.subr.mxu0 %v9425_v8 }
0x148f   :  { %4025 = vmatpush2.msra.mxu0 %v9426_v9 }
0x1490   :  { %4026 = vmatprep.subr.mxu0 %v9427_v36 }
0x1491   :  { %4027 = vmatpush2.msra.mxu0 %v9428_v19 }
0x1492   :  { %4028 = vmatprep.subr.mxu0 %v9429_v13 }
0x1493   :  { %4029 = vmatpush2.msra.mxu0 %v8251_v24 }
0x1514   :  { %v3740_v48 = vpop.f32.mrf.mxu0 }
0x1515   :  { %v3745_v39 = vadd.f32 %v3740_v48, %v3608_v14  ;;  %v8507_v48 = vld [vmem:[#allocation9 + $0x1f8] sm:$0xff]  ;;  %v8516_v14 = vld [vmem:[#allocation9 + $0x1e0] sm:$0xff] }
0x1516   :  { %v3742_v1 = vpop.f32.mrf.mxu0 }
0x1517   :  { %v3746_v8 = vadd.f32 %v3742_v1, %v3609_v2  ;;  %v8498_v1 = vld [vmem:[#allocation9 + $0x10] sm:$0xff]  ;;  %v8519_v2 = vld [vmem:[#allocation9 + $0x1d8] sm:$0xff] }
0x1519   :  { %5281 = vtanh.f32 %v3746_v8  ;;  %v8525_v8 = vld [vmem:[#allocation9 + $0x1c8] sm:$0xff] }
0x151a   :  { %5283 = vtanh.f32 %v3745_v39  ;;  %v8522_v39 = vld [vmem:[#allocation9 + $0x1d0] sm:$0xff] }
0x1526   :  { %v8335_v9 = vpop.eup %5281 }
0x1527   :  { %9430 = vst [vmem:[#allocation77_spill] sm:$0xff] %v8335_v9  ;;  %v8337_v36 = vpop.eup %5283  ;;  %3884 = vmatprep.mubr.f32.mxu1 %v8335_v9  ;;  %v8659_v9 = vld [vmem:[#allocation9 + $0x110] sm:$0xff] }
0x1528   :  { %9431 = vst [vmem:[#allocation78_spill] sm:$0xff] %v8337_v36  ;;  %3885 = vmatmul.mubr.f32.vlgmr.msra.gmra.mxu1 %v8337_v36  ;;  %v8655_v36 = vld [vmem:[#allocation9 + $0x118] sm:$0xff]  ;;  %9457 = vst [vmem:[#allocation84_spill] sm:$0xff] %v8659_v9 }
0x1529   :  { %4113 = vmatpush1.msra.mxu1 %v7998_v15  ;;  %v9432_v15 = vld [vmem:[#allocation58_spill] sm:$0xff]  ;;  %9456 = vst [vmem:[#allocation83_spill] sm:$0xff] %v8655_v36 }
0x152a   :  { %4114 = vmatprep.subr.mxu1 %v8000_v28  ;;  %v9433_v28 = vld [vmem:[#allocation59_spill] sm:$0xff] }
0x152b   :  { %4115 = vmatpush1.msra.mxu1 %v8003_v29  ;;  %v9434_v29 = vld [vmem:[#allocation60_spill] sm:$0xff] }
0x152c   :  { %4116 = vmatprep.subr.mxu1 %v8007_v30  ;;  %v9435_v30 = vld [vmem:[#allocation65_spill] sm:$0xff] }
0x152d   :  { %4117 = vmatpush1.msra.mxu1 %v8010_v11  ;;  %v9436_v11 = vld [vmem:[#allocation66_spill] sm:$0xff] }
0x152e   :  { %4118 = vmatprep.subr.mxu1 %v8013_v12  ;;  %v9437_v12 = vld [vmem:[#allocation67_spill] sm:$0xff] }
0x152f   :  { %4119 = vmatpush1.msra.mxu1 %v8016_v17  ;;  %v9438_v17 = vld [vmem:[#allocation68_spill] sm:$0xff] }
0x1530   :  { %4120 = vmatprep.subr.mxu1 %v8019_v27  ;;  %v9439_v27 = vld [vmem:[#allocation73_spill] sm:$0xff] }
0x1531   :  { %4121 = vmatpush1.msra.mxu1 %v8022_v63  ;;  %v9440_v63 = vld [vmem:[#allocation74_spill] sm:$0xff] }
0x1532   :  { %4122 = vmatprep.subr.mxu1 %v8025_v55  ;;  %v9441_v55 = vld [vmem:[#allocation75_spill] sm:$0xff] }
0x1533   :  { %4123 = vmatpush1.msra.mxu1 %v8028_v31  ;;  %v9442_v31 = vld [vmem:[#allocation76_spill] sm:$0xff] }
0x1534   :  { %4124 = vmatprep.subr.mxu1 %v8031_v32  ;;  %v3752_v32 = vld [vmem:[#allocation4 + $0x190] sm:$0xff] }
0x1535   :  { %4125 = vmatpush1.msra.mxu1 %v8034_v42  ;;  %v3753_v42 = vld [vmem:[#allocation4 + $0x198] sm:$0xff] }
0x1536   :  { %4126 = vmatprep.subr.mxu1 %v8037_v18  ;;  %v3754_v18 = vadd.f32 %v3752_v32, %v5833_v57 }
0x1537   :  { %4127 = vmatpush1.msra.mxu1 %v8040_v51  ;;  %v3755_v51 = vadd.f32 %v3753_v42, %v5835_v61 }
0x1538   :  { %4128 = vmatprep.subr.mxu1 %v8043_v25 }
0x1539   :  { %4129 = vmatpush1.msra.mxu1 %v8046_v43 }
0x153a   :  { %4130 = vmatprep.subr.mxu1 %v8049_v44 }
0x153b   :  { %4131 = vmatpush1.msra.mxu1 %v8052_v45 }
0x153c   :  { %4132 = vmatprep.subr.mxu1 %v8055_v46 }
0x153d   :  { %4133 = vmatpush1.msra.mxu1 %v8058_v33 }
0x153e   :  { %4134 = vmatprep.subr.mxu1 %v8061_v37  ;;  %v8412_v37 = vld [vmem:[#allocation9 + $0xf8] sm:$0xff] }
0x153f   :  { %4135 = vmatpush1.msra.mxu1 %v8064_v38  ;;  %v8414_v38 = vld [vmem:[#allocation9 + $0xf0] sm:$0xff]  ;;  %4258 = vmatprep.subr.mxu0 %v8412_v37 }
0x1540   :  { %4136 = vmatprep.subr.mxu1 %v8067_v52  ;;  %v8416_v52 = vld [vmem:[#allocation9 + $0xe8] sm:$0xff] }
0x1541   :  { %4137 = vmatpush1.msra.mxu1 %v8070_v53  ;;  %v8419_v53 = vld [vmem:[#allocation9 + $0xe0] sm:$0xff] }
0x1542   :  { %4138 = vmatprep.subr.mxu1 %v8073_v54  ;;  %v8423_v54 = vld [vmem:[#allocation9 + $0xd8] sm:$0xff] }
0x1543   :  { %4139 = vmatpush1.msra.mxu1 %v8076_v34  ;;  %v8426_v34 = vld [vmem:[#allocation9 + $0xd0] sm:$0xff] }
0x1544   :  { %4140 = vmatprep.subr.mxu1 %v8079_v35  ;;  %v8429_v35 = vld [vmem:[#allocation9 + $0xc8] sm:$0xff] }
0x1545   :  { %4141 = vmatpush1.msra.mxu1 %v8082_v40  ;;  %v8432_v40 = vld [vmem:[#allocation9 + $0xc0] sm:$0xff] }
0x1546   :  { %4142 = vmatprep.subr.mxu1 %v8085_v49  ;;  %v8435_v49 = vld [vmem:[#allocation9 + $0xb8] sm:$0xff] }
0x1547   :  { %4143 = vmatpush1.msra.mxu1 %v8088_v50  ;;  %v8438_v50 = vld [vmem:[#allocation9 + $0xb0] sm:$0xff] }
0x1548   :  { %4144 = vmatprep.subr.mxu1 %v8091_v26  ;;  %v8441_v26 = vld [vmem:[#allocation9 + $0xa8] sm:$0xff] }
0x1549   :  { %4145 = vmatpush2.msra.mxu1 %v8094_v56  ;;  %v8444_v56 = vld [vmem:[#allocation9 + $0xa0] sm:$0xff] }
0x154a   :  { %4146 = vmatprep.subr.mxu1 %v8097_v58  ;;  %v8447_v58 = vld [vmem:[#allocation9 + $0x98] sm:$0xff] }
0x154b   :  { %4147 = vmatpush2.msra.mxu1 %v8100_v3  ;;  %v8450_v3 = vld [vmem:[#allocation9 + $0x90] sm:$0xff] }
0x154c   :  { %4148 = vmatprep.subr.mxu1 %v8103_v41  ;;  %v8453_v41 = vld [vmem:[#allocation9 + $0x88] sm:$0xff] }
0x154d   :  { %4149 = vmatpush2.msra.mxu1 %v8106_v16  ;;  %v8456_v16 = vld [vmem:[#allocation9 + $0x80] sm:$0xff] }
0x154e   :  { %4150 = vmatprep.subr.mxu1 %v8109_v47  ;;  %v8459_v47 = vld [vmem:[#allocation9 + $0x78] sm:$0xff] }
0x154f   :  { %4151 = vmatpush2.msra.mxu1 %v8112_v4  ;;  %v8462_v4 = vld [vmem:[#allocation9 + $0x70] sm:$0xff] }
0x1550   :  { %4152 = vmatprep.subr.mxu1 %v8115_v5  ;;  %v8465_v5 = vld [vmem:[#allocation9 + $0x68] sm:$0xff] }
0x1551   :  { %4153 = vmatpush2.msra.mxu1 %v8118_v6  ;;  %v8468_v6 = vld [vmem:[#allocation9 + $0x60] sm:$0xff] }
0x1552   :  { %4154 = vmatprep.subr.mxu1 %v8121_v7  ;;  %v8471_v7 = vld [vmem:[#allocation9 + $0x58] sm:$0xff] }
0x1553   :  { %4155 = vmatpush2.msra.mxu1 %v8124_v59  ;;  %v8474_v59 = vld [vmem:[#allocation9 + $0x50] sm:$0xff] }
0x1554   :  { %4156 = vmatprep.subr.mxu1 %v8180_v0  ;;  %v8480_v0 = vld [vmem:[#allocation9 + $0x40] sm:$0xff] }
0x1555   :  { %4157 = vmatpush2.msra.mxu1 %v8183_v20  ;;  %v8483_v20 = vld [vmem:[#allocation9 + $0x38] sm:$0xff] }
0x1556   :  { %4158 = vmatprep.subr.mxu1 %v8187_v21  ;;  %v8486_v21 = vld [vmem:[#allocation9 + $0x30] sm:$0xff] }
0x1557   :  { %4159 = vmatpush2.msra.mxu1 %v8191_v22  ;;  %v8489_v22 = vld [vmem:[#allocation9 + $0x28] sm:$0xff] }
0x1558   :  { %4160 = vmatprep.subr.mxu1 %v8195_v60  ;;  %v8492_v60 = vld [vmem:[#allocation9 + $0x20] sm:$0xff] }
0x1559   :  { %4161 = vmatpush2.msra.mxu1 %v8199_v62  ;;  %v8495_v62 = vld [vmem:[#allocation9 + $0x18] sm:$0xff] }
0x155a   :  { %4162 = vmatprep.subr.mxu1 %v9432_v15  ;;  %v8528_v15 = vld [vmem:[#allocation9 + $0x1c0] sm:$0xff] }
0x155b   :  { %4163 = vmatpush2.msra.mxu1 %v9433_v28  ;;  %v8531_v28 = vld [vmem:[#allocation9 + $0x1b8] sm:$0xff] }
0x155c   :  { %4164 = vmatprep.subr.mxu1 %v9434_v29  ;;  %v8534_v29 = vld [vmem:[#allocation9 + $0x1b0] sm:$0xff] }
0x155d   :  { %4165 = vmatpush2.msra.mxu1 %v9435_v30  ;;  %v8537_v30 = vld [vmem:[#allocation9 + $0x1a8] sm:$0xff] }
0x155e   :  { %4166 = vmatprep.subr.mxu1 %v9436_v11  ;;  %v8540_v11 = vld [vmem:[#allocation9 + $0x1a0] sm:$0xff] }
0x155f   :  { %4167 = vmatpush2.msra.mxu1 %v9437_v12  ;;  %v3898_v12 = vld [vmem:[#allocation4 + $0x1a0] sm:$0xff] }
0x1560   :  { %4168 = vmatprep.subr.mxu1 %v9438_v17  ;;  %v3899_v17 = vld [vmem:[#allocation4 + $0x1a8] sm:$0xff] }
0x1561   :  { %4169 = vmatpush2.msra.mxu1 %v9439_v27  ;;  %v3900_v27 = vadd.f32 %v3898_v12, %v5833_v57  ;;  %v8611_v12 = vld [vmem:[#allocation9 + $0x178] sm:$0xff] }
0x1562   :  { %4170 = vmatprep.subr.mxu1 %v9440_v63  ;;  %v3901_v63 = vadd.f32 %v3899_v17, %v5835_v61  ;;  %v8615_v17 = vld [vmem:[#allocation9 + $0x170] sm:$0xff] }
0x1563   :  { %4171 = vmatpush2.msra.mxu1 %v9441_v55 }
0x1564   :  { %4172 = vmatprep.subr.mxu1 %v9442_v31 }
0x1565   :  { %4173 = vmatpush2.msra.mxu1 %v9428_v19  ;;  %v8501_v19 = vld [vmem:[#allocation9 + $0x8] sm:$0xff] }
0x1566   :  { %4174 = vmatprep.subr.mxu1 %v9429_v13  ;;  %v8504_v13 = vld [vmem:[#allocation9] sm:$0xff] }
0x1567   :  { %4175 = vmatpush2.msra.mxu1 %v8251_v24  ;;  %v8477_v24 = vld [vmem:[#allocation9 + $0x48] sm:$0xff] }
0x1568   :  { %4404 = vmatprep.subr.mxu1 %v8412_v37 }
0x15e8   :  { %v3886_v25 = vpop.f32.mrf.mxu1 }
0x15e9   :  { %v3891_v43 = vadd.f32 %v3886_v25, %v3754_v18  ;;  %v8596_v25 = vld [vmem:[#allocation9 + $0x198] sm:$0xff] }
0x15ea   :  { %v3888_v44 = vpop.f32.mrf.mxu1 }
0x15eb   :  { %v3892_v45 = vadd.f32 %v3888_v44, %v3755_v51  ;;  %v8603_v44 = vld [vmem:[#allocation9 + $0x188] sm:$0xff] }
0x15ed   :  { %5285 = vtanh.f32 %v3892_v45  ;;  %v8607_v45 = vld [vmem:[#allocation9 + $0x180] sm:$0xff] }
0x15ee   :  { %5287 = vtanh.f32 %v3891_v43  ;;  %v8599_v43 = vld [vmem:[#allocation9 + $0x190] sm:$0xff] }
0x15fa   :  { %v8406_v46 = vpop.eup %5285 }
0x15fb   :  { %9443 = vst [vmem:[#allocation58_spill] sm:$0xff] %v8406_v46  ;;  %v8408_v33 = vpop.eup %5287  ;;  %4030 = vmatprep.mubr.f32.mxu0 %v8406_v46  ;;  %v8651_v46 = vld [vmem:[#allocation9 + $0x120] sm:$0xff] }
0x15fc   :  { %9444 = vst [vmem:[#allocation59_spill] sm:$0xff] %v8408_v33  ;;  %4031 = vmatmul.mubr.f32.vlgmr.msra.gmra.mxu0 %v8408_v33  ;;  %v8647_v33 = vld [vmem:[#allocation9 + $0x128] sm:$0xff]  ;;  %9455 = vst [vmem:[#allocation82_spill] sm:$0xff] %v8651_v46 }
0x15fd   :  { %4259 = vmatpush1.msra.mxu0 %v8414_v38  ;;  %9454 = vst [vmem:[#allocation81_spill] sm:$0xff] %v8647_v33 }
0x15fe   :  { %4260 = vmatprep.subr.mxu0 %v8416_v52 }
0x15ff   :  { %4261 = vmatpush1.msra.mxu0 %v8419_v53 }
0x1600   :  { %4262 = vmatprep.subr.mxu0 %v8423_v54 }
0x1601   :  { %4263 = vmatpush1.msra.mxu0 %v8426_v34 }
0x1602   :  { %4264 = vmatprep.subr.mxu0 %v8429_v35 }
0x1603   :  { %4265 = vmatpush1.msra.mxu0 %v8432_v40 }
0x1604   :  { %4266 = vmatprep.subr.mxu0 %v8435_v49 }
0x1605   :  { %4267 = vmatpush1.msra.mxu0 %v8438_v50 }
0x1606   :  { %4268 = vmatprep.subr.mxu0 %v8441_v26 }
0x1607   :  { %4269 = vmatpush1.msra.mxu0 %v8444_v56 }
0x1608   :  { %4270 = vmatprep.subr.mxu0 %v8447_v58 }
0x1609   :  { %4271 = vmatpush1.msra.mxu0 %v8450_v3 }
0x160a   :  { %4272 = vmatprep.subr.mxu0 %v8453_v41 }
0x160b   :  { %4273 = vmatpush1.msra.mxu0 %v8456_v16 }
0x160c   :  { %4274 = vmatprep.subr.mxu0 %v8459_v47 }
0x160d   :  { %4275 = vmatpush1.msra.mxu0 %v8462_v4 }
0x160e   :  { %4276 = vmatprep.subr.mxu0 %v8465_v5 }
0x160f   :  { %4277 = vmatpush1.msra.mxu0 %v8468_v6 }
0x1610   :  { %4278 = vmatprep.subr.mxu0 %v8471_v7 }
0x1611   :  { %4279 = vmatpush1.msra.mxu0 %v8474_v59 }
0x1612   :  { %4280 = vmatprep.subr.mxu0 %v8477_v24 }
0x1613   :  { %4281 = vmatpush1.msra.mxu0 %v8480_v0 }
0x1614   :  { %4282 = vmatprep.subr.mxu0 %v8483_v20 }
0x1615   :  { %4283 = vmatpush1.msra.mxu0 %v8486_v21 }
0x1616   :  { %4284 = vmatprep.subr.mxu0 %v8489_v22 }
0x1617   :  { %4285 = vmatpush1.msra.mxu0 %v8492_v60 }
0x1618   :  { %4286 = vmatprep.subr.mxu0 %v8495_v62 }
0x1619   :  { %4287 = vmatpush1.msra.mxu0 %v8498_v1 }
0x161a   :  { %4288 = vmatprep.subr.mxu0 %v8501_v19 }
0x161b   :  { %4289 = vmatpush1.msra.mxu0 %v8504_v13 }
0x161c   :  { %4290 = vmatprep.subr.mxu0 %v8507_v48 }
0x161d   :  { %4291 = vmatpush2.msra.mxu0 %v8510_v23 }
0x161e   :  { %4292 = vmatprep.subr.mxu0 %v8513_v10 }
0x161f   :  { %4293 = vmatpush2.msra.mxu0 %v8516_v14 }
0x1620   :  { %4294 = vmatprep.subr.mxu0 %v8519_v2 }
0x1621   :  { %4295 = vmatpush2.msra.mxu0 %v8522_v39 }
0x1622   :  { %4296 = vmatprep.subr.mxu0 %v8525_v8 }
0x1623   :  { %4297 = vmatpush2.msra.mxu0 %v8528_v15 }
0x1624   :  { %4298 = vmatprep.subr.mxu0 %v8531_v28 }
0x1625   :  { %4299 = vmatpush2.msra.mxu0 %v8534_v29 }
0x1626   :  { %4300 = vmatprep.subr.mxu0 %v8537_v30 }
0x1627   :  { %4301 = vmatpush2.msra.mxu0 %v8540_v11 }
0x1628   :  { %4302 = vmatprep.subr.mxu0 %v8596_v25 }
0x1629   :  { %4303 = vmatpush2.msra.mxu0 %v8599_v43 }
0x162a   :  { %4304 = vmatprep.subr.mxu0 %v8603_v44 }
0x162b   :  { %4305 = vmatpush2.msra.mxu0 %v8607_v45 }
0x162c   :  { %4306 = vmatprep.subr.mxu0 %v8611_v12 }
0x162d   :  { %4307 = vmatpush2.msra.mxu0 %v8615_v17 }
0x16bc   :  { %v4032_v55 = vpop.f32.mrf.mxu0 }
0x16bd   :  { %v4037_v31 = vadd.f32 %v4032_v55, %v3900_v27  ;;  %v8619_v27 = vld [vmem:[#allocation9 + $0x168] sm:$0xff]  ;;  %v8623_v55 = vld [vmem:[#allocation9 + $0x158] sm:$0xff] }
0x16be   :  { %v4034_v32 = vpop.f32.mrf.mxu0  ;;  %9448 = vst [vmem:[#allocation67_spill] sm:$0xff] %v8623_v55  ;;  %4308 = vmatprep.subr.mxu0 %v8619_v27 }
0x16bf   :  { %v4038_v42 = vadd.f32 %v4034_v32, %v3901_v63  ;;  %v8621_v63 = vld [vmem:[#allocation9 + $0x160] sm:$0xff]  ;;  %v8631_v32 = vld [vmem:[#allocation9 + $0x148] sm:$0xff] }
0x16c0   :  { %9447 = vst [vmem:[#allocation66_spill] sm:$0xff] %v8621_v63  ;;  %4309 = vmatpush2.msra.mxu0 %v8621_v63  ;;  %9450 = vst [vmem:[#allocation73_spill] sm:$0xff] %v8631_v32 }
0x16c1   :  { %5289 = vtanh.f32 %v4038_v42  ;;  %4310 = vmatprep.subr.mxu0 %v8623_v55  ;;  %v8635_v42 = vld [vmem:[#allocation9 + $0x140] sm:$0xff] }
0x16c2   :  { %5291 = vtanh.f32 %v4037_v31  ;;  %v8627_v31 = vld [vmem:[#allocation9 + $0x150] sm:$0xff]  ;;  %9451 = vst [vmem:[#allocation74_spill] sm:$0xff] %v8635_v42 }
0x16c3   :  { %9449 = vst [vmem:[#allocation68_spill] sm:$0xff] %v8627_v31  ;;  %4311 = vmatpush2.msra.mxu0 %v8627_v31 }
0x16c4   :  { %4312 = vmatprep.subr.mxu0 %v8631_v32 }
0x16c5   :  { %4313 = vmatpush2.msra.mxu0 %v8635_v42 }
0x16ce   :  { %v8547_v18 = vpop.eup %5289 }
0x16cf   :  { %9445 = vst [vmem:[#allocation60_spill] sm:$0xff] %v8547_v18  ;;  %v8549_v51 = vpop.eup %5291  ;;  %4176 = vmatprep.mubr.f32.mxu1 %v8547_v18  ;;  %v8643_v18 = vld [vmem:[#allocation9 + $0x130] sm:$0xff] }
0x16d0   :  { %9446 = vst [vmem:[#allocation65_spill] sm:$0xff] %v8549_v51  ;;  %4177 = vmatmul.mubr.f32.vlgmr.msra.gmra.mxu1 %v8549_v51  ;;  %v8639_v51 = vld [vmem:[#allocation9 + $0x138] sm:$0xff]  ;;  %9453 = vst [vmem:[#allocation76_spill] sm:$0xff] %v8643_v18 }
0x16d1   :  { %4405 = vmatpush1.msra.mxu1 %v8414_v38  ;;  %9452 = vst [vmem:[#allocation75_spill] sm:$0xff] %v8639_v51  ;;  %4314 = vmatprep.subr.mxu0 %v8639_v51 }
0x16d2   :  { %4406 = vmatprep.subr.mxu1 %v8416_v52  ;;  %4315 = vmatpush2.msra.mxu0 %v8643_v18 }
0x16d3   :  { %4407 = vmatpush1.msra.mxu1 %v8419_v53  ;;  %4316 = vmatprep.subr.mxu0 %v8647_v33 }
0x16d4   :  { %4408 = vmatprep.subr.mxu1 %v8423_v54  ;;  %4317 = vmatpush2.msra.mxu0 %v8651_v46 }
0x16d5   :  { %4409 = vmatpush1.msra.mxu1 %v8426_v34  ;;  %4318 = vmatprep.subr.mxu0 %v8655_v36 }
0x16d6   :  { %4410 = vmatprep.subr.mxu1 %v8429_v35  ;;  %4319 = vmatpush2.msra.mxu0 %v8659_v9 }
0x16d7   :  { %4411 = vmatpush1.msra.mxu1 %v8432_v40 }
0x16d8   :  { %4412 = vmatprep.subr.mxu1 %v8435_v49 }
0x16d9   :  { %4413 = vmatpush1.msra.mxu1 %v8438_v50 }
0x16da   :  { %4414 = vmatprep.subr.mxu1 %v8441_v26 }
0x16db   :  { %4415 = vmatpush1.msra.mxu1 %v8444_v56 }
0x16dc   :  { %4416 = vmatprep.subr.mxu1 %v8447_v58 }
0x16dd   :  { %4417 = vmatpush1.msra.mxu1 %v8450_v3 }
0x16de   :  { %4418 = vmatprep.subr.mxu1 %v8453_v41 }
0x16df   :  { %4419 = vmatpush1.msra.mxu1 %v8456_v16 }
0x16e0   :  { %4420 = vmatprep.subr.mxu1 %v8459_v47 }
0x16e1   :  { %4421 = vmatpush1.msra.mxu1 %v8462_v4 }
0x16e2   :  { %4422 = vmatprep.subr.mxu1 %v8465_v5 }
0x16e3   :  { %4423 = vmatpush1.msra.mxu1 %v8468_v6 }
0x16e4   :  { %4424 = vmatprep.subr.mxu1 %v8471_v7 }
0x16e5   :  { %4425 = vmatpush1.msra.mxu1 %v8474_v59 }
0x16e6   :  { %4426 = vmatprep.subr.mxu1 %v8477_v24 }
0x16e7   :  { %4427 = vmatpush1.msra.mxu1 %v8480_v0 }
0x16e8   :  { %4428 = vmatprep.subr.mxu1 %v8483_v20 }
0x16e9   :  { %4429 = vmatpush1.msra.mxu1 %v8486_v21 }
0x16ea   :  { %4430 = vmatprep.subr.mxu1 %v8489_v22 }
0x16eb   :  { %4431 = vmatpush1.msra.mxu1 %v8492_v60 }
0x16ec   :  { %4432 = vmatprep.subr.mxu1 %v8495_v62 }
0x16ed   :  { %4433 = vmatpush1.msra.mxu1 %v8498_v1 }
0x16ee   :  { %4434 = vmatprep.subr.mxu1 %v8501_v19 }
0x16ef   :  { %4435 = vmatpush1.msra.mxu1 %v8504_v13 }
0x16f0   :  { %4436 = vmatprep.subr.mxu1 %v8507_v48 }
0x16f1   :  { %4437 = vmatpush2.msra.mxu1 %v8510_v23 }
0x16f2   :  { %4438 = vmatprep.subr.mxu1 %v8513_v10 }
0x16f3   :  { %4439 = vmatpush2.msra.mxu1 %v8516_v14 }
0x16f4   :  { %4440 = vmatprep.subr.mxu1 %v8519_v2 }
0x16f5   :  { %4441 = vmatpush2.msra.mxu1 %v8522_v39 }
0x16f6   :  { %4442 = vmatprep.subr.mxu1 %v8525_v8 }
0x16f7   :  { %4443 = vmatpush2.msra.mxu1 %v8528_v15 }
0x16f8   :  { %4444 = vmatprep.subr.mxu1 %v8531_v28 }
0x16f9   :  { %4445 = vmatpush2.msra.mxu1 %v8534_v29 }
0x16fa   :  { %4446 = vmatprep.subr.mxu1 %v8537_v30 }
0x16fb   :  { %4447 = vmatpush2.msra.mxu1 %v8540_v11 }
0x16fc   :  { %4448 = vmatprep.subr.mxu1 %v8596_v25 }
0x16fd   :  { %4449 = vmatpush2.msra.mxu1 %v8599_v43 }
0x16fe   :  { %4450 = vmatprep.subr.mxu1 %v8603_v44 }
0x16ff   :  { %4451 = vmatpush2.msra.mxu1 %v8607_v45 }
0x1700   :  { %4452 = vmatprep.subr.mxu1 %v8611_v12 }
0x1701   :  { %4453 = vmatpush2.msra.mxu1 %v8615_v17 }
0x1702   :  { %4454 = vmatprep.subr.mxu1 %v8619_v27 }
0x1703   :  { %4455 = vmatpush2.msra.mxu1 %v8621_v63 }
0x1704   :  { %4456 = vmatprep.subr.mxu1 %v8623_v55 }
0x1705   :  { %4457 = vmatpush2.msra.mxu1 %v8627_v31 }
0x1706   :  { %4458 = vmatprep.subr.mxu1 %v8631_v32 }
0x1707   :  { %4459 = vmatpush2.msra.mxu1 %v8635_v42  ;;  %v8663_v42 = vld [vmem:[#allocation9 + $0x108] sm:$0xff] }
0x1708   :  { %4460 = vmatprep.subr.mxu1 %v8639_v51  ;;  %9458 = vst [vmem:[#allocation85_spill] sm:$0xff] %v8663_v42  ;;  %v8667_v51 = vld [vmem:[#allocation9 + $0x100] sm:$0xff]  ;;  %4320 = vmatprep.subr.mxu0 %v8663_v42 }
0x1709   :  { %4461 = vmatpush2.msra.mxu1 %v8643_v18  ;;  %4321 = vmatpush2.msra.mxu0 %v8667_v51 }
0x170a   :  { %4462 = vmatprep.subr.mxu1 %v8647_v33  ;;  %4550 = vmatprep.subr.mxu0 %v8412_v37  ;;  %v4045_v33 = vld [vmem:[#allocation4 + $0x1b8] sm:$0xff]  ;;  %v9463_v37 = vld [vmem:[#allocation74_spill] sm:$0xff] }
0x170b   :  { %4463 = vmatpush2.msra.mxu1 %v8651_v46  ;;  %v4044_v46 = vld [vmem:[#allocation4 + $0x1b0] sm:$0xff] }
0x170c   :  { %4464 = vmatprep.subr.mxu1 %v8655_v36  ;;  %v4046_v18 = vadd.f32 %v4044_v46, %v5833_v57  ;;  %v4047_v36 = vadd.f32 %v4045_v33, %v5835_v61  ;;  %v9461_v46 = vld [vmem:[#allocation68_spill] sm:$0xff]  ;;  %v9462_v33 = vld [vmem:[#allocation73_spill] sm:$0xff] }
0x170d   :  { %4465 = vmatpush2.msra.mxu1 %v8659_v9 }
0x170e   :  { %4466 = vmatprep.subr.mxu1 %v8663_v42 }
0x170f   :  { %4467 = vmatpush2.msra.mxu1 %v8667_v51 }
0x1790   :  { %v4178_v32 = vpop.f32.mrf.mxu1 }
0x1791   :  { %v4183_v31 = vadd.f32 %v4178_v32, %v4046_v18  ;;  %v4661_v18 = vld [vmem:[#allocation9 + $0xe8] sm:$0xff]  ;;  %v4654_v32 = vld [vmem:[#allocation9 + $0xb0] sm:$0xff] }
0x1792   :  { %v4180_v55 = vpop.f32.mrf.mxu1 }
0x1793   :  { %v4184_v9 = vadd.f32 %v4180_v55, %v4047_v36  ;;  %v9459_v36 = vld [vmem:[#allocation66_spill] sm:$0xff] }
0x1794   :  { %v4839_v55 = vld [vmem:[#allocation10] sm:$0xff] }
0x1795   :  { %5293 = vtanh.f32 %v4184_v9  ;;  %v9460_v9 = vld [vmem:[#allocation67_spill] sm:$0xff] }
0x1796   :  { %5295 = vtanh.f32 %v4183_v31  ;;  %v4655_v31 = vld [vmem:[#allocation9 + $0xb8] sm:$0xff] }
0x17a2   :  { %v8679_v63 = vpop.eup %5293 }
0x17a3   :  { %v8681_v42 = vpop.eup %5295  ;;  %4322 = vmatprep.mubr.f32.mxu0 %v8679_v63 }
0x17a4   :  { %4323 = vmatmul.mubr.f32.vlgmr.msra.gmra.mxu0 %v8681_v42 }
0x17a5   :  { %4551 = vmatpush1.msra.mxu0 %v8414_v38  ;;  %v9464_v38 = vld [vmem:[#allocation75_spill] sm:$0xff] }
0x17a6   :  { %4552 = vmatprep.subr.mxu0 %v8416_v52  ;;  %v9465_v52 = vld [vmem:[#allocation76_spill] sm:$0xff] }
0x17a7   :  { %4553 = vmatpush1.msra.mxu0 %v8419_v53  ;;  %v9466_v53 = vld [vmem:[#allocation81_spill] sm:$0xff] }
0x17a8   :  { %4554 = vmatprep.subr.mxu0 %v8423_v54  ;;  %v9467_v54 = vld [vmem:[#allocation82_spill] sm:$0xff] }
0x17a9   :  { %4555 = vmatpush1.msra.mxu0 %v8426_v34  ;;  %v9468_v34 = vld [vmem:[#allocation83_spill] sm:$0xff] }
0x17aa   :  { %4556 = vmatprep.subr.mxu0 %v8429_v35  ;;  %v9469_v35 = vld [vmem:[#allocation84_spill] sm:$0xff] }
0x17ab   :  { %4557 = vmatpush1.msra.mxu0 %v8432_v40  ;;  %v9470_v40 = vld [vmem:[#allocation85_spill] sm:$0xff] }
0x17ac   :  { %4558 = vmatprep.subr.mxu0 %v8435_v49  ;;  %v4190_v49 = vld [vmem:[#allocation4 + $0x1c0] sm:$0xff] }
0x17ad   :  { %4559 = vmatpush1.msra.mxu0 %v8438_v50  ;;  %v4191_v50 = vld [vmem:[#allocation4 + $0x1c8] sm:$0xff] }
0x17ae   :  { %4560 = vmatprep.subr.mxu0 %v8441_v26  ;;  %v4192_v26 = vadd.f32 %v4190_v49, %v5833_v57  ;;  %v4645_v49 = vld [vmem:[#allocation9 + $0x68] sm:$0xff] }
0x17af   :  { %4561 = vmatpush1.msra.mxu0 %v8444_v56  ;;  %v4193_v56 = vadd.f32 %v4191_v50, %v5835_v61  ;;  %v4644_v50 = vld [vmem:[#allocation9 + $0x60] sm:$0xff] }
0x17b0   :  { %4562 = vmatprep.subr.mxu0 %v8447_v58 }
0x17b1   :  { %4563 = vmatpush1.msra.mxu0 %v8450_v3 }
0x17b2   :  { %4564 = vmatprep.subr.mxu0 %v8453_v41 }
0x17b3   :  { %4565 = vmatpush1.msra.mxu0 %v8456_v16 }
0x17b4   :  { %4566 = vmatprep.subr.mxu0 %v8459_v47 }
0x17b5   :  { %4567 = vmatpush1.msra.mxu0 %v8462_v4 }
0x17b6   :  { %4568 = vmatprep.subr.mxu0 %v8465_v5  ;;  %v5451_v5 = vmov 0.0  }
0x17b7   :  { %4569 = vmatpush1.msra.mxu0 %v8468_v6  ;;  %v4336_v6 = vld [vmem:[#allocation4 + $0x1d0] sm:$0xff] }
0x17b8   :  { %4570 = vmatprep.subr.mxu0 %v8471_v7  ;;  %v4337_v7 = vld [vmem:[#allocation4 + $0x1d8] sm:$0xff] }
0x17b9   :  { %4571 = vmatpush1.msra.mxu0 %v8474_v59  ;;  %v4338_v59 = vadd.f32 %v4336_v6, %v5833_v57  ;;  %v4864_v6 = vld [vmem:[#allocation10 + $0xc8] sm:$0xff] }
0x17ba   :  { %4572 = vmatprep.subr.mxu0 %v8477_v24  ;;  %v4339_v24 = vadd.f32 %v4337_v7, %v5835_v61  ;;  %v4863_v7 = vld [vmem:[#allocation10 + $0xc0] sm:$0xff] }
0x17bb   :  { %4573 = vmatpush1.msra.mxu0 %v8480_v0 }
0x17bc   :  { %4574 = vmatprep.subr.mxu0 %v8483_v20 }
0x17bd   :  { %4575 = vmatpush1.msra.mxu0 %v8486_v21 }
0x17be   :  { %4576 = vmatprep.subr.mxu0 %v8489_v22 }
0x17bf   :  { %4577 = vmatpush1.msra.mxu0 %v8492_v60 }
0x17c0   :  { %4578 = vmatprep.subr.mxu0 %v8495_v62  ;;  %v4854_v62 = vld [vmem:[#allocation10 + $0x78] sm:$0xff] }
0x17c1   :  { %4579 = vmatpush1.msra.mxu0 %v8498_v1 }
0x17c2   :  { %4580 = vmatprep.subr.mxu0 %v8501_v19  ;;  %v4853_v19 = vld [vmem:[#allocation10 + $0x70] sm:$0xff] }
0x17c3   :  { %4581 = vmatpush1.msra.mxu0 %v8504_v13  ;;  %v9471_v13 = vld [vmem:[#allocation35_spill] sm:$0xff] }
0x17c4   :  { %4582 = vmatprep.subr.mxu0 %v8507_v48  ;;  %v4852_v48 = vld [vmem:[#allocation10 + $0x68] sm:$0xff] }
0x17c5   :  { %4583 = vmatpush2.msra.mxu0 %v8510_v23  ;;  %v4851_v23 = vld [vmem:[#allocation10 + $0x60] sm:$0xff] }
0x17c6   :  { %4584 = vmatprep.subr.mxu0 %v8513_v10  ;;  %v4850_v10 = vld [vmem:[#allocation10 + $0x58] sm:$0xff] }
0x17c7   :  { %4585 = vmatpush2.msra.mxu0 %v8516_v14  ;;  %v4849_v14 = vld [vmem:[#allocation10 + $0x50] sm:$0xff] }
0x17c8   :  { %4586 = vmatprep.subr.mxu0 %v8519_v2  ;;  %v4848_v2 = vld [vmem:[#allocation10 + $0x48] sm:$0xff] }
0x17c9   :  { %4587 = vmatpush2.msra.mxu0 %v8522_v39  ;;  %v4847_v39 = vld [vmem:[#allocation10 + $0x40] sm:$0xff] }
0x17ca   :  { %4588 = vmatprep.subr.mxu0 %v8525_v8  ;;  %v4846_v8 = vld [vmem:[#allocation10 + $0x38] sm:$0xff] }
0x17cb   :  { %4589 = vmatpush2.msra.mxu0 %v8528_v15  ;;  %v4845_v15 = vld [vmem:[#allocation10 + $0x30] sm:$0xff] }
0x17cc   :  { %4590 = vmatprep.subr.mxu0 %v8531_v28  ;;  %v4844_v28 = vld [vmem:[#allocation10 + $0x28] sm:$0xff] }
0x17cd   :  { %4591 = vmatpush2.msra.mxu0 %v8534_v29  ;;  %v4843_v29 = vld [vmem:[#allocation10 + $0x20] sm:$0xff] }
0x17ce   :  { %4592 = vmatprep.subr.mxu0 %v8537_v30  ;;  %v4663_v30 = vld [vmem:[#allocation9 + $0xf8] sm:$0xff] }
0x17cf   :  { %4593 = vmatpush2.msra.mxu0 %v8540_v11  ;;  %4696 = vmatprep.subr.mxu1 %v4663_v30  ;;  %v4662_v11 = vld [vmem:[#allocation9 + $0xf0] sm:$0xff] }
0x17d0   :  { %4594 = vmatprep.subr.mxu0 %v8596_v25  ;;  %v4842_v25 = vld [vmem:[#allocation10 + $0x18] sm:$0xff]  ;;  %v4857_v30 = vld [vmem:[#allocation10 + $0x90] sm:$0xff] }
0x17d1   :  { %4595 = vmatpush2.msra.mxu0 %v8599_v43  ;;  %v4841_v43 = vld [vmem:[#allocation10 + $0x10] sm:$0xff] }
0x17d2   :  { %4596 = vmatprep.subr.mxu0 %v8603_v44  ;;  %v4659_v44 = vld [vmem:[#allocation9 + $0xd8] sm:$0xff] }
0x17d3   :  { %4597 = vmatpush2.msra.mxu0 %v8607_v45  ;;  %v4658_v45 = vld [vmem:[#allocation9 + $0xd0] sm:$0xff] }
0x17d4   :  { %4598 = vmatprep.subr.mxu0 %v8611_v12  ;;  %v4657_v12 = vld [vmem:[#allocation9 + $0xc8] sm:$0xff] }
0x17d5   :  { %4599 = vmatpush2.msra.mxu0 %v8615_v17  ;;  %v4656_v17 = vld [vmem:[#allocation9 + $0xc0] sm:$0xff] }
0x17d6   :  { %4600 = vmatprep.subr.mxu0 %v8619_v27  ;;  %v4840_v27 = vld [vmem:[#allocation10 + $0x8] sm:$0xff] }
0x17d7   :  { %4601 = vmatpush2.msra.mxu0 %v9459_v36  ;;  %v4653_v36 = vld [vmem:[#allocation9 + $0xa8] sm:$0xff] }
0x17d8   :  { %4602 = vmatprep.subr.mxu0 %v9460_v9  ;;  %v4652_v9 = vld [vmem:[#allocation9 + $0xa0] sm:$0xff] }
0x17d9   :  { %4603 = vmatpush2.msra.mxu0 %v9461_v46  ;;  %v4870_v46 = vld [vmem:[#allocation10 + $0xf8] sm:$0xff] }
0x17da   :  { %4604 = vmatprep.subr.mxu0 %v9462_v33  ;;  %v4869_v33 = vld [vmem:[#allocation10 + $0xf0] sm:$0xff] }
0x17db   :  { %4605 = vmatpush2.msra.mxu0 %v9463_v37  ;;  %v4651_v37 = vld [vmem:[#allocation9 + $0x98] sm:$0xff] }
0x17dc   :  { %4606 = vmatprep.subr.mxu0 %v9464_v38  ;;  %v4650_v38 = vld [vmem:[#allocation9 + $0x90] sm:$0xff] }
0x17dd   :  { %4607 = vmatpush2.msra.mxu0 %v9465_v52  ;;  %v4649_v52 = vld [vmem:[#allocation9 + $0x88] sm:$0xff] }
0x17de   :  { %4608 = vmatprep.subr.mxu0 %v9466_v53  ;;  %v4648_v53 = vld [vmem:[#allocation9 + $0x80] sm:$0xff] }
0x17df   :  { %4609 = vmatpush2.msra.mxu0 %v9467_v54  ;;  %v4868_v54 = vld [vmem:[#allocation10 + $0xe8] sm:$0xff] }
0x17e0   :  { %4610 = vmatprep.subr.mxu0 %v9468_v34  ;;  %v4867_v34 = vld [vmem:[#allocation10 + $0xe0] sm:$0xff] }
0x17e1   :  { %4611 = vmatpush2.msra.mxu0 %v9469_v35  ;;  %v4647_v35 = vld [vmem:[#allocation9 + $0x78] sm:$0xff] }
0x17e2   :  { %4612 = vmatprep.subr.mxu0 %v9470_v40  ;;  %v4646_v40 = vld [vmem:[#allocation9 + $0x70] sm:$0xff] }
0x17e3   :  { %4613 = vmatpush2.msra.mxu0 %v8667_v51  ;;  %v4660_v51 = vld [vmem:[#allocation9 + $0xe0] sm:$0xff] }
0x17e4   :  { %4878 = vmatprep.subr.mxu0 %v5451_v5 }
0x1864   :  { %v4324_v58 = vpop.f32.mrf.mxu0 }
0x1865   :  { %v4329_v3 = vadd.f32 %v4324_v58, %v4192_v26  ;;  %v4866_v26 = vld [vmem:[#allocation10 + $0xd8] sm:$0xff] }
0x1866   :  { %v4326_v41 = vpop.f32.mrf.mxu0  ;;  %v4643_v58 = vld [vmem:[#allocation9 + $0x58] sm:$0xff] }
0x1867   :  { %v4330_v16 = vadd.f32 %v4326_v41, %v4193_v56  ;;  %v4865_v56 = vld [vmem:[#allocation10 + $0xd0] sm:$0xff]  ;;  %v4641_v41 = vld [vmem:[#allocation9 + $0x48] sm:$0xff] }
0x1869   :  { %5297 = vtanh.f32 %v4330_v16  ;;  %v4640_v16 = vld [vmem:[#allocation9 + $0x40] sm:$0xff] }
0x186a   :  { %5299 = vtanh.f32 %v4329_v3  ;;  %v4642_v3 = vld [vmem:[#allocation9 + $0x50] sm:$0xff] }
0x1876   :  { %v8750_v47 = vpop.eup %5297 }
0x1877   :  { %v8752_v4 = vpop.eup %5299  ;;  %4468 = vmatprep.mubr.f32.mxu1 %v8750_v47 }
0x1878   :  { %4469 = vmatmul.mubr.f32.vlgmr.msra.gmra.mxu1 %v8752_v4 }
0x1879   :  { %4697 = vmatpush1.msra.mxu1 %v4662_v11  ;;  %v4689_v11 = vld [vmem:[#allocation9 + $0x1c8] sm:$0xff] }
0x187a   :  { %4698 = vmatprep.subr.mxu1 %v4661_v18  ;;  %v4688_v18 = vld [vmem:[#allocation9 + $0x1c0] sm:$0xff] }
0x187b   :  { %4699 = vmatpush1.msra.mxu1 %v4660_v51  ;;  %v4856_v51 = vld [vmem:[#allocation10 + $0x88] sm:$0xff] }
0x187c   :  { %4700 = vmatprep.subr.mxu1 %v4659_v44  ;;  %v4855_v44 = vld [vmem:[#allocation10 + $0x80] sm:$0xff] }
0x187d   :  { %4701 = vmatpush1.msra.mxu1 %v4658_v45  ;;  %v4685_v45 = vld [vmem:[#allocation9 + $0x1a8] sm:$0xff] }
0x187e   :  { %4702 = vmatprep.subr.mxu1 %v4657_v12  ;;  %v4684_v12 = vld [vmem:[#allocation9 + $0x1a0] sm:$0xff] }
0x187f   :  { %4703 = vmatpush1.msra.mxu1 %v4656_v17  ;;  %v9472_v17 = vld [vmem:[#allocation36_spill] sm:$0xff] }
0x1880   :  { %4704 = vmatprep.subr.mxu1 %v4655_v31  ;;  %v4682_v31 = vld [vmem:[#allocation9 + $0x190] sm:$0xff] }
0x1881   :  { %4705 = vmatpush1.msra.mxu1 %v4654_v32  ;;  %v4681_v32 = vld [vmem:[#allocation9 + $0x188] sm:$0xff] }
0x1882   :  { %4706 = vmatprep.subr.mxu1 %v4653_v36  ;;  %v4680_v36 = vld [vmem:[#allocation9 + $0x180] sm:$0xff] }
0x1883   :  { %4707 = vmatpush1.msra.mxu1 %v4652_v9  ;;  %v9474_v9 = vld [vmem:[#allocation21_spill] sm:$0xff] }
0x1884   :  { %4708 = vmatprep.subr.mxu1 %v4651_v37  ;;  %v4677_v37 = vld [vmem:[#allocation9 + $0x168] sm:$0xff] }
0x1885   :  { %4709 = vmatpush1.msra.mxu1 %v4650_v38  ;;  %v4676_v38 = vld [vmem:[#allocation9 + $0x160] sm:$0xff] }
0x1886   :  { %4710 = vmatprep.subr.mxu1 %v4649_v52  ;;  %v4675_v52 = vld [vmem:[#allocation9 + $0x158] sm:$0xff] }
0x1887   :  { %4711 = vmatpush1.msra.mxu1 %v4648_v53  ;;  %v4674_v53 = vld [vmem:[#allocation9 + $0x150] sm:$0xff] }
0x1888   :  { %4712 = vmatprep.subr.mxu1 %v4647_v35  ;;  %v9477_v35 = vld [vmem:[#allocation39_spill] sm:$0xff] }
0x1889   :  { %4713 = vmatpush1.msra.mxu1 %v4646_v40  ;;  %v4672_v40 = vld [vmem:[#allocation9 + $0x140] sm:$0xff] }
0x188a   :  { %4714 = vmatprep.subr.mxu1 %v4645_v49  ;;  %v4671_v49 = vld [vmem:[#allocation9 + $0x138] sm:$0xff] }
0x188b   :  { %4715 = vmatpush1.msra.mxu1 %v4644_v50  ;;  %v4670_v50 = vld [vmem:[#allocation9 + $0x130] sm:$0xff] }
0x188c   :  { %4716 = vmatprep.subr.mxu1 %v4643_v58  ;;  %v9479_v58 = vld [vmem:[#allocation37_spill] sm:$0xff] }
0x188d   :  { %4717 = vmatpush1.msra.mxu1 %v4642_v3  ;;  %v4668_v3 = vld [vmem:[#allocation9 + $0x120] sm:$0xff] }
0x188e   :  { %4718 = vmatprep.subr.mxu1 %v4641_v41  ;;  %v4667_v41 = vld [vmem:[#allocation9 + $0x118] sm:$0xff] }
0x188f   :  { %4719 = vmatpush1.msra.mxu1 %v4640_v16  ;;  %v4666_v16 = vld [vmem:[#allocation9 + $0x110] sm:$0xff] }
0x1938   :  { %v4470_v0 = vpop.f32.mrf.mxu1 }
0x1939   :  { %v4475_v20 = vadd.f32 %v4470_v0, %v4338_v59  ;;  %v4639_v59 = vld [vmem:[#allocation9 + $0x38] sm:$0xff]  ;;  %v4637_v0 = vld [vmem:[#allocation9 + $0x28] sm:$0xff] }
0x193a   :  { %v4472_v21 = vpop.f32.mrf.mxu1  ;;  %4720 = vmatprep.subr.mxu1 %v4639_v59  ;;  %v9481_v59 = vld [vmem:[#allocation24_spill] sm:$0xff] }
0x193b   :  { %v4476_v22 = vadd.f32 %v4472_v21, %v4339_v24  ;;  %v4638_v24 = vld [vmem:[#allocation9 + $0x30] sm:$0xff]  ;;  %v4862_v21 = vld [vmem:[#allocation10 + $0xb8] sm:$0xff] }
0x193c   :  { %4721 = vmatpush1.msra.mxu1 %v4638_v24  ;;  %v4664_v24 = vld [vmem:[#allocation9 + $0x100] sm:$0xff] }
0x193d   :  { %5301 = vtanh.f32 %v4476_v22  ;;  %4722 = vmatprep.subr.mxu1 %v4637_v0  ;;  %v4861_v22 = vld [vmem:[#allocation10 + $0xb0] sm:$0xff]  ;;  %v9482_v0 = vld [vmem:[#allocation25_spill] sm:$0xff] }
0x193e   :  { %5303 = vtanh.f32 %v4475_v20  ;;  %v4636_v20 = vld [vmem:[#allocation9 + $0x20] sm:$0xff] }
0x193f   :  { %4723 = vmatpush1.msra.mxu1 %v4636_v20  ;;  %v9483_v20 = vld [vmem:[#allocation26_spill] sm:$0xff] }
0x194a   :  { %v8759_v60 = vpop.eup %5301 }
0x194b   :  { %v8761_v1 = vpop.eup %5303  ;;  %4614 = vmatprep.mubr.f32.mxu0 %v8759_v60 }
0x194c   :  { %4615 = vmatmul.mubr.f32.vlgmr.msra.gmra.mxu0 %v8761_v1 }
0x194d   :  { %4879 = vmatpush1.msra.mxu0 %v4854_v62  ;;  %4942 = vmatprep.mubr.f32.mxu0 %v9471_v13  ;;  %v4635_v62 = vld [vmem:[#allocation9 + $0x18] sm:$0xff]  ;;  %v4633_v13 = vld [vmem:[#allocation9 + $0x8] sm:$0xff] }
0x194e   :  { %4880 = vmatprep.subr.mxu0 %v5451_v5  ;;  %4724 = vmatprep.subr.mxu1 %v4635_v62  ;;  %v9486_v62 = vld [vmem:[#allocation48_spill] sm:$0xff] }
0x194f   :  { %4881 = vmatpush1.msra.mxu0 %v4853_v19  ;;  %v4634_v19 = vld [vmem:[#allocation9 + $0x10] sm:$0xff] }
0x1950   :  { %4882 = vmatprep.subr.mxu0 %v5451_v5  ;;  %4725 = vmatpush1.msra.mxu1 %v4634_v19  ;;  %v9487_v19 = vld [vmem:[#allocation45_spill] sm:$0xff] }
0x1951   :  { %4883 = vmatpush1.msra.mxu0 %v4852_v48  ;;  %v4632_v48 = vld [vmem:[#allocation9] sm:$0xff]  ;;  %4726 = vmatprep.subr.mxu1 %v4633_v13 }
0x1952   :  { %4884 = vmatprep.subr.mxu0 %v5451_v5  ;;  %4727 = vmatpush1.msra.mxu1 %v4632_v48  ;;  %v9488_v13 = vld [vmem:[#allocation46_spill] sm:$0xff]  ;;  %v9489_v48 = vld [vmem:[#allocation28_spill] sm:$0xff] }
0x1953   :  { %4885 = vmatpush1.msra.mxu0 %v4851_v23  ;;  %v4860_v23 = vld [vmem:[#allocation10 + $0xa8] sm:$0xff] }
0x1954   :  { %4886 = vmatprep.subr.mxu0 %v5451_v5 }
0x1955   :  { %4887 = vmatpush1.msra.mxu0 %v4850_v10  ;;  %v4859_v10 = vld [vmem:[#allocation10 + $0xa0] sm:$0xff] }
0x1956   :  { %4888 = vmatprep.subr.mxu0 %v5451_v5 }
0x1957   :  { %4889 = vmatpush1.msra.mxu0 %v4849_v14  ;;  %v4695_v14 = vld [vmem:[#allocation9 + $0x1f8] sm:$0xff] }
0x1958   :  { %4890 = vmatprep.subr.mxu0 %v5451_v5  ;;  %4728 = vmatprep.subr.mxu1 %v4695_v14  ;;  %v9492_v14 = vld [vmem:[#allocation31_spill] sm:$0xff] }
0x1959   :  { %4891 = vmatpush1.msra.mxu0 %v4848_v2  ;;  %v4694_v2 = vld [vmem:[#allocation9 + $0x1f0] sm:$0xff] }
0x195a   :  { %4892 = vmatprep.subr.mxu0 %v5451_v5  ;;  %4729 = vmatpush2.msra.mxu1 %v4694_v2  ;;  %v9493_v2 = vld [vmem:[#allocation55_spill] sm:$0xff] }
0x195b   :  { %4893 = vmatpush1.msra.mxu0 %v4847_v39  ;;  %v4693_v39 = vld [vmem:[#allocation9 + $0x1e8] sm:$0xff] }
0x195c   :  { %4894 = vmatprep.subr.mxu0 %v5451_v5  ;;  %4730 = vmatprep.subr.mxu1 %v4693_v39  ;;  %v9494_v39 = vld [vmem:[#allocation56_spill] sm:$0xff] }
0x195d   :  { %4895 = vmatpush1.msra.mxu0 %v4846_v8  ;;  %v4692_v8 = vld [vmem:[#allocation9 + $0x1e0] sm:$0xff] }
0x195e   :  { %4896 = vmatprep.subr.mxu0 %v5451_v5  ;;  %4731 = vmatpush2.msra.mxu1 %v4692_v8  ;;  %v9495_v8 = vld [vmem:[#allocation53_spill] sm:$0xff] }
0x195f   :  { %4897 = vmatpush1.msra.mxu0 %v4845_v15  ;;  %v4858_v15 = vld [vmem:[#allocation10 + $0x98] sm:$0xff] }
0x1960   :  { %4898 = vmatprep.subr.mxu0 %v5451_v5 }
0x1961   :  { %4899 = vmatpush1.msra.mxu0 %v4844_v28  ;;  %v4691_v28 = vld [vmem:[#allocation9 + $0x1d8] sm:$0xff] }
0x1962   :  { %4900 = vmatprep.subr.mxu0 %v5451_v5  ;;  %4732 = vmatprep.subr.mxu1 %v4691_v28  ;;  %v9497_v28 = vld [vmem:[#allocation32_spill] sm:$0xff] }
0x1963   :  { %4901 = vmatpush1.msra.mxu0 %v4843_v29  ;;  %v4690_v29 = vld [vmem:[#allocation9 + $0x1d0] sm:$0xff] }
0x1964   :  { %4902 = vmatprep.subr.mxu0 %v5451_v5  ;;  %4733 = vmatpush2.msra.mxu1 %v4690_v29  ;;  %v9498_v29 = vld [vmem:[#allocation33_spill] sm:$0xff] }
0x1965   :  { %4903 = vmatpush1.msra.mxu0 %v4842_v25  ;;  %v4687_v25 = vld [vmem:[#allocation9 + $0x1b8] sm:$0xff]  ;;  %4734 = vmatprep.subr.mxu1 %v4689_v11 }
0x1966   :  { %4904 = vmatprep.subr.mxu0 %v5451_v5  ;;  %4735 = vmatpush2.msra.mxu1 %v4688_v18  ;;  %v9500_v11 = vld [vmem:[#allocation41_spill] sm:$0xff]  ;;  %v9501_v18 = vld [vmem:[#allocation63_spill] sm:$0xff] }
0x1967   :  { %4905 = vmatpush1.msra.mxu0 %v4841_v43  ;;  %v4686_v43 = vld [vmem:[#allocation9 + $0x1b0] sm:$0xff]  ;;  %4736 = vmatprep.subr.mxu1 %v4687_v25  ;;  %v9503_v25 = vld [vmem:[#allocation61_spill] sm:$0xff] }
0x1968   :  { %4906 = vmatprep.subr.mxu0 %v5451_v5  ;;  %4737 = vmatpush2.msra.mxu1 %v4686_v43  ;;  %v9504_v43 = vld [vmem:[#allocation62_spill] sm:$0xff] }
0x1969   :  { %4907 = vmatpush1.msra.mxu0 %v4840_v27  ;;  %4738 = vmatprep.subr.mxu1 %v4685_v45  ;;  %v4683_v27 = vld [vmem:[#allocation9 + $0x198] sm:$0xff]  ;;  %v9506_v45 = vld [vmem:[#allocation43_spill] sm:$0xff] }
0x196a   :  { %4908 = vmatprep.subr.mxu0 %v5451_v5  ;;  %4739 = vmatpush2.msra.mxu1 %v4684_v12  ;;  %v9507_v12 = vld [vmem:[#allocation44_spill] sm:$0xff] }
0x196b   :  { %4909 = vmatpush1.msra.mxu0 %v4839_v55  ;;  %v9473_v55 = vld [vmem:[#allocation20_spill] sm:$0xff]  ;;  %4740 = vmatprep.subr.mxu1 %v4683_v27  ;;  %v9509_v27 = vld [vmem:[#allocation71_spill] sm:$0xff] }
0x196c   :  { %4910 = vmatprep.subr.mxu0 %v5451_v5  ;;  %4741 = vmatpush2.msra.mxu1 %v4682_v31  ;;  %v9511_v31 = vld [vmem:[#allocation69_spill] sm:$0xff] }
0x196d   :  { %4911 = vmatpush2.msra.mxu0 %v4870_v46  ;;  %4742 = vmatprep.subr.mxu1 %v4681_v32  ;;  %v4679_v46 = vld [vmem:[#allocation9 + $0x178] sm:$0xff]  ;;  %v9512_v32 = vld [vmem:[#allocation70_spill] sm:$0xff] }
0x196e   :  { %4912 = vmatprep.subr.mxu0 %v5451_v5  ;;  %4743 = vmatpush2.msra.mxu1 %v4680_v36  ;;  %v9513_v36 = vld [vmem:[#allocation50_spill] sm:$0xff] }
0x196f   :  { %4913 = vmatpush2.msra.mxu0 %v4869_v33  ;;  %4744 = vmatprep.subr.mxu1 %v4679_v46  ;;  %v4678_v33 = vld [vmem:[#allocation9 + $0x170] sm:$0xff] }
0x1970   :  { %4914 = vmatprep.subr.mxu0 %v5451_v5  ;;  %4745 = vmatpush2.msra.mxu1 %v4678_v33  ;;  %v9515_v46 = vld [vmem:[#allocation52_spill] sm:$0xff]  ;;  %v9517_v33 = vld [vmem:[#allocation79_spill] sm:$0xff] }
0x1971   :  { %4915 = vmatpush2.msra.mxu0 %v4868_v54  ;;  %4746 = vmatprep.subr.mxu1 %v4677_v37  ;;  %v9476_v54 = vld [vmem:[#allocation23_spill] sm:$0xff]  ;;  %v9518_v37 = vld [vmem:[#allocation80_spill] sm:$0xff] }
0x1972   :  { %4916 = vmatprep.subr.mxu0 %v5451_v5  ;;  %4747 = vmatpush2.msra.mxu1 %v4676_v38  ;;  %v9519_v38 = vld [vmem:[#allocation77_spill] sm:$0xff] }
0x1973   :  { %4917 = vmatpush2.msra.mxu0 %v4867_v34  ;;  %v4673_v34 = vld [vmem:[#allocation9 + $0x148] sm:$0xff]  ;;  %4748 = vmatprep.subr.mxu1 %v4675_v52  ;;  %v9520_v52 = vld [vmem:[#allocation78_spill] sm:$0xff] }
0x1974   :  { %4918 = vmatprep.subr.mxu0 %v5451_v5  ;;  %4749 = vmatpush2.msra.mxu1 %v4674_v53  ;;  %v9521_v53 = vld [vmem:[#allocation58_spill] sm:$0xff] }
0x1975   :  { %4919 = vmatpush2.msra.mxu0 %v4866_v26  ;;  %4750 = vmatprep.subr.mxu1 %v4673_v34  ;;  %v9478_v26 = vld [vmem:[#allocation40_spill] sm:$0xff] }
0x1976   :  { %4920 = vmatprep.subr.mxu0 %v5451_v5  ;;  %4751 = vmatpush2.msra.mxu1 %v4672_v40  ;;  %v9523_v34 = vld [vmem:[#allocation60_spill] sm:$0xff] }
0x1977   :  { %4921 = vmatpush2.msra.mxu0 %v4865_v56  ;;  %v4669_v56 = vld [vmem:[#allocation9 + $0x128] sm:$0xff]  ;;  %4752 = vmatprep.subr.mxu1 %v4671_v49  ;;  %v4482_v40 = vld [vmem:[#allocation4 + $0x1e0] sm:$0xff]  ;;  %v4483_v49 = vld [vmem:[#allocation4 + $0x1e8] sm:$0xff] }
0x1978   :  { %4922 = vmatprep.subr.mxu0 %v5451_v5  ;;  %4753 = vmatpush2.msra.mxu1 %v4670_v50  ;;  %v4484_v50 = vadd.f32 %v4482_v40, %v5833_v57 }
0x1979   :  { %4923 = vmatpush2.msra.mxu0 %v4864_v6  ;;  %4754 = vmatprep.subr.mxu1 %v4669_v56  ;;  %v9480_v6 = vld [vmem:[#allocation38_spill] sm:$0xff] }
0x197a   :  { %4924 = vmatprep.subr.mxu0 %v5451_v5  ;;  %4755 = vmatpush2.msra.mxu1 %v4668_v3 }
0x197b   :  { %4925 = vmatpush2.msra.mxu0 %v4863_v7  ;;  %v4665_v7 = vld [vmem:[#allocation9 + $0x108] sm:$0xff]  ;;  %4756 = vmatprep.subr.mxu1 %v4667_v41 }
0x197c   :  { %4926 = vmatprep.subr.mxu0 %v5451_v5  ;;  %4757 = vmatpush2.msra.mxu1 %v4666_v16 }
0x197d   :  { %4927 = vmatpush2.msra.mxu0 %v4862_v21  ;;  %4758 = vmatprep.subr.mxu1 %v4665_v7  ;;  %v9484_v21 = vld [vmem:[#allocation27_spill] sm:$0xff] }
0x197e   :  { %4928 = vmatprep.subr.mxu0 %v5451_v5  ;;  %4759 = vmatpush2.msra.mxu1 %v4664_v24 }
0x197f   :  { %4929 = vmatpush2.msra.mxu0 %v4861_v22  ;;  %v9485_v22 = vld [vmem:[#allocation47_spill] sm:$0xff] }
0x1980   :  { %4930 = vmatprep.subr.mxu0 %v5451_v5 }
0x1981   :  { %4931 = vmatpush2.msra.mxu0 %v4860_v23  ;;  %v9490_v23 = vld [vmem:[#allocation29_spill] sm:$0xff] }
0x1982   :  { %4932 = vmatprep.subr.mxu0 %v5451_v5 }
0x1983   :  { %4933 = vmatpush2.msra.mxu0 %v4859_v10  ;;  %v9491_v10 = vld [vmem:[#allocation30_spill] sm:$0xff] }
0x1984   :  { %4934 = vmatprep.subr.mxu0 %v5451_v5 }
0x1985   :  { %4935 = vmatpush2.msra.mxu0 %v4858_v15  ;;  %v9496_v15 = vld [vmem:[#allocation54_spill] sm:$0xff] }
0x1986   :  { %4936 = vmatprep.subr.mxu0 %v5451_v5 }
0x1987   :  { %4937 = vmatpush2.msra.mxu0 %v4857_v30  ;;  %v9499_v30 = vld [vmem:[#allocation34_spill] sm:$0xff] }
0x1988   :  { %4938 = vmatprep.subr.mxu0 %v5451_v5 }
0x1989   :  { %4939 = vmatpush2.msra.mxu0 %v4856_v51  ;;  %v9502_v51 = vld [vmem:[#allocation64_spill] sm:$0xff] }
0x198a   :  { %4940 = vmatprep.subr.mxu0 %v5451_v5  ;;  %v9475_v5 = vld [vmem:[#allocation22_spill] sm:$0xff] }
0x198b   :  { %4941 = vmatpush2.msra.mxu0 %v4855_v44  ;;  %v9505_v44 = vld [vmem:[#allocation42_spill] sm:$0xff] }
0x198c   :  { %4943 = vmatmul.mubr.f32.vlgmr.msra.gmra.mxu0 %v9472_v17  ;;  %v9508_v17 = vld [vmem:[#allocation49_spill] sm:$0xff] }
0x198d   :  { %4947 = vmatprep.mubr.f32.mxu0 %v9473_v55  ;;  %v9510_v55 = vld [vmem:[#allocation72_spill] sm:$0xff] }
0x1990   :  { %4948 = vmatmul.mubr.f32.gmra.mxu0 %v9474_v9  ;;  %v9514_v9 = vld [vmem:[#allocation51_spill] sm:$0xff] }
0x1991   :  { %4952 = vmatprep.mubr.f32.mxu0 %v9475_v5  ;;  %v9516_v5 = vld [vmem:[#allocation57_spill] sm:$0xff] }
0x1994   :  { %4953 = vmatmul.mubr.f32.gmra.mxu0 %v9476_v54  ;;  %v9522_v54 = vld [vmem:[#allocation59_spill] sm:$0xff] }
0x1995   :  { %4957 = vmatprep.mubr.f32.mxu0 %v9477_v35  ;;  %v9524_v35 = vld [vmem:[#allocation65_spill] sm:$0xff] }
0x1998   :  { %4958 = vmatmul.mubr.f32.gmra.mxu0 %v9478_v26  ;;  %v4485_v26 = vadd.f32 %v4483_v49, %v5835_v61 }
0x1999   :  { %4962 = vmatprep.mubr.f32.mxu0 %v9479_v58 }
0x199c   :  { %4963 = vmatmul.mubr.f32.gmra.mxu0 %v9480_v6 }
0x199d   :  { %4967 = vmatprep.mubr.f32.mxu0 %v9481_v59 }
0x19a0   :  { %4968 = vmatmul.mubr.f32.gmra.mxu0 %v9482_v0 }
0x19a1   :  { %4972 = vmatprep.mubr.f32.mxu0 %v9483_v20 }
0x19a4   :  { %4973 = vmatmul.mubr.f32.gmra.mxu0 %v9484_v21 }
0x19a5   :  { %4977 = vmatprep.mubr.f32.mxu0 %v9485_v22 }
0x19a8   :  { %4978 = vmatmul.mubr.f32.gmra.mxu0 %v9486_v62 }
0x19a9   :  { %4982 = vmatprep.mubr.f32.mxu0 %v9487_v19 }
0x19ac   :  { %4983 = vmatmul.mubr.f32.gmra.mxu0 %v9488_v13 }
0x19ad   :  { %4987 = vmatprep.mubr.f32.mxu0 %v9489_v48 }
0x19b0   :  { %4988 = vmatmul.mubr.f32.gmra.mxu0 %v9490_v23 }
0x19b1   :  { %4992 = vmatprep.mubr.f32.mxu0 %v9491_v10 }
0x19b4   :  { %4993 = vmatmul.mubr.f32.gmra.mxu0 %v9492_v14 }
0x19b5   :  { %4997 = vmatprep.mubr.f32.mxu0 %v9493_v2 }
0x19b8   :  { %4998 = vmatmul.mubr.f32.gmra.mxu0 %v9494_v39 }
0x19b9   :  { %5002 = vmatprep.mubr.f32.mxu0 %v9495_v8 }
0x19bc   :  { %5003 = vmatmul.mubr.f32.gmra.mxu0 %v9496_v15 }
0x19bd   :  { %5007 = vmatprep.mubr.f32.mxu0 %v9497_v28 }
0x19c0   :  { %5008 = vmatmul.mubr.f32.gmra.mxu0 %v9498_v29 }
0x19c1   :  { %5012 = vmatprep.mubr.f32.mxu0 %v9499_v30 }
0x19c4   :  { %5013 = vmatmul.mubr.f32.gmra.mxu0 %v9500_v11 }
0x19c5   :  { %5017 = vmatprep.mubr.f32.mxu0 %v9501_v18 }
0x19c8   :  { %5018 = vmatmul.mubr.f32.gmra.mxu0 %v9502_v51 }
0x19c9   :  { %5022 = vmatprep.mubr.f32.mxu0 %v9503_v25 }
0x19cc   :  { %5023 = vmatmul.mubr.f32.gmra.mxu0 %v9504_v43 }
0x19cd   :  { %5027 = vmatprep.mubr.f32.mxu0 %v9505_v44 }
0x19d0   :  { %5028 = vmatmul.mubr.f32.gmra.mxu0 %v9506_v45 }
0x19d1   :  { %5032 = vmatprep.mubr.f32.mxu0 %v9507_v12 }
0x19d4   :  { %5033 = vmatmul.mubr.f32.gmra.mxu0 %v9508_v17 }
0x19d5   :  { %5037 = vmatprep.mubr.f32.mxu0 %v9509_v27 }
0x19d8   :  { %5038 = vmatmul.mubr.f32.gmra.mxu0 %v9510_v55 }
0x19d9   :  { %5042 = vmatprep.mubr.f32.mxu0 %v9511_v31 }
0x19dc   :  { %5043 = vmatmul.mubr.f32.gmra.mxu0 %v9512_v32 }
0x19dd   :  { %5047 = vmatprep.mubr.f32.mxu0 %v9513_v36 }
0x19e0   :  { %5048 = vmatmul.mubr.f32.gmra.mxu0 %v9514_v9 }
0x19e1   :  { %5052 = vmatprep.mubr.f32.mxu0 %v9515_v46 }
0x19e4   :  { %5053 = vmatmul.mubr.f32.gmra.mxu0 %v9516_v5 }
0x19e5   :  { %5057 = vmatprep.mubr.f32.mxu0 %v9517_v33 }
0x19e8   :  { %5058 = vmatmul.mubr.f32.gmra.mxu0 %v9518_v37 }
0x19e9   :  { %5062 = vmatprep.mubr.f32.mxu0 %v9519_v38 }
0x19ec   :  { %5063 = vmatmul.mubr.f32.gmra.mxu0 %v9520_v52 }
0x19ed   :  { %5067 = vmatprep.mubr.f32.mxu0 %v9521_v53 }
0x19f0   :  { %5068 = vmatmul.mubr.f32.gmra.mxu0 %v9522_v54 }
0x19f1   :  { %5072 = vmatprep.mubr.f32.mxu0 %v9523_v34 }
0x19f4   :  { %5073 = vmatmul.mubr.f32.gmra.mxu0 %v9524_v35 }
0x19f5   :  { %5077 = vmatprep.mubr.f32.mxu0 %v8679_v63 }
0x19f8   :  { %5078 = vmatmul.mubr.f32.gmra.mxu0 %v8681_v42 }
0x19f9   :  { %5082 = vmatprep.mubr.f32.mxu0 %v8750_v47 }
0x19fc   :  { %5083 = vmatmul.mubr.f32.gmra.mxu0 %v8752_v4  ;;  %v8861_v4 = vld [vmem:[%s8911_s5] ss:$0 sm:$0xff]  ;;  %s5452_s5 = smov [#allocation13]  }
0x19fd   :  { %5087 = vmatprep.mubr.f32.mxu0 %v8759_v60  ;;  %s5158_s24 = sshll.u32 %s5452_s5, 4  ;;  %s5159_s24 = int_to_ptr.vmem [resolvable:$true] %s5158_s24 }
0x19fe   :  { %s5393_s25 = scalar_lea.vmem %s5159_s24, 256  ;;  %p5398_p7 = scmp.lt.s32.totalorder %s5159_s24, %s5159_s24 }
0x19ff   :  { %p5394_p6 = scmp.ne.s32.totalorder %s5159_s24, %s5393_s25  ;;  %p5399_p8 = scmp.lt.s32.totalorder %s5393_s25, %s5393_s25 }
0x1a00   :  { %5088 = vmatmul.mubr.f32.gmra.mxu0 %v8761_v1 }
0x1a01   :  { %p5400_p9 = por %p5399_p8, %p5398_p7 }
0x1a03   :  { %p5401_p10 = pnand %p5400_p9, %p5394_p6 }
0x1a0c   :  { %v4616_v56 = vpop.f32.mrf.mxu0 }
0x1a0d   :  { %v4621_v58 = vadd.f32 %v4616_v56, %v4484_v50 }
0x1a0e   :  { %v4618_v3 = vpop.f32.mrf.mxu0 }
0x1a0f   :  { %v4622_v63 = vadd.f32 %v4618_v3, %v4485_v26 }
0x1a11   :  { %5305 = vtanh.f32 %v4622_v63 }
0x1a12   :  { %5307 = vtanh.f32 %v4621_v58 }
0x1a1e   :  { %v5306_v42 = vpop.eup %5305 }
0x1a1f   :  { %v5308_v47 = vpop.eup %5307  ;;  %4760 = vmatprep.mubr.f32.mxu1 %v5306_v42  ;;  %5092 = vmatprep.mubr.f32.mxu0 %v5306_v42 }
0x1a20   :  { %4761 = vmatmul.mubr.f32.vlgmr.msra.gmra.mxu1 %v5308_v47  ;;  %5093 = vmatmul.mubr.f32.gmra.mxu0 %v5308_v47 }
0x1a4c   :  { %v4944_v60 = vpop.f32.mrf.mxu0 }
0x1a4d   :  { %v4945_v1 = vadd.f32 %v8861_v4, %v4944_v60 }
0x1a4e   :  { %v4946_v41 = vpop.f32.mrf.mxu0 }
0x1a4f   :  { %5103 = vst [vmem:[#allocation12] sm:$0xff] %v4945_v1 }
0x1a50   :  { %v4949_v16 = vpop.f32.mrf.mxu0 }
0x1a51   :  { %v4950_v6 = vadd.f32 %v8861_v4, %v4949_v16 }
0x1a52   :  { %v4951_v7 = vpop.f32.mrf.mxu0 }
0x1a53   :  { %5104 = vst [vmem:[#allocation12 + $0x8] sm:$0xff] %v4950_v6 }
0x1a54   :  { %v4954_v59 = vpop.f32.mrf.mxu0 }
0x1a55   :  { %v4955_v24 = vadd.f32 %v8861_v4, %v4954_v59 }
0x1a56   :  { %v4956_v0 = vpop.f32.mrf.mxu0 }
0x1a57   :  { %5105 = vst [vmem:[#allocation12 + $0x10] sm:$0xff] %v4955_v24 }
0x1a58   :  { %v4959_v20 = vpop.f32.mrf.mxu0 }
0x1a59   :  { %v4960_v21 = vadd.f32 %v8861_v4, %v4959_v20 }
0x1a5a   :  { %v4961_v22 = vpop.f32.mrf.mxu0 }
0x1a5b   :  { %5106 = vst [vmem:[#allocation12 + $0x18] sm:$0xff] %v4960_v21 }
0x1a5c   :  { %v4964_v62 = vpop.f32.mrf.mxu0 }
0x1a5d   :  { %v4965_v19 = vadd.f32 %v8861_v4, %v4964_v62 }
0x1a5e   :  { %v4966_v13 = vpop.f32.mrf.mxu0 }
0x1a5f   :  { %5107 = vst [vmem:[#allocation12 + $0x20] sm:$0xff] %v4965_v19 }
0x1a60   :  { %v4969_v48 = vpop.f32.mrf.mxu0 }
0x1a61   :  { %v4970_v23 = vadd.f32 %v8861_v4, %v4969_v48 }
0x1a62   :  { %v4971_v10 = vpop.f32.mrf.mxu0 }
0x1a63   :  { %5108 = vst [vmem:[#allocation12 + $0x28] sm:$0xff] %v4970_v23 }
0x1a64   :  { %v4974_v14 = vpop.f32.mrf.mxu0 }
0x1a65   :  { %v4975_v2 = vadd.f32 %v8861_v4, %v4974_v14 }
0x1a66   :  { %v4976_v39 = vpop.f32.mrf.mxu0 }
0x1a67   :  { %5109 = vst [vmem:[#allocation12 + $0x30] sm:$0xff] %v4975_v2 }
0x1a68   :  { %v4979_v8 = vpop.f32.mrf.mxu0 }
0x1a69   :  { %v4980_v15 = vadd.f32 %v8861_v4, %v4979_v8 }
0x1a6a   :  { %v4981_v28 = vpop.f32.mrf.mxu0 }
0x1a6b   :  { %5110 = vst [vmem:[#allocation12 + $0x38] sm:$0xff] %v4980_v15 }
0x1a6c   :  { %v4984_v29 = vpop.f32.mrf.mxu0 }
0x1a6d   :  { %v4985_v30 = vadd.f32 %v8861_v4, %v4984_v29 }
0x1a6e   :  { %v4986_v11 = vpop.f32.mrf.mxu0 }
0x1a6f   :  { %5111 = vst [vmem:[#allocation12 + $0x40] sm:$0xff] %v4985_v30 }
0x1a70   :  { %v4989_v18 = vpop.f32.mrf.mxu0 }
0x1a71   :  { %v4990_v51 = vadd.f32 %v8861_v4, %v4989_v18 }
0x1a72   :  { %v4991_v25 = vpop.f32.mrf.mxu0 }
0x1a73   :  { %5112 = vst [vmem:[#allocation12 + $0x48] sm:$0xff] %v4990_v51  ;;  %v4628_v25 = vld [vmem:[#allocation4 + $0x1f0] sm:$0xff] }
0x1a74   :  { %v4994_v43 = vpop.f32.mrf.mxu0 }
0x1a75   :  { %v4995_v44 = vadd.f32 %v8861_v4, %v4994_v43  ;;  %v4629_v43 = vld [vmem:[#allocation4 + $0x1f8] sm:$0xff] }
0x1a76   :  { %v4996_v45 = vpop.f32.mrf.mxu0 }
0x1a77   :  { %5113 = vst [vmem:[#allocation12 + $0x50] sm:$0xff] %v4995_v44  ;;  %v4630_v44 = vadd.f32 %v4628_v25, %v5833_v57  ;;  %v4631_v45 = vadd.f32 %v4629_v43, %v5835_v61 }
0x1a78   :  { %v4999_v12 = vpop.f32.mrf.mxu0 }
0x1a79   :  { %v5000_v17 = vadd.f32 %v8861_v4, %v4999_v12 }
0x1a7a   :  { %v5001_v27 = vpop.f32.mrf.mxu0 }
0x1a7b   :  { %5114 = vst [vmem:[#allocation12 + $0x58] sm:$0xff] %v5000_v17 }
0x1a7c   :  { %v5004_v55 = vpop.f32.mrf.mxu0 }
0x1a7d   :  { %v5005_v31 = vadd.f32 %v8861_v4, %v5004_v55 }
0x1a7e   :  { %v5006_v32 = vpop.f32.mrf.mxu0 }
0x1a7f   :  { %5115 = vst [vmem:[#allocation12 + $0x60] sm:$0xff] %v5005_v31 }
0x1a80   :  { %v5009_v36 = vpop.f32.mrf.mxu0 }
0x1a81   :  { %v5010_v9 = vadd.f32 %v8861_v4, %v5009_v36 }
0x1a82   :  { %v5011_v46 = vpop.f32.mrf.mxu0 }
0x1a83   :  { %5116 = vst [vmem:[#allocation12 + $0x68] sm:$0xff] %v5010_v9 }
0x1a84   :  { %v5014_v5 = vpop.f32.mrf.mxu0 }
0x1a85   :  { %v5015_v33 = vadd.f32 %v8861_v4, %v5014_v5 }
0x1a86   :  { %v5016_v37 = vpop.f32.mrf.mxu0 }
0x1a87   :  { %5117 = vst [vmem:[#allocation12 + $0x70] sm:$0xff] %v5015_v33 }
0x1a88   :  { %v5019_v38 = vpop.f32.mrf.mxu0 }
0x1a89   :  { %v5020_v52 = vadd.f32 %v8861_v4, %v5019_v38 }
0x1a8a   :  { %v5021_v53 = vpop.f32.mrf.mxu0 }
0x1a8b   :  { %5118 = vst [vmem:[#allocation12 + $0x78] sm:$0xff] %v5020_v52 }
0x1a8c   :  { %v5024_v54 = vpop.f32.mrf.mxu0 }
0x1a8d   :  { %v5025_v34 = vadd.f32 %v8861_v4, %v5024_v54 }
0x1a8e   :  { %v5026_v35 = vpop.f32.mrf.mxu0 }
0x1a8f   :  { %5119 = vst [vmem:[#allocation12 + $0x80] sm:$0xff] %v5025_v34 }
0x1a90   :  { %v5029_v40 = vpop.f32.mrf.mxu0 }
0x1a91   :  { %v5030_v49 = vadd.f32 %v8861_v4, %v5029_v40 }
0x1a92   :  { %v5031_v50 = vpop.f32.mrf.mxu0 }
0x1a93   :  { %5120 = vst [vmem:[#allocation12 + $0x88] sm:$0xff] %v5030_v49 }
0x1a94   :  { %v5034_v26 = vpop.f32.mrf.mxu0 }
0x1a95   :  { %v5035_v56 = vadd.f32 %v8861_v4, %v5034_v26 }
0x1a96   :  { %v5036_v58 = vpop.f32.mrf.mxu0 }
0x1a97   :  { %5121 = vst [vmem:[#allocation12 + $0x90] sm:$0xff] %v5035_v56 }
0x1a98   :  { %v5039_v3 = vpop.f32.mrf.mxu0 }
0x1a99   :  { %v5040_v63 = vadd.f32 %v8861_v4, %v5039_v3 }
0x1a9a   :  { %v5041_v42 = vpop.f32.mrf.mxu0 }
0x1a9b   :  { %5122 = vst [vmem:[#allocation12 + $0x98] sm:$0xff] %v5040_v63 }
0x1a9c   :  { %v5044_v47 = vpop.f32.mrf.mxu0 }
0x1a9d   :  { %v5045_v60 = vadd.f32 %v8861_v4, %v5044_v47 }
0x1a9e   :  { %v5046_v1 = vpop.f32.mrf.mxu0 }
0x1a9f   :  { %5123 = vst [vmem:[#allocation12 + $0xa0] sm:$0xff] %v5045_v60 }
0x1aa0   :  { %v5049_v41 = vpop.f32.mrf.mxu0 }
0x1aa1   :  { %v5050_v16 = vadd.f32 %v8861_v4, %v5049_v41 }
0x1aa2   :  { %v5051_v6 = vpop.f32.mrf.mxu0 }
0x1aa3   :  { %5124 = vst [vmem:[#allocation12 + $0xa8] sm:$0xff] %v5050_v16 }
0x1aa4   :  { %v5054_v7 = vpop.f32.mrf.mxu0 }
0x1aa5   :  { %v5055_v59 = vadd.f32 %v8861_v4, %v5054_v7 }
0x1aa6   :  { %v5056_v24 = vpop.f32.mrf.mxu0 }
0x1aa7   :  { %5125 = vst [vmem:[#allocation12 + $0xb0] sm:$0xff] %v5055_v59 }
0x1aa8   :  { %v5059_v0 = vpop.f32.mrf.mxu0 }
0x1aa9   :  { %v5060_v20 = vadd.f32 %v8861_v4, %v5059_v0 }
0x1aaa   :  { %v5061_v21 = vpop.f32.mrf.mxu0 }
0x1aab   :  { %5126 = vst [vmem:[#allocation12 + $0xb8] sm:$0xff] %v5060_v20 }
0x1aac   :  { %v5064_v22 = vpop.f32.mrf.mxu0 }
0x1aad   :  { %v5065_v62 = vadd.f32 %v8861_v4, %v5064_v22 }
0x1aae   :  { %v5066_v19 = vpop.f32.mrf.mxu0 }
0x1aaf   :  { %5127 = vst [vmem:[#allocation12 + $0xc0] sm:$0xff] %v5065_v62 }
0x1ab0   :  { %v5069_v13 = vpop.f32.mrf.mxu0 }
0x1ab1   :  { %v5070_v48 = vadd.f32 %v8861_v4, %v5069_v13 }
0x1ab2   :  { %v5071_v23 = vpop.f32.mrf.mxu0 }
0x1ab3   :  { %5128 = vst [vmem:[#allocation12 + $0xc8] sm:$0xff] %v5070_v48 }
0x1ab4   :  { %v5074_v10 = vpop.f32.mrf.mxu0 }
0x1ab5   :  { %v5075_v14 = vadd.f32 %v8861_v4, %v5074_v10 }
0x1ab6   :  { %v5076_v2 = vpop.f32.mrf.mxu0 }
0x1ab7   :  { %5129 = vst [vmem:[#allocation12 + $0xd0] sm:$0xff] %v5075_v14 }
0x1ab8   :  { %v5079_v39 = vpop.f32.mrf.mxu0 }
0x1ab9   :  { %v5080_v8 = vadd.f32 %v8861_v4, %v5079_v39 }
0x1aba   :  { %v5081_v15 = vpop.f32.mrf.mxu0 }
0x1abb   :  { %5130 = vst [vmem:[#allocation12 + $0xd8] sm:$0xff] %v5080_v8 }
0x1abc   :  { %v5084_v28 = vpop.f32.mrf.mxu0 }
0x1abd   :  { %v5085_v29 = vadd.f32 %v8861_v4, %v5084_v28 }
0x1abe   :  { %v5086_v30 = vpop.f32.mrf.mxu0 }
0x1abf   :  { %5131 = vst [vmem:[#allocation12 + $0xe0] sm:$0xff] %v5085_v29 }
0x1ac0   :  { %v5089_v11 = vpop.f32.mrf.mxu0 }
0x1ac1   :  { %v5090_v18 = vadd.f32 %v8861_v4, %v5089_v11 }
0x1ac2   :  { %v5091_v51 = vpop.f32.mrf.mxu0 }
0x1ac3   :  { %5132 = vst [vmem:[#allocation12 + $0xe8] sm:$0xff] %v5090_v18 }
0x1ae0   :  { %v4762_v12 = vpop.f32.mrf.mxu1  ;;  %v5094_v17 = vpop.f32.mrf.mxu0 }
0x1ae1   :  { %v4767_v27 = vadd.f32 %v4762_v12, %v4630_v44  ;;  %v5095_v55 = vadd.f32 %v8861_v4, %v5094_v17 }
0x1ae2   :  { %v4764_v31 = vpop.f32.mrf.mxu1  ;;  %v5096_v32 = vpop.f32.mrf.mxu0 }
0x1ae3   :  { %5309 = vtanh.f32 %v4767_v27  ;;  %5133 = vst [vmem:[#allocation12 + $0xf0] sm:$0xff] %v5095_v55  ;;  %v4768_v36 = vadd.f32 %v4764_v31, %v4631_v45 }
0x1ae5   :  { %5311 = vtanh.f32 %v4768_v36 }
0x1af0   :  { %v5310_v9 = vpop.eup %5309 }
0x1af1   :  { %5138 = vst [vmem:[#allocation13] sm:$0xff] %v5310_v9 }
0x1af2   :  { %v5312_v46 = vpop.eup %5311 }
0x1af3   :  { %5139 = vst [vmem:[#allocation13 + $0x8] sm:$0xff] %v5312_v46  ;;  %5097 = vmatprep.mubr.f32.mxu0 %v5312_v46 }
0x1af4   :  { %5098 = vmatmul.mubr.f32.gmra.mxu0 %v5310_v9 }
0x1af5   :  { %5404 = shalt.err (!%p5401_p10)
}
0x1af6   :  { %5161 = dma.vmem_to_hbm [thread:$0]  %s5159_s24, 256, %s8913_s7, [#allocation14]  }
0x1af7   :  { %s5453_s28 = smov [#allocation12]  }
0x1af8   :  { %s5145_s29 = sshll.u32 %s5453_s28, 4  ;;  %s5146_s29 = int_to_ptr.vmem [resolvable:$true] %s5145_s29 }
0x1af9   :  { %s5413_s30 = scalar_lea.vmem %s5146_s29, 4096  ;;  %p5418_p12 = scmp.lt.s32.totalorder %s5146_s29, %s5146_s29 }
0x1afa   :  { %p5414_p11 = scmp.ne.s32.totalorder %s5146_s29, %s5413_s30  ;;  %p5419_p13 = scmp.lt.s32.totalorder %s5413_s30, %s5413_s30 }
0x1afc   :  { %p5420_p0 = por %p5419_p13, %p5418_p12 }
0x1afe   :  { %p5421_p1 = pnand %p5420_p0, %p5414_p11 }
0x1bb4   :  { %v5099_v61 = vpop.f32.mrf.mxu0 }
0x1bb5   :  { %v5100_v57 = vadd.f32 %v8861_v4, %v5099_v61 }
0x1bb6   :  { %v5101_v5 = vpop.f32.mrf.mxu0 }
0x1bb7   :  { %5134 = vst [vmem:[#allocation12 + $0xf8] sm:$0xff] %v5100_v57 }
0x1bb8   :  { %5424 = shalt.err (!%p5421_p1)
}
0x1bb9   :  { %5151 = dma.vmem_to_hbm [thread:$0]  %s5146_s29, 4096, %s8912_s6, [#allocation6], %s5449_s0, %s5449_s0, %s5450_s20  }
0x1bba   :  { %5439 = dma.done.wait [#allocation6], 4096  }
0x1bbb   :  { %5440 = vsyncadd [#allocation6], 4294963200 }
0x1bbc   :  { %5441 = dma.done.wait [#allocation14], 256  }
0x1bbd   :  { %5442 = vsyncadd [#allocation14], 4294967040 }
0x1bbe   :  { %5168 = vsyncpa [#allocation5], 1 }
0x1bbf   :  { %5169 = vsyncpa [#allocation8], 1 }
0x1bc0   :  { %5170 = vsyncpa [#allocation11], 1 }
0x1bc1   :  { %5171 = vsyncpa [#allocation6], 1 }
0x1bc2   :  { %5172 = vsyncpa [#allocation14], 1 }

</bundles_post_ra>
